<compile_context>
chip_gen: v7x
topology: tpu7x:2x2x1
jax: 0.10.0
libtpu: 0.0.40
codegen_flags: <defaults>
</compile_context>

<pallas_src>
import functools
import numpy as np
import jax
import jax.numpy as jnp
from jax.experimental import pallas as pl
from jax.experimental.pallas import tpu as pltpu


def _round_up(x, m):
    return (x + m - 1) // m * m


# ---------------------------------------------------------------------------
# Fused kernel: avg-pool + BN(batch stats) + Linear + Tanh
# ---------------------------------------------------------------------------
def fused_pool_bn_fc_tanh_kernel(x_ref, gamma_ref, beta_ref, w2_ref, b2_ref,
                                 out_ref, pooled_sc, acc_sc,
                                 *, inv_p, inv_b, eps, tb):
    cj = pl.program_id(0)          # channel-tile index (contraction for the matmul)
    i = pl.program_id(1)           # batch-tile index   (reduction axis, innermost)
    nc = pl.num_programs(0)
    nb = pl.num_programs(1)

    @pl.when(jnp.logical_and(cj == 0, i == 0))
    def _():
        acc_sc[...] = jnp.zeros_like(acc_sc)

    # ---- global average pool over the spatial axis, native (B, C, P) layout ----
    x = x_ref[...]                                      # (tb, c_tile, P) f32
    pooled = jnp.sum(x, axis=-1) * inv_p                # (tb, c_tile)  == AvgPool + view
    row = pl.multiple_of(i * tb, tb)
    pooled_sc[pl.ds(row, tb), :] = pooled               # whole batch resident in VMEM

    # ---- finalize this channel slab once the batch loop has completed ----
    @pl.when(i == nb - 1)
    def _():
        feats = pooled_sc[...]                                        # (B, c_tile)
        mean = jnp.sum(feats, axis=0, keepdims=True) * inv_b          # (1, c_tile)
        centered = feats - mean
        var = jnp.sum(centered * centered, axis=0, keepdims=True) * inv_b  # biased
        scale = gamma_ref[...] * jax.lax.rsqrt(var + eps)             # BN fold (once)
        feat_bn = centered * scale + beta_ref[...]                    # (B, c_tile)
        # Partial MXU matmul over this slice of the 2048-wide contraction dim.
        acc_sc[...] += jnp.dot(feat_bn.astype(jnp.bfloat16), w2_ref[...],
                               preferred_element_type=jnp.float32)

    @pl.when(jnp.logical_and(i == nb - 1, cj == nc - 1))
    def _():
        out_ref[...] = jnp.tanh(acc_sc[...] + b2_ref[...]).astype(out_ref.dtype)


# ---------------------------------------------------------------------------
# Wrapper
# ---------------------------------------------------------------------------
def prepare_bottleneck_params(params):
    """One-time weight prep: pad z_dim to a lane-dense multiple of 128 and cast the
    Linear weight to bf16 (MXU native).  BN params / bias stay f32."""
    w2 = params["w2"]                                   # (C, Z) f32
    b2 = params["b2"]                                   # (1, Z) f32
    C, Z = w2.shape
    Zp = _round_up(Z, 128)
    w2p = jnp.zeros((C, Zp), jnp.bfloat16).at[:, :Z].set(w2.astype(jnp.bfloat16))
    b2p = jnp.zeros((1, Zp), jnp.float32).at[:, :Z].set(b2)
    return {"gamma": params["gamma"], "beta": params["beta"],
            "w2_bf16": w2p, "b2_pad": b2p, "z_dim": Z}


def image_encoder_forward(resnet_feat_map, prepared, *, tb=8, c_tile=512, eps=1e-5):
    """resnet_feat_map: (B, C=2048, Hf, Wf) output of the ResNet-50 conv body.
    Returns (B, z_dim) f32, matching ImageEncoder.forward (training-mode BN)."""
    B, C, Hf, Wf = resnet_feat_map.shape
    P = Hf * Wf
    Z = prepared["z_dim"]
    Zp = prepared["w2_bf16"].shape[1]

    tb = min(tb, B)
    assert B % tb == 0 and (tb == B or tb % 8 == 0), (B, tb)
    c_tile = min(c_tile, C)
    assert C % c_tile == 0 and c_tile % 8 == 0, (C, c_tile)
    nb = B // tb
    nc = C // c_tile

    # Free reshape only (contiguous); NO transpose pass over HBM.
    x = resnet_feat_map.reshape(B, C, P)

    # Explicit VMEM budget (x block double-buffered; spatial dim pads to 128 lanes).
    # Defaults (tb=8, c_tile=512) keep this well under v7x's 64 MiB and v5e's 16 MiB
    # default scoped limit.
    p_pad = _round_up(P, 128)
    vmem_bytes = (2 * tb * c_tile * p_pad * 4           # x blocks
                  + 2 * c_tile * Zp * 2                 # w2 blocks (bf16)
                  + B * c_tile * 4                      # pooled scratch
                  + 2 * B * Zp * 4                      # acc scratch + resident out
                  + 4 * 8 * c_tile * 4 + 2 * 8 * Zp * 4 # gamma/beta/b2 (sublane pad)
                  + (4 << 20))                          # headroom
    vmem_bytes = int(min(max(vmem_bytes, 8 << 20), 64 << 20))

    out = pl.pallas_call(
        functools.partial(fused_pool_bn_fc_tanh_kernel,
                          inv_p=1.0 / P, inv_b=1.0 / B, eps=eps, tb=tb),
        out_shape=jax.ShapeDtypeStruct((B, Zp), jnp.float32),
        grid=(nc, nb),
        in_specs=[pl.BlockSpec((tb, c_tile, P), lambda cj, i: (i, cj, 0)),
                  pl.BlockSpec((1, c_tile), lambda cj, i: (0, cj)),
                  pl.BlockSpec((1, c_tile), lambda cj, i: (0, cj)),
                  pl.BlockSpec((c_tile, Zp), lambda cj, i: (cj, 0)),
                  pl.BlockSpec((1, Zp), lambda cj, i: (0, 0))],
        out_specs=pl.BlockSpec((B, Zp), lambda cj, i: (0, 0)),
        scratch_shapes=[pltpu.VMEM((B, c_tile), jnp.float32),   # pooled (whole batch)
                        pltpu.VMEM((B, Zp), jnp.float32)],      # matmul accumulator
        compiler_params=pltpu.CompilerParams(
            # Both axes carry resident accumulators -> "arbitrary" (single-TC).
            dimension_semantics=("arbitrary", "arbitrary"),
            vmem_limit_bytes=vmem_bytes),
    )(x, prepared["gamma"], prepared["beta"],
      prepared["w2_bf16"], prepared["b2_pad"])

    return out[:, :Z]


# ---------------------------------------------------------------------------
# Pure-JAX reference mirroring the PyTorch forward (for validation)
# ---------------------------------------------------------------------------
def image_encoder_reference(resnet_feat_map, params, *, eps=1e-5):
    B, C, Hf, Wf = resnet_feat_map.shape
    feat = jnp.mean(resnet_feat_map.reshape(B, C, Hf * Wf), axis=-1)      # (B, C)
    mean = jnp.mean(feat, axis=0, keepdims=True)
    var = jnp.mean((feat - mean) ** 2, axis=0, keepdims=True)             # biased
    feat_bn = (feat - mean) / jnp.sqrt(var + eps) * params["gamma"] + params["beta"]
    return jnp.tanh(feat_bn @ params["w2"] + params["b2"])


def make_params(key, c_dim, z_dim):
    k1, k2, k3, k4 = jax.random.split(key, 4)
    return {
        "gamma": 1.0 + 0.1 * jax.random.normal(k1, (1, c_dim), jnp.float32),
        "beta": 0.1 * jax.random.normal(k2, (1, c_dim), jnp.float32),
        "w2": 0.02 * jax.random.normal(k3, (c_dim, z_dim), jnp.float32),
        "b2": 0.02 * jax.random.normal(k4, (1, z_dim), jnp.float32),
    }


if __name__ == "__main__":
    # Small but semantics-consistent shapes: ResNet-50 final stage is (B, 2048, 7, 7);
    # the bottleneck dims are fixed by the module (2048 -> z_dim).
    B, C, Hf, Wf = 16, 2048, 7, 7
    z_dim = 32

    key = jax.random.PRNGKey(0)
    k_par, k_img = jax.random.split(key)
    params = make_params(k_par, C, z_dim)

    # Synthetic stand-in for the ResNet-50 conv-body output (post-ReLU features).
    resnet_feat_map = jax.nn.relu(
        jax.random.normal(k_img, (B, C, Hf, Wf), jnp.float32))

    prepared = prepare_bottleneck_params(params)
    # tb=8, c_tile=512 -> grid=(4, 2): exercises both the batch-stat reduction and
    # the channel-slab matmul accumulation.
    out = image_encoder_forward(resnet_feat_map, prepared, tb=8, c_tile=512)
    out = jax.block_until_ready(out)

    ref = jax.block_until_ready(image_encoder_reference(resnet_feat_map, params))
    assert out.shape == (B, z_dim), out.shape
    assert np.allclose(np.asarray(out), np.asarray(ref), rtol=2e-2, atol=2e-2), (
        "kernel output mismatch vs reference")

    print("KERNEL_OK")
</pallas_src>

<mosaic_0001>
module attributes {stable_mosaic.version = 11 : i64} {
  func.func @fused_pool_bn_fc_tanh_kernel(%arg0: i32, %arg1: i32, %arg2: memref<8x512x49xf32, #tpu.memory_space<vmem>>, %arg3: memref<1x512xf32, #tpu.memory_space<vmem>>, %arg4: memref<1x512xf32, #tpu.memory_space<vmem>>, %arg5: memref<512x128xbf16, #tpu.memory_space<vmem>>, %arg6: memref<1x128xf32, #tpu.memory_space<vmem>>, %arg7: memref<16x128xf32, #tpu.memory_space<vmem>>, %arg8: memref<16x512xf32, #tpu.memory_space<vmem>>, %arg9: memref<16x128xf32, #tpu.memory_space<vmem>>) attributes {dimension_semantics = [#tpu.dimension_semantics<arbitrary>, #tpu.dimension_semantics<arbitrary>], iteration_bounds = array<i64: 4, 2>, scalar_prefetch = 0 : i64, scratch_operands = 2 : i64, tpu.core_type = #tpu.core_type<tc>, window_params = [{transform_indices = @transform_0, window_bounds = array<i64: 8, 512, 49>}, {transform_indices = @transform_1, window_bounds = array<i64: 1, 512>}, {transform_indices = @transform_2, window_bounds = array<i64: 1, 512>}, {transform_indices = @transform_3, window_bounds = array<i64: 512, 128>}, {pipeline_mode = #tpu.pipeline_mode<synchronous>, transform_indices = @transform_4, window_bounds = array<i64: 1, 128>}, {pipeline_mode = #tpu.pipeline_mode<synchronous>, transform_indices = @transform_5, window_bounds = array<i64: 16, 128>}]} {
    %c0_i32 = arith.constant 0 : i32
    %0 = arith.cmpi eq, %arg0, %c0_i32 : i32
    %c0_i32_0 = arith.constant 0 : i32
    %1 = arith.cmpi eq, %arg1, %c0_i32_0 : i32
    %2 = arith.andi %0, %1 : i1
    %3 = arith.extui %2 : i1 to i32
    %c0_i32_1 = arith.constant 0 : i32
    %4 = arith.cmpi ne, %3, %c0_i32_1 : i32
    scf.if %4 {
      %cst_9 = arith.constant 0.000000e+00 : f32
      %21 = vector.broadcast %cst_9 : f32 to vector<16x128xf32>
      %c0_10 = arith.constant 0 : index
      %c0_11 = arith.constant 0 : index
      %22 = vector.load %arg9[%c0_10, %c0_11] : memref<16x128xf32, #tpu.memory_space<vmem>>, vector<16x128xf32>
      tpu.vector_store %arg9[%c0_10, %c0_11], %21 {strides = array<i32>} : memref<16x128xf32, #tpu.memory_space<vmem>>, vector<16x128xf32>,
    } else {
    }
    %c0 = arith.constant 0 : index
    %c0_2 = arith.constant 0 : index
    %c0_3 = arith.constant 0 : index
    %5 = vector.load %arg2[%c0, %c0_2, %c0_3] : memref<8x512x49xf32, #tpu.memory_space<vmem>>, vector<8x512x49xf32>
    %cst = arith.constant dense<0.000000e+00> : vector<8x512xf32>
    %6 = vector.multi_reduction <add>, %5, %cst [2] : vector<8x512x49xf32> to vector<8x512xf32>
    %cst_4 = arith.constant 0.0204081628 : f32
    %7 = vector.broadcast %cst_4 : f32 to vector<8x512xf32>
    %8 = arith.mulf %6, %7 : vector<8x512xf32>
    %c8_i32 = arith.constant 8 : i32
    %9 = arith.muli %arg1, %c8_i32 : i32
    %10 = tpu.assume_multiple %9, 8 : i32
    %11 = arith.index_cast %10 : i32 to index
    %c0_5 = arith.constant 0 : index
    %12 = vector.load %arg8[%11, %c0_5] : memref<16x512xf32, #tpu.memory_space<vmem>>, vector<8x512xf32>
    tpu.vector_store %arg8[%11, %c0_5], %8 {strides = array<i32>} : memref<16x512xf32, #tpu.memory_space<vmem>>, vector<8x512xf32>,
    %c1_i32 = arith.constant 1 : i32
    %13 = arith.cmpi eq, %arg1, %c1_i32 : i32
    %14 = arith.extui %13 : i1 to i32
    %c0_i32_6 = arith.constant 0 : i32
    %15 = arith.cmpi ne, %14, %c0_i32_6 : i32
    scf.if %15 {
      %c0_9 = arith.constant 0 : index
      %c0_10 = arith.constant 0 : index
      %21 = vector.load %arg8[%c0_9, %c0_10] : memref<16x512xf32, #tpu.memory_space<vmem>>, vector<16x512xf32>
      %cst_11 = arith.constant dense<0.000000e+00> : vector<512xf32>
      %22 = vector.multi_reduction <add>, %21, %cst_11 [0] : vector<16x512xf32> to vector<512xf32>
      %23 = vector.shape_cast %22 : vector<512xf32> to vector<1x512xf32>
      %cst_12 = arith.constant 6.250000e-02 : f32
      %24 = vector.broadcast %cst_12 : f32 to vector<1x512xf32>
      %25 = arith.mulf %23, %24 : vector<1x512xf32>
      %26 = vector.broadcast %25 : vector<1x512xf32> to vector<16x512xf32>
      %27 = arith.subf %21, %26 : vector<16x512xf32>
      %28 = arith.mulf %27, %27 : vector<16x512xf32>
      %cst_13 = arith.constant dense<0.000000e+00> : vector<512xf32>
      %29 = vector.multi_reduction <add>, %28, %cst_13 [0] : vector<16x512xf32> to vector<512xf32>
      %30 = vector.shape_cast %29 : vector<512xf32> to vector<1x512xf32>
      %cst_14 = arith.constant 6.250000e-02 : f32
      %31 = vector.broadcast %cst_14 : f32 to vector<1x512xf32>
      %32 = arith.mulf %30, %31 : vector<1x512xf32>
      %c0_15 = arith.constant 0 : index
      %c0_16 = arith.constant 0 : index
      %33 = vector.load %arg3[%c0_15, %c0_16] : memref<1x512xf32, #tpu.memory_space<vmem>>, vector<1x512xf32>
      %cst_17 = arith.constant 9.99999974E-6 : f32
      %34 = vector.broadcast %cst_17 : f32 to vector<1x512xf32>
      %35 = arith.addf %32, %34 : vector<1x512xf32>
      %36 = math.rsqrt %35 : vector<1x512xf32>
      %37 = arith.mulf %33, %36 : vector<1x512xf32>
      %38 = vector.broadcast %37 : vector<1x512xf32> to vector<16x512xf32>
      %39 = arith.mulf %27, %38 : vector<16x512xf32>
      %c0_18 = arith.constant 0 : index
      %c0_19 = arith.constant 0 : index
      %40 = vector.load %arg4[%c0_18, %c0_19] : memref<1x512xf32, #tpu.memory_space<vmem>>, vector<1x512xf32>
      %41 = vector.broadcast %40 : vector<1x512xf32> to vector<16x512xf32>
      %42 = arith.addf %39, %41 : vector<16x512xf32>
      %c0_20 = arith.constant 0 : index
      %c0_21 = arith.constant 0 : index
      %43 = vector.load %arg9[%c0_20, %c0_21] : memref<16x128xf32, #tpu.memory_space<vmem>>, vector<16x128xf32>
      %44 = arith.truncf %42 : vector<16x512xf32> to vector<16x512xbf16>
      %c0_22 = arith.constant 0 : index
      %c0_23 = arith.constant 0 : index
      %45 = vector.load %arg5[%c0_22, %c0_23] : memref<512x128xbf16, #tpu.memory_space<vmem>>, vector<512x128xbf16>
      %cst_24 = arith.constant dense<0.000000e+00> : vector<16x128xf32>
      %46 = tpu.matmul %44, %45, %cst_24 {dimension_numbers = #tpu.dot_dimension_numbers<[1], [0], [0], [1], [0, 0, 1, 1], [], []>} : vector<16x512xbf16>, vector<512x128xbf16>, vector<16x128xf32> -> vector<16x128xf32>
      %47 = arith.addf %43, %46 : vector<16x128xf32>
      %c0_25 = arith.constant 0 : index
      %c0_26 = arith.constant 0 : index
      %48 = vector.load %arg9[%c0_25, %c0_26] : memref<16x128xf32, #tpu.memory_space<vmem>>, vector<16x128xf32>
      tpu.vector_store %arg9[%c0_25, %c0_26], %47 {strides = array<i32>} : memref<16x128xf32, #tpu.memory_space<vmem>>, vector<16x128xf32>,
    } else {
    }
    %c1_i32_7 = arith.constant 1 : i32
    %16 = arith.cmpi eq, %arg1, %c1_i32_7 : i32
    %c3_i32 = arith.constant 3 : i32
    %17 = arith.cmpi eq, %arg0, %c3_i32 : i32
    %18 = arith.andi %16, %17 : i1
    %19 = arith.extui %18 : i1 to i32
    %c0_i32_8 = arith.constant 0 : i32
    %20 = arith.cmpi ne, %19, %c0_i32_8 : i32
    scf.if %20 {
      %c0_9 = arith.constant 0 : index
      %c0_10 = arith.constant 0 : index
      %21 = vector.load %arg9[%c0_9, %c0_10] : memref<16x128xf32, #tpu.memory_space<vmem>>, vector<16x128xf32>
      %c0_11 = arith.constant 0 : index
      %c0_12 = arith.constant 0 : index
      %22 = vector.load %arg6[%c0_11, %c0_12] : memref<1x128xf32, #tpu.memory_space<vmem>>, vector<1x128xf32>
      %23 = vector.broadcast %22 : vector<1x128xf32> to vector<16x128xf32>
      %24 = arith.addf %21, %23 : vector<16x128xf32>
      %25 = math.tanh %24 : vector<16x128xf32>
      %c0_13 = arith.constant 0 : index
      %c0_14 = arith.constant 0 : index
      %26 = vector.load %arg7[%c0_13, %c0_14] : memref<16x128xf32, #tpu.memory_space<vmem>>, vector<16x128xf32>
      tpu.vector_store %arg7[%c0_13, %c0_14], %25 {strides = array<i32>} : memref<16x128xf32, #tpu.memory_space<vmem>>, vector<16x128xf32>,
    } else {
    }
    return
  }
  func.func @transform_0(%arg0: i32, %arg1: i32) -> (i32, i32, i32) {
    %c0_i32 = arith.constant 0 : i32
    %c0_i32_0 = arith.constant 0 : i32
    return %arg1, %arg0, %c0_i32 : i32, i32, i32
  }
  func.func @transform_1(%arg0: i32, %arg1: i32) -> (i32, i32) {
    %c0_i32 = arith.constant 0 : i32
    %c0_i32_0 = arith.constant 0 : i32
    return %c0_i32, %arg0 : i32, i32
  }
  func.func @transform_2(%arg0: i32, %arg1: i32) -> (i32, i32) {
    %c0_i32 = arith.constant 0 : i32
    %c0_i32_0 = arith.constant 0 : i32
    return %c0_i32, %arg0 : i32, i32
  }
  func.func @transform_3(%arg0: i32, %arg1: i32) -> (i32, i32) {
    %c0_i32 = arith.constant 0 : i32
    %c0_i32_0 = arith.constant 0 : i32
    return %arg0, %c0_i32 : i32, i32
  }
  func.func @transform_4(%arg0: i32, %arg1: i32) -> (i32, i32) {
    %c0_i32 = arith.constant 0 : i32
    %c0_i32_0 = arith.constant 0 : i32
    %c0_i32_1 = arith.constant 0 : i32
    return %c0_i32, %c0_i32_0 : i32, i32
  }
  func.func @transform_5(%arg0: i32, %arg1: i32) -> (i32, i32) {
    %c0_i32 = arith.constant 0 : i32
    %c0_i32_0 = arith.constant 0 : i32
    %c0_i32_1 = arith.constant 0 : i32
    return %c0_i32, %c0_i32_0 : i32, i32
  }
}

</mosaic_0001>

<bundles_post_ra>
// kernel: tpu_custom_call.1
= control target key start
LH: loop header
LB: loop body
LE: loop exit
PB: predicated region body
PF: predicated region fallthrough
CT: control target
= control target key end

     0   :  { %10 = vsyncpa [#allocation6], 0  ;;  %s11148_s18 = smov 0   ;;  %s11150_s19 = smov 0   ;;  %s14626_s0 = inlined_call_operand.vmem [shape: f32[16,2048,49], index: 0, kind: input, shape index: {}]   ;;  %s14627_s1 = inlined_call_operand.vmem [shape: f32[1,2048], index: 1, kind: input, shape index: {}]   ;;  %s14628_s2 = inlined_call_operand.vmem [shape: f32[1,2048], index: 2, kind: input, shape index: {}]   ;;  %s14629_s3 = inlined_call_operand.vmem [shape: bf16[2048,128], index: 3, kind: input, shape index: {}]   ;;  %s14630_s4 = inlined_call_operand.vmem [shape: f32[1,128], index: 4, kind: input, shape index: {}]   ;;  %s14631_s5 = inlined_call_operand.hbm [shape: f32[16,128], index: 5, kind: output, shape index: {}]  }
   0x1   :  { %s11152_s20 = smov 0   ;;  %s11154_s21 = smov 0  }
   0x2   :  { %s11156_s22 = smov 0   ;;  %s11158_s23 = smov 0  }
   0x3   :  { %s11160_s24 = smov 0  }
   0x4 LB: > { %s10815_s25 = sadd.s32 4294967295, %s11111_s24   ;;  %s25_s26 = sadd.s32 1, %s11103_s22  ;;  %s11111_s24 = sphi %s11160_s24, %s16_s24   ;;  %s11107_s23 = sphi %s11158_s23, %s14687_s23   ;;  %s11103_s22 = sphi %s11156_s22, %s14686_s22   ;;  %s11099_s21 = sphi %s11154_s21, %s14685_s21   ;;  %s11095_s20 = sphi %s11152_s20, %s14684_s20   ;;  %s11091_s19 = sphi %s11150_s19, %s14683_s19   ;;  %s11087_s18 = sphi %s11148_s18, %s14682_s18  }
   0x5   : > { %p26_p0 = scmp.ge.s32.totalorder %s25_s26, 2  ;;  %s28_s27 = sadd.s32 1, %s11107_s23 }
   0x6   : > { %p44_p1 = scmp.ne.s32.totalorder %s11091_s19, %s11087_s18  ;;  %p45_p2 = scmp.eq.s32.totalorder %s11111_s24, 0 }
   0x7   : > { %s14689_s26 = smov (%p26_p0, %s25_s26), 0  ;;  %s14691_s27 = smov (!%p26_p0, %s28_s27), %s11107_s23 }
   0x8   : > { %p30_p3 = scmp.ge.s32.totalorder %s14691_s27, 4  ;;  %s32_s28 = ssub.s32 %s11103_s22, %s14689_s26 }
   0x9   : > { %p46_p4 = por %p45_p2, %p44_p1  ;;  %s37_s6 = sadd.s32 1, %s11091_s19 }
   0xa   : > { %s14693_s27 = smov (%p30_p3, %s14691_s27), 0  ;;  %p10817_p6 = scmp.ge.s32.totalorder %s11111_s24, 8 }
   0xb   : > { %s33_s29 = ssub.s32 %s11107_s23, %s14693_s27 }
   0xc   : > { %s34_s30 = sor.u32 %s33_s29, %s32_s28  ;;  %193 = sbr.rel (%p10817_p6) target bundleno = 282 (0x11a), region = 20 }
   0xd   : > { %p35_p5 = scmp.eq.s32.totalorder %s34_s30, 0 }
   0xf   : > { %s11200_s7 = scalar_select %p35_p5, %s11091_s19, %s37_s6  }
  0x13   : > { %196 = sbr.rel (!%p46_p4) target bundleno = 282 (0x11a), region = 24  ;;  %s198_s8 = sand.u32 (%p46_p4), 1, %s11091_s19  }
  0x14   : > { %s10820_s9 = sshll.u32 (%p46_p4), %s11107_s23, 6  ;;  %s10818_s10 = sshll.u32 (%p46_p4), %s198_s8, 12 }
  0x15   : > { %s10870_s11 = sshll.u32 (%p46_p4), %s11103_s22, 11  ;;  %s11214_s17 = scalar_lea.vmem (%p46_p4), [#allocation4], %s10818_s10 }
  0x16   : > { %s204_s12 = sadd.s32 (%p46_p4), %s10870_s11, %s10820_s9 }
  0x17   : > { %s10822_s13 = sshll.u32 (%p46_p4), %s204_s12, 3 }
  0x18   : > { %s11209_s16 = scalar_lea.vmem (%p46_p4), %s14626_s0, %s10822_s13 }
  0x19   : > { %v1259_v0 = vld [vmem:[%s11209_s16] sm:$0xff] (%p46_p4)  ;;  %v1261_v1 = vld [vmem:[%s11209_s16 + $0x8] sm:$0xff] (%p46_p4)  ;;  %v1263_v2 = vld [vmem:[%s11209_s16 + $0x10] sm:$0xff] (%p46_p4) }
  0x1a   : > { %1260 = vst [vmem:[%s11214_s17] sm:$0xff] %v1259_v0  ;;  %1262 = vst [vmem:[%s11214_s17 + $0x8] sm:$0xff] %v1261_v1  ;;  %v1265_v3 = vld [vmem:[%s11209_s16 + $0x18] sm:$0xff]  ;;  %v1267_v4 = vld [vmem:[%s11209_s16 + $0x20] sm:$0xff] }
  0x1b   : > { %1264 = vst [vmem:[%s11214_s17 + $0x10] sm:$0xff] %v1263_v2  ;;  %v1269_v5 = vld [vmem:[%s11209_s16 + $0x28] sm:$0xff]  ;;  %1266 = vst [vmem:[%s11214_s17 + $0x18] sm:$0xff] %v1265_v3  ;;  %v1271_v6 = vld [vmem:[%s11209_s16 + $0x30] sm:$0xff] }
  0x1c   : > { %1268 = vst [vmem:[%s11214_s17 + $0x20] sm:$0xff] %v1267_v4  ;;  %1270 = vst [vmem:[%s11214_s17 + $0x28] sm:$0xff] %v1269_v5  ;;  %v1273_v7 = vld [vmem:[%s11209_s16 + $0x38] sm:$0xff]  ;;  %v1275_v8 = vld [vmem:[%s11209_s16 + $0x40] sm:$0xff] }
  0x1d   : > { %1272 = vst [vmem:[%s11214_s17 + $0x30] sm:$0xff] %v1271_v6  ;;  %1274 = vst [vmem:[%s11214_s17 + $0x38] sm:$0xff] %v1273_v7  ;;  %v1277_v9 = vld [vmem:[%s11209_s16 + $0x48] sm:$0xff]  ;;  %v1279_v10 = vld [vmem:[%s11209_s16 + $0x50] sm:$0xff] }
  0x1e   : > { %1276 = vst [vmem:[%s11214_s17 + $0x40] sm:$0xff] %v1275_v8  ;;  %v1281_v11 = vld [vmem:[%s11209_s16 + $0x58] sm:$0xff]  ;;  %1278 = vst [vmem:[%s11214_s17 + $0x48] sm:$0xff] %v1277_v9  ;;  %v1283_v12 = vld [vmem:[%s11209_s16 + $0x60] sm:$0xff] }
  0x1f   : > { %1280 = vst [vmem:[%s11214_s17 + $0x50] sm:$0xff] %v1279_v10  ;;  %1282 = vst [vmem:[%s11214_s17 + $0x58] sm:$0xff] %v1281_v11  ;;  %v1285_v13 = vld [vmem:[%s11209_s16 + $0x68] sm:$0xff]  ;;  %v1287_v14 = vld [vmem:[%s11209_s16 + $0x70] sm:$0xff] }
  0x20   : > { %1284 = vst [vmem:[%s11214_s17 + $0x60] sm:$0xff] %v1283_v12  ;;  %1286 = vst [vmem:[%s11214_s17 + $0x68] sm:$0xff] %v1285_v13  ;;  %v1289_v15 = vld [vmem:[%s11209_s16 + $0x78] sm:$0xff]  ;;  %v1291_v16 = vld [vmem:[%s11209_s16 + $0x80] sm:$0xff] }
  0x21   : > { %1288 = vst [vmem:[%s11214_s17 + $0x70] sm:$0xff] %v1287_v14  ;;  %v1293_v17 = vld [vmem:[%s11209_s16 + $0x88] sm:$0xff]  ;;  %1290 = vst [vmem:[%s11214_s17 + $0x78] sm:$0xff] %v1289_v15  ;;  %v1295_v18 = vld [vmem:[%s11209_s16 + $0x90] sm:$0xff] }
  0x22   : > { %1292 = vst [vmem:[%s11214_s17 + $0x80] sm:$0xff] %v1291_v16  ;;  %1294 = vst [vmem:[%s11214_s17 + $0x88] sm:$0xff] %v1293_v17  ;;  %v1297_v19 = vld [vmem:[%s11209_s16 + $0x98] sm:$0xff]  ;;  %v1299_v20 = vld [vmem:[%s11209_s16 + $0xa0] sm:$0xff] }
  0x23   : > { %1296 = vst [vmem:[%s11214_s17 + $0x90] sm:$0xff] %v1295_v18  ;;  %1298 = vst [vmem:[%s11214_s17 + $0x98] sm:$0xff] %v1297_v19  ;;  %v1301_v21 = vld [vmem:[%s11209_s16 + $0xa8] sm:$0xff]  ;;  %v1303_v22 = vld [vmem:[%s11209_s16 + $0xb0] sm:$0xff] }
  0x24   : > { %1300 = vst [vmem:[%s11214_s17 + $0xa0] sm:$0xff] %v1299_v20  ;;  %v1305_v23 = vld [vmem:[%s11209_s16 + $0xb8] sm:$0xff]  ;;  %1302 = vst [vmem:[%s11214_s17 + $0xa8] sm:$0xff] %v1301_v21  ;;  %v1307_v24 = vld [vmem:[%s11209_s16 + $0xc0] sm:$0xff] }
  0x25   : > { %1304 = vst [vmem:[%s11214_s17 + $0xb0] sm:$0xff] %v1303_v22  ;;  %1306 = vst [vmem:[%s11214_s17 + $0xb8] sm:$0xff] %v1305_v23  ;;  %v1309_v25 = vld [vmem:[%s11209_s16 + $0xc8] sm:$0xff]  ;;  %v1311_v26 = vld [vmem:[%s11209_s16 + $0xd0] sm:$0xff] }
  0x26   : > { %1308 = vst [vmem:[%s11214_s17 + $0xc0] sm:$0xff] %v1307_v24  ;;  %1310 = vst [vmem:[%s11214_s17 + $0xc8] sm:$0xff] %v1309_v25  ;;  %v1313_v27 = vld [vmem:[%s11209_s16 + $0xd8] sm:$0xff]  ;;  %v1315_v28 = vld [vmem:[%s11209_s16 + $0xe0] sm:$0xff] }
  0x27   : > { %1312 = vst [vmem:[%s11214_s17 + $0xd0] sm:$0xff] %v1311_v26  ;;  %v1317_v29 = vld [vmem:[%s11209_s16 + $0xe8] sm:$0xff]  ;;  %1314 = vst [vmem:[%s11214_s17 + $0xd8] sm:$0xff] %v1313_v27  ;;  %v1319_v30 = vld [vmem:[%s11209_s16 + $0xf0] sm:$0xff] }
  0x28   : > { %1316 = vst [vmem:[%s11214_s17 + $0xe0] sm:$0xff] %v1315_v28  ;;  %1318 = vst [vmem:[%s11214_s17 + $0xe8] sm:$0xff] %v1317_v29  ;;  %v1321_v31 = vld [vmem:[%s11209_s16 + $0xf8] sm:$0xff]  ;;  %v1323_v32 = vld [vmem:[%s11209_s16 + $0x100] sm:$0xff] }
  0x29   : > { %1320 = vst [vmem:[%s11214_s17 + $0xf0] sm:$0xff] %v1319_v30  ;;  %1322 = vst [vmem:[%s11214_s17 + $0xf8] sm:$0xff] %v1321_v31  ;;  %v1325_v33 = vld [vmem:[%s11209_s16 + $0x108] sm:$0xff]  ;;  %v1327_v34 = vld [vmem:[%s11209_s16 + $0x110] sm:$0xff] }
  0x2a   : > { %1324 = vst [vmem:[%s11214_s17 + $0x100] sm:$0xff] %v1323_v32  ;;  %v1329_v35 = vld [vmem:[%s11209_s16 + $0x118] sm:$0xff]  ;;  %1326 = vst [vmem:[%s11214_s17 + $0x108] sm:$0xff] %v1325_v33  ;;  %v1331_v36 = vld [vmem:[%s11209_s16 + $0x120] sm:$0xff] }
  0x2b   : > { %1328 = vst [vmem:[%s11214_s17 + $0x110] sm:$0xff] %v1327_v34  ;;  %1330 = vst [vmem:[%s11214_s17 + $0x118] sm:$0xff] %v1329_v35  ;;  %v1333_v37 = vld [vmem:[%s11209_s16 + $0x128] sm:$0xff]  ;;  %v1335_v38 = vld [vmem:[%s11209_s16 + $0x130] sm:$0xff] }
  0x2c   : > { %1332 = vst [vmem:[%s11214_s17 + $0x120] sm:$0xff] %v1331_v36  ;;  %1334 = vst [vmem:[%s11214_s17 + $0x128] sm:$0xff] %v1333_v37  ;;  %v1337_v39 = vld [vmem:[%s11209_s16 + $0x138] sm:$0xff]  ;;  %v1339_v40 = vld [vmem:[%s11209_s16 + $0x140] sm:$0xff] }
  0x2d   : > { %1336 = vst [vmem:[%s11214_s17 + $0x130] sm:$0xff] %v1335_v38  ;;  %v1341_v41 = vld [vmem:[%s11209_s16 + $0x148] sm:$0xff]  ;;  %1338 = vst [vmem:[%s11214_s17 + $0x138] sm:$0xff] %v1337_v39  ;;  %v1343_v42 = vld [vmem:[%s11209_s16 + $0x150] sm:$0xff] }
  0x2e   : > { %1340 = vst [vmem:[%s11214_s17 + $0x140] sm:$0xff] %v1339_v40  ;;  %1342 = vst [vmem:[%s11214_s17 + $0x148] sm:$0xff] %v1341_v41  ;;  %v1345_v43 = vld [vmem:[%s11209_s16 + $0x158] sm:$0xff]  ;;  %v1347_v44 = vld [vmem:[%s11209_s16 + $0x160] sm:$0xff] }
  0x2f   : > { %1344 = vst [vmem:[%s11214_s17 + $0x150] sm:$0xff] %v1343_v42  ;;  %1346 = vst [vmem:[%s11214_s17 + $0x158] sm:$0xff] %v1345_v43  ;;  %v1349_v45 = vld [vmem:[%s11209_s16 + $0x168] sm:$0xff]  ;;  %v1351_v46 = vld [vmem:[%s11209_s16 + $0x170] sm:$0xff] }
  0x30   : > { %1348 = vst [vmem:[%s11214_s17 + $0x160] sm:$0xff] %v1347_v44  ;;  %v1353_v47 = vld [vmem:[%s11209_s16 + $0x178] sm:$0xff]  ;;  %1350 = vst [vmem:[%s11214_s17 + $0x168] sm:$0xff] %v1349_v45  ;;  %v1355_v48 = vld [vmem:[%s11209_s16 + $0x180] sm:$0xff] }
  0x31   : > { %1352 = vst [vmem:[%s11214_s17 + $0x170] sm:$0xff] %v1351_v46  ;;  %1354 = vst [vmem:[%s11214_s17 + $0x178] sm:$0xff] %v1353_v47  ;;  %v1357_v49 = vld [vmem:[%s11209_s16 + $0x188] sm:$0xff]  ;;  %v1359_v50 = vld [vmem:[%s11209_s16 + $0x190] sm:$0xff] }
  0x32   : > { %1356 = vst [vmem:[%s11214_s17 + $0x180] sm:$0xff] %v1355_v48  ;;  %1358 = vst [vmem:[%s11214_s17 + $0x188] sm:$0xff] %v1357_v49  ;;  %v1361_v51 = vld [vmem:[%s11209_s16 + $0x198] sm:$0xff]  ;;  %v1363_v52 = vld [vmem:[%s11209_s16 + $0x1a0] sm:$0xff] }
  0x33   : > { %1360 = vst [vmem:[%s11214_s17 + $0x190] sm:$0xff] %v1359_v50  ;;  %v1365_v53 = vld [vmem:[%s11209_s16 + $0x1a8] sm:$0xff]  ;;  %1362 = vst [vmem:[%s11214_s17 + $0x198] sm:$0xff] %v1361_v51  ;;  %v1367_v54 = vld [vmem:[%s11209_s16 + $0x1b0] sm:$0xff] }
  0x34   : > { %1364 = vst [vmem:[%s11214_s17 + $0x1a0] sm:$0xff] %v1363_v52  ;;  %1366 = vst [vmem:[%s11214_s17 + $0x1a8] sm:$0xff] %v1365_v53  ;;  %v1369_v55 = vld [vmem:[%s11209_s16 + $0x1b8] sm:$0xff]  ;;  %v1371_v56 = vld [vmem:[%s11209_s16 + $0x1c0] sm:$0xff] }
  0x35   : > { %1368 = vst [vmem:[%s11214_s17 + $0x1b0] sm:$0xff] %v1367_v54  ;;  %1370 = vst [vmem:[%s11214_s17 + $0x1b8] sm:$0xff] %v1369_v55  ;;  %v1373_v57 = vld [vmem:[%s11209_s16 + $0x1c8] sm:$0xff]  ;;  %v1375_v58 = vld [vmem:[%s11209_s16 + $0x1d0] sm:$0xff] }
  0x36   : > { %1372 = vst [vmem:[%s11214_s17 + $0x1c0] sm:$0xff] %v1371_v56  ;;  %v1377_v59 = vld [vmem:[%s11209_s16 + $0x1d8] sm:$0xff]  ;;  %1374 = vst [vmem:[%s11214_s17 + $0x1c8] sm:$0xff] %v1373_v57  ;;  %v1379_v60 = vld [vmem:[%s11209_s16 + $0x1e0] sm:$0xff] }
  0x37   : > { %1376 = vst [vmem:[%s11214_s17 + $0x1d0] sm:$0xff] %v1375_v58  ;;  %1378 = vst [vmem:[%s11214_s17 + $0x1d8] sm:$0xff] %v1377_v59  ;;  %v1381_v61 = vld [vmem:[%s11209_s16 + $0x1e8] sm:$0xff]  ;;  %v1383_v62 = vld [vmem:[%s11209_s16 + $0x1f0] sm:$0xff] }
  0x38   : > { %1380 = vst [vmem:[%s11214_s17 + $0x1e0] sm:$0xff] %v1379_v60  ;;  %1382 = vst [vmem:[%s11214_s17 + $0x1e8] sm:$0xff] %v1381_v61  ;;  %v1385_v63 = vld [vmem:[%s11209_s16 + $0x1f8] sm:$0xff]  ;;  %v1387_v0 = vld [vmem:[%s11209_s16 + $0x800] sm:$0xff] }
  0x39   : > { %1384 = vst [vmem:[%s11214_s17 + $0x1f0] sm:$0xff] %v1383_v62  ;;  %v1389_v1 = vld [vmem:[%s11209_s16 + $0x808] sm:$0xff]  ;;  %1386 = vst [vmem:[%s11214_s17 + $0x1f8] sm:$0xff] %v1385_v63  ;;  %v1391_v2 = vld [vmem:[%s11209_s16 + $0x810] sm:$0xff] }
  0x3a   : > { %1388 = vst [vmem:[%s11214_s17 + $0x200] sm:$0xff] %v1387_v0  ;;  %1390 = vst [vmem:[%s11214_s17 + $0x208] sm:$0xff] %v1389_v1  ;;  %v1393_v3 = vld [vmem:[%s11209_s16 + $0x818] sm:$0xff]  ;;  %v1395_v4 = vld [vmem:[%s11209_s16 + $0x820] sm:$0xff] }
  0x3b   : > { %1392 = vst [vmem:[%s11214_s17 + $0x210] sm:$0xff] %v1391_v2  ;;  %1394 = vst [vmem:[%s11214_s17 + $0x218] sm:$0xff] %v1393_v3  ;;  %v1397_v5 = vld [vmem:[%s11209_s16 + $0x828] sm:$0xff]  ;;  %v1399_v6 = vld [vmem:[%s11209_s16 + $0x830] sm:$0xff] }
  0x3c   : > { %1396 = vst [vmem:[%s11214_s17 + $0x220] sm:$0xff] %v1395_v4  ;;  %v1401_v7 = vld [vmem:[%s11209_s16 + $0x838] sm:$0xff]  ;;  %1398 = vst [vmem:[%s11214_s17 + $0x228] sm:$0xff] %v1397_v5  ;;  %v1403_v8 = vld [vmem:[%s11209_s16 + $0x840] sm:$0xff] }
  0x3d   : > { %1400 = vst [vmem:[%s11214_s17 + $0x230] sm:$0xff] %v1399_v6  ;;  %1402 = vst [vmem:[%s11214_s17 + $0x238] sm:$0xff] %v1401_v7  ;;  %v1405_v9 = vld [vmem:[%s11209_s16 + $0x848] sm:$0xff]  ;;  %v1407_v10 = vld [vmem:[%s11209_s16 + $0x850] sm:$0xff] }
  0x3e   : > { %1404 = vst [vmem:[%s11214_s17 + $0x240] sm:$0xff] %v1403_v8  ;;  %1406 = vst [vmem:[%s11214_s17 + $0x248] sm:$0xff] %v1405_v9  ;;  %v1409_v11 = vld [vmem:[%s11209_s16 + $0x858] sm:$0xff]  ;;  %v1411_v12 = vld [vmem:[%s11209_s16 + $0x860] sm:$0xff] }
  0x3f   : > { %1408 = vst [vmem:[%s11214_s17 + $0x250] sm:$0xff] %v1407_v10  ;;  %v1413_v13 = vld [vmem:[%s11209_s16 + $0x868] sm:$0xff]  ;;  %1410 = vst [vmem:[%s11214_s17 + $0x258] sm:$0xff] %v1409_v11  ;;  %v1415_v14 = vld [vmem:[%s11209_s16 + $0x870] sm:$0xff] }
  0x40   : > { %1412 = vst [vmem:[%s11214_s17 + $0x260] sm:$0xff] %v1411_v12  ;;  %1414 = vst [vmem:[%s11214_s17 + $0x268] sm:$0xff] %v1413_v13  ;;  %v1417_v15 = vld [vmem:[%s11209_s16 + $0x878] sm:$0xff]  ;;  %v1419_v16 = vld [vmem:[%s11209_s16 + $0x880] sm:$0xff] }
  0x41   : > { %1416 = vst [vmem:[%s11214_s17 + $0x270] sm:$0xff] %v1415_v14  ;;  %1418 = vst [vmem:[%s11214_s17 + $0x278] sm:$0xff] %v1417_v15  ;;  %v1421_v17 = vld [vmem:[%s11209_s16 + $0x888] sm:$0xff]  ;;  %v1423_v18 = vld [vmem:[%s11209_s16 + $0x890] sm:$0xff] }
  0x42   : > { %1420 = vst [vmem:[%s11214_s17 + $0x280] sm:$0xff] %v1419_v16  ;;  %v1425_v19 = vld [vmem:[%s11209_s16 + $0x898] sm:$0xff]  ;;  %1422 = vst [vmem:[%s11214_s17 + $0x288] sm:$0xff] %v1421_v17  ;;  %v1427_v20 = vld [vmem:[%s11209_s16 + $0x8a0] sm:$0xff] }
  0x43   : > { %1424 = vst [vmem:[%s11214_s17 + $0x290] sm:$0xff] %v1423_v18  ;;  %1426 = vst [vmem:[%s11214_s17 + $0x298] sm:$0xff] %v1425_v19  ;;  %v1429_v21 = vld [vmem:[%s11209_s16 + $0x8a8] sm:$0xff]  ;;  %v1431_v22 = vld [vmem:[%s11209_s16 + $0x8b0] sm:$0xff] }
  0x44   : > { %1428 = vst [vmem:[%s11214_s17 + $0x2a0] sm:$0xff] %v1427_v20  ;;  %1430 = vst [vmem:[%s11214_s17 + $0x2a8] sm:$0xff] %v1429_v21  ;;  %v1433_v23 = vld [vmem:[%s11209_s16 + $0x8b8] sm:$0xff]  ;;  %v1435_v24 = vld [vmem:[%s11209_s16 + $0x8c0] sm:$0xff] }
  0x45   : > { %1432 = vst [vmem:[%s11214_s17 + $0x2b0] sm:$0xff] %v1431_v22  ;;  %v1437_v25 = vld [vmem:[%s11209_s16 + $0x8c8] sm:$0xff]  ;;  %1434 = vst [vmem:[%s11214_s17 + $0x2b8] sm:$0xff] %v1433_v23  ;;  %v1439_v26 = vld [vmem:[%s11209_s16 + $0x8d0] sm:$0xff] }
  0x46   : > { %1436 = vst [vmem:[%s11214_s17 + $0x2c0] sm:$0xff] %v1435_v24  ;;  %1438 = vst [vmem:[%s11214_s17 + $0x2c8] sm:$0xff] %v1437_v25  ;;  %v1441_v27 = vld [vmem:[%s11209_s16 + $0x8d8] sm:$0xff]  ;;  %v1443_v28 = vld [vmem:[%s11209_s16 + $0x8e0] sm:$0xff] }
  0x47   : > { %1440 = vst [vmem:[%s11214_s17 + $0x2d0] sm:$0xff] %v1439_v26  ;;  %1442 = vst [vmem:[%s11214_s17 + $0x2d8] sm:$0xff] %v1441_v27  ;;  %v1445_v29 = vld [vmem:[%s11209_s16 + $0x8e8] sm:$0xff]  ;;  %v1447_v30 = vld [vmem:[%s11209_s16 + $0x8f0] sm:$0xff] }
  0x48   : > { %1444 = vst [vmem:[%s11214_s17 + $0x2e0] sm:$0xff] %v1443_v28  ;;  %v1449_v31 = vld [vmem:[%s11209_s16 + $0x8f8] sm:$0xff]  ;;  %1446 = vst [vmem:[%s11214_s17 + $0x2e8] sm:$0xff] %v1445_v29  ;;  %v1451_v32 = vld [vmem:[%s11209_s16 + $0x900] sm:$0xff] }
  0x49   : > { %1448 = vst [vmem:[%s11214_s17 + $0x2f0] sm:$0xff] %v1447_v30  ;;  %1450 = vst [vmem:[%s11214_s17 + $0x2f8] sm:$0xff] %v1449_v31  ;;  %v1453_v33 = vld [vmem:[%s11209_s16 + $0x908] sm:$0xff]  ;;  %v1455_v34 = vld [vmem:[%s11209_s16 + $0x910] sm:$0xff] }
  0x4a   : > { %1452 = vst [vmem:[%s11214_s17 + $0x300] sm:$0xff] %v1451_v32  ;;  %1454 = vst [vmem:[%s11214_s17 + $0x308] sm:$0xff] %v1453_v33  ;;  %v1457_v35 = vld [vmem:[%s11209_s16 + $0x918] sm:$0xff]  ;;  %v1459_v36 = vld [vmem:[%s11209_s16 + $0x920] sm:$0xff] }
  0x4b   : > { %1456 = vst [vmem:[%s11214_s17 + $0x310] sm:$0xff] %v1455_v34  ;;  %v1461_v37 = vld [vmem:[%s11209_s16 + $0x928] sm:$0xff]  ;;  %1458 = vst [vmem:[%s11214_s17 + $0x318] sm:$0xff] %v1457_v35  ;;  %v1463_v38 = vld [vmem:[%s11209_s16 + $0x930] sm:$0xff] }
  0x4c   : > { %1460 = vst [vmem:[%s11214_s17 + $0x320] sm:$0xff] %v1459_v36  ;;  %1462 = vst [vmem:[%s11214_s17 + $0x328] sm:$0xff] %v1461_v37  ;;  %v1465_v39 = vld [vmem:[%s11209_s16 + $0x938] sm:$0xff]  ;;  %v1467_v40 = vld [vmem:[%s11209_s16 + $0x940] sm:$0xff] }
  0x4d   : > { %1464 = vst [vmem:[%s11214_s17 + $0x330] sm:$0xff] %v1463_v38  ;;  %1466 = vst [vmem:[%s11214_s17 + $0x338] sm:$0xff] %v1465_v39  ;;  %v1469_v41 = vld [vmem:[%s11209_s16 + $0x948] sm:$0xff]  ;;  %v1471_v42 = vld [vmem:[%s11209_s16 + $0x950] sm:$0xff] }
  0x4e   : > { %1468 = vst [vmem:[%s11214_s17 + $0x340] sm:$0xff] %v1467_v40  ;;  %v1473_v43 = vld [vmem:[%s11209_s16 + $0x958] sm:$0xff]  ;;  %1470 = vst [vmem:[%s11214_s17 + $0x348] sm:$0xff] %v1469_v41  ;;  %v1475_v44 = vld [vmem:[%s11209_s16 + $0x960] sm:$0xff] }
  0x4f   : > { %1472 = vst [vmem:[%s11214_s17 + $0x350] sm:$0xff] %v1471_v42  ;;  %1474 = vst [vmem:[%s11214_s17 + $0x358] sm:$0xff] %v1473_v43  ;;  %v1477_v45 = vld [vmem:[%s11209_s16 + $0x968] sm:$0xff]  ;;  %v1479_v46 = vld [vmem:[%s11209_s16 + $0x970] sm:$0xff] }
  0x50   : > { %1476 = vst [vmem:[%s11214_s17 + $0x360] sm:$0xff] %v1475_v44  ;;  %1478 = vst [vmem:[%s11214_s17 + $0x368] sm:$0xff] %v1477_v45  ;;  %v1481_v47 = vld [vmem:[%s11209_s16 + $0x978] sm:$0xff]  ;;  %v1483_v48 = vld [vmem:[%s11209_s16 + $0x980] sm:$0xff] }
  0x51   : > { %1480 = vst [vmem:[%s11214_s17 + $0x370] sm:$0xff] %v1479_v46  ;;  %v1485_v49 = vld [vmem:[%s11209_s16 + $0x988] sm:$0xff]  ;;  %1482 = vst [vmem:[%s11214_s17 + $0x378] sm:$0xff] %v1481_v47  ;;  %v1487_v50 = vld [vmem:[%s11209_s16 + $0x990] sm:$0xff] }
  0x52   : > { %1484 = vst [vmem:[%s11214_s17 + $0x380] sm:$0xff] %v1483_v48  ;;  %1486 = vst [vmem:[%s11214_s17 + $0x388] sm:$0xff] %v1485_v49  ;;  %v1489_v51 = vld [vmem:[%s11209_s16 + $0x998] sm:$0xff]  ;;  %v1491_v52 = vld [vmem:[%s11209_s16 + $0x9a0] sm:$0xff] }
  0x53   : > { %1488 = vst [vmem:[%s11214_s17 + $0x390] sm:$0xff] %v1487_v50  ;;  %1490 = vst [vmem:[%s11214_s17 + $0x398] sm:$0xff] %v1489_v51  ;;  %v1493_v53 = vld [vmem:[%s11209_s16 + $0x9a8] sm:$0xff]  ;;  %v1495_v54 = vld [vmem:[%s11209_s16 + $0x9b0] sm:$0xff] }
  0x54   : > { %1492 = vst [vmem:[%s11214_s17 + $0x3a0] sm:$0xff] %v1491_v52  ;;  %v1497_v55 = vld [vmem:[%s11209_s16 + $0x9b8] sm:$0xff]  ;;  %1494 = vst [vmem:[%s11214_s17 + $0x3a8] sm:$0xff] %v1493_v53  ;;  %v1499_v56 = vld [vmem:[%s11209_s16 + $0x9c0] sm:$0xff] }
  0x55   : > { %1496 = vst [vmem:[%s11214_s17 + $0x3b0] sm:$0xff] %v1495_v54  ;;  %1498 = vst [vmem:[%s11214_s17 + $0x3b8] sm:$0xff] %v1497_v55  ;;  %v1501_v57 = vld [vmem:[%s11209_s16 + $0x9c8] sm:$0xff]  ;;  %v1503_v58 = vld [vmem:[%s11209_s16 + $0x9d0] sm:$0xff] }
  0x56   : > { %1500 = vst [vmem:[%s11214_s17 + $0x3c0] sm:$0xff] %v1499_v56  ;;  %1502 = vst [vmem:[%s11214_s17 + $0x3c8] sm:$0xff] %v1501_v57  ;;  %v1505_v59 = vld [vmem:[%s11209_s16 + $0x9d8] sm:$0xff]  ;;  %v1507_v60 = vld [vmem:[%s11209_s16 + $0x9e0] sm:$0xff] }
  0x57   : > { %1504 = vst [vmem:[%s11214_s17 + $0x3d0] sm:$0xff] %v1503_v58  ;;  %v1509_v61 = vld [vmem:[%s11209_s16 + $0x9e8] sm:$0xff]  ;;  %1506 = vst [vmem:[%s11214_s17 + $0x3d8] sm:$0xff] %v1505_v59  ;;  %v1511_v62 = vld [vmem:[%s11209_s16 + $0x9f0] sm:$0xff] }
  0x58   : > { %1508 = vst [vmem:[%s11214_s17 + $0x3e0] sm:$0xff] %v1507_v60  ;;  %1510 = vst [vmem:[%s11214_s17 + $0x3e8] sm:$0xff] %v1509_v61  ;;  %v1513_v63 = vld [vmem:[%s11209_s16 + $0x9f8] sm:$0xff]  ;;  %v1515_v0 = vld [vmem:[%s11209_s16 + $0x1000] sm:$0xff] }
  0x59   : > { %1512 = vst [vmem:[%s11214_s17 + $0x3f0] sm:$0xff] %v1511_v62  ;;  %1514 = vst [vmem:[%s11214_s17 + $0x3f8] sm:$0xff] %v1513_v63  ;;  %v1517_v1 = vld [vmem:[%s11209_s16 + $0x1008] sm:$0xff]  ;;  %v1519_v2 = vld [vmem:[%s11209_s16 + $0x1010] sm:$0xff] }
  0x5a   : > { %1516 = vst [vmem:[%s11214_s17 + $0x400] sm:$0xff] %v1515_v0  ;;  %v1521_v3 = vld [vmem:[%s11209_s16 + $0x1018] sm:$0xff]  ;;  %1518 = vst [vmem:[%s11214_s17 + $0x408] sm:$0xff] %v1517_v1  ;;  %v1523_v4 = vld [vmem:[%s11209_s16 + $0x1020] sm:$0xff] }
  0x5b   : > { %1520 = vst [vmem:[%s11214_s17 + $0x410] sm:$0xff] %v1519_v2  ;;  %1522 = vst [vmem:[%s11214_s17 + $0x418] sm:$0xff] %v1521_v3  ;;  %v1525_v5 = vld [vmem:[%s11209_s16 + $0x1028] sm:$0xff]  ;;  %v1527_v6 = vld [vmem:[%s11209_s16 + $0x1030] sm:$0xff] }
  0x5c   : > { %1524 = vst [vmem:[%s11214_s17 + $0x420] sm:$0xff] %v1523_v4  ;;  %1526 = vst [vmem:[%s11214_s17 + $0x428] sm:$0xff] %v1525_v5  ;;  %v1529_v7 = vld [vmem:[%s11209_s16 + $0x1038] sm:$0xff]  ;;  %v1531_v8 = vld [vmem:[%s11209_s16 + $0x1040] sm:$0xff] }
  0x5d   : > { %1528 = vst [vmem:[%s11214_s17 + $0x430] sm:$0xff] %v1527_v6  ;;  %v1533_v9 = vld [vmem:[%s11209_s16 + $0x1048] sm:$0xff]  ;;  %1530 = vst [vmem:[%s11214_s17 + $0x438] sm:$0xff] %v1529_v7  ;;  %v1535_v10 = vld [vmem:[%s11209_s16 + $0x1050] sm:$0xff] }
  0x5e   : > { %1532 = vst [vmem:[%s11214_s17 + $0x440] sm:$0xff] %v1531_v8  ;;  %1534 = vst [vmem:[%s11214_s17 + $0x448] sm:$0xff] %v1533_v9  ;;  %v1537_v11 = vld [vmem:[%s11209_s16 + $0x1058] sm:$0xff]  ;;  %v1539_v12 = vld [vmem:[%s11209_s16 + $0x1060] sm:$0xff] }
  0x5f   : > { %1536 = vst [vmem:[%s11214_s17 + $0x450] sm:$0xff] %v1535_v10  ;;  %1538 = vst [vmem:[%s11214_s17 + $0x458] sm:$0xff] %v1537_v11  ;;  %v1541_v13 = vld [vmem:[%s11209_s16 + $0x1068] sm:$0xff]  ;;  %v1543_v14 = vld [vmem:[%s11209_s16 + $0x1070] sm:$0xff] }
  0x60   : > { %1540 = vst [vmem:[%s11214_s17 + $0x460] sm:$0xff] %v1539_v12  ;;  %v1545_v15 = vld [vmem:[%s11209_s16 + $0x1078] sm:$0xff]  ;;  %1542 = vst [vmem:[%s11214_s17 + $0x468] sm:$0xff] %v1541_v13  ;;  %v1547_v16 = vld [vmem:[%s11209_s16 + $0x1080] sm:$0xff] }
  0x61   : > { %1544 = vst [vmem:[%s11214_s17 + $0x470] sm:$0xff] %v1543_v14  ;;  %1546 = vst [vmem:[%s11214_s17 + $0x478] sm:$0xff] %v1545_v15  ;;  %v1549_v17 = vld [vmem:[%s11209_s16 + $0x1088] sm:$0xff]  ;;  %v1551_v18 = vld [vmem:[%s11209_s16 + $0x1090] sm:$0xff] }
  0x62   : > { %1548 = vst [vmem:[%s11214_s17 + $0x480] sm:$0xff] %v1547_v16  ;;  %1550 = vst [vmem:[%s11214_s17 + $0x488] sm:$0xff] %v1549_v17  ;;  %v1553_v19 = vld [vmem:[%s11209_s16 + $0x1098] sm:$0xff]  ;;  %v1555_v20 = vld [vmem:[%s11209_s16 + $0x10a0] sm:$0xff] }
  0x63   : > { %1552 = vst [vmem:[%s11214_s17 + $0x490] sm:$0xff] %v1551_v18  ;;  %v1557_v21 = vld [vmem:[%s11209_s16 + $0x10a8] sm:$0xff]  ;;  %1554 = vst [vmem:[%s11214_s17 + $0x498] sm:$0xff] %v1553_v19  ;;  %v1559_v22 = vld [vmem:[%s11209_s16 + $0x10b0] sm:$0xff] }
  0x64   : > { %1556 = vst [vmem:[%s11214_s17 + $0x4a0] sm:$0xff] %v1555_v20  ;;  %1558 = vst [vmem:[%s11214_s17 + $0x4a8] sm:$0xff] %v1557_v21  ;;  %v1561_v23 = vld [vmem:[%s11209_s16 + $0x10b8] sm:$0xff]  ;;  %v1563_v24 = vld [vmem:[%s11209_s16 + $0x10c0] sm:$0xff] }
  0x65   : > { %1560 = vst [vmem:[%s11214_s17 + $0x4b0] sm:$0xff] %v1559_v22  ;;  %1562 = vst [vmem:[%s11214_s17 + $0x4b8] sm:$0xff] %v1561_v23  ;;  %v1565_v25 = vld [vmem:[%s11209_s16 + $0x10c8] sm:$0xff]  ;;  %v1567_v26 = vld [vmem:[%s11209_s16 + $0x10d0] sm:$0xff] }
  0x66   : > { %1564 = vst [vmem:[%s11214_s17 + $0x4c0] sm:$0xff] %v1563_v24  ;;  %v1569_v27 = vld [vmem:[%s11209_s16 + $0x10d8] sm:$0xff]  ;;  %1566 = vst [vmem:[%s11214_s17 + $0x4c8] sm:$0xff] %v1565_v25  ;;  %v1571_v28 = vld [vmem:[%s11209_s16 + $0x10e0] sm:$0xff] }
  0x67   : > { %1568 = vst [vmem:[%s11214_s17 + $0x4d0] sm:$0xff] %v1567_v26  ;;  %1570 = vst [vmem:[%s11214_s17 + $0x4d8] sm:$0xff] %v1569_v27  ;;  %v1573_v29 = vld [vmem:[%s11209_s16 + $0x10e8] sm:$0xff]  ;;  %v1575_v30 = vld [vmem:[%s11209_s16 + $0x10f0] sm:$0xff] }
  0x68   : > { %1572 = vst [vmem:[%s11214_s17 + $0x4e0] sm:$0xff] %v1571_v28  ;;  %1574 = vst [vmem:[%s11214_s17 + $0x4e8] sm:$0xff] %v1573_v29  ;;  %v1577_v31 = vld [vmem:[%s11209_s16 + $0x10f8] sm:$0xff]  ;;  %v1579_v32 = vld [vmem:[%s11209_s16 + $0x1100] sm:$0xff] }
  0x69   : > { %1576 = vst [vmem:[%s11214_s17 + $0x4f0] sm:$0xff] %v1575_v30  ;;  %v1581_v33 = vld [vmem:[%s11209_s16 + $0x1108] sm:$0xff]  ;;  %1578 = vst [vmem:[%s11214_s17 + $0x4f8] sm:$0xff] %v1577_v31  ;;  %v1583_v34 = vld [vmem:[%s11209_s16 + $0x1110] sm:$0xff] }
  0x6a   : > { %1580 = vst [vmem:[%s11214_s17 + $0x500] sm:$0xff] %v1579_v32  ;;  %1582 = vst [vmem:[%s11214_s17 + $0x508] sm:$0xff] %v1581_v33  ;;  %v1585_v35 = vld [vmem:[%s11209_s16 + $0x1118] sm:$0xff]  ;;  %v1587_v36 = vld [vmem:[%s11209_s16 + $0x1120] sm:$0xff] }
  0x6b   : > { %1584 = vst [vmem:[%s11214_s17 + $0x510] sm:$0xff] %v1583_v34  ;;  %1586 = vst [vmem:[%s11214_s17 + $0x518] sm:$0xff] %v1585_v35  ;;  %v1589_v37 = vld [vmem:[%s11209_s16 + $0x1128] sm:$0xff]  ;;  %v1591_v38 = vld [vmem:[%s11209_s16 + $0x1130] sm:$0xff] }
  0x6c   : > { %1588 = vst [vmem:[%s11214_s17 + $0x520] sm:$0xff] %v1587_v36  ;;  %v1593_v39 = vld [vmem:[%s11209_s16 + $0x1138] sm:$0xff]  ;;  %1590 = vst [vmem:[%s11214_s17 + $0x528] sm:$0xff] %v1589_v37  ;;  %v1595_v40 = vld [vmem:[%s11209_s16 + $0x1140] sm:$0xff] }
  0x6d   : > { %1592 = vst [vmem:[%s11214_s17 + $0x530] sm:$0xff] %v1591_v38  ;;  %1594 = vst [vmem:[%s11214_s17 + $0x538] sm:$0xff] %v1593_v39  ;;  %v1597_v41 = vld [vmem:[%s11209_s16 + $0x1148] sm:$0xff]  ;;  %v1599_v42 = vld [vmem:[%s11209_s16 + $0x1150] sm:$0xff] }
  0x6e   : > { %1596 = vst [vmem:[%s11214_s17 + $0x540] sm:$0xff] %v1595_v40  ;;  %1598 = vst [vmem:[%s11214_s17 + $0x548] sm:$0xff] %v1597_v41  ;;  %v1601_v43 = vld [vmem:[%s11209_s16 + $0x1158] sm:$0xff]  ;;  %v1603_v44 = vld [vmem:[%s11209_s16 + $0x1160] sm:$0xff] }
  0x6f   : > { %1600 = vst [vmem:[%s11214_s17 + $0x550] sm:$0xff] %v1599_v42  ;;  %v1605_v45 = vld [vmem:[%s11209_s16 + $0x1168] sm:$0xff]  ;;  %1602 = vst [vmem:[%s11214_s17 + $0x558] sm:$0xff] %v1601_v43  ;;  %v1607_v46 = vld [vmem:[%s11209_s16 + $0x1170] sm:$0xff] }
  0x70   : > { %1604 = vst [vmem:[%s11214_s17 + $0x560] sm:$0xff] %v1603_v44  ;;  %1606 = vst [vmem:[%s11214_s17 + $0x568] sm:$0xff] %v1605_v45  ;;  %v1609_v47 = vld [vmem:[%s11209_s16 + $0x1178] sm:$0xff]  ;;  %v1611_v48 = vld [vmem:[%s11209_s16 + $0x1180] sm:$0xff] }
  0x71   : > { %1608 = vst [vmem:[%s11214_s17 + $0x570] sm:$0xff] %v1607_v46  ;;  %1610 = vst [vmem:[%s11214_s17 + $0x578] sm:$0xff] %v1609_v47  ;;  %v1613_v49 = vld [vmem:[%s11209_s16 + $0x1188] sm:$0xff]  ;;  %v1615_v50 = vld [vmem:[%s11209_s16 + $0x1190] sm:$0xff] }
  0x72   : > { %1612 = vst [vmem:[%s11214_s17 + $0x580] sm:$0xff] %v1611_v48  ;;  %v1617_v51 = vld [vmem:[%s11209_s16 + $0x1198] sm:$0xff]  ;;  %1614 = vst [vmem:[%s11214_s17 + $0x588] sm:$0xff] %v1613_v49  ;;  %v1619_v52 = vld [vmem:[%s11209_s16 + $0x11a0] sm:$0xff] }
  0x73   : > { %1616 = vst [vmem:[%s11214_s17 + $0x590] sm:$0xff] %v1615_v50  ;;  %1618 = vst [vmem:[%s11214_s17 + $0x598] sm:$0xff] %v1617_v51  ;;  %v1621_v53 = vld [vmem:[%s11209_s16 + $0x11a8] sm:$0xff]  ;;  %v1623_v54 = vld [vmem:[%s11209_s16 + $0x11b0] sm:$0xff] }
  0x74   : > { %1620 = vst [vmem:[%s11214_s17 + $0x5a0] sm:$0xff] %v1619_v52  ;;  %1622 = vst [vmem:[%s11214_s17 + $0x5a8] sm:$0xff] %v1621_v53  ;;  %v1625_v55 = vld [vmem:[%s11209_s16 + $0x11b8] sm:$0xff]  ;;  %v1627_v56 = vld [vmem:[%s11209_s16 + $0x11c0] sm:$0xff] }
  0x75   : > { %1624 = vst [vmem:[%s11214_s17 + $0x5b0] sm:$0xff] %v1623_v54  ;;  %v1629_v57 = vld [vmem:[%s11209_s16 + $0x11c8] sm:$0xff]  ;;  %1626 = vst [vmem:[%s11214_s17 + $0x5b8] sm:$0xff] %v1625_v55  ;;  %v1631_v58 = vld [vmem:[%s11209_s16 + $0x11d0] sm:$0xff] }
  0x76   : > { %1628 = vst [vmem:[%s11214_s17 + $0x5c0] sm:$0xff] %v1627_v56  ;;  %1630 = vst [vmem:[%s11214_s17 + $0x5c8] sm:$0xff] %v1629_v57  ;;  %v1633_v59 = vld [vmem:[%s11209_s16 + $0x11d8] sm:$0xff]  ;;  %v1635_v60 = vld [vmem:[%s11209_s16 + $0x11e0] sm:$0xff] }
  0x77   : > { %1632 = vst [vmem:[%s11214_s17 + $0x5d0] sm:$0xff] %v1631_v58  ;;  %1634 = vst [vmem:[%s11214_s17 + $0x5d8] sm:$0xff] %v1633_v59  ;;  %v1637_v61 = vld [vmem:[%s11209_s16 + $0x11e8] sm:$0xff]  ;;  %v1639_v62 = vld [vmem:[%s11209_s16 + $0x11f0] sm:$0xff] }
  0x78   : > { %1636 = vst [vmem:[%s11214_s17 + $0x5e0] sm:$0xff] %v1635_v60  ;;  %v1641_v63 = vld [vmem:[%s11209_s16 + $0x11f8] sm:$0xff]  ;;  %1638 = vst [vmem:[%s11214_s17 + $0x5e8] sm:$0xff] %v1637_v61  ;;  %v1643_v0 = vld [vmem:[%s11209_s16 + $0x1800] sm:$0xff] }
  0x79   : > { %1640 = vst [vmem:[%s11214_s17 + $0x5f0] sm:$0xff] %v1639_v62  ;;  %1642 = vst [vmem:[%s11214_s17 + $0x5f8] sm:$0xff] %v1641_v63  ;;  %v1645_v1 = vld [vmem:[%s11209_s16 + $0x1808] sm:$0xff]  ;;  %v1647_v2 = vld [vmem:[%s11209_s16 + $0x1810] sm:$0xff] }
  0x7a   : > { %1644 = vst [vmem:[%s11214_s17 + $0x600] sm:$0xff] %v1643_v0  ;;  %1646 = vst [vmem:[%s11214_s17 + $0x608] sm:$0xff] %v1645_v1  ;;  %v1649_v3 = vld [vmem:[%s11209_s16 + $0x1818] sm:$0xff]  ;;  %v1651_v4 = vld [vmem:[%s11209_s16 + $0x1820] sm:$0xff] }
  0x7b   : > { %1648 = vst [vmem:[%s11214_s17 + $0x610] sm:$0xff] %v1647_v2  ;;  %v1653_v5 = vld [vmem:[%s11209_s16 + $0x1828] sm:$0xff]  ;;  %1650 = vst [vmem:[%s11214_s17 + $0x618] sm:$0xff] %v1649_v3  ;;  %v1655_v6 = vld [vmem:[%s11209_s16 + $0x1830] sm:$0xff] }
  0x7c   : > { %1652 = vst [vmem:[%s11214_s17 + $0x620] sm:$0xff] %v1651_v4  ;;  %1654 = vst [vmem:[%s11214_s17 + $0x628] sm:$0xff] %v1653_v5  ;;  %v1657_v7 = vld [vmem:[%s11209_s16 + $0x1838] sm:$0xff]  ;;  %v1659_v8 = vld [vmem:[%s11209_s16 + $0x1840] sm:$0xff] }
  0x7d   : > { %1656 = vst [vmem:[%s11214_s17 + $0x630] sm:$0xff] %v1655_v6  ;;  %1658 = vst [vmem:[%s11214_s17 + $0x638] sm:$0xff] %v1657_v7  ;;  %v1661_v9 = vld [vmem:[%s11209_s16 + $0x1848] sm:$0xff]  ;;  %v1663_v10 = vld [vmem:[%s11209_s16 + $0x1850] sm:$0xff] }
  0x7e   : > { %1660 = vst [vmem:[%s11214_s17 + $0x640] sm:$0xff] %v1659_v8  ;;  %v1665_v11 = vld [vmem:[%s11209_s16 + $0x1858] sm:$0xff]  ;;  %1662 = vst [vmem:[%s11214_s17 + $0x648] sm:$0xff] %v1661_v9  ;;  %v1667_v12 = vld [vmem:[%s11209_s16 + $0x1860] sm:$0xff] }
  0x7f   : > { %1664 = vst [vmem:[%s11214_s17 + $0x650] sm:$0xff] %v1663_v10  ;;  %1666 = vst [vmem:[%s11214_s17 + $0x658] sm:$0xff] %v1665_v11  ;;  %v1669_v13 = vld [vmem:[%s11209_s16 + $0x1868] sm:$0xff]  ;;  %v1671_v14 = vld [vmem:[%s11209_s16 + $0x1870] sm:$0xff] }
  0x80   : > { %1668 = vst [vmem:[%s11214_s17 + $0x660] sm:$0xff] %v1667_v12  ;;  %1670 = vst [vmem:[%s11214_s17 + $0x668] sm:$0xff] %v1669_v13  ;;  %v1673_v15 = vld [vmem:[%s11209_s16 + $0x1878] sm:$0xff]  ;;  %v1675_v16 = vld [vmem:[%s11209_s16 + $0x1880] sm:$0xff] }
  0x81   : > { %1672 = vst [vmem:[%s11214_s17 + $0x670] sm:$0xff] %v1671_v14  ;;  %v1677_v17 = vld [vmem:[%s11209_s16 + $0x1888] sm:$0xff]  ;;  %1674 = vst [vmem:[%s11214_s17 + $0x678] sm:$0xff] %v1673_v15  ;;  %v1679_v18 = vld [vmem:[%s11209_s16 + $0x1890] sm:$0xff] }
  0x82   : > { %1676 = vst [vmem:[%s11214_s17 + $0x680] sm:$0xff] %v1675_v16  ;;  %1678 = vst [vmem:[%s11214_s17 + $0x688] sm:$0xff] %v1677_v17  ;;  %v1681_v19 = vld [vmem:[%s11209_s16 + $0x1898] sm:$0xff]  ;;  %v1683_v20 = vld [vmem:[%s11209_s16 + $0x18a0] sm:$0xff] }
  0x83   : > { %1680 = vst [vmem:[%s11214_s17 + $0x690] sm:$0xff] %v1679_v18  ;;  %1682 = vst [vmem:[%s11214_s17 + $0x698] sm:$0xff] %v1681_v19  ;;  %v1685_v21 = vld [vmem:[%s11209_s16 + $0x18a8] sm:$0xff]  ;;  %v1687_v22 = vld [vmem:[%s11209_s16 + $0x18b0] sm:$0xff] }
  0x84   : > { %1684 = vst [vmem:[%s11214_s17 + $0x6a0] sm:$0xff] %v1683_v20  ;;  %v1689_v23 = vld [vmem:[%s11209_s16 + $0x18b8] sm:$0xff]  ;;  %1686 = vst [vmem:[%s11214_s17 + $0x6a8] sm:$0xff] %v1685_v21  ;;  %v1691_v24 = vld [vmem:[%s11209_s16 + $0x18c0] sm:$0xff] }
  0x85   : > { %1688 = vst [vmem:[%s11214_s17 + $0x6b0] sm:$0xff] %v1687_v22  ;;  %1690 = vst [vmem:[%s11214_s17 + $0x6b8] sm:$0xff] %v1689_v23  ;;  %v1693_v25 = vld [vmem:[%s11209_s16 + $0x18c8] sm:$0xff]  ;;  %v1695_v26 = vld [vmem:[%s11209_s16 + $0x18d0] sm:$0xff] }
  0x86   : > { %1692 = vst [vmem:[%s11214_s17 + $0x6c0] sm:$0xff] %v1691_v24  ;;  %1694 = vst [vmem:[%s11214_s17 + $0x6c8] sm:$0xff] %v1693_v25  ;;  %v1697_v27 = vld [vmem:[%s11209_s16 + $0x18d8] sm:$0xff]  ;;  %v1699_v28 = vld [vmem:[%s11209_s16 + $0x18e0] sm:$0xff] }
  0x87   : > { %1696 = vst [vmem:[%s11214_s17 + $0x6d0] sm:$0xff] %v1695_v26  ;;  %v1701_v29 = vld [vmem:[%s11209_s16 + $0x18e8] sm:$0xff]  ;;  %1698 = vst [vmem:[%s11214_s17 + $0x6d8] sm:$0xff] %v1697_v27  ;;  %v1703_v30 = vld [vmem:[%s11209_s16 + $0x18f0] sm:$0xff] }
  0x88   : > { %1700 = vst [vmem:[%s11214_s17 + $0x6e0] sm:$0xff] %v1699_v28  ;;  %1702 = vst [vmem:[%s11214_s17 + $0x6e8] sm:$0xff] %v1701_v29  ;;  %v1705_v31 = vld [vmem:[%s11209_s16 + $0x18f8] sm:$0xff]  ;;  %v1707_v32 = vld [vmem:[%s11209_s16 + $0x1900] sm:$0xff] }
  0x89   : > { %1704 = vst [vmem:[%s11214_s17 + $0x6f0] sm:$0xff] %v1703_v30  ;;  %1706 = vst [vmem:[%s11214_s17 + $0x6f8] sm:$0xff] %v1705_v31  ;;  %v1709_v33 = vld [vmem:[%s11209_s16 + $0x1908] sm:$0xff]  ;;  %v1711_v34 = vld [vmem:[%s11209_s16 + $0x1910] sm:$0xff] }
  0x8a   : > { %1708 = vst [vmem:[%s11214_s17 + $0x700] sm:$0xff] %v1707_v32  ;;  %v1713_v35 = vld [vmem:[%s11209_s16 + $0x1918] sm:$0xff]  ;;  %1710 = vst [vmem:[%s11214_s17 + $0x708] sm:$0xff] %v1709_v33  ;;  %v1715_v36 = vld [vmem:[%s11209_s16 + $0x1920] sm:$0xff] }
  0x8b   : > { %1712 = vst [vmem:[%s11214_s17 + $0x710] sm:$0xff] %v1711_v34  ;;  %1714 = vst [vmem:[%s11214_s17 + $0x718] sm:$0xff] %v1713_v35  ;;  %v1717_v37 = vld [vmem:[%s11209_s16 + $0x1928] sm:$0xff]  ;;  %v1719_v38 = vld [vmem:[%s11209_s16 + $0x1930] sm:$0xff] }
  0x8c   : > { %1716 = vst [vmem:[%s11214_s17 + $0x720] sm:$0xff] %v1715_v36  ;;  %1718 = vst [vmem:[%s11214_s17 + $0x728] sm:$0xff] %v1717_v37  ;;  %v1721_v39 = vld [vmem:[%s11209_s16 + $0x1938] sm:$0xff]  ;;  %v1723_v40 = vld [vmem:[%s11209_s16 + $0x1940] sm:$0xff] }
  0x8d   : > { %1720 = vst [vmem:[%s11214_s17 + $0x730] sm:$0xff] %v1719_v38  ;;  %v1725_v41 = vld [vmem:[%s11209_s16 + $0x1948] sm:$0xff]  ;;  %1722 = vst [vmem:[%s11214_s17 + $0x738] sm:$0xff] %v1721_v39  ;;  %v1727_v42 = vld [vmem:[%s11209_s16 + $0x1950] sm:$0xff] }
  0x8e   : > { %1724 = vst [vmem:[%s11214_s17 + $0x740] sm:$0xff] %v1723_v40  ;;  %1726 = vst [vmem:[%s11214_s17 + $0x748] sm:$0xff] %v1725_v41  ;;  %v1729_v43 = vld [vmem:[%s11209_s16 + $0x1958] sm:$0xff]  ;;  %v1731_v44 = vld [vmem:[%s11209_s16 + $0x1960] sm:$0xff] }
  0x8f   : > { %1728 = vst [vmem:[%s11214_s17 + $0x750] sm:$0xff] %v1727_v42  ;;  %1730 = vst [vmem:[%s11214_s17 + $0x758] sm:$0xff] %v1729_v43  ;;  %v1733_v45 = vld [vmem:[%s11209_s16 + $0x1968] sm:$0xff]  ;;  %v1735_v46 = vld [vmem:[%s11209_s16 + $0x1970] sm:$0xff] }
  0x90   : > { %1732 = vst [vmem:[%s11214_s17 + $0x760] sm:$0xff] %v1731_v44  ;;  %v1737_v47 = vld [vmem:[%s11209_s16 + $0x1978] sm:$0xff]  ;;  %1734 = vst [vmem:[%s11214_s17 + $0x768] sm:$0xff] %v1733_v45  ;;  %v1739_v48 = vld [vmem:[%s11209_s16 + $0x1980] sm:$0xff] }
  0x91   : > { %1736 = vst [vmem:[%s11214_s17 + $0x770] sm:$0xff] %v1735_v46  ;;  %1738 = vst [vmem:[%s11214_s17 + $0x778] sm:$0xff] %v1737_v47  ;;  %v1741_v49 = vld [vmem:[%s11209_s16 + $0x1988] sm:$0xff]  ;;  %v1743_v50 = vld [vmem:[%s11209_s16 + $0x1990] sm:$0xff] }
  0x92   : > { %1740 = vst [vmem:[%s11214_s17 + $0x780] sm:$0xff] %v1739_v48  ;;  %1742 = vst [vmem:[%s11214_s17 + $0x788] sm:$0xff] %v1741_v49  ;;  %v1745_v51 = vld [vmem:[%s11209_s16 + $0x1998] sm:$0xff]  ;;  %v1747_v52 = vld [vmem:[%s11209_s16 + $0x19a0] sm:$0xff] }
  0x93   : > { %1744 = vst [vmem:[%s11214_s17 + $0x790] sm:$0xff] %v1743_v50  ;;  %v1749_v53 = vld [vmem:[%s11209_s16 + $0x19a8] sm:$0xff]  ;;  %1746 = vst [vmem:[%s11214_s17 + $0x798] sm:$0xff] %v1745_v51  ;;  %v1751_v54 = vld [vmem:[%s11209_s16 + $0x19b0] sm:$0xff] }
  0x94   : > { %1748 = vst [vmem:[%s11214_s17 + $0x7a0] sm:$0xff] %v1747_v52  ;;  %1750 = vst [vmem:[%s11214_s17 + $0x7a8] sm:$0xff] %v1749_v53  ;;  %v1753_v55 = vld [vmem:[%s11209_s16 + $0x19b8] sm:$0xff]  ;;  %v1755_v56 = vld [vmem:[%s11209_s16 + $0x19c0] sm:$0xff] }
  0x95   : > { %1752 = vst [vmem:[%s11214_s17 + $0x7b0] sm:$0xff] %v1751_v54  ;;  %1754 = vst [vmem:[%s11214_s17 + $0x7b8] sm:$0xff] %v1753_v55  ;;  %v1757_v57 = vld [vmem:[%s11209_s16 + $0x19c8] sm:$0xff]  ;;  %v1759_v58 = vld [vmem:[%s11209_s16 + $0x19d0] sm:$0xff] }
  0x96   : > { %1756 = vst [vmem:[%s11214_s17 + $0x7c0] sm:$0xff] %v1755_v56  ;;  %v1761_v59 = vld [vmem:[%s11209_s16 + $0x19d8] sm:$0xff]  ;;  %1758 = vst [vmem:[%s11214_s17 + $0x7c8] sm:$0xff] %v1757_v57  ;;  %v1763_v60 = vld [vmem:[%s11209_s16 + $0x19e0] sm:$0xff] }
  0x97   : > { %1760 = vst [vmem:[%s11214_s17 + $0x7d0] sm:$0xff] %v1759_v58  ;;  %1762 = vst [vmem:[%s11214_s17 + $0x7d8] sm:$0xff] %v1761_v59  ;;  %v1765_v61 = vld [vmem:[%s11209_s16 + $0x19e8] sm:$0xff]  ;;  %v1767_v62 = vld [vmem:[%s11209_s16 + $0x19f0] sm:$0xff] }
  0x98   : > { %1764 = vst [vmem:[%s11214_s17 + $0x7e0] sm:$0xff] %v1763_v60  ;;  %1766 = vst [vmem:[%s11214_s17 + $0x7e8] sm:$0xff] %v1765_v61  ;;  %v1769_v63 = vld [vmem:[%s11209_s16 + $0x19f8] sm:$0xff]  ;;  %v1771_v0 = vld [vmem:[%s11209_s16 + $0x2000] sm:$0xff] }
  0x99   : > { %1768 = vst [vmem:[%s11214_s17 + $0x7f0] sm:$0xff] %v1767_v62  ;;  %v1773_v1 = vld [vmem:[%s11209_s16 + $0x2008] sm:$0xff]  ;;  %1770 = vst [vmem:[%s11214_s17 + $0x7f8] sm:$0xff] %v1769_v63  ;;  %v1775_v2 = vld [vmem:[%s11209_s16 + $0x2010] sm:$0xff] }
  0x9a   : > { %1772 = vst [vmem:[%s11214_s17 + $0x800] sm:$0xff] %v1771_v0  ;;  %1774 = vst [vmem:[%s11214_s17 + $0x808] sm:$0xff] %v1773_v1  ;;  %v1777_v3 = vld [vmem:[%s11209_s16 + $0x2018] sm:$0xff]  ;;  %v1779_v4 = vld [vmem:[%s11209_s16 + $0x2020] sm:$0xff] }
  0x9b   : > { %1776 = vst [vmem:[%s11214_s17 + $0x810] sm:$0xff] %v1775_v2  ;;  %1778 = vst [vmem:[%s11214_s17 + $0x818] sm:$0xff] %v1777_v3  ;;  %v1781_v5 = vld [vmem:[%s11209_s16 + $0x2028] sm:$0xff]  ;;  %v1783_v6 = vld [vmem:[%s11209_s16 + $0x2030] sm:$0xff] }
  0x9c   : > { %1780 = vst [vmem:[%s11214_s17 + $0x820] sm:$0xff] %v1779_v4  ;;  %v1785_v7 = vld [vmem:[%s11209_s16 + $0x2038] sm:$0xff]  ;;  %1782 = vst [vmem:[%s11214_s17 + $0x828] sm:$0xff] %v1781_v5  ;;  %v1787_v8 = vld [vmem:[%s11209_s16 + $0x2040] sm:$0xff] }
  0x9d   : > { %1784 = vst [vmem:[%s11214_s17 + $0x830] sm:$0xff] %v1783_v6  ;;  %1786 = vst [vmem:[%s11214_s17 + $0x838] sm:$0xff] %v1785_v7  ;;  %v1789_v9 = vld [vmem:[%s11209_s16 + $0x2048] sm:$0xff]  ;;  %v1791_v10 = vld [vmem:[%s11209_s16 + $0x2050] sm:$0xff] }
  0x9e   : > { %1788 = vst [vmem:[%s11214_s17 + $0x840] sm:$0xff] %v1787_v8  ;;  %1790 = vst [vmem:[%s11214_s17 + $0x848] sm:$0xff] %v1789_v9  ;;  %v1793_v11 = vld [vmem:[%s11209_s16 + $0x2058] sm:$0xff]  ;;  %v1795_v12 = vld [vmem:[%s11209_s16 + $0x2060] sm:$0xff] }
  0x9f   : > { %1792 = vst [vmem:[%s11214_s17 + $0x850] sm:$0xff] %v1791_v10  ;;  %v1797_v13 = vld [vmem:[%s11209_s16 + $0x2068] sm:$0xff]  ;;  %1794 = vst [vmem:[%s11214_s17 + $0x858] sm:$0xff] %v1793_v11  ;;  %v1799_v14 = vld [vmem:[%s11209_s16 + $0x2070] sm:$0xff] }
  0xa0   : > { %1796 = vst [vmem:[%s11214_s17 + $0x860] sm:$0xff] %v1795_v12  ;;  %1798 = vst [vmem:[%s11214_s17 + $0x868] sm:$0xff] %v1797_v13  ;;  %v1801_v15 = vld [vmem:[%s11209_s16 + $0x2078] sm:$0xff]  ;;  %v1803_v16 = vld [vmem:[%s11209_s16 + $0x2080] sm:$0xff] }
  0xa1   : > { %1800 = vst [vmem:[%s11214_s17 + $0x870] sm:$0xff] %v1799_v14  ;;  %1802 = vst [vmem:[%s11214_s17 + $0x878] sm:$0xff] %v1801_v15  ;;  %v1805_v17 = vld [vmem:[%s11209_s16 + $0x2088] sm:$0xff]  ;;  %v1807_v18 = vld [vmem:[%s11209_s16 + $0x2090] sm:$0xff] }
  0xa2   : > { %1804 = vst [vmem:[%s11214_s17 + $0x880] sm:$0xff] %v1803_v16  ;;  %v1809_v19 = vld [vmem:[%s11209_s16 + $0x2098] sm:$0xff]  ;;  %1806 = vst [vmem:[%s11214_s17 + $0x888] sm:$0xff] %v1805_v17  ;;  %v1811_v20 = vld [vmem:[%s11209_s16 + $0x20a0] sm:$0xff] }
  0xa3   : > { %1808 = vst [vmem:[%s11214_s17 + $0x890] sm:$0xff] %v1807_v18  ;;  %1810 = vst [vmem:[%s11214_s17 + $0x898] sm:$0xff] %v1809_v19  ;;  %v1813_v21 = vld [vmem:[%s11209_s16 + $0x20a8] sm:$0xff]  ;;  %v1815_v22 = vld [vmem:[%s11209_s16 + $0x20b0] sm:$0xff] }
  0xa4   : > { %1812 = vst [vmem:[%s11214_s17 + $0x8a0] sm:$0xff] %v1811_v20  ;;  %1814 = vst [vmem:[%s11214_s17 + $0x8a8] sm:$0xff] %v1813_v21  ;;  %v1817_v23 = vld [vmem:[%s11209_s16 + $0x20b8] sm:$0xff]  ;;  %v1819_v24 = vld [vmem:[%s11209_s16 + $0x20c0] sm:$0xff] }
  0xa5   : > { %1816 = vst [vmem:[%s11214_s17 + $0x8b0] sm:$0xff] %v1815_v22  ;;  %v1821_v25 = vld [vmem:[%s11209_s16 + $0x20c8] sm:$0xff]  ;;  %1818 = vst [vmem:[%s11214_s17 + $0x8b8] sm:$0xff] %v1817_v23  ;;  %v1823_v26 = vld [vmem:[%s11209_s16 + $0x20d0] sm:$0xff] }
  0xa6   : > { %1820 = vst [vmem:[%s11214_s17 + $0x8c0] sm:$0xff] %v1819_v24  ;;  %1822 = vst [vmem:[%s11214_s17 + $0x8c8] sm:$0xff] %v1821_v25  ;;  %v1825_v27 = vld [vmem:[%s11209_s16 + $0x20d8] sm:$0xff]  ;;  %v1827_v28 = vld [vmem:[%s11209_s16 + $0x20e0] sm:$0xff] }
  0xa7   : > { %1824 = vst [vmem:[%s11214_s17 + $0x8d0] sm:$0xff] %v1823_v26  ;;  %1826 = vst [vmem:[%s11214_s17 + $0x8d8] sm:$0xff] %v1825_v27  ;;  %v1829_v29 = vld [vmem:[%s11209_s16 + $0x20e8] sm:$0xff]  ;;  %v1831_v30 = vld [vmem:[%s11209_s16 + $0x20f0] sm:$0xff] }
  0xa8   : > { %1828 = vst [vmem:[%s11214_s17 + $0x8e0] sm:$0xff] %v1827_v28  ;;  %v1833_v31 = vld [vmem:[%s11209_s16 + $0x20f8] sm:$0xff]  ;;  %1830 = vst [vmem:[%s11214_s17 + $0x8e8] sm:$0xff] %v1829_v29  ;;  %v1835_v32 = vld [vmem:[%s11209_s16 + $0x2100] sm:$0xff] }
  0xa9   : > { %1832 = vst [vmem:[%s11214_s17 + $0x8f0] sm:$0xff] %v1831_v30  ;;  %1834 = vst [vmem:[%s11214_s17 + $0x8f8] sm:$0xff] %v1833_v31  ;;  %v1837_v33 = vld [vmem:[%s11209_s16 + $0x2108] sm:$0xff]  ;;  %v1839_v34 = vld [vmem:[%s11209_s16 + $0x2110] sm:$0xff] }
  0xaa   : > { %1836 = vst [vmem:[%s11214_s17 + $0x900] sm:$0xff] %v1835_v32  ;;  %1838 = vst [vmem:[%s11214_s17 + $0x908] sm:$0xff] %v1837_v33  ;;  %v1841_v35 = vld [vmem:[%s11209_s16 + $0x2118] sm:$0xff]  ;;  %v1843_v36 = vld [vmem:[%s11209_s16 + $0x2120] sm:$0xff] }
  0xab   : > { %1840 = vst [vmem:[%s11214_s17 + $0x910] sm:$0xff] %v1839_v34  ;;  %v1845_v37 = vld [vmem:[%s11209_s16 + $0x2128] sm:$0xff]  ;;  %1842 = vst [vmem:[%s11214_s17 + $0x918] sm:$0xff] %v1841_v35  ;;  %v1847_v38 = vld [vmem:[%s11209_s16 + $0x2130] sm:$0xff] }
  0xac   : > { %1844 = vst [vmem:[%s11214_s17 + $0x920] sm:$0xff] %v1843_v36  ;;  %1846 = vst [vmem:[%s11214_s17 + $0x928] sm:$0xff] %v1845_v37  ;;  %v1849_v39 = vld [vmem:[%s11209_s16 + $0x2138] sm:$0xff]  ;;  %v1851_v40 = vld [vmem:[%s11209_s16 + $0x2140] sm:$0xff] }
  0xad   : > { %1848 = vst [vmem:[%s11214_s17 + $0x930] sm:$0xff] %v1847_v38  ;;  %1850 = vst [vmem:[%s11214_s17 + $0x938] sm:$0xff] %v1849_v39  ;;  %v1853_v41 = vld [vmem:[%s11209_s16 + $0x2148] sm:$0xff]  ;;  %v1855_v42 = vld [vmem:[%s11209_s16 + $0x2150] sm:$0xff] }
  0xae   : > { %1852 = vst [vmem:[%s11214_s17 + $0x940] sm:$0xff] %v1851_v40  ;;  %v1857_v43 = vld [vmem:[%s11209_s16 + $0x2158] sm:$0xff]  ;;  %1854 = vst [vmem:[%s11214_s17 + $0x948] sm:$0xff] %v1853_v41  ;;  %v1859_v44 = vld [vmem:[%s11209_s16 + $0x2160] sm:$0xff] }
  0xaf   : > { %1856 = vst [vmem:[%s11214_s17 + $0x950] sm:$0xff] %v1855_v42  ;;  %1858 = vst [vmem:[%s11214_s17 + $0x958] sm:$0xff] %v1857_v43  ;;  %v1861_v45 = vld [vmem:[%s11209_s16 + $0x2168] sm:$0xff]  ;;  %v1863_v46 = vld [vmem:[%s11209_s16 + $0x2170] sm:$0xff] }
  0xb0   : > { %1860 = vst [vmem:[%s11214_s17 + $0x960] sm:$0xff] %v1859_v44  ;;  %1862 = vst [vmem:[%s11214_s17 + $0x968] sm:$0xff] %v1861_v45  ;;  %v1865_v47 = vld [vmem:[%s11209_s16 + $0x2178] sm:$0xff]  ;;  %v1867_v48 = vld [vmem:[%s11209_s16 + $0x2180] sm:$0xff] }
  0xb1   : > { %1864 = vst [vmem:[%s11214_s17 + $0x970] sm:$0xff] %v1863_v46  ;;  %v1869_v49 = vld [vmem:[%s11209_s16 + $0x2188] sm:$0xff]  ;;  %1866 = vst [vmem:[%s11214_s17 + $0x978] sm:$0xff] %v1865_v47  ;;  %v1871_v50 = vld [vmem:[%s11209_s16 + $0x2190] sm:$0xff] }
  0xb2   : > { %1868 = vst [vmem:[%s11214_s17 + $0x980] sm:$0xff] %v1867_v48  ;;  %1870 = vst [vmem:[%s11214_s17 + $0x988] sm:$0xff] %v1869_v49  ;;  %v1873_v51 = vld [vmem:[%s11209_s16 + $0x2198] sm:$0xff]  ;;  %v1875_v52 = vld [vmem:[%s11209_s16 + $0x21a0] sm:$0xff] }
  0xb3   : > { %1872 = vst [vmem:[%s11214_s17 + $0x990] sm:$0xff] %v1871_v50  ;;  %1874 = vst [vmem:[%s11214_s17 + $0x998] sm:$0xff] %v1873_v51  ;;  %v1877_v53 = vld [vmem:[%s11209_s16 + $0x21a8] sm:$0xff]  ;;  %v1879_v54 = vld [vmem:[%s11209_s16 + $0x21b0] sm:$0xff] }
  0xb4   : > { %1876 = vst [vmem:[%s11214_s17 + $0x9a0] sm:$0xff] %v1875_v52  ;;  %v1881_v55 = vld [vmem:[%s11209_s16 + $0x21b8] sm:$0xff]  ;;  %1878 = vst [vmem:[%s11214_s17 + $0x9a8] sm:$0xff] %v1877_v53  ;;  %v1883_v56 = vld [vmem:[%s11209_s16 + $0x21c0] sm:$0xff] }
  0xb5   : > { %1880 = vst [vmem:[%s11214_s17 + $0x9b0] sm:$0xff] %v1879_v54  ;;  %1882 = vst [vmem:[%s11214_s17 + $0x9b8] sm:$0xff] %v1881_v55  ;;  %v1885_v57 = vld [vmem:[%s11209_s16 + $0x21c8] sm:$0xff]  ;;  %v1887_v58 = vld [vmem:[%s11209_s16 + $0x21d0] sm:$0xff] }
  0xb6   : > { %1884 = vst [vmem:[%s11214_s17 + $0x9c0] sm:$0xff] %v1883_v56  ;;  %1886 = vst [vmem:[%s11214_s17 + $0x9c8] sm:$0xff] %v1885_v57  ;;  %v1889_v59 = vld [vmem:[%s11209_s16 + $0x21d8] sm:$0xff]  ;;  %v1891_v60 = vld [vmem:[%s11209_s16 + $0x21e0] sm:$0xff] }
  0xb7   : > { %1888 = vst [vmem:[%s11214_s17 + $0x9d0] sm:$0xff] %v1887_v58  ;;  %v1893_v61 = vld [vmem:[%s11209_s16 + $0x21e8] sm:$0xff]  ;;  %1890 = vst [vmem:[%s11214_s17 + $0x9d8] sm:$0xff] %v1889_v59  ;;  %v1895_v62 = vld [vmem:[%s11209_s16 + $0x21f0] sm:$0xff] }
  0xb8   : > { %1892 = vst [vmem:[%s11214_s17 + $0x9e0] sm:$0xff] %v1891_v60  ;;  %1894 = vst [vmem:[%s11214_s17 + $0x9e8] sm:$0xff] %v1893_v61  ;;  %v1897_v63 = vld [vmem:[%s11209_s16 + $0x21f8] sm:$0xff]  ;;  %v1899_v0 = vld [vmem:[%s11209_s16 + $0x2800] sm:$0xff] }
  0xb9   : > { %1896 = vst [vmem:[%s11214_s17 + $0x9f0] sm:$0xff] %v1895_v62  ;;  %1898 = vst [vmem:[%s11214_s17 + $0x9f8] sm:$0xff] %v1897_v63  ;;  %v1901_v1 = vld [vmem:[%s11209_s16 + $0x2808] sm:$0xff]  ;;  %v1903_v2 = vld [vmem:[%s11209_s16 + $0x2810] sm:$0xff] }
  0xba   : > { %1900 = vst [vmem:[%s11214_s17 + $0xa00] sm:$0xff] %v1899_v0  ;;  %v1905_v3 = vld [vmem:[%s11209_s16 + $0x2818] sm:$0xff]  ;;  %1902 = vst [vmem:[%s11214_s17 + $0xa08] sm:$0xff] %v1901_v1  ;;  %v1907_v4 = vld [vmem:[%s11209_s16 + $0x2820] sm:$0xff] }
  0xbb   : > { %1904 = vst [vmem:[%s11214_s17 + $0xa10] sm:$0xff] %v1903_v2  ;;  %1906 = vst [vmem:[%s11214_s17 + $0xa18] sm:$0xff] %v1905_v3  ;;  %v1909_v5 = vld [vmem:[%s11209_s16 + $0x2828] sm:$0xff]  ;;  %v1911_v6 = vld [vmem:[%s11209_s16 + $0x2830] sm:$0xff] }
  0xbc   : > { %1908 = vst [vmem:[%s11214_s17 + $0xa20] sm:$0xff] %v1907_v4  ;;  %1910 = vst [vmem:[%s11214_s17 + $0xa28] sm:$0xff] %v1909_v5  ;;  %v1913_v7 = vld [vmem:[%s11209_s16 + $0x2838] sm:$0xff]  ;;  %v1915_v8 = vld [vmem:[%s11209_s16 + $0x2840] sm:$0xff] }
  0xbd   : > { %1912 = vst [vmem:[%s11214_s17 + $0xa30] sm:$0xff] %v1911_v6  ;;  %v1917_v9 = vld [vmem:[%s11209_s16 + $0x2848] sm:$0xff]  ;;  %1914 = vst [vmem:[%s11214_s17 + $0xa38] sm:$0xff] %v1913_v7  ;;  %v1919_v10 = vld [vmem:[%s11209_s16 + $0x2850] sm:$0xff] }
  0xbe   : > { %1916 = vst [vmem:[%s11214_s17 + $0xa40] sm:$0xff] %v1915_v8  ;;  %1918 = vst [vmem:[%s11214_s17 + $0xa48] sm:$0xff] %v1917_v9  ;;  %v1921_v11 = vld [vmem:[%s11209_s16 + $0x2858] sm:$0xff]  ;;  %v1923_v12 = vld [vmem:[%s11209_s16 + $0x2860] sm:$0xff] }
  0xbf   : > { %1920 = vst [vmem:[%s11214_s17 + $0xa50] sm:$0xff] %v1919_v10  ;;  %1922 = vst [vmem:[%s11214_s17 + $0xa58] sm:$0xff] %v1921_v11  ;;  %v1925_v13 = vld [vmem:[%s11209_s16 + $0x2868] sm:$0xff]  ;;  %v1927_v14 = vld [vmem:[%s11209_s16 + $0x2870] sm:$0xff] }
  0xc0   : > { %1924 = vst [vmem:[%s11214_s17 + $0xa60] sm:$0xff] %v1923_v12  ;;  %v1929_v15 = vld [vmem:[%s11209_s16 + $0x2878] sm:$0xff]  ;;  %1926 = vst [vmem:[%s11214_s17 + $0xa68] sm:$0xff] %v1925_v13  ;;  %v1931_v16 = vld [vmem:[%s11209_s16 + $0x2880] sm:$0xff] }
  0xc1   : > { %1928 = vst [vmem:[%s11214_s17 + $0xa70] sm:$0xff] %v1927_v14  ;;  %1930 = vst [vmem:[%s11214_s17 + $0xa78] sm:$0xff] %v1929_v15  ;;  %v1933_v17 = vld [vmem:[%s11209_s16 + $0x2888] sm:$0xff]  ;;  %v1935_v18 = vld [vmem:[%s11209_s16 + $0x2890] sm:$0xff] }
  0xc2   : > { %1932 = vst [vmem:[%s11214_s17 + $0xa80] sm:$0xff] %v1931_v16  ;;  %1934 = vst [vmem:[%s11214_s17 + $0xa88] sm:$0xff] %v1933_v17  ;;  %v1937_v19 = vld [vmem:[%s11209_s16 + $0x2898] sm:$0xff]  ;;  %v1939_v20 = vld [vmem:[%s11209_s16 + $0x28a0] sm:$0xff] }
  0xc3   : > { %1936 = vst [vmem:[%s11214_s17 + $0xa90] sm:$0xff] %v1935_v18  ;;  %v1941_v21 = vld [vmem:[%s11209_s16 + $0x28a8] sm:$0xff]  ;;  %1938 = vst [vmem:[%s11214_s17 + $0xa98] sm:$0xff] %v1937_v19  ;;  %v1943_v22 = vld [vmem:[%s11209_s16 + $0x28b0] sm:$0xff] }
  0xc4   : > { %1940 = vst [vmem:[%s11214_s17 + $0xaa0] sm:$0xff] %v1939_v20  ;;  %1942 = vst [vmem:[%s11214_s17 + $0xaa8] sm:$0xff] %v1941_v21  ;;  %v1945_v23 = vld [vmem:[%s11209_s16 + $0x28b8] sm:$0xff]  ;;  %v1947_v24 = vld [vmem:[%s11209_s16 + $0x28c0] sm:$0xff] }
  0xc5   : > { %1944 = vst [vmem:[%s11214_s17 + $0xab0] sm:$0xff] %v1943_v22  ;;  %1946 = vst [vmem:[%s11214_s17 + $0xab8] sm:$0xff] %v1945_v23  ;;  %v1949_v25 = vld [vmem:[%s11209_s16 + $0x28c8] sm:$0xff]  ;;  %v1951_v26 = vld [vmem:[%s11209_s16 + $0x28d0] sm:$0xff] }
  0xc6   : > { %1948 = vst [vmem:[%s11214_s17 + $0xac0] sm:$0xff] %v1947_v24  ;;  %v1953_v27 = vld [vmem:[%s11209_s16 + $0x28d8] sm:$0xff]  ;;  %1950 = vst [vmem:[%s11214_s17 + $0xac8] sm:$0xff] %v1949_v25  ;;  %v1955_v28 = vld [vmem:[%s11209_s16 + $0x28e0] sm:$0xff] }
  0xc7   : > { %1952 = vst [vmem:[%s11214_s17 + $0xad0] sm:$0xff] %v1951_v26  ;;  %1954 = vst [vmem:[%s11214_s17 + $0xad8] sm:$0xff] %v1953_v27  ;;  %v1957_v29 = vld [vmem:[%s11209_s16 + $0x28e8] sm:$0xff]  ;;  %v1959_v30 = vld [vmem:[%s11209_s16 + $0x28f0] sm:$0xff] }
  0xc8   : > { %1956 = vst [vmem:[%s11214_s17 + $0xae0] sm:$0xff] %v1955_v28  ;;  %1958 = vst [vmem:[%s11214_s17 + $0xae8] sm:$0xff] %v1957_v29  ;;  %v1961_v31 = vld [vmem:[%s11209_s16 + $0x28f8] sm:$0xff]  ;;  %v1963_v32 = vld [vmem:[%s11209_s16 + $0x2900] sm:$0xff] }
  0xc9   : > { %1960 = vst [vmem:[%s11214_s17 + $0xaf0] sm:$0xff] %v1959_v30  ;;  %v1965_v33 = vld [vmem:[%s11209_s16 + $0x2908] sm:$0xff]  ;;  %1962 = vst [vmem:[%s11214_s17 + $0xaf8] sm:$0xff] %v1961_v31  ;;  %v1967_v34 = vld [vmem:[%s11209_s16 + $0x2910] sm:$0xff] }
  0xca   : > { %1964 = vst [vmem:[%s11214_s17 + $0xb00] sm:$0xff] %v1963_v32  ;;  %1966 = vst [vmem:[%s11214_s17 + $0xb08] sm:$0xff] %v1965_v33  ;;  %v1969_v35 = vld [vmem:[%s11209_s16 + $0x2918] sm:$0xff]  ;;  %v1971_v36 = vld [vmem:[%s11209_s16 + $0x2920] sm:$0xff] }
  0xcb   : > { %1968 = vst [vmem:[%s11214_s17 + $0xb10] sm:$0xff] %v1967_v34  ;;  %1970 = vst [vmem:[%s11214_s17 + $0xb18] sm:$0xff] %v1969_v35  ;;  %v1973_v37 = vld [vmem:[%s11209_s16 + $0x2928] sm:$0xff]  ;;  %v1975_v38 = vld [vmem:[%s11209_s16 + $0x2930] sm:$0xff] }
  0xcc   : > { %1972 = vst [vmem:[%s11214_s17 + $0xb20] sm:$0xff] %v1971_v36  ;;  %v1977_v39 = vld [vmem:[%s11209_s16 + $0x2938] sm:$0xff]  ;;  %1974 = vst [vmem:[%s11214_s17 + $0xb28] sm:$0xff] %v1973_v37  ;;  %v1979_v40 = vld [vmem:[%s11209_s16 + $0x2940] sm:$0xff] }
  0xcd   : > { %1976 = vst [vmem:[%s11214_s17 + $0xb30] sm:$0xff] %v1975_v38  ;;  %1978 = vst [vmem:[%s11214_s17 + $0xb38] sm:$0xff] %v1977_v39  ;;  %v1981_v41 = vld [vmem:[%s11209_s16 + $0x2948] sm:$0xff]  ;;  %v1983_v42 = vld [vmem:[%s11209_s16 + $0x2950] sm:$0xff] }
  0xce   : > { %1980 = vst [vmem:[%s11214_s17 + $0xb40] sm:$0xff] %v1979_v40  ;;  %1982 = vst [vmem:[%s11214_s17 + $0xb48] sm:$0xff] %v1981_v41  ;;  %v1985_v43 = vld [vmem:[%s11209_s16 + $0x2958] sm:$0xff]  ;;  %v1987_v44 = vld [vmem:[%s11209_s16 + $0x2960] sm:$0xff] }
  0xcf   : > { %1984 = vst [vmem:[%s11214_s17 + $0xb50] sm:$0xff] %v1983_v42  ;;  %v1989_v45 = vld [vmem:[%s11209_s16 + $0x2968] sm:$0xff]  ;;  %1986 = vst [vmem:[%s11214_s17 + $0xb58] sm:$0xff] %v1985_v43  ;;  %v1991_v46 = vld [vmem:[%s11209_s16 + $0x2970] sm:$0xff] }
  0xd0   : > { %1988 = vst [vmem:[%s11214_s17 + $0xb60] sm:$0xff] %v1987_v44  ;;  %1990 = vst [vmem:[%s11214_s17 + $0xb68] sm:$0xff] %v1989_v45  ;;  %v1993_v47 = vld [vmem:[%s11209_s16 + $0x2978] sm:$0xff]  ;;  %v1995_v48 = vld [vmem:[%s11209_s16 + $0x2980] sm:$0xff] }
  0xd1   : > { %1992 = vst [vmem:[%s11214_s17 + $0xb70] sm:$0xff] %v1991_v46  ;;  %1994 = vst [vmem:[%s11214_s17 + $0xb78] sm:$0xff] %v1993_v47  ;;  %v1997_v49 = vld [vmem:[%s11209_s16 + $0x2988] sm:$0xff]  ;;  %v1999_v50 = vld [vmem:[%s11209_s16 + $0x2990] sm:$0xff] }
  0xd2   : > { %1996 = vst [vmem:[%s11214_s17 + $0xb80] sm:$0xff] %v1995_v48  ;;  %v2001_v51 = vld [vmem:[%s11209_s16 + $0x2998] sm:$0xff]  ;;  %1998 = vst [vmem:[%s11214_s17 + $0xb88] sm:$0xff] %v1997_v49  ;;  %v2003_v52 = vld [vmem:[%s11209_s16 + $0x29a0] sm:$0xff] }
  0xd3   : > { %2000 = vst [vmem:[%s11214_s17 + $0xb90] sm:$0xff] %v1999_v50  ;;  %2002 = vst [vmem:[%s11214_s17 + $0xb98] sm:$0xff] %v2001_v51  ;;  %v2005_v53 = vld [vmem:[%s11209_s16 + $0x29a8] sm:$0xff]  ;;  %v2007_v54 = vld [vmem:[%s11209_s16 + $0x29b0] sm:$0xff] }
  0xd4   : > { %2004 = vst [vmem:[%s11214_s17 + $0xba0] sm:$0xff] %v2003_v52  ;;  %2006 = vst [vmem:[%s11214_s17 + $0xba8] sm:$0xff] %v2005_v53  ;;  %v2009_v55 = vld [vmem:[%s11209_s16 + $0x29b8] sm:$0xff]  ;;  %v2011_v56 = vld [vmem:[%s11209_s16 + $0x29c0] sm:$0xff] }
  0xd5   : > { %2008 = vst [vmem:[%s11214_s17 + $0xbb0] sm:$0xff] %v2007_v54  ;;  %v2013_v57 = vld [vmem:[%s11209_s16 + $0x29c8] sm:$0xff]  ;;  %2010 = vst [vmem:[%s11214_s17 + $0xbb8] sm:$0xff] %v2009_v55  ;;  %v2015_v58 = vld [vmem:[%s11209_s16 + $0x29d0] sm:$0xff] }
  0xd6   : > { %2012 = vst [vmem:[%s11214_s17 + $0xbc0] sm:$0xff] %v2011_v56  ;;  %2014 = vst [vmem:[%s11214_s17 + $0xbc8] sm:$0xff] %v2013_v57  ;;  %v2017_v59 = vld [vmem:[%s11209_s16 + $0x29d8] sm:$0xff]  ;;  %v2019_v60 = vld [vmem:[%s11209_s16 + $0x29e0] sm:$0xff] }
  0xd7   : > { %2016 = vst [vmem:[%s11214_s17 + $0xbd0] sm:$0xff] %v2015_v58  ;;  %2018 = vst [vmem:[%s11214_s17 + $0xbd8] sm:$0xff] %v2017_v59  ;;  %v2021_v61 = vld [vmem:[%s11209_s16 + $0x29e8] sm:$0xff]  ;;  %v2023_v62 = vld [vmem:[%s11209_s16 + $0x29f0] sm:$0xff] }
  0xd8   : > { %2020 = vst [vmem:[%s11214_s17 + $0xbe0] sm:$0xff] %v2019_v60  ;;  %v2025_v63 = vld [vmem:[%s11209_s16 + $0x29f8] sm:$0xff]  ;;  %2022 = vst [vmem:[%s11214_s17 + $0xbe8] sm:$0xff] %v2021_v61  ;;  %v2027_v0 = vld [vmem:[%s11209_s16 + $0x3000] sm:$0xff] }
  0xd9   : > { %2024 = vst [vmem:[%s11214_s17 + $0xbf0] sm:$0xff] %v2023_v62  ;;  %2026 = vst [vmem:[%s11214_s17 + $0xbf8] sm:$0xff] %v2025_v63  ;;  %v2029_v1 = vld [vmem:[%s11209_s16 + $0x3008] sm:$0xff]  ;;  %v2031_v2 = vld [vmem:[%s11209_s16 + $0x3010] sm:$0xff] }
  0xda   : > { %2028 = vst [vmem:[%s11214_s17 + $0xc00] sm:$0xff] %v2027_v0  ;;  %2030 = vst [vmem:[%s11214_s17 + $0xc08] sm:$0xff] %v2029_v1  ;;  %v2033_v3 = vld [vmem:[%s11209_s16 + $0x3018] sm:$0xff]  ;;  %v2035_v4 = vld [vmem:[%s11209_s16 + $0x3020] sm:$0xff] }
  0xdb   : > { %2032 = vst [vmem:[%s11214_s17 + $0xc10] sm:$0xff] %v2031_v2  ;;  %v2037_v5 = vld [vmem:[%s11209_s16 + $0x3028] sm:$0xff]  ;;  %2034 = vst [vmem:[%s11214_s17 + $0xc18] sm:$0xff] %v2033_v3  ;;  %v2039_v6 = vld [vmem:[%s11209_s16 + $0x3030] sm:$0xff] }
  0xdc   : > { %2036 = vst [vmem:[%s11214_s17 + $0xc20] sm:$0xff] %v2035_v4  ;;  %2038 = vst [vmem:[%s11214_s17 + $0xc28] sm:$0xff] %v2037_v5  ;;  %v2041_v7 = vld [vmem:[%s11209_s16 + $0x3038] sm:$0xff]  ;;  %v2043_v8 = vld [vmem:[%s11209_s16 + $0x3040] sm:$0xff] }
  0xdd   : > { %2040 = vst [vmem:[%s11214_s17 + $0xc30] sm:$0xff] %v2039_v6  ;;  %2042 = vst [vmem:[%s11214_s17 + $0xc38] sm:$0xff] %v2041_v7  ;;  %v2045_v9 = vld [vmem:[%s11209_s16 + $0x3048] sm:$0xff]  ;;  %v2047_v10 = vld [vmem:[%s11209_s16 + $0x3050] sm:$0xff] }
  0xde   : > { %2044 = vst [vmem:[%s11214_s17 + $0xc40] sm:$0xff] %v2043_v8  ;;  %v2049_v11 = vld [vmem:[%s11209_s16 + $0x3058] sm:$0xff]  ;;  %2046 = vst [vmem:[%s11214_s17 + $0xc48] sm:$0xff] %v2045_v9  ;;  %v2051_v12 = vld [vmem:[%s11209_s16 + $0x3060] sm:$0xff] }
  0xdf   : > { %2048 = vst [vmem:[%s11214_s17 + $0xc50] sm:$0xff] %v2047_v10  ;;  %2050 = vst [vmem:[%s11214_s17 + $0xc58] sm:$0xff] %v2049_v11  ;;  %v2053_v13 = vld [vmem:[%s11209_s16 + $0x3068] sm:$0xff]  ;;  %v2055_v14 = vld [vmem:[%s11209_s16 + $0x3070] sm:$0xff] }
  0xe0   : > { %2052 = vst [vmem:[%s11214_s17 + $0xc60] sm:$0xff] %v2051_v12  ;;  %2054 = vst [vmem:[%s11214_s17 + $0xc68] sm:$0xff] %v2053_v13  ;;  %v2057_v15 = vld [vmem:[%s11209_s16 + $0x3078] sm:$0xff]  ;;  %v2059_v16 = vld [vmem:[%s11209_s16 + $0x3080] sm:$0xff] }
  0xe1   : > { %2056 = vst [vmem:[%s11214_s17 + $0xc70] sm:$0xff] %v2055_v14  ;;  %v2061_v17 = vld [vmem:[%s11209_s16 + $0x3088] sm:$0xff]  ;;  %2058 = vst [vmem:[%s11214_s17 + $0xc78] sm:$0xff] %v2057_v15  ;;  %v2063_v18 = vld [vmem:[%s11209_s16 + $0x3090] sm:$0xff] }
  0xe2   : > { %2060 = vst [vmem:[%s11214_s17 + $0xc80] sm:$0xff] %v2059_v16  ;;  %2062 = vst [vmem:[%s11214_s17 + $0xc88] sm:$0xff] %v2061_v17  ;;  %v2065_v19 = vld [vmem:[%s11209_s16 + $0x3098] sm:$0xff]  ;;  %v2067_v20 = vld [vmem:[%s11209_s16 + $0x30a0] sm:$0xff] }
  0xe3   : > { %2064 = vst [vmem:[%s11214_s17 + $0xc90] sm:$0xff] %v2063_v18  ;;  %2066 = vst [vmem:[%s11214_s17 + $0xc98] sm:$0xff] %v2065_v19  ;;  %v2069_v21 = vld [vmem:[%s11209_s16 + $0x30a8] sm:$0xff]  ;;  %v2071_v22 = vld [vmem:[%s11209_s16 + $0x30b0] sm:$0xff] }
  0xe4   : > { %2068 = vst [vmem:[%s11214_s17 + $0xca0] sm:$0xff] %v2067_v20  ;;  %v2073_v23 = vld [vmem:[%s11209_s16 + $0x30b8] sm:$0xff]  ;;  %2070 = vst [vmem:[%s11214_s17 + $0xca8] sm:$0xff] %v2069_v21  ;;  %v2075_v24 = vld [vmem:[%s11209_s16 + $0x30c0] sm:$0xff] }
  0xe5   : > { %2072 = vst [vmem:[%s11214_s17 + $0xcb0] sm:$0xff] %v2071_v22  ;;  %2074 = vst [vmem:[%s11214_s17 + $0xcb8] sm:$0xff] %v2073_v23  ;;  %v2077_v25 = vld [vmem:[%s11209_s16 + $0x30c8] sm:$0xff]  ;;  %v2079_v26 = vld [vmem:[%s11209_s16 + $0x30d0] sm:$0xff] }
  0xe6   : > { %2076 = vst [vmem:[%s11214_s17 + $0xcc0] sm:$0xff] %v2075_v24  ;;  %2078 = vst [vmem:[%s11214_s17 + $0xcc8] sm:$0xff] %v2077_v25  ;;  %v2081_v27 = vld [vmem:[%s11209_s16 + $0x30d8] sm:$0xff]  ;;  %v2083_v28 = vld [vmem:[%s11209_s16 + $0x30e0] sm:$0xff] }
  0xe7   : > { %2080 = vst [vmem:[%s11214_s17 + $0xcd0] sm:$0xff] %v2079_v26  ;;  %v2085_v29 = vld [vmem:[%s11209_s16 + $0x30e8] sm:$0xff]  ;;  %2082 = vst [vmem:[%s11214_s17 + $0xcd8] sm:$0xff] %v2081_v27  ;;  %v2087_v30 = vld [vmem:[%s11209_s16 + $0x30f0] sm:$0xff] }
  0xe8   : > { %2084 = vst [vmem:[%s11214_s17 + $0xce0] sm:$0xff] %v2083_v28  ;;  %2086 = vst [vmem:[%s11214_s17 + $0xce8] sm:$0xff] %v2085_v29  ;;  %v2089_v31 = vld [vmem:[%s11209_s16 + $0x30f8] sm:$0xff]  ;;  %v2091_v32 = vld [vmem:[%s11209_s16 + $0x3100] sm:$0xff] }
  0xe9   : > { %2088 = vst [vmem:[%s11214_s17 + $0xcf0] sm:$0xff] %v2087_v30  ;;  %2090 = vst [vmem:[%s11214_s17 + $0xcf8] sm:$0xff] %v2089_v31  ;;  %v2093_v33 = vld [vmem:[%s11209_s16 + $0x3108] sm:$0xff]  ;;  %v2095_v34 = vld [vmem:[%s11209_s16 + $0x3110] sm:$0xff] }
  0xea   : > { %2092 = vst [vmem:[%s11214_s17 + $0xd00] sm:$0xff] %v2091_v32  ;;  %v2097_v35 = vld [vmem:[%s11209_s16 + $0x3118] sm:$0xff]  ;;  %2094 = vst [vmem:[%s11214_s17 + $0xd08] sm:$0xff] %v2093_v33  ;;  %v2099_v36 = vld [vmem:[%s11209_s16 + $0x3120] sm:$0xff] }
  0xeb   : > { %2096 = vst [vmem:[%s11214_s17 + $0xd10] sm:$0xff] %v2095_v34  ;;  %2098 = vst [vmem:[%s11214_s17 + $0xd18] sm:$0xff] %v2097_v35  ;;  %v2101_v37 = vld [vmem:[%s11209_s16 + $0x3128] sm:$0xff]  ;;  %v2103_v38 = vld [vmem:[%s11209_s16 + $0x3130] sm:$0xff] }
  0xec   : > { %2100 = vst [vmem:[%s11214_s17 + $0xd20] sm:$0xff] %v2099_v36  ;;  %2102 = vst [vmem:[%s11214_s17 + $0xd28] sm:$0xff] %v2101_v37  ;;  %v2105_v39 = vld [vmem:[%s11209_s16 + $0x3138] sm:$0xff]  ;;  %v2107_v40 = vld [vmem:[%s11209_s16 + $0x3140] sm:$0xff] }
  0xed   : > { %2104 = vst [vmem:[%s11214_s17 + $0xd30] sm:$0xff] %v2103_v38  ;;  %v2109_v41 = vld [vmem:[%s11209_s16 + $0x3148] sm:$0xff]  ;;  %2106 = vst [vmem:[%s11214_s17 + $0xd38] sm:$0xff] %v2105_v39  ;;  %v2111_v42 = vld [vmem:[%s11209_s16 + $0x3150] sm:$0xff] }
  0xee   : > { %2108 = vst [vmem:[%s11214_s17 + $0xd40] sm:$0xff] %v2107_v40  ;;  %2110 = vst [vmem:[%s11214_s17 + $0xd48] sm:$0xff] %v2109_v41  ;;  %v2113_v43 = vld [vmem:[%s11209_s16 + $0x3158] sm:$0xff]  ;;  %v2115_v44 = vld [vmem:[%s11209_s16 + $0x3160] sm:$0xff] }
  0xef   : > { %2112 = vst [vmem:[%s11214_s17 + $0xd50] sm:$0xff] %v2111_v42  ;;  %2114 = vst [vmem:[%s11214_s17 + $0xd58] sm:$0xff] %v2113_v43  ;;  %v2117_v45 = vld [vmem:[%s11209_s16 + $0x3168] sm:$0xff]  ;;  %v2119_v46 = vld [vmem:[%s11209_s16 + $0x3170] sm:$0xff] }
  0xf0   : > { %2116 = vst [vmem:[%s11214_s17 + $0xd60] sm:$0xff] %v2115_v44  ;;  %v2121_v47 = vld [vmem:[%s11209_s16 + $0x3178] sm:$0xff]  ;;  %2118 = vst [vmem:[%s11214_s17 + $0xd68] sm:$0xff] %v2117_v45  ;;  %v2123_v48 = vld [vmem:[%s11209_s16 + $0x3180] sm:$0xff] }
  0xf1   : > { %2120 = vst [vmem:[%s11214_s17 + $0xd70] sm:$0xff] %v2119_v46  ;;  %2122 = vst [vmem:[%s11214_s17 + $0xd78] sm:$0xff] %v2121_v47  ;;  %v2125_v49 = vld [vmem:[%s11209_s16 + $0x3188] sm:$0xff]  ;;  %v2127_v50 = vld [vmem:[%s11209_s16 + $0x3190] sm:$0xff] }
  0xf2   : > { %2124 = vst [vmem:[%s11214_s17 + $0xd80] sm:$0xff] %v2123_v48  ;;  %2126 = vst [vmem:[%s11214_s17 + $0xd88] sm:$0xff] %v2125_v49  ;;  %v2129_v51 = vld [vmem:[%s11209_s16 + $0x3198] sm:$0xff]  ;;  %v2131_v52 = vld [vmem:[%s11209_s16 + $0x31a0] sm:$0xff] }
  0xf3   : > { %2128 = vst [vmem:[%s11214_s17 + $0xd90] sm:$0xff] %v2127_v50  ;;  %v2133_v53 = vld [vmem:[%s11209_s16 + $0x31a8] sm:$0xff]  ;;  %2130 = vst [vmem:[%s11214_s17 + $0xd98] sm:$0xff] %v2129_v51  ;;  %v2135_v54 = vld [vmem:[%s11209_s16 + $0x31b0] sm:$0xff] }
  0xf4   : > { %2132 = vst [vmem:[%s11214_s17 + $0xda0] sm:$0xff] %v2131_v52  ;;  %2134 = vst [vmem:[%s11214_s17 + $0xda8] sm:$0xff] %v2133_v53  ;;  %v2137_v55 = vld [vmem:[%s11209_s16 + $0x31b8] sm:$0xff]  ;;  %v2139_v56 = vld [vmem:[%s11209_s16 + $0x31c0] sm:$0xff] }
  0xf5   : > { %2136 = vst [vmem:[%s11214_s17 + $0xdb0] sm:$0xff] %v2135_v54  ;;  %2138 = vst [vmem:[%s11214_s17 + $0xdb8] sm:$0xff] %v2137_v55  ;;  %v2141_v57 = vld [vmem:[%s11209_s16 + $0x31c8] sm:$0xff]  ;;  %v2143_v58 = vld [vmem:[%s11209_s16 + $0x31d0] sm:$0xff] }
  0xf6   : > { %2140 = vst [vmem:[%s11214_s17 + $0xdc0] sm:$0xff] %v2139_v56  ;;  %v2145_v59 = vld [vmem:[%s11209_s16 + $0x31d8] sm:$0xff]  ;;  %2142 = vst [vmem:[%s11214_s17 + $0xdc8] sm:$0xff] %v2141_v57  ;;  %v2147_v60 = vld [vmem:[%s11209_s16 + $0x31e0] sm:$0xff] }
  0xf7   : > { %2144 = vst [vmem:[%s11214_s17 + $0xdd0] sm:$0xff] %v2143_v58  ;;  %2146 = vst [vmem:[%s11214_s17 + $0xdd8] sm:$0xff] %v2145_v59  ;;  %v2149_v61 = vld [vmem:[%s11209_s16 + $0x31e8] sm:$0xff]  ;;  %v2151_v62 = vld [vmem:[%s11209_s16 + $0x31f0] sm:$0xff] }
  0xf8   : > { %2148 = vst [vmem:[%s11214_s17 + $0xde0] sm:$0xff] %v2147_v60  ;;  %2150 = vst [vmem:[%s11214_s17 + $0xde8] sm:$0xff] %v2149_v61  ;;  %v2153_v63 = vld [vmem:[%s11209_s16 + $0x31f8] sm:$0xff]  ;;  %v2155_v0 = vld [vmem:[%s11209_s16 + $0x3800] sm:$0xff] }
  0xf9   : > { %2152 = vst [vmem:[%s11214_s17 + $0xdf0] sm:$0xff] %v2151_v62  ;;  %v2157_v1 = vld [vmem:[%s11209_s16 + $0x3808] sm:$0xff]  ;;  %2154 = vst [vmem:[%s11214_s17 + $0xdf8] sm:$0xff] %v2153_v63  ;;  %v2159_v2 = vld [vmem:[%s11209_s16 + $0x3810] sm:$0xff] }
  0xfa   : > { %2156 = vst [vmem:[%s11214_s17 + $0xe00] sm:$0xff] %v2155_v0  ;;  %2158 = vst [vmem:[%s11214_s17 + $0xe08] sm:$0xff] %v2157_v1  ;;  %v2161_v3 = vld [vmem:[%s11209_s16 + $0x3818] sm:$0xff]  ;;  %v2163_v4 = vld [vmem:[%s11209_s16 + $0x3820] sm:$0xff] }
  0xfb   : > { %2160 = vst [vmem:[%s11214_s17 + $0xe10] sm:$0xff] %v2159_v2  ;;  %2162 = vst [vmem:[%s11214_s17 + $0xe18] sm:$0xff] %v2161_v3  ;;  %v2165_v5 = vld [vmem:[%s11209_s16 + $0x3828] sm:$0xff]  ;;  %v2167_v6 = vld [vmem:[%s11209_s16 + $0x3830] sm:$0xff] }
  0xfc   : > { %2164 = vst [vmem:[%s11214_s17 + $0xe20] sm:$0xff] %v2163_v4  ;;  %v2169_v7 = vld [vmem:[%s11209_s16 + $0x3838] sm:$0xff]  ;;  %2166 = vst [vmem:[%s11214_s17 + $0xe28] sm:$0xff] %v2165_v5  ;;  %v2171_v8 = vld [vmem:[%s11209_s16 + $0x3840] sm:$0xff] }
  0xfd   : > { %2168 = vst [vmem:[%s11214_s17 + $0xe30] sm:$0xff] %v2167_v6  ;;  %2170 = vst [vmem:[%s11214_s17 + $0xe38] sm:$0xff] %v2169_v7  ;;  %v2173_v9 = vld [vmem:[%s11209_s16 + $0x3848] sm:$0xff]  ;;  %v2175_v10 = vld [vmem:[%s11209_s16 + $0x3850] sm:$0xff] }
  0xfe   : > { %2172 = vst [vmem:[%s11214_s17 + $0xe40] sm:$0xff] %v2171_v8  ;;  %2174 = vst [vmem:[%s11214_s17 + $0xe48] sm:$0xff] %v2173_v9  ;;  %v2177_v11 = vld [vmem:[%s11209_s16 + $0x3858] sm:$0xff]  ;;  %v2179_v12 = vld [vmem:[%s11209_s16 + $0x3860] sm:$0xff] }
  0xff   : > { %2176 = vst [vmem:[%s11214_s17 + $0xe50] sm:$0xff] %v2175_v10  ;;  %v2181_v13 = vld [vmem:[%s11209_s16 + $0x3868] sm:$0xff]  ;;  %2178 = vst [vmem:[%s11214_s17 + $0xe58] sm:$0xff] %v2177_v11  ;;  %v2183_v14 = vld [vmem:[%s11209_s16 + $0x3870] sm:$0xff] }
 0x100   : > { %2180 = vst [vmem:[%s11214_s17 + $0xe60] sm:$0xff] %v2179_v12  ;;  %2182 = vst [vmem:[%s11214_s17 + $0xe68] sm:$0xff] %v2181_v13  ;;  %v2185_v15 = vld [vmem:[%s11209_s16 + $0x3878] sm:$0xff]  ;;  %v2187_v16 = vld [vmem:[%s11209_s16 + $0x3880] sm:$0xff] }
 0x101   : > { %2184 = vst [vmem:[%s11214_s17 + $0xe70] sm:$0xff] %v2183_v14  ;;  %2186 = vst [vmem:[%s11214_s17 + $0xe78] sm:$0xff] %v2185_v15  ;;  %v2189_v17 = vld [vmem:[%s11209_s16 + $0x3888] sm:$0xff]  ;;  %v2191_v18 = vld [vmem:[%s11209_s16 + $0x3890] sm:$0xff] }
 0x102   : > { %2188 = vst [vmem:[%s11214_s17 + $0xe80] sm:$0xff] %v2187_v16  ;;  %v2193_v19 = vld [vmem:[%s11209_s16 + $0x3898] sm:$0xff]  ;;  %2190 = vst [vmem:[%s11214_s17 + $0xe88] sm:$0xff] %v2189_v17  ;;  %v2195_v20 = vld [vmem:[%s11209_s16 + $0x38a0] sm:$0xff] }
 0x103   : > { %2192 = vst [vmem:[%s11214_s17 + $0xe90] sm:$0xff] %v2191_v18  ;;  %2194 = vst [vmem:[%s11214_s17 + $0xe98] sm:$0xff] %v2193_v19  ;;  %v2197_v21 = vld [vmem:[%s11209_s16 + $0x38a8] sm:$0xff]  ;;  %v2199_v22 = vld [vmem:[%s11209_s16 + $0x38b0] sm:$0xff] }
 0x104   : > { %2196 = vst [vmem:[%s11214_s17 + $0xea0] sm:$0xff] %v2195_v20  ;;  %2198 = vst [vmem:[%s11214_s17 + $0xea8] sm:$0xff] %v2197_v21  ;;  %v2201_v23 = vld [vmem:[%s11209_s16 + $0x38b8] sm:$0xff]  ;;  %v2203_v24 = vld [vmem:[%s11209_s16 + $0x38c0] sm:$0xff] }
 0x105   : > { %2200 = vst [vmem:[%s11214_s17 + $0xeb0] sm:$0xff] %v2199_v22  ;;  %v2205_v25 = vld [vmem:[%s11209_s16 + $0x38c8] sm:$0xff]  ;;  %2202 = vst [vmem:[%s11214_s17 + $0xeb8] sm:$0xff] %v2201_v23  ;;  %v2207_v26 = vld [vmem:[%s11209_s16 + $0x38d0] sm:$0xff] }
 0x106   : > { %2204 = vst [vmem:[%s11214_s17 + $0xec0] sm:$0xff] %v2203_v24  ;;  %2206 = vst [vmem:[%s11214_s17 + $0xec8] sm:$0xff] %v2205_v25  ;;  %v2209_v27 = vld [vmem:[%s11209_s16 + $0x38d8] sm:$0xff]  ;;  %v2211_v28 = vld [vmem:[%s11209_s16 + $0x38e0] sm:$0xff] }
 0x107   : > { %2208 = vst [vmem:[%s11214_s17 + $0xed0] sm:$0xff] %v2207_v26  ;;  %2210 = vst [vmem:[%s11214_s17 + $0xed8] sm:$0xff] %v2209_v27  ;;  %v2213_v29 = vld [vmem:[%s11209_s16 + $0x38e8] sm:$0xff]  ;;  %v2215_v30 = vld [vmem:[%s11209_s16 + $0x38f0] sm:$0xff] }
 0x108   : > { %2212 = vst [vmem:[%s11214_s17 + $0xee0] sm:$0xff] %v2211_v28  ;;  %v2217_v31 = vld [vmem:[%s11209_s16 + $0x38f8] sm:$0xff]  ;;  %2214 = vst [vmem:[%s11214_s17 + $0xee8] sm:$0xff] %v2213_v29  ;;  %v2219_v32 = vld [vmem:[%s11209_s16 + $0x3900] sm:$0xff] }
 0x109   : > { %2216 = vst [vmem:[%s11214_s17 + $0xef0] sm:$0xff] %v2215_v30  ;;  %2218 = vst [vmem:[%s11214_s17 + $0xef8] sm:$0xff] %v2217_v31  ;;  %v2221_v33 = vld [vmem:[%s11209_s16 + $0x3908] sm:$0xff]  ;;  %v2223_v34 = vld [vmem:[%s11209_s16 + $0x3910] sm:$0xff] }
 0x10a   : > { %2220 = vst [vmem:[%s11214_s17 + $0xf00] sm:$0xff] %v2219_v32  ;;  %2222 = vst [vmem:[%s11214_s17 + $0xf08] sm:$0xff] %v2221_v33  ;;  %v2225_v35 = vld [vmem:[%s11209_s16 + $0x3918] sm:$0xff]  ;;  %v2227_v36 = vld [vmem:[%s11209_s16 + $0x3920] sm:$0xff] }
 0x10b   : > { %2224 = vst [vmem:[%s11214_s17 + $0xf10] sm:$0xff] %v2223_v34  ;;  %v2229_v37 = vld [vmem:[%s11209_s16 + $0x3928] sm:$0xff]  ;;  %2226 = vst [vmem:[%s11214_s17 + $0xf18] sm:$0xff] %v2225_v35  ;;  %v2231_v38 = vld [vmem:[%s11209_s16 + $0x3930] sm:$0xff] }
 0x10c   : > { %2228 = vst [vmem:[%s11214_s17 + $0xf20] sm:$0xff] %v2227_v36  ;;  %2230 = vst [vmem:[%s11214_s17 + $0xf28] sm:$0xff] %v2229_v37  ;;  %v2233_v39 = vld [vmem:[%s11209_s16 + $0x3938] sm:$0xff]  ;;  %v2235_v40 = vld [vmem:[%s11209_s16 + $0x3940] sm:$0xff] }
 0x10d   : > { %2232 = vst [vmem:[%s11214_s17 + $0xf30] sm:$0xff] %v2231_v38  ;;  %2234 = vst [vmem:[%s11214_s17 + $0xf38] sm:$0xff] %v2233_v39  ;;  %v2237_v41 = vld [vmem:[%s11209_s16 + $0x3948] sm:$0xff]  ;;  %v2239_v42 = vld [vmem:[%s11209_s16 + $0x3950] sm:$0xff] }
 0x10e   : > { %2236 = vst [vmem:[%s11214_s17 + $0xf40] sm:$0xff] %v2235_v40  ;;  %v2241_v43 = vld [vmem:[%s11209_s16 + $0x3958] sm:$0xff]  ;;  %2238 = vst [vmem:[%s11214_s17 + $0xf48] sm:$0xff] %v2237_v41  ;;  %v2243_v44 = vld [vmem:[%s11209_s16 + $0x3960] sm:$0xff] }
 0x10f   : > { %2240 = vst [vmem:[%s11214_s17 + $0xf50] sm:$0xff] %v2239_v42  ;;  %2242 = vst [vmem:[%s11214_s17 + $0xf58] sm:$0xff] %v2241_v43  ;;  %v2245_v45 = vld [vmem:[%s11209_s16 + $0x3968] sm:$0xff]  ;;  %v2247_v46 = vld [vmem:[%s11209_s16 + $0x3970] sm:$0xff] }
 0x110   : > { %2244 = vst [vmem:[%s11214_s17 + $0xf60] sm:$0xff] %v2243_v44  ;;  %2246 = vst [vmem:[%s11214_s17 + $0xf68] sm:$0xff] %v2245_v45  ;;  %v2249_v47 = vld [vmem:[%s11209_s16 + $0x3978] sm:$0xff]  ;;  %v2251_v48 = vld [vmem:[%s11209_s16 + $0x3980] sm:$0xff] }
 0x111   : > { %2248 = vst [vmem:[%s11214_s17 + $0xf70] sm:$0xff] %v2247_v46  ;;  %v2253_v49 = vld [vmem:[%s11209_s16 + $0x3988] sm:$0xff]  ;;  %2250 = vst [vmem:[%s11214_s17 + $0xf78] sm:$0xff] %v2249_v47  ;;  %v2255_v50 = vld [vmem:[%s11209_s16 + $0x3990] sm:$0xff] }
 0x112   : > { %2252 = vst [vmem:[%s11214_s17 + $0xf80] sm:$0xff] %v2251_v48  ;;  %2254 = vst [vmem:[%s11214_s17 + $0xf88] sm:$0xff] %v2253_v49  ;;  %v2257_v51 = vld [vmem:[%s11209_s16 + $0x3998] sm:$0xff]  ;;  %v2259_v52 = vld [vmem:[%s11209_s16 + $0x39a0] sm:$0xff] }
 0x113   : > { %2256 = vst [vmem:[%s11214_s17 + $0xf90] sm:$0xff] %v2255_v50  ;;  %2258 = vst [vmem:[%s11214_s17 + $0xf98] sm:$0xff] %v2257_v51  ;;  %v2261_v53 = vld [vmem:[%s11209_s16 + $0x39a8] sm:$0xff]  ;;  %v2263_v54 = vld [vmem:[%s11209_s16 + $0x39b0] sm:$0xff] }
 0x114   : > { %2260 = vst [vmem:[%s11214_s17 + $0xfa0] sm:$0xff] %v2259_v52  ;;  %v2265_v55 = vld [vmem:[%s11209_s16 + $0x39b8] sm:$0xff]  ;;  %2262 = vst [vmem:[%s11214_s17 + $0xfa8] sm:$0xff] %v2261_v53  ;;  %v2267_v56 = vld [vmem:[%s11209_s16 + $0x39c0] sm:$0xff] }
 0x115   : > { %2264 = vst [vmem:[%s11214_s17 + $0xfb0] sm:$0xff] %v2263_v54  ;;  %2266 = vst [vmem:[%s11214_s17 + $0xfb8] sm:$0xff] %v2265_v55  ;;  %v2269_v57 = vld [vmem:[%s11209_s16 + $0x39c8] sm:$0xff]  ;;  %v2271_v58 = vld [vmem:[%s11209_s16 + $0x39d0] sm:$0xff] }
 0x116   : > { %2268 = vst [vmem:[%s11214_s17 + $0xfc0] sm:$0xff] %v2267_v56  ;;  %2270 = vst [vmem:[%s11214_s17 + $0xfc8] sm:$0xff] %v2269_v57  ;;  %v2273_v59 = vld [vmem:[%s11209_s16 + $0x39d8] sm:$0xff]  ;;  %v2275_v60 = vld [vmem:[%s11209_s16 + $0x39e0] sm:$0xff] }
 0x117   : > { %2272 = vst [vmem:[%s11214_s17 + $0xfd0] sm:$0xff] %v2271_v58  ;;  %v2277_v61 = vld [vmem:[%s11209_s16 + $0x39e8] sm:$0xff]  ;;  %2274 = vst [vmem:[%s11214_s17 + $0xfd8] sm:$0xff] %v2273_v59  ;;  %v2279_v62 = vld [vmem:[%s11209_s16 + $0x39f0] sm:$0xff] }
 0x118   : > { %2276 = vst [vmem:[%s11214_s17 + $0xfe0] sm:$0xff] %v2275_v60  ;;  %2278 = vst [vmem:[%s11214_s17 + $0xfe8] sm:$0xff] %v2277_v61  ;;  %v2281_v63 = vld [vmem:[%s11209_s16 + $0x39f8] sm:$0xff] }
 0x119   : > { %2280 = vst [vmem:[%s11214_s17 + $0xff0] sm:$0xff] %v2279_v62  ;;  %2282 = vst [vmem:[%s11214_s17 + $0xff8] sm:$0xff] %v2281_v63 }
 0x11a PF: > { %p10823_p7 = scmp.ge.s32.totalorder %s11111_s24, 1  ;;  %p4396_p8 = scmp.lt.s32.totalorder %s11111_s24, 9 }
 0x11c   : > { %p4397_p9 = pnand %p10823_p7, %p4396_p8 }
 0x11d   : > { %s4403_s28 = sand.u32 (!%p4397_p9), 1, %s11087_s18   ;;  %s10825_s29 = sshll.u32 (!%p4397_p9), %s11099_s21, 2 }
 0x11e   : > { %4400 = sbr.rel (%p4397_p9) target bundleno = 1821 (0x71d), region = 88  ;;  %s10824_s30 = sshll.u32 (!%p4397_p9), %s4403_s28, 12 }
 0x11f   : > { %p4441_p10 = scmp.lt.s32.totalorder (!%p4397_p9), %s10825_s29, 15  ;;  %s10827_s6 = sshll.u32 (!%p4397_p9), %s11099_s21, 6 }
 0x120   : > { %p4451_p11 = scmp.lt.s32.totalorder (!%p4397_p9), %s10827_s6, 255  ;;  %p4457_p12 = scmp.eq.s32.totalorder (!%p4397_p9), %s11099_s21, 0 }
 0x121   : > { %p4458_p13 = scmp.eq.s32.totalorder (!%p4397_p9), %s11095_s20, 0  ;;  %s12259_s17 = scalar_lea.vmem (!%p4397_p9), [#allocation4], %s10824_s30 }
 0x123   : > { %p4459_p0 = pnand (!%p4397_p9), %p4458_p13, %p4457_p12 }
 0x125   : > { %s14695_s29 = smov (!%p4441_p10, %s10825_s29), 15  ;;  %s14697_s6 = smov (!%p4451_p11, %s10827_s6), 255 }
 0x126   : > { %s4443_s10 = scalar_lea.vmem %s14627_s1, %s14695_s29  ;;  %s4448_s13 = scalar_lea.vmem %s14628_s2, %s14695_s29  ;;  %v11113_v0 = vmov (!%p4459_p0), 0.0  }
 0x127   : > { %s10828_s18 = sshll.u32 %s14697_s6, 2  ;;  %4462 = sbr.rel (%p4459_p0) target bundleno = 302 (0x12e), region = 96  ;;  %4463 = vst [vmem:[#allocation3] sm:$0xff] (!%p4459_p0), %v11113_v0  ;;  %4464 = vst [vmem:[#allocation3 + $0x8] sm:$0xff] (!%p4459_p0), %v11113_v0 }
 0x128   : > { %s12257_s16 = scalar_lea.vmem %s14629_s3, %s10828_s18 }
 0x12e PF: > { %v4467_v1 = vld [vmem:[%s12259_s17 + $0x10] sm:$0xff]  ;;  %vm4977_vm0 = vcmask 400384   ;;  %v4465_v2 = vld [vmem:[%s12259_s17] sm:$0xff]  ;;  %v4468_v3 = vld [vmem:[%s12259_s17 + $0x18] sm:$0xff]  ;;  %vm7550_vm1 = vcmask 130112   ;;  %vm7557_vm2 = vcmask 195712  }
 0x12f   : > { %v4984_v4 = vsel %vm4977_vm0, %v4467_v1, 0.0  ;;  %v4978_v5 = vsel %vm4977_vm0, %v4465_v2, 0.0  ;;  %v4466_v6 = vld [vmem:[%s12259_s17 + $0x8] sm:$0xff]  ;;  %v4987_v7 = vsel %vm4977_vm0, %v4468_v3, 0.0  ;;  %v4469_v10 = vld [vmem:[%s12259_s17 + $0x20] sm:$0xff]  ;;  %v4472_v13 = vld [vmem:[%s12259_s17 + $0x38] sm:$0xff] }
 0x130   : > { %4985 = vadd.xlane.f32.xlu1 %v4984_v4  ;;  %4979 = vadd.xlane.f32.xlu0 %v4978_v5  ;;  %v4981_v8 = vsel %vm4977_vm0, %v4466_v6, 0.0  ;;  %v4470_v9 = vld [vmem:[%s12259_s17 + $0x28] sm:$0xff]  ;;  %v4990_v12 = vsel %vm4977_vm0, %v4469_v10, 0.0  ;;  %v4471_v14 = vld [vmem:[%s12259_s17 + $0x30] sm:$0xff]  ;;  %v4999_v15 = vsel %vm4977_vm0, %v4472_v13, 0.0  ;;  %v4473_v18 = vld [vmem:[%s12259_s17 + $0x40] sm:$0xff] }
 0x131   : > { %v4993_v11 = vsel %vm4977_vm0, %v4470_v9, 0.0  ;;  %v4996_v16 = vsel %vm4977_vm0, %v4471_v14, 0.0  ;;  %v4474_v17 = vld [vmem:[%s12259_s17 + $0x48] sm:$0xff]  ;;  %v5002_v20 = vsel %vm4977_vm0, %v4473_v18, 0.0  ;;  %v4476_v21 = vld [vmem:[%s12259_s17 + $0x58] sm:$0xff]  ;;  %v4475_v22 = vld [vmem:[%s12259_s17 + $0x50] sm:$0xff] }
 0x132   : > { %v5005_v19 = vsel %vm4977_vm0, %v4474_v17, 0.0  ;;  %v5011_v23 = vsel %vm4977_vm0, %v4476_v21, 0.0  ;;  %v5008_v24 = vsel %vm4977_vm0, %v4475_v22, 0.0  ;;  %v4478_v25 = vld [vmem:[%s12259_s17 + $0x68] sm:$0xff]  ;;  %v4477_v26 = vld [vmem:[%s12259_s17 + $0x60] sm:$0xff]  ;;  %v4480_v29 = vld [vmem:[%s12259_s17 + $0x78] sm:$0xff] }
 0x133   : > { %v5017_v27 = vsel %vm4977_vm0, %v4478_v25, 0.0  ;;  %v5014_v28 = vsel %vm4977_vm0, %v4477_v26, 0.0  ;;  %v4479_v30 = vld [vmem:[%s12259_s17 + $0x70] sm:$0xff]  ;;  %v5023_v31 = vsel %vm4977_vm0, %v4480_v29, 0.0  ;;  %v4482_v33 = vld [vmem:[%s12259_s17 + $0x88] sm:$0xff]  ;;  %v4481_v34 = vld [vmem:[%s12259_s17 + $0x80] sm:$0xff] }
 0x134   : > { %4988 = vadd.xlane.f32.xlu1 %v4987_v7  ;;  %4982 = vadd.xlane.f32.xlu0 %v4981_v8  ;;  %v5020_v32 = vsel %vm4977_vm0, %v4479_v30, 0.0  ;;  %v5029_v35 = vsel %vm4977_vm0, %v4482_v33, 0.0  ;;  %v5026_v36 = vsel %vm4977_vm0, %v4481_v34, 0.0  ;;  %v4484_v37 = vld [vmem:[%s12259_s17 + $0x98] sm:$0xff]  ;;  %v4483_v38 = vld [vmem:[%s12259_s17 + $0x90] sm:$0xff]  ;;  %v4486_v41 = vld [vmem:[%s12259_s17 + $0xa8] sm:$0xff] }
 0x135   : > { %v5035_v39 = vsel %vm4977_vm0, %v4484_v37, 0.0  ;;  %v5032_v40 = vsel %vm4977_vm0, %v4483_v38, 0.0  ;;  %v4485_v42 = vld [vmem:[%s12259_s17 + $0xa0] sm:$0xff]  ;;  %v5041_v43 = vsel %vm4977_vm0, %v4486_v41, 0.0  ;;  %v4488_v45 = vld [vmem:[%s12259_s17 + $0xb8] sm:$0xff]  ;;  %v4487_v46 = vld [vmem:[%s12259_s17 + $0xb0] sm:$0xff] }
 0x136   : > { %v5038_v44 = vsel %vm4977_vm0, %v4485_v42, 0.0  ;;  %v5047_v47 = vsel %vm4977_vm0, %v4488_v45, 0.0  ;;  %v5044_v48 = vsel %vm4977_vm0, %v4487_v46, 0.0  ;;  %v4490_v49 = vld [vmem:[%s12259_s17 + $0xc8] sm:$0xff]  ;;  %v4489_v50 = vld [vmem:[%s12259_s17 + $0xc0] sm:$0xff]  ;;  %v4492_v53 = vld [vmem:[%s12259_s17 + $0xd8] sm:$0xff] }
 0x137   : > { %v5053_v51 = vsel %vm4977_vm0, %v4490_v49, 0.0  ;;  %v5050_v52 = vsel %vm4977_vm0, %v4489_v50, 0.0  ;;  %v4491_v54 = vld [vmem:[%s12259_s17 + $0xd0] sm:$0xff]  ;;  %v5059_v55 = vsel %vm4977_vm0, %v4492_v53, 0.0  ;;  %v4494_v57 = vld [vmem:[%s12259_s17 + $0xe8] sm:$0xff]  ;;  %v4493_v58 = vld [vmem:[%s12259_s17 + $0xe0] sm:$0xff] }
 0x138   : > { %4994 = vadd.xlane.f32.xlu1 %v4993_v11  ;;  %4991 = vadd.xlane.f32.xlu0 %v4990_v12  ;;  %v5056_v56 = vsel %vm4977_vm0, %v4491_v54, 0.0  ;;  %v5065_v59 = vsel %vm4977_vm0, %v4494_v57, 0.0  ;;  %v5062_v60 = vsel %vm4977_vm0, %v4493_v58, 0.0  ;;  %v4496_v61 = vld [vmem:[%s12259_s17 + $0xf8] sm:$0xff]  ;;  %v4495_v62 = vld [vmem:[%s12259_s17 + $0xf0] sm:$0xff]  ;;  %v4498_v1 = vld [vmem:[%s12259_s17 + $0x108] sm:$0xff] }
 0x139   : > { %v5071_v63 = vsel %vm4977_vm0, %v4496_v61, 0.0  ;;  %v5068_v0 = vsel %vm4977_vm0, %v4495_v62, 0.0  ;;  %v4497_v2 = vld [vmem:[%s12259_s17 + $0x100] sm:$0xff]  ;;  %v5077_v3 = vsel %vm4977_vm0, %v4498_v1, 0.0  ;;  %v4500_v5 = vld [vmem:[%s12259_s17 + $0x118] sm:$0xff]  ;;  %v4499_v6 = vld [vmem:[%s12259_s17 + $0x110] sm:$0xff] }
 0x13a   : > { %v5074_v4 = vsel %vm4977_vm0, %v4497_v2, 0.0  ;;  %v5083_v7 = vsel %vm4977_vm0, %v4500_v5, 0.0  ;;  %v5080_v8 = vsel %vm4977_vm0, %v4499_v6, 0.0  ;;  %v4502_v9 = vld [vmem:[%s12259_s17 + $0x128] sm:$0xff]  ;;  %v4501_v10 = vld [vmem:[%s12259_s17 + $0x120] sm:$0xff]  ;;  %v4504_v13 = vld [vmem:[%s12259_s17 + $0x138] sm:$0xff] }
 0x13b   : > { %v5089_v11 = vsel %vm4977_vm0, %v4502_v9, 0.0  ;;  %v5086_v12 = vsel %vm4977_vm0, %v4501_v10, 0.0  ;;  %v4503_v14 = vld [vmem:[%s12259_s17 + $0x130] sm:$0xff]  ;;  %v4506_v17 = vld [vmem:[%s12259_s17 + $0x148] sm:$0xff]  ;;  %v4505_v18 = vld [vmem:[%s12259_s17 + $0x140] sm:$0xff]  ;;  %vm7564_vm3 = vcmask 261312  }
 0x13c   : > { %5000 = vadd.xlane.f32.xlu1 %v4999_v15  ;;  %4997 = vadd.xlane.f32.xlu0 %v4996_v16  ;;  %v5095_v15 = vsel %vm4977_vm0, %v4504_v13, 0.0  ;;  %v5092_v16 = vsel %vm4977_vm0, %v4503_v14, 0.0  ;;  %v4508_v21 = vld [vmem:[%s12259_s17 + $0x158] sm:$0xff]  ;;  %v4507_v22 = vld [vmem:[%s12259_s17 + $0x150] sm:$0xff]  ;;  %v4510_v25 = vld [vmem:[%s12259_s17 + $0x168] sm:$0xff]  ;;  %v7539_v13 = vlaneseq  ;;  %vm7571_vm4 = vcmask 326912  }
 0x13d   : > { %v4509_v26 = vld [vmem:[%s12259_s17 + $0x160] sm:$0xff]  ;;  %v4512_v29 = vld [vmem:[%s12259_s17 + $0x178] sm:$0xff]  ;;  %v4511_v30 = vld [vmem:[%s12259_s17 + $0x170] sm:$0xff]  ;;  %vm7578_vm5 = vcmask 392512   ;;  %vm7585_vm6 = vcmask 458112   ;;  %vm7592_vm7 = vcmask 523712  }
 0x13e   : > { %v4514_v33 = vld [vmem:[%s12259_s17 + $0x188] sm:$0xff]  ;;  %v4513_v34 = vld [vmem:[%s12259_s17 + $0x180] sm:$0xff]  ;;  %v4516_v37 = vld [vmem:[%s12259_s17 + $0x198] sm:$0xff]  ;;  %vm7599_vm8 = vcmask 589312   ;;  %vm14633_vm9 = vcmask 654912   ;;  %vm7613_vm10 = vcmask 720512  }
 0x13f   : > { %v4515_v38 = vld [vmem:[%s12259_s17 + $0x190] sm:$0xff]  ;;  %v4518_v41 = vld [vmem:[%s12259_s17 + $0x1a8] sm:$0xff]  ;;  %v4517_v42 = vld [vmem:[%s12259_s17 + $0x1a0] sm:$0xff]  ;;  %vm14632_vm11 = vcmask 786112   ;;  %vm7627_vm12 = vcmask 851712   ;;  %vm7634_vm13 = vcmask 917312  }
 0x140   : > { %5006 = vadd.xlane.f32.xlu1 %v5005_v19  ;;  %5003 = vadd.xlane.f32.xlu0 %v5002_v20  ;;  %v5101_v19 = vsel %vm4977_vm0, %v4506_v17, 0.0  ;;  %v5098_v20 = vsel %vm4977_vm0, %v4505_v18, 0.0  ;;  %v4520_v45 = vld [vmem:[%s12259_s17 + $0x1b8] sm:$0xff]  ;;  %v4519_v46 = vld [vmem:[%s12259_s17 + $0x1b0] sm:$0xff]  ;;  %v4522_v49 = vld [vmem:[%s12259_s17 + $0x1c8] sm:$0xff]  ;;  %v12405_v18 = vand.u32 127, %v7539_v13 }
 0x141   : > { %v4521_v50 = vld [vmem:[%s12259_s17 + $0x1c0] sm:$0xff]  ;;  %v4524_v53 = vld [vmem:[%s12259_s17 + $0x1d8] sm:$0xff]  ;;  %v4523_v54 = vld [vmem:[%s12259_s17 + $0x1d0] sm:$0xff]  ;;  %vm7641_vm14 = vcmask 982912   ;;  %vm7648_vm15 = vcmask 1048512   ;;  %p10147_p1 = scmp.eq.s32.totalorder %s11095_s20, 1 }
 0x142   : > { %v4526_v57 = vld [vmem:[%s12259_s17 + $0x1e8] sm:$0xff]  ;;  %v4525_v58 = vld [vmem:[%s12259_s17 + $0x1e0] sm:$0xff]  ;;  %v4528_v61 = vld [vmem:[%s12259_s17 + $0x1f8] sm:$0xff]  ;;  %s10829_s28 = sshll.u32 %s11095_s20, 3  ;;  %p10832_p2 = scmp.ne.s32.totalorder %s11095_s20, 1 }
 0x143   : > { %v4527_v62 = vld [vmem:[%s12259_s17 + $0x1f0] sm:$0xff]  ;;  %v4530_v1 = vld [vmem:[%s12259_s17 + $0x208] sm:$0xff]  ;;  %v4529_v2 = vld [vmem:[%s12259_s17 + $0x200] sm:$0xff]  ;;  %s10138_s30 = sshra.s32 %s10829_s28, 3 }
 0x144   : > { %5012 = vadd.xlane.f32.xlu1 %v5011_v23  ;;  %5009 = vadd.xlane.f32.xlu0 %v5008_v24  ;;  %v5107_v23 = vsel %vm4977_vm0, %v4508_v21, 0.0  ;;  %v5104_v24 = vsel %vm4977_vm0, %v4507_v22, 0.0  ;;  %v4532_v5 = vld [vmem:[%s12259_s17 + $0x218] sm:$0xff]  ;;  %v4531_v6 = vld [vmem:[%s12259_s17 + $0x210] sm:$0xff]  ;;  %v4534_v9 = vld [vmem:[%s12259_s17 + $0x228] sm:$0xff]  ;;  %v12409_v21 = vshrl.u32 %v7539_v13, 7 }
 0x145   : > { %v4533_v10 = vld [vmem:[%s12259_s17 + $0x220] sm:$0xff]  ;;  %v4536_v14 = vld [vmem:[%s12259_s17 + $0x238] sm:$0xff]  ;;  %v7545_v22 = vadd.s32 4294967288, %v12405_v18  ;;  %s10871_s6 = sshll.u32 %s10138_s30, 5 }
 0x146   : > { %s14362_s8 = scalar_lea.vmem [#allocation2], %s10871_s6 }
 0x148   : > { %5018 = vadd.xlane.f32.xlu1 %v5017_v27  ;;  %5015 = vadd.xlane.f32.xlu0 %v5014_v28  ;;  %v5113_v27 = vsel %vm4977_vm0, %v4510_v25, 0.0  ;;  %v5110_v28 = vsel %vm4977_vm0, %v4509_v26, 0.0 }
 0x14c   : > { %5024 = vadd.xlane.f32.xlu1 %v5023_v31  ;;  %5021 = vadd.xlane.f32.xlu0 %v5020_v32  ;;  %v5119_v31 = vsel %vm4977_vm0, %v4512_v29, 0.0  ;;  %v5116_v32 = vsel %vm4977_vm0, %v4511_v30, 0.0  ;;  %v4540_v29 = vld [vmem:[%s12259_s17 + $0x258] sm:$0xff]  ;;  %v4539_v30 = vld [vmem:[%s12259_s17 + $0x250] sm:$0xff] }
 0x150   : > { %5030 = vadd.xlane.f32.xlu1 %v5029_v35  ;;  %5027 = vadd.xlane.f32.xlu0 %v5026_v36  ;;  %v5125_v35 = vsel %vm4977_vm0, %v4514_v33, 0.0  ;;  %v5122_v36 = vsel %vm4977_vm0, %v4513_v34, 0.0  ;;  %v12424_v34 = vsub.s32 %v7545_v22, %v12409_v21 }
 0x154   : > { %5036 = vadd.xlane.f32.xlu1 %v5035_v39  ;;  %5033 = vadd.xlane.f32.xlu0 %v5032_v40  ;;  %v5131_v39 = vsel %vm4977_vm0, %v4516_v37, 0.0  ;;  %v5128_v40 = vsel %vm4977_vm0, %v4515_v38, 0.0 }
 0x158   : > { %5042 = vadd.xlane.f32.xlu1 %v5041_v43  ;;  %5039 = vadd.xlane.f32.xlu0 %v5038_v44  ;;  %v5137_v43 = vsel %vm4977_vm0, %v4518_v41, 0.0  ;;  %v5134_v44 = vsel %vm4977_vm0, %v4517_v42, 0.0  ;;  %v5200_v41 = vsel %vm4977_vm0, %v4539_v30, 0.0 }
 0x15c   : > { %5048 = vadd.xlane.f32.xlu1 %v5047_v47  ;;  %5045 = vadd.xlane.f32.xlu0 %v5044_v48  ;;  %v5143_v47 = vsel %vm4977_vm0, %v4520_v45, 0.0  ;;  %v5140_v48 = vsel %vm4977_vm0, %v4519_v46, 0.0  ;;  %v4542_v45 = vld [vmem:[%s12259_s17 + $0x268] sm:$0xff]  ;;  %v4541_v46 = vld [vmem:[%s12259_s17 + $0x260] sm:$0xff] }
 0x160   : > { %5054 = vadd.xlane.f32.xlu1 %v5053_v51  ;;  %5051 = vadd.xlane.f32.xlu0 %v5050_v52  ;;  %v5149_v51 = vsel %vm4977_vm0, %v4522_v49, 0.0  ;;  %v5146_v52 = vsel %vm4977_vm0, %v4521_v50, 0.0  ;;  %v7580_v49 = vadd.s32 4294967248, %v12405_v18 }
 0x164   : > { %5060 = vadd.xlane.f32.xlu1 %v5059_v55  ;;  %5057 = vadd.xlane.f32.xlu0 %v5056_v56  ;;  %v5155_v55 = vsel %vm4977_vm0, %v4524_v53, 0.0  ;;  %v5152_v56 = vsel %vm4977_vm0, %v4523_v54, 0.0 }
 0x168   : > { %5066 = vadd.xlane.f32.xlu1 %v5065_v59  ;;  %5063 = vadd.xlane.f32.xlu0 %v5062_v60  ;;  %v5161_v59 = vsel %vm4977_vm0, %v4526_v57, 0.0  ;;  %v5158_v60 = vsel %vm4977_vm0, %v4525_v58, 0.0  ;;  %v5206_v57 = vsel %vm4977_vm0, %v4541_v46, 0.0 }
 0x16c   : > { %5072 = vadd.xlane.f32.xlu1 %v5071_v63  ;;  %5069 = vadd.xlane.f32.xlu0 %v5068_v0  ;;  %v5167_v63 = vsel %vm4977_vm0, %v4528_v61, 0.0  ;;  %v5164_v0 = vsel %vm4977_vm0, %v4527_v62, 0.0  ;;  %v4544_v62 = vld [vmem:[%s12259_s17 + $0x278] sm:$0xff] }
 0x170   : > { %5078 = vadd.xlane.f32.xlu1 %v5077_v3  ;;  %5075 = vadd.xlane.f32.xlu0 %v5074_v4  ;;  %v5173_v3 = vsel %vm4977_vm0, %v4530_v1, 0.0  ;;  %v5170_v4 = vsel %vm4977_vm0, %v4529_v2, 0.0  ;;  %v12459_v2 = vsub.s32 %v7580_v49, %v12409_v21 }
 0x174   : > { %5084 = vadd.xlane.f32.xlu1 %v5083_v7  ;;  %5081 = vadd.xlane.f32.xlu0 %v5080_v8  ;;  %v5179_v7 = vsel %vm4977_vm0, %v4532_v5, 0.0  ;;  %v5176_v8 = vsel %vm4977_vm0, %v4531_v6, 0.0 }
 0x178   : > { %5090 = vadd.xlane.f32.xlu1 %v5089_v11  ;;  %5087 = vadd.xlane.f32.xlu0 %v5086_v12  ;;  %v5185_v11 = vsel %vm4977_vm0, %v4534_v9, 0.0  ;;  %v5182_v12 = vsel %vm4977_vm0, %v4533_v10, 0.0  ;;  %v5215_v10 = vsel %vm4977_vm0, %v4544_v62, 0.0 }
 0x17c   : > { %5096 = vadd.xlane.f32.xlu1 %v5095_v15  ;;  %5093 = vadd.xlane.f32.xlu0 %v5092_v16  ;;  %v4535_v15 = vld [vmem:[%s12259_s17 + $0x230] sm:$0xff]  ;;  %v5191_v16 = vsel %vm4977_vm0, %v4536_v14, 0.0 }
 0x17d   : > { %v5188_v17 = vsel %vm4977_vm0, %v4535_v15, 0.0  ;;  %v4546_v15 = vld [vmem:[%s12259_s17 + $0x288] sm:$0xff] }
 0x180   : > { %5102 = vadd.xlane.f32.xlu1 %v5101_v19  ;;  %5099 = vadd.xlane.f32.xlu0 %v5098_v20  ;;  %v4538_v19 = vld [vmem:[%s12259_s17 + $0x248] sm:$0xff]  ;;  %v4537_v20 = vld [vmem:[%s12259_s17 + $0x240] sm:$0xff] }
 0x181   : > { %v5197_v26 = vsel %vm4977_vm0, %v4538_v19, 0.0 }
 0x184   : > { %5108 = vadd.xlane.f32.xlu1 %v5107_v23  ;;  %5105 = vadd.xlane.f32.xlu0 %v5104_v24  ;;  %v7552_v23 = vadd.s32 4294967280, %v12405_v18 }
 0x188   : > { %5114 = vadd.xlane.f32.xlu1 %v5113_v27  ;;  %5111 = vadd.xlane.f32.xlu0 %v5110_v28  ;;  %v5194_v27 = vsel %vm4977_vm0, %v4537_v20, 0.0  ;;  %v7559_v28 = vadd.s32 4294967272, %v12405_v18  ;;  %v7615_v20 = vadd.s32 4294967208, %v12405_v18 }
 0x18a   : > { %v12433_v42 = vsub.s32 %v7559_v28, %v12409_v21  ;;  %v5221_v28 = vsel %vm4977_vm0, %v4546_v15, 0.0 }
 0x18c   : > { %5120 = vadd.xlane.f32.xlu1 %v5119_v31  ;;  %5117 = vadd.xlane.f32.xlu0 %v5116_v32  ;;  %v7573_v31 = vadd.s32 4294967256, %v12405_v18  ;;  %v12421_v32 = vsub.s32 %v12405_v18, %v12409_v21 }
 0x190   : > { %5126 = vadd.xlane.f32.xlu1 %v5125_v35  ;;  %5123 = vadd.xlane.f32.xlu0 %v5122_v36  ;;  %v7566_v35 = vadd.s32 4294967264, %v12405_v18  ;;  %v12428_v36 = vsub.s32 %v7552_v23, %v12409_v21 }
 0x194   : > { %5132 = vadd.xlane.f32.xlu1 %v5131_v39  ;;  %5129 = vadd.xlane.f32.xlu0 %v5128_v40  ;;  %v5203_v40 = vsel %vm4977_vm0, %v4540_v29, 0.0 }
 0x198   : > { %5138 = vadd.xlane.f32.xlu1 %v5137_v43  ;;  %5135 = vadd.xlane.f32.xlu0 %v5134_v44 }
 0x19c   : > { %5144 = vadd.xlane.f32.xlu1 %v5143_v47  ;;  %5141 = vadd.xlane.f32.xlu0 %v5140_v48  ;;  %v12438_v47 = vsub.s32 %v7573_v31, %v12409_v21  ;;  %v7587_v48 = vadd.s32 4294967240, %v12405_v18 }
 0x19e   : > { %v12456_v1 = vsub.s32 %v7587_v48, %v12409_v21 }
 0x1a0   : > { %5150 = vadd.xlane.f32.xlu1 %v5149_v51  ;;  %5147 = vadd.xlane.f32.xlu0 %v5146_v52  ;;  %v12445_v52 = vsub.s32 %v7566_v35, %v12409_v21  ;;  %v4548_v35 = vld [vmem:[%s12259_s17 + $0x298] sm:$0xff] }
 0x1a1   : > { %v5227_v49 = vsel %vm4977_vm0, %v4548_v35, 0.0 }
 0x1a4   : > { %5156 = vadd.xlane.f32.xlu1 %v5155_v55  ;;  %5153 = vadd.xlane.f32.xlu0 %v5152_v56  ;;  %v5209_v56 = vsel %vm4977_vm0, %v4542_v45, 0.0  ;;  %v7622_v45 = vadd.s32 4294967200, %v12405_v18 }
 0x1a6   : > { %v12511_v62 = vsub.s32 %v7622_v45, %v12409_v21  ;;  %v4555_v45 = vld [vmem:[%s12259_s17 + $0x2d0] sm:$0xff] }
 0x1a8   : > { %5162 = vadd.xlane.f32.xlu1 %v5161_v59  ;;  %5159 = vadd.xlane.f32.xlu0 %v5158_v60 }
 0x1ac   : > { %5168 = vadd.xlane.f32.xlu1 %v5167_v63  ;;  %5165 = vadd.xlane.f32.xlu0 %v5164_v0  ;;  %v4543_v63 = vld [vmem:[%s12259_s17 + $0x270] sm:$0xff] }
 0x1b0   : > { %5174 = vadd.xlane.f32.xlu1 %v5173_v3  ;;  %5171 = vadd.xlane.f32.xlu0 %v5170_v4  ;;  %v7601_v3 = vadd.s32 4294967224, %v12405_v18 }
 0x1b2   : > { %v12473_v19 = vsub.s32 %v7601_v3, %v12409_v21 }
 0x1b4   : > { %5180 = vadd.xlane.f32.xlu1 %v5179_v7  ;;  %5177 = vadd.xlane.f32.xlu0 %v5176_v8  ;;  %v7594_v7 = vadd.s32 4294967232, %v12405_v18 }
 0x1b8   : > { %5186 = vadd.xlane.f32.xlu1 %v5185_v11  ;;  %5183 = vadd.xlane.f32.xlu0 %v5182_v12  ;;  %v5212_v11 = vsel %vm4977_vm0, %v4543_v63, 0.0  ;;  %v7636_v63 = vadd.s32 4294967184, %v12405_v18 }
 0x1bc   : > { %5192 = vadd.xlane.f32.xlu1 %v5191_v16  ;;  %5189 = vadd.xlane.f32.xlu0 %v5188_v17  ;;  %v4545_v16 = vld [vmem:[%s12259_s17 + $0x280] sm:$0xff] }
 0x1bd   : > { %v4986_v24 = vpop.xlane.xlu1 %4985  ;;  %v4980_v25 = vpop.xlane.xlu0 %4979  ;;  %v5218_v29 = vsel %vm4977_vm0, %v4545_v16, 0.0 }
 0x1be   : > { %v6514_v33 = vmul.f32 0.020408163, %v4980_v25  ;;  %v6516_v37 = vmul.f32 0.020408163, %v4986_v24  ;;  %v12479_v24 = vsub.s32 %v7594_v7, %v12409_v21  ;;  %v7608_v25 = vadd.s32 4294967216, %v12405_v18 }
 0x1c0   : > { %5198 = vadd.xlane.f32.xlu1 %v5197_v26  ;;  %5195 = vadd.xlane.f32.xlu0 %v5194_v27  ;;  %v7544_v50 = vrot.slane %v6514_v33, %v12421_v32  ;;  %v7556_v53 = vrot.slane %v6516_v37, %v12428_v36  ;;  %v4547_v37 = vld [vmem:[%s12259_s17 + $0x290] sm:$0xff] }
 0x1c1   : > { %v4989_v38 = vpop.xlane.xlu1 %4988  ;;  %v4983_v39 = vpop.xlane.xlu0 %4982 }
 0x1c2   : > { %v6517_v43 = vmul.f32 0.020408163, %v4989_v38  ;;  %v6515_v44 = vmul.f32 0.020408163, %v4983_v39  ;;  %v12489_v39 = vsub.s32 %v7615_v20, %v12409_v21 }
 0x1c4   : > { %v7549_v51 = vrot.slane %v6515_v44, %v12424_v34  ;;  %5204 = vadd.xlane.f32.xlu1 %v5203_v40  ;;  %5201 = vadd.xlane.f32.xlu0 %v5200_v41  ;;  %v7563_v58 = vrot.slane %v6517_v43, %v12433_v42  ;;  %v7629_v40 = vadd.s32 4294967192, %v12405_v18  ;;  %v12495_v44 = vsub.s32 %v7608_v25, %v12409_v21 }
 0x1c5   : > { %v4995_v54 = vpop.xlane.xlu1 %4994  ;;  %v4992_v55 = vpop.xlane.xlu0 %4991 }
 0x1c6   : > { %v7551_v59 = vsel %vm7550_vm1, %v7549_v51, %v7544_v50  ;;  %v6519_v60 = vmul.f32 0.020408163, %v4995_v54  ;;  %v6518_v61 = vmul.f32 0.020408163, %v4992_v55  ;;  %v5224_v50 = vsel %vm4977_vm0, %v4547_v37, 0.0  ;;  %v4550_v55 = vld [vmem:[%s12259_s17 + $0x2a8] sm:$0xff] }
 0x1c7   : > { %v7558_v0 = vsel %vm7557_vm2, %v7556_v53, %v7551_v59  ;;  %v7643_v59 = vadd.s32 4294967176, %v12405_v18 }
 0x1c8   : > { %v7577_v4 = vrot.slane %v6519_v60, %v12438_v47  ;;  %v7565_v5 = vsel %vm7564_vm3, %v7563_v58, %v7558_v0  ;;  %v7570_v6 = vrot.slane %v6518_v61, %v12445_v52  ;;  %5210 = vadd.xlane.f32.xlu1 %v5209_v56  ;;  %5207 = vadd.xlane.f32.xlu0 %v5206_v57  ;;  %v4549_v56 = vld [vmem:[%s12259_s17 + $0x2a0] sm:$0xff] }
 0x1c9   : > { %v5001_v8 = vpop.xlane.xlu1 %5000  ;;  %v4998_v9 = vpop.xlane.xlu0 %4997  ;;  %v12505_v58 = vsub.s32 %v7629_v40, %v12409_v21 }
 0x1ca   : > { %v7572_v12 = vsel %vm7571_vm4, %v7570_v6, %v7565_v5  ;;  %v6521_v13 = vmul.f32 0.020408163, %v5001_v8  ;;  %v6520_v14 = vmul.f32 0.020408163, %v4998_v9  ;;  %v5230_v5 = vsel %vm4977_vm0, %v4549_v56, 0.0  ;;  %v4552_v9 = vld [vmem:[%s12259_s17 + $0x2b8] sm:$0xff] }
 0x1cb   : > { %v7579_v17 = vsel %vm7578_vm5, %v7577_v4, %v7572_v12  ;;  %v5233_v4 = vsel %vm4977_vm0, %v4550_v55, 0.0  ;;  %v12521_v12 = vsub.s32 %v7643_v59, %v12409_v21  ;;  %v4558_v59 = vld [vmem:[%s12259_s17 + $0x2e8] sm:$0xff] }
 0x1cc   : > { %v7591_v22 = vrot.slane %v6521_v13, %v12456_v1  ;;  %v7584_v23 = vrot.slane %v6520_v14, %v12459_v2  ;;  %5216 = vadd.xlane.f32.xlu1 %v5215_v10  ;;  %5213 = vadd.xlane.f32.xlu0 %v5212_v11  ;;  %v4551_v10 = vld [vmem:[%s12259_s17 + $0x2b0] sm:$0xff]  ;;  %v12526_v14 = vsub.s32 %v7636_v63, %v12409_v21 }
 0x1cd   : > { %v5007_v26 = vpop.xlane.xlu1 %5006  ;;  %v5004_v27 = vpop.xlane.xlu0 %5003  ;;  %v5236_v20 = vsel %vm4977_vm0, %v4551_v10, 0.0  ;;  %v4559_v10 = vld [vmem:[%s12259_s17 + $0x2f0] sm:$0xff] }
 0x1ce   : > { %v7586_v30 = vsel %vm7585_vm6, %v7584_v23, %v7579_v17  ;;  %v6523_v31 = vmul.f32 0.020408163, %v5007_v26  ;;  %v6522_v33 = vmul.f32 0.020408163, %v5004_v27  ;;  %v5239_v17 = vsel %vm4977_vm0, %v4552_v9, 0.0  ;;  %v4554_v26 = vld [vmem:[%s12259_s17 + $0x2c8] sm:$0xff] }
 0x1cf   : > { %v7593_v38 = vsel %vm7592_vm7, %v7591_v22, %v7586_v30  ;;  %v4553_v27 = vld [vmem:[%s12259_s17 + $0x2c0] sm:$0xff]  ;;  %v5245_v35 = vsel %vm4977_vm0, %v4554_v26, 0.0  ;;  %v4560_v9 = vld [vmem:[%s12259_s17 + $0x2f8] sm:$0xff]  ;;  %v4562_v26 = vld [vmem:[%s12259_s17 + $0x308] sm:$0xff] }
 0x1d0   : > { %v7605_v41 = vrot.slane %v6523_v31, %v12473_v19  ;;  %v7598_v43 = vrot.slane %v6522_v33, %v12479_v24  ;;  %5222 = vadd.xlane.f32.xlu1 %v5221_v28  ;;  %5219 = vadd.xlane.f32.xlu0 %v5218_v29  ;;  %v5242_v37 = vsel %vm4977_vm0, %v4553_v27, 0.0  ;;  %v4561_v27 = vld [vmem:[%s12259_s17 + $0x300] sm:$0xff] }
 0x1d1   : > { %v5013_v46 = vpop.xlane.xlu1 %5012  ;;  %v5010_v48 = vpop.xlane.xlu0 %5009 }
 0x1d2   : > { %v7600_v51 = vsel %vm7599_vm8, %v7598_v43, %v7593_v38  ;;  %v6525_v53 = vmul.f32 0.020408163, %v5013_v46  ;;  %v6524_v54 = vmul.f32 0.020408163, %v5010_v48  ;;  %v4556_v43 = vld [vmem:[%s12259_s17 + $0x2d8] sm:$0xff] }
 0x1d3   : > { %v7607_v57 = vsel %vm14633_vm9, %v7605_v41, %v7600_v51 }
 0x1d4   : > { %v7619_v60 = vrot.slane %v6525_v53, %v12489_v39  ;;  %v7612_v61 = vrot.slane %v6524_v54, %v12495_v44  ;;  %5228 = vadd.xlane.f32.xlu1 %v5227_v49  ;;  %5225 = vadd.xlane.f32.xlu0 %v5224_v50  ;;  %v5251_v53 = vsel %vm4977_vm0, %v4556_v43, 0.0  ;;  %v5248_v54 = vsel %vm4977_vm0, %v4555_v45, 0.0  ;;  %v4564_v43 = vld [vmem:[%s12259_s17 + $0x318] sm:$0xff]  ;;  %v4563_v45 = vld [vmem:[%s12259_s17 + $0x310] sm:$0xff] }
 0x1d5   : > { %v5019_v0 = vpop.xlane.xlu1 %5018  ;;  %v5016_v3 = vpop.xlane.xlu0 %5015 }
 0x1d6   : > { %v7614_v6 = vsel %vm7613_vm10, %v7612_v61, %v7607_v57  ;;  %v6527_v7 = vmul.f32 0.020408163, %v5019_v0  ;;  %v6526_v8 = vmul.f32 0.020408163, %v5016_v3 }
 0x1d7   : > { %v7621_v11 = vsel %vm14632_vm11, %v7619_v60, %v7614_v6  ;;  %v4557_v60 = vld [vmem:[%s12259_s17 + $0x2e0] sm:$0xff] }
 0x1d8   : > { %v7633_v18 = vrot.slane %v6527_v7, %v12505_v58  ;;  %v7626_v13 = vrot.slane %v6526_v8, %v12511_v62  ;;  %5234 = vadd.xlane.f32.xlu1 %v5233_v4  ;;  %5231 = vadd.xlane.f32.xlu0 %v5230_v5  ;;  %v5257_v4 = vsel %vm4977_vm0, %v4558_v59, 0.0  ;;  %v5254_v5 = vsel %vm4977_vm0, %v4557_v60, 0.0  ;;  %v4566_v60 = vld [vmem:[%s12259_s17 + $0x328] sm:$0xff] }
 0x1d9   : > { %v5025_v15 = vpop.xlane.xlu1 %5024  ;;  %v5022_v16 = vpop.xlane.xlu0 %5021 }
 0x1da   : > { %v7628_v22 = vsel %vm7627_vm12, %v7626_v13, %v7621_v11  ;;  %v6529_v23 = vmul.f32 0.020408163, %v5025_v15  ;;  %v6528_v25 = vmul.f32 0.020408163, %v5022_v16 }
 0x1db   : > { %v7635_v28 = vsel %vm7634_vm13, %v7633_v18, %v7628_v22 }
 0x1dc   : > { %v7647_v29 = vrot.slane %v6529_v23, %v12521_v12  ;;  %v7640_v30 = vrot.slane %v6528_v25, %v12526_v14  ;;  %5240 = vadd.xlane.f32.xlu1 %v5239_v17  ;;  %5237 = vadd.xlane.f32.xlu0 %v5236_v20  ;;  %v5263_v17 = vsel %vm4977_vm0, %v4560_v9, 0.0  ;;  %v5260_v20 = vsel %vm4977_vm0, %v4559_v10, 0.0 }
 0x1dd   : > { %v5031_v31 = vpop.xlane.xlu1 %5030  ;;  %v5028_v33 = vpop.xlane.xlu0 %5027 }
 0x1de   : > { %v7642_v38 = vsel %vm7641_vm14, %v7640_v30, %v7635_v28  ;;  %v6531_v40 = vmul.f32 0.020408163, %v5031_v31  ;;  %v6530_v41 = vmul.f32 0.020408163, %v5028_v33 }
 0x1df   : > { %v12542_v46 = vsel %vm7648_vm15, %v7647_v29, %v7642_v38 }
 0x1e0   : > { %v7657_v48 = vrot.slane %v6531_v40, %v12424_v34  ;;  %v7653_v49 = vrot.slane %v6530_v41, %v12421_v32  ;;  %5246 = vadd.xlane.f32.xlu1 %v5245_v35  ;;  %5243 = vadd.xlane.f32.xlu0 %v5242_v37  ;;  %v5269_v35 = vsel %vm4977_vm0, %v4562_v26, 0.0  ;;  %v5266_v37 = vsel %vm4977_vm0, %v4561_v27, 0.0 }
 0x1e1   : > { %v5037_v50 = vpop.xlane.xlu1 %5036  ;;  %v5034_v51 = vpop.xlane.xlu0 %5033 }
 0x1e2   : > { %v7658_v55 = vsel %vm7550_vm1, %v7657_v48, %v7653_v49  ;;  %v6533_v56 = vmul.f32 0.020408163, %v5037_v50  ;;  %v6532_v57 = vmul.f32 0.020408163, %v5034_v51 }
 0x1e4   : > { %v7667_v61 = vrot.slane %v6533_v56, %v12433_v42  ;;  %v7662_v63 = vrot.slane %v6532_v57, %v12428_v36  ;;  %5252 = vadd.xlane.f32.xlu1 %v5251_v53  ;;  %5249 = vadd.xlane.f32.xlu0 %v5248_v54  ;;  %v5275_v54 = vsel %vm4977_vm0, %v4564_v43, 0.0 }
 0x1e5   : > { %v5043_v0 = vpop.xlane.xlu1 %5042  ;;  %v5040_v3 = vpop.xlane.xlu0 %5039 }
 0x1e6   : > { %v7663_v6 = vsel %vm7557_vm2, %v7662_v63, %v7658_v55  ;;  %v6535_v7 = vmul.f32 0.020408163, %v5043_v0  ;;  %v6534_v8 = vmul.f32 0.020408163, %v5040_v3  ;;  %v5272_v55 = vsel %vm4977_vm0, %v4563_v45, 0.0 }
 0x1e7   : > { %v7668_v11 = vsel %vm7564_vm3, %v7667_v61, %v7663_v6  ;;  %v4565_v61 = vld [vmem:[%s12259_s17 + $0x320] sm:$0xff]  ;;  %v5281_v6 = vsel %vm4977_vm0, %v4566_v60, 0.0 }
 0x1e8   : > { %v7677_v18 = vrot.slane %v6535_v7, %v12438_v47  ;;  %v7672_v13 = vrot.slane %v6534_v8, %v12445_v52  ;;  %5258 = vadd.xlane.f32.xlu1 %v5257_v4  ;;  %5255 = vadd.xlane.f32.xlu0 %v5254_v5  ;;  %v5278_v7 = vsel %vm4977_vm0, %v4565_v61, 0.0 }
 0x1e9   : > { %v5049_v15 = vpop.xlane.xlu1 %5048  ;;  %v5046_v16 = vpop.xlane.xlu0 %5045 }
 0x1ea   : > { %v7673_v22 = vsel %vm7571_vm4, %v7672_v13, %v7668_v11  ;;  %v6537_v23 = vmul.f32 0.020408163, %v5049_v15  ;;  %v6536_v25 = vmul.f32 0.020408163, %v5046_v16  ;;  %v4568_v11 = vld [vmem:[%s12259_s17 + $0x338] sm:$0xff] }
 0x1eb   : > { %v7678_v28 = vsel %vm7578_vm5, %v7677_v18, %v7673_v22  ;;  %v4567_v18 = vld [vmem:[%s12259_s17 + $0x330] sm:$0xff]  ;;  %v5287_v22 = vsel %vm4977_vm0, %v4568_v11, 0.0 }
 0x1ec   : > { %v7687_v29 = vrot.slane %v6537_v23, %v12456_v1  ;;  %v7682_v30 = vrot.slane %v6536_v25, %v12459_v2  ;;  %5264 = vadd.xlane.f32.xlu1 %v5263_v17  ;;  %5261 = vadd.xlane.f32.xlu0 %v5260_v20  ;;  %v5284_v23 = vsel %vm4977_vm0, %v4567_v18, 0.0  ;;  %v4576_v18 = vld [vmem:[%s12259_s17 + $0x378] sm:$0xff] }
 0x1ed   : > { %v5055_v31 = vpop.xlane.xlu1 %5054  ;;  %v5052_v33 = vpop.xlane.xlu0 %5051 }
 0x1ee   : > { %v7683_v38 = vsel %vm7585_vm6, %v7682_v30, %v7678_v28  ;;  %v6539_v40 = vmul.f32 0.020408163, %v5055_v31  ;;  %v6538_v41 = vmul.f32 0.020408163, %v5052_v33  ;;  %v4570_v28 = vld [vmem:[%s12259_s17 + $0x348] sm:$0xff] }
 0x1ef   : > { %v7688_v48 = vsel %vm7592_vm7, %v7687_v29, %v7683_v38  ;;  %v4569_v29 = vld [vmem:[%s12259_s17 + $0x340] sm:$0xff]  ;;  %v5293_v38 = vsel %vm4977_vm0, %v4570_v28, 0.0 }
 0x1f0   : > { %v7697_v49 = vrot.slane %v6539_v40, %v12473_v19  ;;  %v7692_v50 = vrot.slane %v6538_v41, %v12479_v24  ;;  %5270 = vadd.xlane.f32.xlu1 %v5269_v35  ;;  %5267 = vadd.xlane.f32.xlu0 %v5266_v37  ;;  %v5290_v40 = vsel %vm4977_vm0, %v4569_v29, 0.0  ;;  %v4578_v29 = vld [vmem:[%s12259_s17 + $0x388] sm:$0xff] }
 0x1f1   : > { %v5061_v51 = vpop.xlane.xlu1 %5060  ;;  %v5058_v53 = vpop.xlane.xlu0 %5057 }
 0x1f2   : > { %v7693_v56 = vsel %vm7599_vm8, %v7692_v50, %v7688_v48  ;;  %v6541_v57 = vmul.f32 0.020408163, %v5061_v51  ;;  %v6540_v59 = vmul.f32 0.020408163, %v5058_v53  ;;  %v4572_v48 = vld [vmem:[%s12259_s17 + $0x358] sm:$0xff] }
 0x1f3   : > { %v7698_v63 = vsel %vm14633_vm9, %v7697_v49, %v7693_v56  ;;  %v4571_v49 = vld [vmem:[%s12259_s17 + $0x350] sm:$0xff]  ;;  %v5299_v56 = vsel %vm4977_vm0, %v4572_v48, 0.0 }
 0x1f4   : > { %v7707_v0 = vrot.slane %v6541_v57, %v12489_v39  ;;  %v7702_v3 = vrot.slane %v6540_v59, %v12495_v44  ;;  %5276 = vadd.xlane.f32.xlu1 %v5275_v54  ;;  %5273 = vadd.xlane.f32.xlu0 %v5272_v55  ;;  %v5296_v57 = vsel %vm4977_vm0, %v4571_v49, 0.0  ;;  %v4580_v49 = vld [vmem:[%s12259_s17 + $0x398] sm:$0xff] }
 0x1f5   : > { %v5067_v4 = vpop.xlane.xlu1 %5066  ;;  %v5064_v5 = vpop.xlane.xlu0 %5063 }
 0x1f6   : > { %v7703_v8 = vsel %vm7613_vm10, %v7702_v3, %v7698_v63  ;;  %v6543_v9 = vmul.f32 0.020408163, %v5067_v4  ;;  %v6542_v10 = vmul.f32 0.020408163, %v5064_v5  ;;  %v4574_v63 = vld [vmem:[%s12259_s17 + $0x368] sm:$0xff] }
 0x1f7   : > { %v7708_v13 = vsel %vm14632_vm11, %v7707_v0, %v7703_v8  ;;  %v4573_v0 = vld [vmem:[%s12259_s17 + $0x360] sm:$0xff] }
 0x1f8   : > { %v7717_v15 = vrot.slane %v6543_v9, %v12505_v58  ;;  %v7712_v16 = vrot.slane %v6542_v10, %v12511_v62  ;;  %5282 = vadd.xlane.f32.xlu1 %v5281_v6  ;;  %5279 = vadd.xlane.f32.xlu0 %v5278_v7  ;;  %v5305_v7 = vsel %vm4977_vm0, %v4574_v63, 0.0  ;;  %v5302_v8 = vsel %vm4977_vm0, %v4573_v0, 0.0 }
 0x1f9   : > { %v5073_v17 = vpop.xlane.xlu1 %5072  ;;  %v5070_v20 = vpop.xlane.xlu0 %5069 }
 0x1fa   : > { %v7713_v25 = vsel %vm7627_vm12, %v7712_v16, %v7708_v13  ;;  %v6545_v26 = vmul.f32 0.020408163, %v5073_v17  ;;  %v6544_v27 = vmul.f32 0.020408163, %v5070_v20  ;;  %v4575_v13 = vld [vmem:[%s12259_s17 + $0x370] sm:$0xff] }
 0x1fb   : > { %v7718_v30 = vsel %vm7634_vm13, %v7717_v15, %v7713_v25  ;;  %v5308_v25 = vsel %vm4977_vm0, %v4575_v13, 0.0 }
 0x1fc   : > { %v7727_v31 = vrot.slane %v6545_v26, %v12521_v12  ;;  %v7722_v33 = vrot.slane %v6544_v27, %v12526_v14  ;;  %5288 = vadd.xlane.f32.xlu1 %v5287_v22  ;;  %5285 = vadd.xlane.f32.xlu0 %v5284_v23  ;;  %v5311_v23 = vsel %vm4977_vm0, %v4576_v18, 0.0 }
 0x1fd   : > { %v5079_v35 = vpop.xlane.xlu1 %5078  ;;  %v5076_v37 = vpop.xlane.xlu0 %5075 }
 0x1fe   : > { %v7723_v41 = vsel %vm7641_vm14, %v7722_v33, %v7718_v30  ;;  %v6547_v43 = vmul.f32 0.020408163, %v5079_v35  ;;  %v6546_v45 = vmul.f32 0.020408163, %v5076_v37  ;;  %v4577_v30 = vld [vmem:[%s12259_s17 + $0x380] sm:$0xff] }
 0x1ff   : > { %v12607_v50 = vsel %vm7648_vm15, %v7727_v31, %v7723_v41  ;;  %v5314_v41 = vsel %vm4977_vm0, %v4577_v30, 0.0 }
 0x200   : > { %v7736_v51 = vrot.slane %v6547_v43, %v12424_v34  ;;  %v7732_v53 = vrot.slane %v6546_v45, %v12421_v32  ;;  %5294 = vadd.xlane.f32.xlu1 %v5293_v38  ;;  %5291 = vadd.xlane.f32.xlu0 %v5290_v40  ;;  %v5317_v40 = vsel %vm4977_vm0, %v4578_v29, 0.0 }
 0x201   : > { %v5085_v54 = vpop.xlane.xlu1 %5084  ;;  %v5082_v55 = vpop.xlane.xlu0 %5081 }
 0x202   : > { %v7737_v59 = vsel %vm7550_vm1, %v7736_v51, %v7732_v53  ;;  %v6549_v60 = vmul.f32 0.020408163, %v5085_v54  ;;  %v6548_v61 = vmul.f32 0.020408163, %v5082_v55  ;;  %v4579_v51 = vld [vmem:[%s12259_s17 + $0x390] sm:$0xff] }
 0x204   : > { %v7746_v3 = vrot.slane %v6549_v60, %v12433_v42  ;;  %v7741_v4 = vrot.slane %v6548_v61, %v12428_v36  ;;  %5300 = vadd.xlane.f32.xlu1 %v5299_v56  ;;  %5297 = vadd.xlane.f32.xlu0 %v5296_v57  ;;  %v5320_v60 = vsel %vm4977_vm0, %v4579_v51, 0.0 }
 0x205   : > { %v5091_v5 = vpop.xlane.xlu1 %5090  ;;  %v5088_v6 = vpop.xlane.xlu0 %5087 }
 0x206   : > { %v7742_v9 = vsel %vm7557_vm2, %v7741_v4, %v7737_v59  ;;  %v6551_v10 = vmul.f32 0.020408163, %v5091_v5  ;;  %v6550_v11 = vmul.f32 0.020408163, %v5088_v6  ;;  %v5323_v59 = vsel %vm4977_vm0, %v4580_v49, 0.0  ;;  %v4581_v4 = vld [vmem:[%s12259_s17 + $0x3a0] sm:$0xff] }
 0x207   : > { %v7747_v15 = vsel %vm7564_vm3, %v7746_v3, %v7742_v9  ;;  %v4582_v3 = vld [vmem:[%s12259_s17 + $0x3a8] sm:$0xff] }
 0x208   : > { %v7756_v16 = vrot.slane %v6551_v10, %v12438_v47  ;;  %v7751_v17 = vrot.slane %v6550_v11, %v12445_v52  ;;  %5306 = vadd.xlane.f32.xlu1 %v5305_v7  ;;  %5303 = vadd.xlane.f32.xlu0 %v5302_v8  ;;  %v5329_v10 = vsel %vm4977_vm0, %v4582_v3, 0.0  ;;  %v5326_v11 = vsel %vm4977_vm0, %v4581_v4, 0.0 }
 0x209   : > { %v5097_v20 = vpop.xlane.xlu1 %5096  ;;  %v5094_v22 = vpop.xlane.xlu0 %5093 }
 0x20a   : > { %v7752_v26 = vsel %vm7571_vm4, %v7751_v17, %v7747_v15  ;;  %v6553_v27 = vmul.f32 0.020408163, %v5097_v20  ;;  %v6552_v28 = vmul.f32 0.020408163, %v5094_v22  ;;  %v4583_v17 = vld [vmem:[%s12259_s17 + $0x3b0] sm:$0xff] }
 0x20b   : > { %v7757_v31 = vsel %vm7578_vm5, %v7756_v16, %v7752_v26  ;;  %v4584_v16 = vld [vmem:[%s12259_s17 + $0x3b8] sm:$0xff] }
 0x20c   : > { %v7766_v33 = vrot.slane %v6553_v27, %v12456_v1  ;;  %v7761_v35 = vrot.slane %v6552_v28, %v12459_v2  ;;  %5312 = vadd.xlane.f32.xlu1 %v5311_v23  ;;  %5309 = vadd.xlane.f32.xlu0 %v5308_v25  ;;  %v5335_v27 = vsel %vm4977_vm0, %v4584_v16, 0.0  ;;  %v5332_v28 = vsel %vm4977_vm0, %v4583_v17, 0.0 }
 0x20d   : > { %v5103_v37 = vpop.xlane.xlu1 %5102  ;;  %v5100_v38 = vpop.xlane.xlu0 %5099 }
 0x20e   : > { %v7762_v43 = vsel %vm7585_vm6, %v7761_v35, %v7757_v31  ;;  %v6555_v45 = vmul.f32 0.020408163, %v5103_v37  ;;  %v6554_v48 = vmul.f32 0.020408163, %v5100_v38  ;;  %v4585_v35 = vld [vmem:[%s12259_s17 + $0x3c0] sm:$0xff] }
 0x20f   : > { %v7767_v53 = vsel %vm7592_vm7, %v7766_v33, %v7762_v43  ;;  %v4586_v33 = vld [vmem:[%s12259_s17 + $0x3c8] sm:$0xff] }
 0x210   : > { %v7776_v54 = vrot.slane %v6555_v45, %v12473_v19  ;;  %v7771_v55 = vrot.slane %v6554_v48, %v12479_v24  ;;  %5318 = vadd.xlane.f32.xlu1 %v5317_v40  ;;  %5315 = vadd.xlane.f32.xlu0 %v5314_v41  ;;  %v5341_v45 = vsel %vm4977_vm0, %v4586_v33, 0.0  ;;  %v5338_v48 = vsel %vm4977_vm0, %v4585_v35, 0.0 }
 0x211   : > { %v5109_v56 = vpop.xlane.xlu1 %5108  ;;  %v5106_v57 = vpop.xlane.xlu0 %5105 }
 0x212   : > { %v7772_v61 = vsel %vm7599_vm8, %v7771_v55, %v7767_v53  ;;  %v6557_v63 = vmul.f32 0.020408163, %v5109_v56  ;;  %v6556_v0 = vmul.f32 0.020408163, %v5106_v57  ;;  %v4587_v55 = vld [vmem:[%s12259_s17 + $0x3d0] sm:$0xff] }
 0x213   : > { %v7777_v5 = vsel %vm14633_vm9, %v7776_v54, %v7772_v61  ;;  %v4588_v54 = vld [vmem:[%s12259_s17 + $0x3d8] sm:$0xff] }
 0x214   : > { %v7786_v6 = vrot.slane %v6557_v63, %v12489_v39  ;;  %v7781_v7 = vrot.slane %v6556_v0, %v12495_v44  ;;  %5324 = vadd.xlane.f32.xlu1 %v5323_v59  ;;  %5321 = vadd.xlane.f32.xlu0 %v5320_v60  ;;  %v5347_v63 = vsel %vm4977_vm0, %v4588_v54, 0.0  ;;  %v5344_v0 = vsel %vm4977_vm0, %v4587_v55, 0.0 }
 0x215   : > { %v5115_v8 = vpop.xlane.xlu1 %5114  ;;  %v5112_v9 = vpop.xlane.xlu0 %5111 }
 0x216   : > { %v7782_v18 = vsel %vm7613_vm10, %v7781_v7, %v7777_v5  ;;  %v6559_v13 = vmul.f32 0.020408163, %v5115_v8  ;;  %v6558_v15 = vmul.f32 0.020408163, %v5112_v9  ;;  %v4589_v7 = vld [vmem:[%s12259_s17 + $0x3e0] sm:$0xff] }
 0x217   : > { %v7787_v20 = vsel %vm14632_vm11, %v7786_v6, %v7782_v18  ;;  %v4590_v6 = vld [vmem:[%s12259_s17 + $0x3e8] sm:$0xff] }
 0x218   : > { %v7796_v22 = vrot.slane %v6559_v13, %v12505_v58  ;;  %v7791_v23 = vrot.slane %v6558_v15, %v12511_v62  ;;  %5330 = vadd.xlane.f32.xlu1 %v5329_v10  ;;  %5327 = vadd.xlane.f32.xlu0 %v5326_v11  ;;  %v5353_v18 = vsel %vm4977_vm0, %v4590_v6, 0.0  ;;  %v5350_v13 = vsel %vm4977_vm0, %v4589_v7, 0.0 }
 0x219   : > { %v5121_v25 = vpop.xlane.xlu1 %5120  ;;  %v5118_v26 = vpop.xlane.xlu0 %5117 }
 0x21a   : > { %v7792_v29 = vsel %vm7627_vm12, %v7791_v23, %v7787_v20  ;;  %v6561_v30 = vmul.f32 0.020408163, %v5121_v25  ;;  %v6560_v31 = vmul.f32 0.020408163, %v5118_v26  ;;  %v4592_v20 = vld [vmem:[%s12259_s17 + $0x3f8] sm:$0xff] }
 0x21b   : > { %v7797_v37 = vsel %vm7634_vm13, %v7796_v22, %v7792_v29  ;;  %v4591_v22 = vld [vmem:[%s12259_s17 + $0x3f0] sm:$0xff]  ;;  %v5359_v29 = vsel %vm4977_vm0, %v4592_v20, 0.0 }
 0x21c   : > { %v7806_v38 = vrot.slane %v6561_v30, %v12521_v12  ;;  %v7801_v40 = vrot.slane %v6560_v31, %v12526_v14  ;;  %5336 = vadd.xlane.f32.xlu1 %v5335_v27  ;;  %5333 = vadd.xlane.f32.xlu0 %v5332_v28  ;;  %v5356_v30 = vsel %vm4977_vm0, %v4591_v22, 0.0 }
 0x21d   : > { %v5127_v41 = vpop.xlane.xlu1 %5126  ;;  %v5124_v43 = vpop.xlane.xlu0 %5123 }
 0x21e   : > { %v7802_v49 = vsel %vm7641_vm14, %v7801_v40, %v7797_v37  ;;  %v6563_v51 = vmul.f32 0.020408163, %v5127_v41  ;;  %v6562_v53 = vmul.f32 0.020408163, %v5124_v43  ;;  %v4594_v37 = vld [vmem:[%s12259_s17 + $0x408] sm:$0xff] }
 0x21f   : > { %v12672_v56 = vsel %vm7648_vm15, %v7806_v38, %v7802_v49  ;;  %v4593_v38 = vld [vmem:[%s12259_s17 + $0x400] sm:$0xff]  ;;  %v5365_v49 = vsel %vm4977_vm0, %v4594_v37, 0.0 }
 0x220   : > { %v7815_v57 = vrot.slane %v6563_v51, %v12424_v34  ;;  %v7811_v59 = vrot.slane %v6562_v53, %v12421_v32  ;;  %5342 = vadd.xlane.f32.xlu1 %v5341_v45  ;;  %5339 = vadd.xlane.f32.xlu0 %v5338_v48  ;;  %v5362_v51 = vsel %vm4977_vm0, %v4593_v38, 0.0 }
 0x221   : > { %v5133_v60 = vpop.xlane.xlu1 %5132  ;;  %v5130_v61 = vpop.xlane.xlu0 %5129 }
 0x222   : > { %v7816_v3 = vsel %vm7550_vm1, %v7815_v57, %v7811_v59  ;;  %v6565_v4 = vmul.f32 0.020408163, %v5133_v60  ;;  %v6564_v5 = vmul.f32 0.020408163, %v5130_v61  ;;  %v4596_v57 = vld [vmem:[%s12259_s17 + $0x418] sm:$0xff]  ;;  %v4595_v59 = vld [vmem:[%s12259_s17 + $0x410] sm:$0xff] }
 0x224   : > { %v7825_v8 = vrot.slane %v6565_v4, %v12433_v42  ;;  %v7820_v9 = vrot.slane %v6564_v5, %v12428_v36  ;;  %5348 = vadd.xlane.f32.xlu1 %v5347_v63  ;;  %5345 = vadd.xlane.f32.xlu0 %v5344_v0  ;;  %v5371_v4 = vsel %vm4977_vm0, %v4596_v57, 0.0  ;;  %v5368_v5 = vsel %vm4977_vm0, %v4595_v59, 0.0 }
 0x225   : > { %v5139_v10 = vpop.xlane.xlu1 %5138  ;;  %v5136_v11 = vpop.xlane.xlu0 %5135 }
 0x226   : > { %v7821_v15 = vsel %vm7557_vm2, %v7820_v9, %v7816_v3  ;;  %v6567_v16 = vmul.f32 0.020408163, %v5139_v10  ;;  %v6566_v17 = vmul.f32 0.020408163, %v5136_v11  ;;  %v4598_v9 = vld [vmem:[%s12259_s17 + $0x428] sm:$0xff]  ;;  %v4597_v10 = vld [vmem:[%s12259_s17 + $0x420] sm:$0xff] }
 0x227   : > { %v7826_v23 = vsel %vm7564_vm3, %v7825_v8, %v7821_v15  ;;  %v5374_v20 = vsel %vm4977_vm0, %v4597_v10, 0.0 }
 0x228   : > { %v7835_v25 = vrot.slane %v6567_v16, %v12438_v47  ;;  %v7830_v26 = vrot.slane %v6566_v17, %v12445_v52  ;;  %5354 = vadd.xlane.f32.xlu1 %v5353_v18  ;;  %5351 = vadd.xlane.f32.xlu0 %v5350_v13  ;;  %v5377_v17 = vsel %vm4977_vm0, %v4598_v9, 0.0 }
 0x229   : > { %v5145_v27 = vpop.xlane.xlu1 %5144  ;;  %v5142_v28 = vpop.xlane.xlu0 %5141 }
 0x22a   : > { %v7831_v31 = vsel %vm7571_vm4, %v7830_v26, %v7826_v23  ;;  %v6569_v33 = vmul.f32 0.020408163, %v5145_v27  ;;  %v6568_v35 = vmul.f32 0.020408163, %v5142_v28  ;;  %v4600_v26 = vld [vmem:[%s12259_s17 + $0x438] sm:$0xff]  ;;  %v4599_v27 = vld [vmem:[%s12259_s17 + $0x430] sm:$0xff] }
 0x22b   : > { %v7836_v40 = vsel %vm7578_vm5, %v7835_v25, %v7831_v31  ;;  %v5380_v37 = vsel %vm4977_vm0, %v4599_v27, 0.0 }
 0x22c   : > { %v7845_v41 = vrot.slane %v6569_v33, %v12456_v1  ;;  %v7840_v43 = vrot.slane %v6568_v35, %v12459_v2  ;;  %5360 = vadd.xlane.f32.xlu1 %v5359_v29  ;;  %5357 = vadd.xlane.f32.xlu0 %v5356_v30  ;;  %v5383_v35 = vsel %vm4977_vm0, %v4600_v26, 0.0 }
 0x22d   : > { %v5151_v45 = vpop.xlane.xlu1 %5150  ;;  %v5148_v48 = vpop.xlane.xlu0 %5147 }
 0x22e   : > { %v7841_v53 = vsel %vm7585_vm6, %v7840_v43, %v7836_v40  ;;  %v6571_v54 = vmul.f32 0.020408163, %v5151_v45  ;;  %v6570_v55 = vmul.f32 0.020408163, %v5148_v48  ;;  %v4602_v43 = vld [vmem:[%s12259_s17 + $0x448] sm:$0xff]  ;;  %v4601_v45 = vld [vmem:[%s12259_s17 + $0x440] sm:$0xff] }
 0x22f   : > { %v7846_v60 = vsel %vm7592_vm7, %v7845_v41, %v7841_v53  ;;  %v5386_v57 = vsel %vm4977_vm0, %v4601_v45, 0.0 }
 0x230   : > { %v7855_v61 = vrot.slane %v6571_v54, %v12473_v19  ;;  %v7850_v63 = vrot.slane %v6570_v55, %v12479_v24  ;;  %5366 = vadd.xlane.f32.xlu1 %v5365_v49  ;;  %5363 = vadd.xlane.f32.xlu0 %v5362_v51  ;;  %v5389_v55 = vsel %vm4977_vm0, %v4602_v43, 0.0 }
 0x231   : > { %v5157_v0 = vpop.xlane.xlu1 %5156  ;;  %v5154_v3 = vpop.xlane.xlu0 %5153 }
 0x232   : > { %v7851_v6 = vsel %vm7599_vm8, %v7850_v63, %v7846_v60  ;;  %v6573_v7 = vmul.f32 0.020408163, %v5157_v0  ;;  %v6572_v8 = vmul.f32 0.020408163, %v5154_v3  ;;  %v4604_v63 = vld [vmem:[%s12259_s17 + $0x458] sm:$0xff]  ;;  %v4603_v0 = vld [vmem:[%s12259_s17 + $0x450] sm:$0xff] }
 0x233   : > { %v7856_v11 = vsel %vm14633_vm9, %v7855_v61, %v7851_v6  ;;  %v5392_v9 = vsel %vm4977_vm0, %v4603_v0, 0.0 }
 0x234   : > { %v7865_v18 = vrot.slane %v6573_v7, %v12489_v39  ;;  %v7860_v13 = vrot.slane %v6572_v8, %v12495_v44  ;;  %5372 = vadd.xlane.f32.xlu1 %v5371_v4  ;;  %5369 = vadd.xlane.f32.xlu0 %v5368_v5  ;;  %v5395_v8 = vsel %vm4977_vm0, %v4604_v63, 0.0 }
 0x235   : > { %v5163_v15 = vpop.xlane.xlu1 %5162  ;;  %v5160_v16 = vpop.xlane.xlu0 %5159 }
 0x236   : > { %v7861_v22 = vsel %vm7613_vm10, %v7860_v13, %v7856_v11  ;;  %v6575_v23 = vmul.f32 0.020408163, %v5163_v15  ;;  %v6574_v25 = vmul.f32 0.020408163, %v5160_v16  ;;  %v4606_v13 = vld [vmem:[%s12259_s17 + $0x468] sm:$0xff]  ;;  %v4605_v15 = vld [vmem:[%s12259_s17 + $0x460] sm:$0xff] }
 0x237   : > { %v7866_v28 = vsel %vm14632_vm11, %v7865_v18, %v7861_v22 }
 0x238   : > { %v7875_v29 = vrot.slane %v6575_v23, %v12505_v58  ;;  %v7870_v30 = vrot.slane %v6574_v25, %v12511_v62  ;;  %5378 = vadd.xlane.f32.xlu1 %v5377_v17  ;;  %5375 = vadd.xlane.f32.xlu0 %v5374_v20  ;;  %v5401_v23 = vsel %vm4977_vm0, %v4606_v13, 0.0  ;;  %v5398_v25 = vsel %vm4977_vm0, %v4605_v15, 0.0 }
 0x239   : > { %v5169_v31 = vpop.xlane.xlu1 %5168  ;;  %v5166_v33 = vpop.xlane.xlu0 %5165 }
 0x23a   : > { %v7871_v38 = vsel %vm7627_vm12, %v7870_v30, %v7866_v28  ;;  %v6577_v40 = vmul.f32 0.020408163, %v5169_v31  ;;  %v6576_v41 = vmul.f32 0.020408163, %v5166_v33  ;;  %v4607_v30 = vld [vmem:[%s12259_s17 + $0x470] sm:$0xff] }
 0x23b   : > { %v7876_v48 = vsel %vm7634_vm13, %v7875_v29, %v7871_v38  ;;  %v4608_v29 = vld [vmem:[%s12259_s17 + $0x478] sm:$0xff] }
 0x23c   : > { %v7885_v49 = vrot.slane %v6577_v40, %v12521_v12  ;;  %v7880_v51 = vrot.slane %v6576_v41, %v12526_v14  ;;  %5384 = vadd.xlane.f32.xlu1 %v5383_v35  ;;  %5381 = vadd.xlane.f32.xlu0 %v5380_v37  ;;  %v5407_v40 = vsel %vm4977_vm0, %v4608_v29, 0.0  ;;  %v5404_v41 = vsel %vm4977_vm0, %v4607_v30, 0.0 }
 0x23d   : > { %v5175_v53 = vpop.xlane.xlu1 %5174  ;;  %v5172_v54 = vpop.xlane.xlu0 %5171 }
 0x23e   : > { %v7881_v59 = vsel %vm7641_vm14, %v7880_v51, %v7876_v48  ;;  %v6579_v60 = vmul.f32 0.020408163, %v5175_v53  ;;  %v6578_v61 = vmul.f32 0.020408163, %v5172_v54  ;;  %v4609_v51 = vld [vmem:[%s12259_s17 + $0x480] sm:$0xff] }
 0x23f   : > { %v12737_v3 = vsel %vm7648_vm15, %v7885_v49, %v7881_v59  ;;  %v4610_v49 = vld [vmem:[%s12259_s17 + $0x488] sm:$0xff] }
 0x240   : > { %v7894_v4 = vrot.slane %v6579_v60, %v12424_v34  ;;  %v7890_v5 = vrot.slane %v6578_v61, %v12421_v32  ;;  %5390 = vadd.xlane.f32.xlu1 %v5389_v55  ;;  %5387 = vadd.xlane.f32.xlu0 %v5386_v57  ;;  %v5413_v60 = vsel %vm4977_vm0, %v4610_v49, 0.0  ;;  %v5410_v61 = vsel %vm4977_vm0, %v4609_v51, 0.0 }
 0x241   : > { %v5181_v6 = vpop.xlane.xlu1 %5180  ;;  %v5178_v7 = vpop.xlane.xlu0 %5177 }
 0x242   : > { %v7895_v10 = vsel %vm7550_vm1, %v7894_v4, %v7890_v5  ;;  %v6581_v11 = vmul.f32 0.020408163, %v5181_v6  ;;  %v6580_v18 = vmul.f32 0.020408163, %v5178_v7  ;;  %v4612_v5 = vld [vmem:[%s12259_s17 + $0x498] sm:$0xff]  ;;  %v4611_v6 = vld [vmem:[%s12259_s17 + $0x490] sm:$0xff] }
 0x243   : > { %v5416_v13 = vsel %vm4977_vm0, %v4611_v6, 0.0 }
 0x244   : > { %v7904_v16 = vrot.slane %v6581_v11, %v12433_v42  ;;  %v7899_v17 = vrot.slane %v6580_v18, %v12428_v36  ;;  %5396 = vadd.xlane.f32.xlu1 %v5395_v8  ;;  %5393 = vadd.xlane.f32.xlu0 %v5392_v9  ;;  %v5419_v18 = vsel %vm4977_vm0, %v4612_v5, 0.0 }
 0x245   : > { %v5187_v20 = vpop.xlane.xlu1 %5186  ;;  %v5184_v22 = vpop.xlane.xlu0 %5183 }
 0x246   : > { %v7900_v26 = vsel %vm7557_vm2, %v7899_v17, %v7895_v10  ;;  %v6583_v27 = vmul.f32 0.020408163, %v5187_v20  ;;  %v6582_v28 = vmul.f32 0.020408163, %v5184_v22  ;;  %v4614_v20 = vld [vmem:[%s12259_s17 + $0x4a8] sm:$0xff]  ;;  %v4613_v22 = vld [vmem:[%s12259_s17 + $0x4a0] sm:$0xff] }
 0x247   : > { %v7905_v31 = vsel %vm7564_vm3, %v7904_v16, %v7900_v26  ;;  %v5425_v29 = vsel %vm4977_vm0, %v4614_v20, 0.0  ;;  %v5422_v30 = vsel %vm4977_vm0, %v4613_v22, 0.0 }
 0x248   : > { %v7914_v33 = vrot.slane %v6583_v27, %v12438_v47  ;;  %v7909_v35 = vrot.slane %v6582_v28, %v12445_v52  ;;  %5402 = vadd.xlane.f32.xlu1 %v5401_v23  ;;  %5399 = vadd.xlane.f32.xlu0 %v5398_v25 }
 0x249   : > { %v5193_v37 = vpop.xlane.xlu1 %5192  ;;  %v5190_v38 = vpop.xlane.xlu0 %5189 }
 0x24a   : > { %v7910_v43 = vsel %vm7571_vm4, %v7909_v35, %v7905_v31  ;;  %v6585_v45 = vmul.f32 0.020408163, %v5193_v37  ;;  %v6584_v48 = vmul.f32 0.020408163, %v5190_v38  ;;  %v4616_v37 = vld [vmem:[%s12259_s17 + $0x4b8] sm:$0xff]  ;;  %v4615_v38 = vld [vmem:[%s12259_s17 + $0x4b0] sm:$0xff] }
 0x24b   : > { %v7915_v53 = vsel %vm7578_vm5, %v7914_v33, %v7910_v43  ;;  %v5431_v49 = vsel %vm4977_vm0, %v4616_v37, 0.0  ;;  %v5428_v51 = vsel %vm4977_vm0, %v4615_v38, 0.0 }
 0x24c   : > { %v7924_v54 = vrot.slane %v6585_v45, %v12456_v1  ;;  %v7919_v55 = vrot.slane %v6584_v48, %v12459_v2  ;;  %5408 = vadd.xlane.f32.xlu1 %v5407_v40  ;;  %5405 = vadd.xlane.f32.xlu0 %v5404_v41 }
 0x24d   : > { %v5199_v57 = vpop.xlane.xlu1 %5198  ;;  %v5196_v59 = vpop.xlane.xlu0 %5195 }
 0x24e   : > { %v7920_v63 = vsel %vm7585_vm6, %v7919_v55, %v7915_v53  ;;  %v6587_v0 = vmul.f32 0.020408163, %v5199_v57  ;;  %v6586_v4 = vmul.f32 0.020408163, %v5196_v59  ;;  %v4618_v57 = vld [vmem:[%s12259_s17 + $0x4c8] sm:$0xff]  ;;  %v4617_v59 = vld [vmem:[%s12259_s17 + $0x4c0] sm:$0xff] }
 0x24f   : > { %v7925_v7 = vsel %vm7592_vm7, %v7924_v54, %v7920_v63  ;;  %v5437_v5 = vsel %vm4977_vm0, %v4618_v57, 0.0  ;;  %v5434_v6 = vsel %vm4977_vm0, %v4617_v59, 0.0 }
 0x250   : > { %v7934_v8 = vrot.slane %v6587_v0, %v12473_v19  ;;  %v7929_v9 = vrot.slane %v6586_v4, %v12479_v24  ;;  %5414 = vadd.xlane.f32.xlu1 %v5413_v60  ;;  %5411 = vadd.xlane.f32.xlu0 %v5410_v61 }
 0x251   : > { %v5205_v10 = vpop.xlane.xlu1 %5204  ;;  %v5202_v11 = vpop.xlane.xlu0 %5201 }
 0x252   : > { %v7930_v15 = vsel %vm7599_vm8, %v7929_v9, %v7925_v7  ;;  %v6589_v16 = vmul.f32 0.020408163, %v5205_v10  ;;  %v6588_v17 = vmul.f32 0.020408163, %v5202_v11  ;;  %v4620_v10 = vld [vmem:[%s12259_s17 + $0x4d8] sm:$0xff]  ;;  %v4619_v11 = vld [vmem:[%s12259_s17 + $0x4d0] sm:$0xff] }
 0x253   : > { %v7935_v23 = vsel %vm14633_vm9, %v7934_v8, %v7930_v15  ;;  %v5443_v22 = vsel %vm4977_vm0, %v4620_v10, 0.0 }
 0x254   : > { %v7944_v25 = vrot.slane %v6589_v16, %v12489_v39  ;;  %v7939_v26 = vrot.slane %v6588_v17, %v12495_v44  ;;  %5420 = vadd.xlane.f32.xlu1 %v5419_v18  ;;  %5417 = vadd.xlane.f32.xlu0 %v5416_v13 }
 0x255   : > { %v5211_v27 = vpop.xlane.xlu1 %5210  ;;  %v5208_v28 = vpop.xlane.xlu0 %5207 }
 0x256   : > { %v7940_v31 = vsel %vm7613_vm10, %v7939_v26, %v7935_v23  ;;  %v6591_v33 = vmul.f32 0.020408163, %v5211_v27  ;;  %v6590_v35 = vmul.f32 0.020408163, %v5208_v28  ;;  %v5440_v23 = vsel %vm4977_vm0, %v4619_v11, 0.0  ;;  %v4621_v28 = vld [vmem:[%s12259_s17 + $0x4e0] sm:$0xff] }
 0x257   : > { %v7945_v40 = vsel %vm14632_vm11, %v7944_v25, %v7940_v31  ;;  %vm10099_vm11 = vcmask 1041409   ;;  %v5446_v37 = vsel %vm4977_vm0, %v4621_v28, 0.0 }
 0x258   : > { %v7954_v41 = vrot.slane %v6591_v33, %v12505_v58  ;;  %v7949_v43 = vrot.slane %v6590_v35, %v12511_v62  ;;  %5426 = vadd.xlane.f32.xlu1 %v5425_v29  ;;  %5423 = vadd.xlane.f32.xlu0 %v5422_v30 }
 0x259   : > { %v5217_v45 = vpop.xlane.xlu1 %5216  ;;  %v5214_v48 = vpop.xlane.xlu0 %5213 }
 0x25a   : > { %v7950_v53 = vsel %vm7627_vm12, %v7949_v43, %v7945_v40  ;;  %v6593_v54 = vmul.f32 0.020408163, %v5217_v45  ;;  %v6592_v55 = vmul.f32 0.020408163, %v5214_v48  ;;  %v4624_v43 = vld [vmem:[%s12259_s17 + $0x4f8] sm:$0xff]  ;;  %v4623_v45 = vld [vmem:[%s12259_s17 + $0x4f0] sm:$0xff] }
 0x25b   : > { %v7955_v60 = vsel %vm7634_vm13, %v7954_v41, %v7950_v53  ;;  %v5452_v57 = vsel %vm4977_vm0, %v4623_v45, 0.0 }
 0x25c   : > { %v7964_v61 = vrot.slane %v6593_v54, %v12521_v12  ;;  %v7959_v63 = vrot.slane %v6592_v55, %v12526_v14  ;;  %5432 = vadd.xlane.f32.xlu1 %v5431_v49  ;;  %5429 = vadd.xlane.f32.xlu0 %v5428_v51  ;;  %v5455_v55 = vsel %vm4977_vm0, %v4624_v43, 0.0 }
 0x25d   : > { %v5223_v0 = vpop.xlane.xlu1 %5222  ;;  %v5220_v4 = vpop.xlane.xlu0 %5219 }
 0x25e   : > { %v7960_v7 = vsel %vm7641_vm14, %v7959_v63, %v7955_v60  ;;  %v6595_v8 = vmul.f32 0.020408163, %v5223_v0  ;;  %v6594_v9 = vmul.f32 0.020408163, %v5220_v4  ;;  %v4626_v63 = vld [vmem:[%s12259_s17 + $0x508] sm:$0xff]  ;;  %v4625_v0 = vld [vmem:[%s12259_s17 + $0x500] sm:$0xff] }
 0x25f   : > { %v7965_v18 = vsel %vm7648_vm15, %v7964_v61, %v7960_v7  ;;  %v5458_v10 = vsel %vm4977_vm0, %v4625_v0, 0.0 }
 0x260   : > { %v12804_v13 = vsel %vm10099_vm11, %v7965_v18, %v12542_v46  ;;  %v7973_v15 = vrot.slane %v6595_v8, %v12424_v34  ;;  %v7969_v16 = vrot.slane %v6594_v9, %v12421_v32  ;;  %5438 = vadd.xlane.f32.xlu1 %v5437_v5  ;;  %5435 = vadd.xlane.f32.xlu0 %v5434_v6  ;;  %v4622_v46 = vld [vmem:[%s12259_s17 + $0x4e8] sm:$0xff]  ;;  %v5461_v9 = vsel %vm4977_vm0, %v4626_v63, 0.0 }
 0x261   : > { %v5229_v17 = vpop.xlane.xlu1 %5228  ;;  %v5226_v20 = vpop.xlane.xlu0 %5225  ;;  %v5449_v35 = vsel %vm4977_vm0, %v4622_v46, 0.0 }
 0x262   : > { %v7974_v25 = vsel %vm7550_vm1, %v7973_v15, %v7969_v16  ;;  %v6597_v26 = vmul.f32 0.020408163, %v5229_v17  ;;  %v6596_v27 = vmul.f32 0.020408163, %v5226_v20  ;;  %v4628_v16 = vld [vmem:[%s12259_s17 + $0x518] sm:$0xff]  ;;  %v4627_v17 = vld [vmem:[%s12259_s17 + $0x510] sm:$0xff] }
 0x263   : > { %v5464_v46 = vsel %vm4977_vm0, %v4627_v17, 0.0 }
 0x264   : > { %v7983_v29 = vrot.slane %v6597_v26, %v12433_v42  ;;  %v7978_v30 = vrot.slane %v6596_v27, %v12428_v36  ;;  %5444 = vadd.xlane.f32.xlu1 %v5443_v22  ;;  %5441 = vadd.xlane.f32.xlu0 %v5440_v23  ;;  %v5467_v27 = vsel %vm4977_vm0, %v4628_v16, 0.0 }
 0x265   : > { %v5235_v31 = vpop.xlane.xlu1 %5234  ;;  %v5232_v33 = vpop.xlane.xlu0 %5231 }
 0x266   : > { %v7979_v38 = vsel %vm7557_vm2, %v7978_v30, %v7974_v25  ;;  %v6599_v40 = vmul.f32 0.020408163, %v5235_v31  ;;  %v6598_v41 = vmul.f32 0.020408163, %v5232_v33  ;;  %v4630_v31 = vld [vmem:[%s12259_s17 + $0x528] sm:$0xff]  ;;  %v4629_v33 = vld [vmem:[%s12259_s17 + $0x520] sm:$0xff] }
 0x267   : > { %v7984_v48 = vsel %vm7564_vm3, %v7983_v29, %v7979_v38  ;;  %v5473_v43 = vsel %vm4977_vm0, %v4630_v31, 0.0  ;;  %v5470_v45 = vsel %vm4977_vm0, %v4629_v33, 0.0 }
 0x268   : > { %v7993_v49 = vrot.slane %v6599_v40, %v12438_v47  ;;  %v7988_v51 = vrot.slane %v6598_v41, %v12445_v52  ;;  %5450 = vadd.xlane.f32.xlu1 %v5449_v35  ;;  %5447 = vadd.xlane.f32.xlu0 %v5446_v37 }
 0x269   : > { %v5241_v53 = vpop.xlane.xlu1 %5240  ;;  %v5238_v54 = vpop.xlane.xlu0 %5237 }
 0x26a   : > { %v7989_v59 = vsel %vm7571_vm4, %v7988_v51, %v7984_v48  ;;  %v6601_v60 = vmul.f32 0.020408163, %v5241_v53  ;;  %v6600_v61 = vmul.f32 0.020408163, %v5238_v54  ;;  %v4632_v53 = vld [vmem:[%s12259_s17 + $0x538] sm:$0xff]  ;;  %v4631_v54 = vld [vmem:[%s12259_s17 + $0x530] sm:$0xff] }
 0x26b   : > { %v7994_v4 = vsel %vm7578_vm5, %v7993_v49, %v7989_v59  ;;  %v5479_v63 = vsel %vm4977_vm0, %v4632_v53, 0.0  ;;  %v5476_v0 = vsel %vm4977_vm0, %v4631_v54, 0.0 }
 0x26c   : > { %v8003_v5 = vrot.slane %v6601_v60, %v12456_v1  ;;  %v7998_v6 = vrot.slane %v6600_v61, %v12459_v2  ;;  %5456 = vadd.xlane.f32.xlu1 %v5455_v55  ;;  %5453 = vadd.xlane.f32.xlu0 %v5452_v57 }
 0x26d   : > { %v5247_v7 = vpop.xlane.xlu1 %5246  ;;  %v5244_v8 = vpop.xlane.xlu0 %5243 }
 0x26e   : > { %v7999_v11 = vsel %vm7585_vm6, %v7998_v6, %v7994_v4  ;;  %v6603_v18 = vmul.f32 0.020408163, %v5247_v7  ;;  %v6602_v15 = vmul.f32 0.020408163, %v5244_v8  ;;  %v4634_v7 = vld [vmem:[%s12259_s17 + $0x548] sm:$0xff]  ;;  %v4633_v8 = vld [vmem:[%s12259_s17 + $0x540] sm:$0xff] }
 0x26f   : > { %v8004_v20 = vsel %vm7592_vm7, %v8003_v5, %v7999_v11  ;;  %v5485_v16 = vsel %vm4977_vm0, %v4634_v7, 0.0  ;;  %v5482_v17 = vsel %vm4977_vm0, %v4633_v8, 0.0 }
 0x270   : > { %v8013_v22 = vrot.slane %v6603_v18, %v12473_v19  ;;  %v8008_v23 = vrot.slane %v6602_v15, %v12479_v24  ;;  %5462 = vadd.xlane.f32.xlu1 %v5461_v9  ;;  %5459 = vadd.xlane.f32.xlu0 %v5458_v10 }
 0x271   : > { %v5253_v25 = vpop.xlane.xlu1 %5252  ;;  %v5250_v26 = vpop.xlane.xlu0 %5249 }
 0x272   : > { %v8009_v28 = vsel %vm7599_vm8, %v8008_v23, %v8004_v20  ;;  %v6605_v29 = vmul.f32 0.020408163, %v5253_v25  ;;  %v6604_v30 = vmul.f32 0.020408163, %v5250_v26  ;;  %v4636_v25 = vld [vmem:[%s12259_s17 + $0x558] sm:$0xff]  ;;  %v4635_v26 = vld [vmem:[%s12259_s17 + $0x550] sm:$0xff] }
 0x273   : > { %v8014_v35 = vsel %vm14633_vm9, %v8013_v22, %v8009_v28  ;;  %vm14634_vm9 = vcmask 786112   ;;  %v5491_v33 = vsel %vm4977_vm0, %v4636_v25, 0.0 }
 0x274   : > { %v8023_v37 = vrot.slane %v6605_v29, %v12489_v39  ;;  %v8018_v38 = vrot.slane %v6604_v30, %v12495_v44  ;;  %5468 = vadd.xlane.f32.xlu1 %v5467_v27  ;;  %5465 = vadd.xlane.f32.xlu0 %v5464_v46 }
 0x275   : > { %v5259_v40 = vpop.xlane.xlu1 %5258  ;;  %v5256_v41 = vpop.xlane.xlu0 %5255 }
 0x276   : > { %v8019_v48 = vsel %vm7613_vm10, %v8018_v38, %v8014_v35  ;;  %v6607_v49 = vmul.f32 0.020408163, %v5259_v40  ;;  %v6606_v51 = vmul.f32 0.020408163, %v5256_v41  ;;  %v5488_v35 = vsel %vm4977_vm0, %v4635_v26, 0.0  ;;  %v4637_v41 = vld [vmem:[%s12259_s17 + $0x560] sm:$0xff] }
 0x277   : > { %v8024_v55 = vsel %vm14634_vm9, %v8023_v37, %v8019_v48  ;;  %v5494_v53 = vsel %vm4977_vm0, %v4637_v41, 0.0  ;;  %vm14635_vm9 = vcmask 654912  }
 0x278   : > { %v8033_v57 = vrot.slane %v6607_v49, %v12505_v58  ;;  %v8028_v59 = vrot.slane %v6606_v51, %v12511_v62  ;;  %5474 = vadd.xlane.f32.xlu1 %v5473_v43  ;;  %5471 = vadd.xlane.f32.xlu0 %v5470_v45 }
 0x279   : > { %v5265_v60 = vpop.xlane.xlu1 %5264  ;;  %v5262_v61 = vpop.xlane.xlu0 %5261 }
 0x27a   : > { %v8029_v4 = vsel %vm7627_vm12, %v8028_v59, %v8024_v55  ;;  %v6609_v5 = vmul.f32 0.020408163, %v5265_v60  ;;  %v6608_v6 = vmul.f32 0.020408163, %v5262_v61  ;;  %v4640_v59 = vld [vmem:[%s12259_s17 + $0x578] sm:$0xff]  ;;  %v4639_v60 = vld [vmem:[%s12259_s17 + $0x570] sm:$0xff] }
 0x27b   : > { %v8034_v9 = vsel %vm7634_vm13, %v8033_v57, %v8029_v4  ;;  %v5500_v7 = vsel %vm4977_vm0, %v4639_v60, 0.0 }
 0x27c   : > { %v8043_v10 = vrot.slane %v6609_v5, %v12521_v12  ;;  %v8038_v11 = vrot.slane %v6608_v6, %v12526_v14  ;;  %5480 = vadd.xlane.f32.xlu1 %v5479_v63  ;;  %5477 = vadd.xlane.f32.xlu0 %v5476_v0  ;;  %v5503_v6 = vsel %vm4977_vm0, %v4640_v59, 0.0 }
 0x27d   : > { %v5271_v18 = vpop.xlane.xlu1 %5270  ;;  %v5268_v15 = vpop.xlane.xlu0 %5267 }
 0x27e   : > { %v8039_v20 = vsel %vm7641_vm14, %v8038_v11, %v8034_v9  ;;  %v6611_v22 = vmul.f32 0.020408163, %v5271_v18  ;;  %v6610_v23 = vmul.f32 0.020408163, %v5268_v15  ;;  %v4642_v11 = vld [vmem:[%s12259_s17 + $0x588] sm:$0xff]  ;;  %v4641_v18 = vld [vmem:[%s12259_s17 + $0x580] sm:$0xff] }
 0x27f   : > { %v8044_v27 = vsel %vm7648_vm15, %v8043_v10, %v8039_v20  ;;  %v5506_v25 = vsel %vm4977_vm0, %v4641_v18, 0.0 }
 0x280   : > { %v12871_v46 = vsel %vm10099_vm11, %v8044_v27, %v12607_v50  ;;  %v8052_v28 = vrot.slane %v6611_v22, %v12424_v34  ;;  %v8048_v29 = vrot.slane %v6610_v23, %v12421_v32  ;;  %5486 = vadd.xlane.f32.xlu1 %v5485_v16  ;;  %5483 = vadd.xlane.f32.xlu0 %v5482_v17  ;;  %v4638_v50 = vld [vmem:[%s12259_s17 + $0x568] sm:$0xff]  ;;  %v5509_v23 = vsel %vm4977_vm0, %v4642_v11, 0.0 }
 0x281   : > { %v5277_v30 = vpop.xlane.xlu1 %5276  ;;  %v5274_v31 = vpop.xlane.xlu0 %5273  ;;  %v5497_v51 = vsel %vm4977_vm0, %v4638_v50, 0.0 }
 0x282   : > { %v8053_v37 = vsel %vm7550_vm1, %v8052_v28, %v8048_v29  ;;  %v6613_v38 = vmul.f32 0.020408163, %v5277_v30  ;;  %v6612_v40 = vmul.f32 0.020408163, %v5274_v31  ;;  %v4644_v29 = vld [vmem:[%s12259_s17 + $0x598] sm:$0xff]  ;;  %v4643_v30 = vld [vmem:[%s12259_s17 + $0x590] sm:$0xff] }
 0x283   : > { %v5512_v50 = vsel %vm4977_vm0, %v4643_v30, 0.0 }
 0x284   : > { %v8062_v43 = vrot.slane %v6613_v38, %v12433_v42  ;;  %v8057_v45 = vrot.slane %v6612_v40, %v12428_v36  ;;  %5492 = vadd.xlane.f32.xlu1 %v5491_v33  ;;  %5489 = vadd.xlane.f32.xlu0 %v5488_v35  ;;  %v5515_v40 = vsel %vm4977_vm0, %v4644_v29, 0.0 }
 0x285   : > { %v5283_v48 = vpop.xlane.xlu1 %5282  ;;  %v5280_v49 = vpop.xlane.xlu0 %5279 }
 0x286   : > { %v8058_v54 = vsel %vm7557_vm2, %v8057_v45, %v8053_v37  ;;  %v6615_v55 = vmul.f32 0.020408163, %v5283_v48  ;;  %v6614_v57 = vmul.f32 0.020408163, %v5280_v49  ;;  %v4646_v48 = vld [vmem:[%s12259_s17 + $0x5a8] sm:$0xff]  ;;  %v4645_v49 = vld [vmem:[%s12259_s17 + $0x5a0] sm:$0xff] }
 0x287   : > { %v8063_v61 = vsel %vm7564_vm3, %v8062_v43, %v8058_v54  ;;  %v5521_v59 = vsel %vm4977_vm0, %v4646_v48, 0.0  ;;  %v5518_v60 = vsel %vm4977_vm0, %v4645_v49, 0.0 }
 0x288   : > { %v8072_v63 = vrot.slane %v6615_v55, %v12438_v47  ;;  %v8067_v0 = vrot.slane %v6614_v57, %v12445_v52  ;;  %5498 = vadd.xlane.f32.xlu1 %v5497_v51  ;;  %5495 = vadd.xlane.f32.xlu0 %v5494_v53 }
 0x289   : > { %v5289_v4 = vpop.xlane.xlu1 %5288  ;;  %v5286_v5 = vpop.xlane.xlu0 %5285 }
 0x28a   : > { %v8068_v8 = vsel %vm7571_vm4, %v8067_v0, %v8063_v61  ;;  %v6617_v9 = vmul.f32 0.020408163, %v5289_v4  ;;  %v6616_v10 = vmul.f32 0.020408163, %v5286_v5  ;;  %v4648_v4 = vld [vmem:[%s12259_s17 + $0x5b8] sm:$0xff]  ;;  %v4647_v5 = vld [vmem:[%s12259_s17 + $0x5b0] sm:$0xff] }
 0x28b   : > { %v8073_v15 = vsel %vm7578_vm5, %v8072_v63, %v8068_v8  ;;  %v5527_v11 = vsel %vm4977_vm0, %v4648_v4, 0.0  ;;  %v5524_v18 = vsel %vm4977_vm0, %v4647_v5, 0.0 }
 0x28c   : > { %v8082_v16 = vrot.slane %v6617_v9, %v12456_v1  ;;  %v8077_v17 = vrot.slane %v6616_v10, %v12459_v2  ;;  %5504 = vadd.xlane.f32.xlu1 %v5503_v6  ;;  %5501 = vadd.xlane.f32.xlu0 %v5500_v7 }
 0x28d   : > { %v5295_v20 = vpop.xlane.xlu1 %5294  ;;  %v5292_v22 = vpop.xlane.xlu0 %5291 }
 0x28e   : > { %v8078_v26 = vsel %vm7585_vm6, %v8077_v17, %v8073_v15  ;;  %v6619_v27 = vmul.f32 0.020408163, %v5295_v20  ;;  %v6618_v28 = vmul.f32 0.020408163, %v5292_v22  ;;  %v4650_v20 = vld [vmem:[%s12259_s17 + $0x5c8] sm:$0xff]  ;;  %v4649_v22 = vld [vmem:[%s12259_s17 + $0x5c0] sm:$0xff] }
 0x28f   : > { %v8083_v31 = vsel %vm7592_vm7, %v8082_v16, %v8078_v26  ;;  %v5533_v29 = vsel %vm4977_vm0, %v4650_v20, 0.0  ;;  %v5530_v30 = vsel %vm4977_vm0, %v4649_v22, 0.0 }
 0x290   : > { %v8092_v33 = vrot.slane %v6619_v27, %v12473_v19  ;;  %v8087_v35 = vrot.slane %v6618_v28, %v12479_v24  ;;  %5510 = vadd.xlane.f32.xlu1 %v5509_v23  ;;  %5507 = vadd.xlane.f32.xlu0 %v5506_v25 }
 0x291   : > { %v5301_v37 = vpop.xlane.xlu1 %5300  ;;  %v5298_v38 = vpop.xlane.xlu0 %5297 }
 0x292   : > { %v8088_v41 = vsel %vm7599_vm8, %v8087_v35, %v8083_v31  ;;  %v6621_v43 = vmul.f32 0.020408163, %v5301_v37  ;;  %v6620_v45 = vmul.f32 0.020408163, %v5298_v38  ;;  %v4652_v37 = vld [vmem:[%s12259_s17 + $0x5d8] sm:$0xff]  ;;  %v4651_v38 = vld [vmem:[%s12259_s17 + $0x5d0] sm:$0xff] }
 0x293   : > { %v8093_v51 = vsel %vm14635_vm9, %v8092_v33, %v8088_v41  ;;  %vm14636_vm9 = vcmask 786112   ;;  %v5539_v49 = vsel %vm4977_vm0, %v4652_v37, 0.0 }
 0x294   : > { %v8102_v53 = vrot.slane %v6621_v43, %v12489_v39  ;;  %v8097_v54 = vrot.slane %v6620_v45, %v12495_v44  ;;  %5516 = vadd.xlane.f32.xlu1 %v5515_v40  ;;  %5513 = vadd.xlane.f32.xlu0 %v5512_v50 }
 0x295   : > { %v5307_v55 = vpop.xlane.xlu1 %5306  ;;  %v5304_v57 = vpop.xlane.xlu0 %5303 }
 0x296   : > { %v8098_v61 = vsel %vm7613_vm10, %v8097_v54, %v8093_v51  ;;  %v6623_v63 = vmul.f32 0.020408163, %v5307_v55  ;;  %v6622_v0 = vmul.f32 0.020408163, %v5304_v57  ;;  %v5536_v51 = vsel %vm4977_vm0, %v4651_v38, 0.0  ;;  %v4653_v57 = vld [vmem:[%s12259_s17 + $0x5e0] sm:$0xff] }
 0x297   : > { %v8103_v6 = vsel %vm14636_vm9, %v8102_v53, %v8098_v61  ;;  %v5542_v4 = vsel %vm4977_vm0, %v4653_v57, 0.0  ;;  %vm14637_vm9 = vcmask 654912  }
 0x298   : > { %v8112_v7 = vrot.slane %v6623_v63, %v12505_v58  ;;  %v8107_v8 = vrot.slane %v6622_v0, %v12511_v62  ;;  %5522 = vadd.xlane.f32.xlu1 %v5521_v59  ;;  %5519 = vadd.xlane.f32.xlu0 %v5518_v60 }
 0x299   : > { %v5313_v9 = vpop.xlane.xlu1 %5312  ;;  %v5310_v10 = vpop.xlane.xlu0 %5309 }
 0x29a   : > { %v8108_v15 = vsel %vm7627_vm12, %v8107_v8, %v8103_v6  ;;  %v6625_v16 = vmul.f32 0.020408163, %v5313_v9  ;;  %v6624_v17 = vmul.f32 0.020408163, %v5310_v10  ;;  %v4656_v8 = vld [vmem:[%s12259_s17 + $0x5f8] sm:$0xff]  ;;  %v4655_v9 = vld [vmem:[%s12259_s17 + $0x5f0] sm:$0xff] }
 0x29b   : > { %v8113_v23 = vsel %vm7634_vm13, %v8112_v7, %v8108_v15  ;;  %v5548_v20 = vsel %vm4977_vm0, %v4655_v9, 0.0 }
 0x29c   : > { %v8122_v25 = vrot.slane %v6625_v16, %v12521_v12  ;;  %v8117_v26 = vrot.slane %v6624_v17, %v12526_v14  ;;  %5528 = vadd.xlane.f32.xlu1 %v5527_v11  ;;  %5525 = vadd.xlane.f32.xlu0 %v5524_v18  ;;  %v5551_v17 = vsel %vm4977_vm0, %v4656_v8, 0.0 }
 0x29d   : > { %v5319_v27 = vpop.xlane.xlu1 %5318  ;;  %v5316_v28 = vpop.xlane.xlu0 %5315 }
 0x29e   : > { %v8118_v31 = vsel %vm7641_vm14, %v8117_v26, %v8113_v23  ;;  %v6627_v33 = vmul.f32 0.020408163, %v5319_v27  ;;  %v6626_v35 = vmul.f32 0.020408163, %v5316_v28  ;;  %v4658_v26 = vld [vmem:[%s12259_s17 + $0x608] sm:$0xff]  ;;  %v4657_v27 = vld [vmem:[%s12259_s17 + $0x600] sm:$0xff] }
 0x29f   : > { %v8123_v40 = vsel %vm7648_vm15, %v8122_v25, %v8118_v31  ;;  %v5554_v37 = vsel %vm4977_vm0, %v4657_v27, 0.0 }
 0x2a0   : > { %v12938_v50 = vsel %vm10099_vm11, %v8123_v40, %v12672_v56  ;;  %v8131_v41 = vrot.slane %v6627_v33, %v12424_v34  ;;  %v8127_v43 = vrot.slane %v6626_v35, %v12421_v32  ;;  %5534 = vadd.xlane.f32.xlu1 %v5533_v29  ;;  %5531 = vadd.xlane.f32.xlu0 %v5530_v30  ;;  %v4654_v56 = vld [vmem:[%s12259_s17 + $0x5e8] sm:$0xff]  ;;  %v5557_v35 = vsel %vm4977_vm0, %v4658_v26, 0.0 }
 0x2a1   : > { %v5325_v45 = vpop.xlane.xlu1 %5324  ;;  %v5322_v48 = vpop.xlane.xlu0 %5321  ;;  %v5545_v0 = vsel %vm4977_vm0, %v4654_v56, 0.0 }
 0x2a2   : > { %v8132_v53 = vsel %vm7550_vm1, %v8131_v41, %v8127_v43  ;;  %v6629_v54 = vmul.f32 0.020408163, %v5325_v45  ;;  %v6628_v55 = vmul.f32 0.020408163, %v5322_v48  ;;  %v4660_v43 = vld [vmem:[%s12259_s17 + $0x618] sm:$0xff]  ;;  %v4659_v45 = vld [vmem:[%s12259_s17 + $0x610] sm:$0xff] }
 0x2a3   : > { %v5560_v56 = vsel %vm4977_vm0, %v4659_v45, 0.0 }
 0x2a4   : > { %v8141_v59 = vrot.slane %v6629_v54, %v12433_v42  ;;  %v8136_v60 = vrot.slane %v6628_v55, %v12428_v36  ;;  %5540 = vadd.xlane.f32.xlu1 %v5539_v49  ;;  %5537 = vadd.xlane.f32.xlu0 %v5536_v51  ;;  %v5563_v55 = vsel %vm4977_vm0, %v4660_v43, 0.0 }
 0x2a5   : > { %v5331_v61 = vpop.xlane.xlu1 %5330  ;;  %v5328_v63 = vpop.xlane.xlu0 %5327 }
 0x2a6   : > { %v8137_v5 = vsel %vm7557_vm2, %v8136_v60, %v8132_v53  ;;  %v6631_v6 = vmul.f32 0.020408163, %v5331_v61  ;;  %v6630_v7 = vmul.f32 0.020408163, %v5328_v63  ;;  %v4662_v61 = vld [vmem:[%s12259_s17 + $0x628] sm:$0xff]  ;;  %v4661_v63 = vld [vmem:[%s12259_s17 + $0x620] sm:$0xff] }
 0x2a7   : > { %v8142_v10 = vsel %vm7564_vm3, %v8141_v59, %v8137_v5  ;;  %v5569_v8 = vsel %vm4977_vm0, %v4662_v61, 0.0  ;;  %v5566_v9 = vsel %vm4977_vm0, %v4661_v63, 0.0 }
 0x2a8   : > { %v8151_v11 = vrot.slane %v6631_v6, %v12438_v47  ;;  %v8146_v18 = vrot.slane %v6630_v7, %v12445_v52  ;;  %5546 = vadd.xlane.f32.xlu1 %v5545_v0  ;;  %5543 = vadd.xlane.f32.xlu0 %v5542_v4 }
 0x2a9   : > { %v5337_v15 = vpop.xlane.xlu1 %5336  ;;  %v5334_v16 = vpop.xlane.xlu0 %5333 }
 0x2aa   : > { %v8147_v22 = vsel %vm7571_vm4, %v8146_v18, %v8142_v10  ;;  %v6633_v23 = vmul.f32 0.020408163, %v5337_v15  ;;  %v6632_v25 = vmul.f32 0.020408163, %v5334_v16  ;;  %v4664_v15 = vld [vmem:[%s12259_s17 + $0x638] sm:$0xff]  ;;  %v4663_v16 = vld [vmem:[%s12259_s17 + $0x630] sm:$0xff] }
 0x2ab   : > { %v8152_v28 = vsel %vm7578_vm5, %v8151_v11, %v8147_v22  ;;  %v5575_v26 = vsel %vm4977_vm0, %v4664_v15, 0.0  ;;  %v5572_v27 = vsel %vm4977_vm0, %v4663_v16, 0.0 }
 0x2ac   : > { %v8161_v29 = vrot.slane %v6633_v23, %v12456_v1  ;;  %v8156_v30 = vrot.slane %v6632_v25, %v12459_v2  ;;  %5552 = vadd.xlane.f32.xlu1 %v5551_v17  ;;  %5549 = vadd.xlane.f32.xlu0 %v5548_v20 }
 0x2ad   : > { %v5343_v31 = vpop.xlane.xlu1 %5342  ;;  %v5340_v33 = vpop.xlane.xlu0 %5339 }
 0x2ae   : > { %v8157_v38 = vsel %vm7585_vm6, %v8156_v30, %v8152_v28  ;;  %v6635_v40 = vmul.f32 0.020408163, %v5343_v31  ;;  %v6634_v41 = vmul.f32 0.020408163, %v5340_v33  ;;  %v4666_v31 = vld [vmem:[%s12259_s17 + $0x648] sm:$0xff]  ;;  %v4665_v33 = vld [vmem:[%s12259_s17 + $0x640] sm:$0xff] }
 0x2af   : > { %v8162_v48 = vsel %vm7592_vm7, %v8161_v29, %v8157_v38  ;;  %v5581_v43 = vsel %vm4977_vm0, %v4666_v31, 0.0  ;;  %v5578_v45 = vsel %vm4977_vm0, %v4665_v33, 0.0 }
 0x2b0   : > { %v8171_v49 = vrot.slane %v6635_v40, %v12473_v19  ;;  %v8166_v51 = vrot.slane %v6634_v41, %v12479_v24  ;;  %5558 = vadd.xlane.f32.xlu1 %v5557_v35  ;;  %5555 = vadd.xlane.f32.xlu0 %v5554_v37 }
 0x2b1   : > { %v5349_v53 = vpop.xlane.xlu1 %5348  ;;  %v5346_v54 = vpop.xlane.xlu0 %5345 }
 0x2b2   : > { %v8167_v57 = vsel %vm7599_vm8, %v8166_v51, %v8162_v48  ;;  %v6637_v59 = vmul.f32 0.020408163, %v5349_v53  ;;  %v6636_v60 = vmul.f32 0.020408163, %v5346_v54  ;;  %v4668_v53 = vld [vmem:[%s12259_s17 + $0x658] sm:$0xff]  ;;  %v4667_v54 = vld [vmem:[%s12259_s17 + $0x650] sm:$0xff] }
 0x2b3   : > { %v8172_v0 = vsel %vm14637_vm9, %v8171_v49, %v8167_v57  ;;  %vm14638_vm9 = vcmask 786112   ;;  %v5587_v63 = vsel %vm4977_vm0, %v4668_v53, 0.0 }
 0x2b4   : > { %v8181_v4 = vrot.slane %v6637_v59, %v12489_v39  ;;  %v8176_v5 = vrot.slane %v6636_v60, %v12495_v44  ;;  %5564 = vadd.xlane.f32.xlu1 %v5563_v55  ;;  %5561 = vadd.xlane.f32.xlu0 %v5560_v56 }
 0x2b5   : > { %v5355_v6 = vpop.xlane.xlu1 %5354  ;;  %v5352_v7 = vpop.xlane.xlu0 %5351 }
 0x2b6   : > { %v8177_v10 = vsel %vm7613_vm10, %v8176_v5, %v8172_v0  ;;  %v6639_v11 = vmul.f32 0.020408163, %v5355_v6  ;;  %v6638_v18 = vmul.f32 0.020408163, %v5352_v7  ;;  %v5584_v0 = vsel %vm4977_vm0, %v4667_v54, 0.0  ;;  %v4669_v7 = vld [vmem:[%s12259_s17 + $0x660] sm:$0xff] }
 0x2b7   : > { %v8182_v17 = vsel %vm14638_vm9, %v8181_v4, %v8177_v10  ;;  %v5590_v15 = vsel %vm4977_vm0, %v4669_v7, 0.0 }
 0x2b8   : > { %v8191_v20 = vrot.slane %v6639_v11, %v12505_v58  ;;  %v8186_v22 = vrot.slane %v6638_v18, %v12511_v62  ;;  %5570 = vadd.xlane.f32.xlu1 %v5569_v8  ;;  %5567 = vadd.xlane.f32.xlu0 %v5566_v9 }
 0x2b9   : > { %v5361_v23 = vpop.xlane.xlu1 %5360  ;;  %v5358_v25 = vpop.xlane.xlu0 %5357 }
 0x2ba   : > { %v8187_v28 = vsel %vm7627_vm12, %v8186_v22, %v8182_v17  ;;  %v6641_v29 = vmul.f32 0.020408163, %v5361_v23  ;;  %v6640_v30 = vmul.f32 0.020408163, %v5358_v25  ;;  %v4672_v22 = vld [vmem:[%s12259_s17 + $0x678] sm:$0xff]  ;;  %v4671_v23 = vld [vmem:[%s12259_s17 + $0x670] sm:$0xff] }
 0x2bb   : > { %v8192_v35 = vsel %vm7634_vm13, %v8191_v20, %v8187_v28  ;;  %v5596_v31 = vsel %vm4977_vm0, %v4671_v23, 0.0 }
 0x2bc   : > { %v8201_v37 = vrot.slane %v6641_v29, %v12521_v12  ;;  %v8196_v38 = vrot.slane %v6640_v30, %v12526_v14  ;;  %5576 = vadd.xlane.f32.xlu1 %v5575_v26  ;;  %5573 = vadd.xlane.f32.xlu0 %v5572_v27  ;;  %v5599_v30 = vsel %vm4977_vm0, %v4672_v22, 0.0 }
 0x2bd   : > { %v5367_v40 = vpop.xlane.xlu1 %5366  ;;  %v5364_v41 = vpop.xlane.xlu0 %5363 }
 0x2be   : > { %v8197_v48 = vsel %vm7641_vm14, %v8196_v38, %v8192_v35  ;;  %v6643_v49 = vmul.f32 0.020408163, %v5367_v40  ;;  %v6642_v51 = vmul.f32 0.020408163, %v5364_v41  ;;  %v4674_v38 = vld [vmem:[%s12259_s17 + $0x688] sm:$0xff]  ;;  %v4673_v40 = vld [vmem:[%s12259_s17 + $0x680] sm:$0xff] }
 0x2bf   : > { %v8202_v55 = vsel %vm7648_vm15, %v8201_v37, %v8197_v48  ;;  %v5602_v53 = vsel %vm4977_vm0, %v4673_v40, 0.0 }
 0x2c0   : > { %v13005_v56 = vsel %vm10099_vm11, %v8202_v55, %v12737_v3  ;;  %v8210_v57 = vrot.slane %v6643_v49, %v12424_v34  ;;  %v8206_v59 = vrot.slane %v6642_v51, %v12421_v32  ;;  %5582 = vadd.xlane.f32.xlu1 %v5581_v43  ;;  %5579 = vadd.xlane.f32.xlu0 %v5578_v45  ;;  %v4670_v3 = vld [vmem:[%s12259_s17 + $0x668] sm:$0xff]  ;;  %v5605_v51 = vsel %vm4977_vm0, %v4674_v38, 0.0 }
 0x2c1   : > { %v5373_v60 = vpop.xlane.xlu1 %5372  ;;  %v5370_v61 = vpop.xlane.xlu0 %5369  ;;  %v5593_v18 = vsel %vm4977_vm0, %v4670_v3, 0.0  ;;  %vm14639_vm11 = vcmask 654912  }
 0x2c2   : > { %v8211_v4 = vsel %vm7550_vm1, %v8210_v57, %v8206_v59  ;;  %v6645_v5 = vmul.f32 0.020408163, %v5373_v60  ;;  %v6644_v6 = vmul.f32 0.020408163, %v5370_v61  ;;  %v4676_v59 = vld [vmem:[%s12259_s17 + $0x698] sm:$0xff]  ;;  %v4675_v60 = vld [vmem:[%s12259_s17 + $0x690] sm:$0xff] }
 0x2c3   : > { %v5608_v3 = vsel %vm4977_vm0, %v4675_v60, 0.0 }
 0x2c4   : > { %v8220_v8 = vrot.slane %v6645_v5, %v12433_v42  ;;  %v8215_v9 = vrot.slane %v6644_v6, %v12428_v36  ;;  %5588 = vadd.xlane.f32.xlu1 %v5587_v63  ;;  %5585 = vadd.xlane.f32.xlu0 %v5584_v0  ;;  %v5611_v6 = vsel %vm4977_vm0, %v4676_v59, 0.0 }
 0x2c5   : > { %v5379_v10 = vpop.xlane.xlu1 %5378  ;;  %v5376_v11 = vpop.xlane.xlu0 %5375 }
 0x2c6   : > { %v8216_v16 = vsel %vm7557_vm2, %v8215_v9, %v8211_v4  ;;  %v6647_v17 = vmul.f32 0.020408163, %v5379_v10  ;;  %v6646_v20 = vmul.f32 0.020408163, %v5376_v11  ;;  %v4678_v10 = vld [vmem:[%s12259_s17 + $0x6a8] sm:$0xff]  ;;  %v4677_v11 = vld [vmem:[%s12259_s17 + $0x6a0] sm:$0xff] }
 0x2c7   : > { %v8221_v25 = vsel %vm7564_vm3, %v8220_v8, %v8216_v16  ;;  %v5617_v22 = vsel %vm4977_vm0, %v4678_v10, 0.0  ;;  %v5614_v23 = vsel %vm4977_vm0, %v4677_v11, 0.0 }
 0x2c8   : > { %v8230_v26 = vrot.slane %v6647_v17, %v12438_v47  ;;  %v8225_v27 = vrot.slane %v6646_v20, %v12445_v52  ;;  %5594 = vadd.xlane.f32.xlu1 %v5593_v18  ;;  %5591 = vadd.xlane.f32.xlu0 %v5590_v15 }
 0x2c9   : > { %v5385_v28 = vpop.xlane.xlu1 %5384  ;;  %v5382_v29 = vpop.xlane.xlu0 %5381 }
 0x2ca   : > { %v8226_v33 = vsel %vm7571_vm4, %v8225_v27, %v8221_v25  ;;  %v6649_v35 = vmul.f32 0.020408163, %v5385_v28  ;;  %v6648_v37 = vmul.f32 0.020408163, %v5382_v29  ;;  %v4680_v28 = vld [vmem:[%s12259_s17 + $0x6b8] sm:$0xff]  ;;  %v4679_v29 = vld [vmem:[%s12259_s17 + $0x6b0] sm:$0xff] }
 0x2cb   : > { %v8231_v41 = vsel %vm7578_vm5, %v8230_v26, %v8226_v33  ;;  %v5623_v38 = vsel %vm4977_vm0, %v4680_v28, 0.0  ;;  %v5620_v40 = vsel %vm4977_vm0, %v4679_v29, 0.0 }
 0x2cc   : > { %v8240_v43 = vrot.slane %v6649_v35, %v12456_v1  ;;  %v8235_v45 = vrot.slane %v6648_v37, %v12459_v2  ;;  %5600 = vadd.xlane.f32.xlu1 %v5599_v30  ;;  %5597 = vadd.xlane.f32.xlu0 %v5596_v31 }
 0x2cd   : > { %v5391_v48 = vpop.xlane.xlu1 %5390  ;;  %v5388_v49 = vpop.xlane.xlu0 %5387 }
 0x2ce   : > { %v8236_v54 = vsel %vm7585_vm6, %v8235_v45, %v8231_v41  ;;  %v6651_v55 = vmul.f32 0.020408163, %v5391_v48  ;;  %v6650_v57 = vmul.f32 0.020408163, %v5388_v49  ;;  %v4682_v48 = vld [vmem:[%s12259_s17 + $0x6c8] sm:$0xff]  ;;  %v4681_v49 = vld [vmem:[%s12259_s17 + $0x6c0] sm:$0xff] }
 0x2cf   : > { %v8241_v61 = vsel %vm7592_vm7, %v8240_v43, %v8236_v54  ;;  %v5629_v59 = vsel %vm4977_vm0, %v4682_v48, 0.0  ;;  %v5626_v60 = vsel %vm4977_vm0, %v4681_v49, 0.0 }
 0x2d0   : > { %v8250_v63 = vrot.slane %v6651_v55, %v12473_v19  ;;  %v8245_v0 = vrot.slane %v6650_v57, %v12479_v24  ;;  %5606 = vadd.xlane.f32.xlu1 %v5605_v51  ;;  %5603 = vadd.xlane.f32.xlu0 %v5602_v53 }
 0x2d1   : > { %v5397_v4 = vpop.xlane.xlu1 %5396  ;;  %v5394_v5 = vpop.xlane.xlu0 %5393 }
 0x2d2   : > { %v8246_v7 = vsel %vm7599_vm8, %v8245_v0, %v8241_v61  ;;  %v6653_v8 = vmul.f32 0.020408163, %v5397_v4  ;;  %v6652_v9 = vmul.f32 0.020408163, %v5394_v5  ;;  %v4684_v4 = vld [vmem:[%s12259_s17 + $0x6d8] sm:$0xff]  ;;  %v4683_v5 = vld [vmem:[%s12259_s17 + $0x6d0] sm:$0xff] }
 0x2d3   : > { %v8251_v18 = vsel %vm14639_vm11, %v8250_v63, %v8246_v7  ;;  %vm10101_vm11 = vcmask 1042434   ;;  %v5635_v11 = vsel %vm4977_vm0, %v4684_v4, 0.0 }
 0x2d4   : > { %v8260_v15 = vrot.slane %v6653_v8, %v12489_v39  ;;  %v8255_v16 = vrot.slane %v6652_v9, %v12495_v44  ;;  %5612 = vadd.xlane.f32.xlu1 %v5611_v6  ;;  %5609 = vadd.xlane.f32.xlu0 %v5608_v3 }
 0x2d5   : > { %v5403_v17 = vpop.xlane.xlu1 %5402  ;;  %v5400_v20 = vpop.xlane.xlu0 %5399 }
 0x2d6   : > { %v8256_v25 = vsel %vm7613_vm10, %v8255_v16, %v8251_v18  ;;  %v6655_v26 = vmul.f32 0.020408163, %v5403_v17  ;;  %v6654_v27 = vmul.f32 0.020408163, %v5400_v20  ;;  %v5632_v18 = vsel %vm4977_vm0, %v4683_v5, 0.0  ;;  %v4685_v20 = vld [vmem:[%s12259_s17 + $0x6e0] sm:$0xff] }
 0x2d7   : > { %v8261_v30 = vsel %vm14638_vm9, %v8260_v15, %v8256_v25  ;;  %v5638_v28 = vsel %vm4977_vm0, %v4685_v20, 0.0  ;;  %vm14640_vm9 = vcmask 654912  }
 0x2d8   : > { %v8270_v31 = vrot.slane %v6655_v26, %v12505_v58  ;;  %v8265_v33 = vrot.slane %v6654_v27, %v12511_v62  ;;  %5618 = vadd.xlane.f32.xlu1 %v5617_v22  ;;  %5615 = vadd.xlane.f32.xlu0 %v5614_v23 }
 0x2d9   : > { %v5409_v35 = vpop.xlane.xlu1 %5408  ;;  %v5406_v37 = vpop.xlane.xlu0 %5405 }
 0x2da   : > { %v8266_v41 = vsel %vm7627_vm12, %v8265_v33, %v8261_v30  ;;  %v6657_v43 = vmul.f32 0.020408163, %v5409_v35  ;;  %v6656_v45 = vmul.f32 0.020408163, %v5406_v37  ;;  %v4688_v33 = vld [vmem:[%s12259_s17 + $0x6f8] sm:$0xff]  ;;  %v4687_v35 = vld [vmem:[%s12259_s17 + $0x6f0] sm:$0xff] }
 0x2db   : > { %v8271_v51 = vsel %vm7634_vm13, %v8270_v31, %v8266_v41  ;;  %v5644_v48 = vsel %vm4977_vm0, %v4687_v35, 0.0 }
 0x2dc   : > { %v8280_v53 = vrot.slane %v6657_v43, %v12521_v12  ;;  %v8275_v54 = vrot.slane %v6656_v45, %v12526_v14  ;;  %5624 = vadd.xlane.f32.xlu1 %v5623_v38  ;;  %5621 = vadd.xlane.f32.xlu0 %v5620_v40  ;;  %v5647_v45 = vsel %vm4977_vm0, %v4688_v33, 0.0 }
 0x2dd   : > { %v5415_v55 = vpop.xlane.xlu1 %5414  ;;  %v5412_v57 = vpop.xlane.xlu0 %5411 }
 0x2de   : > { %v8276_v61 = vsel %vm7641_vm14, %v8275_v54, %v8271_v51  ;;  %v6659_v63 = vmul.f32 0.020408163, %v5415_v55  ;;  %v6658_v0 = vmul.f32 0.020408163, %v5412_v57  ;;  %v4690_v54 = vld [vmem:[%s12259_s17 + $0x708] sm:$0xff]  ;;  %v4689_v55 = vld [vmem:[%s12259_s17 + $0x700] sm:$0xff] }
 0x2df   : > { %v8281_v6 = vsel %vm7648_vm15, %v8280_v53, %v8276_v61  ;;  %v5650_v4 = vsel %vm4977_vm0, %v4689_v55, 0.0 }
 0x2e0   : > { %v13072_v3 = vsel %vm10101_vm11, %v8281_v6, %v12804_v13  ;;  %v8289_v7 = vrot.slane %v6659_v63, %v12424_v34  ;;  %v8285_v8 = vrot.slane %v6658_v0, %v12421_v32  ;;  %5630 = vadd.xlane.f32.xlu1 %v5629_v59  ;;  %5627 = vadd.xlane.f32.xlu0 %v5626_v60  ;;  %v4686_v13 = vld [vmem:[%s12259_s17 + $0x6e8] sm:$0xff]  ;;  %v5653_v0 = vsel %vm4977_vm0, %v4690_v54, 0.0 }
 0x2e1   : > { %v5421_v9 = vpop.xlane.xlu1 %5420  ;;  %v5418_v10 = vpop.xlane.xlu0 %5417  ;;  %v5641_v27 = vsel %vm4977_vm0, %v4686_v13, 0.0 }
 0x2e2   : > { %v8290_v15 = vsel %vm7550_vm1, %v8289_v7, %v8285_v8  ;;  %v6661_v16 = vmul.f32 0.020408163, %v5421_v9  ;;  %v6660_v17 = vmul.f32 0.020408163, %v5418_v10  ;;  %v4692_v8 = vld [vmem:[%s12259_s17 + $0x718] sm:$0xff]  ;;  %v4691_v9 = vld [vmem:[%s12259_s17 + $0x710] sm:$0xff] }
 0x2e3   : > { %v5656_v13 = vsel %vm4977_vm0, %v4691_v9, 0.0 }
 0x2e4   : > { %v8299_v22 = vrot.slane %v6661_v16, %v12433_v42  ;;  %v8294_v23 = vrot.slane %v6660_v17, %v12428_v36  ;;  %5636 = vadd.xlane.f32.xlu1 %v5635_v11  ;;  %5633 = vadd.xlane.f32.xlu0 %v5632_v18  ;;  %v5659_v17 = vsel %vm4977_vm0, %v4692_v8, 0.0 }
 0x2e5   : > { %v5427_v25 = vpop.xlane.xlu1 %5426  ;;  %v5424_v26 = vpop.xlane.xlu0 %5423 }
 0x2e6   : > { %v8295_v29 = vsel %vm7557_vm2, %v8294_v23, %v8290_v15  ;;  %v6663_v30 = vmul.f32 0.020408163, %v5427_v25  ;;  %v6662_v31 = vmul.f32 0.020408163, %v5424_v26  ;;  %v4694_v25 = vld [vmem:[%s12259_s17 + $0x728] sm:$0xff]  ;;  %v4693_v26 = vld [vmem:[%s12259_s17 + $0x720] sm:$0xff] }
 0x2e7   : > { %v8300_v37 = vsel %vm7564_vm3, %v8299_v22, %v8295_v29  ;;  %v5665_v33 = vsel %vm4977_vm0, %v4694_v25, 0.0  ;;  %v5662_v35 = vsel %vm4977_vm0, %v4693_v26, 0.0 }
 0x2e8   : > { %v8309_v38 = vrot.slane %v6663_v30, %v12438_v47  ;;  %v8304_v40 = vrot.slane %v6662_v31, %v12445_v52  ;;  %5642 = vadd.xlane.f32.xlu1 %v5641_v27  ;;  %5639 = vadd.xlane.f32.xlu0 %v5638_v28 }
 0x2e9   : > { %v5433_v41 = vpop.xlane.xlu1 %5432  ;;  %v5430_v43 = vpop.xlane.xlu0 %5429 }
 0x2ea   : > { %v8305_v49 = vsel %vm7571_vm4, %v8304_v40, %v8300_v37  ;;  %v6665_v51 = vmul.f32 0.020408163, %v5433_v41  ;;  %v6664_v53 = vmul.f32 0.020408163, %v5430_v43  ;;  %v4696_v41 = vld [vmem:[%s12259_s17 + $0x738] sm:$0xff]  ;;  %v4695_v43 = vld [vmem:[%s12259_s17 + $0x730] sm:$0xff] }
 0x2eb   : > { %v8310_v57 = vsel %vm7578_vm5, %v8309_v38, %v8305_v49  ;;  %v5671_v54 = vsel %vm4977_vm0, %v4696_v41, 0.0  ;;  %v5668_v55 = vsel %vm4977_vm0, %v4695_v43, 0.0 }
 0x2ec   : > { %v8319_v59 = vrot.slane %v6665_v51, %v12456_v1  ;;  %v8314_v60 = vrot.slane %v6664_v53, %v12459_v2  ;;  %5648 = vadd.xlane.f32.xlu1 %v5647_v45  ;;  %5645 = vadd.xlane.f32.xlu0 %v5644_v48 }
 0x2ed   : > { %v5439_v61 = vpop.xlane.xlu1 %5438  ;;  %v5436_v63 = vpop.xlane.xlu0 %5435 }
 0x2ee   : > { %v8315_v5 = vsel %vm7585_vm6, %v8314_v60, %v8310_v57  ;;  %v6667_v6 = vmul.f32 0.020408163, %v5439_v61  ;;  %v6666_v7 = vmul.f32 0.020408163, %v5436_v63  ;;  %v4698_v61 = vld [vmem:[%s12259_s17 + $0x748] sm:$0xff]  ;;  %v4697_v63 = vld [vmem:[%s12259_s17 + $0x740] sm:$0xff] }
 0x2ef   : > { %v8320_v10 = vsel %vm7592_vm7, %v8319_v59, %v8315_v5  ;;  %v5677_v8 = vsel %vm4977_vm0, %v4698_v61, 0.0  ;;  %v5674_v9 = vsel %vm4977_vm0, %v4697_v63, 0.0 }
 0x2f0   : > { %v8329_v11 = vrot.slane %v6667_v6, %v12473_v19  ;;  %v8324_v18 = vrot.slane %v6666_v7, %v12479_v24  ;;  %5654 = vadd.xlane.f32.xlu1 %v5653_v0  ;;  %5651 = vadd.xlane.f32.xlu0 %v5650_v4 }
 0x2f1   : > { %v5445_v15 = vpop.xlane.xlu1 %5444  ;;  %v5442_v16 = vpop.xlane.xlu0 %5441 }
 0x2f2   : > { %v8325_v20 = vsel %vm7599_vm8, %v8324_v18, %v8320_v10  ;;  %v6669_v22 = vmul.f32 0.020408163, %v5445_v15  ;;  %v6668_v23 = vmul.f32 0.020408163, %v5442_v16  ;;  %v4700_v15 = vld [vmem:[%s12259_s17 + $0x758] sm:$0xff]  ;;  %v4699_v16 = vld [vmem:[%s12259_s17 + $0x750] sm:$0xff] }
 0x2f3   : > { %v8330_v27 = vsel %vm14640_vm9, %v8329_v11, %v8325_v20  ;;  %vm14641_vm9 = vcmask 786112   ;;  %v5683_v26 = vsel %vm4977_vm0, %v4700_v15, 0.0 }
 0x2f4   : > { %v8339_v28 = vrot.slane %v6669_v22, %v12489_v39  ;;  %v8334_v29 = vrot.slane %v6668_v23, %v12495_v44  ;;  %5660 = vadd.xlane.f32.xlu1 %v5659_v17  ;;  %5657 = vadd.xlane.f32.xlu0 %v5656_v13 }
 0x2f5   : > { %v5451_v30 = vpop.xlane.xlu1 %5450  ;;  %v5448_v31 = vpop.xlane.xlu0 %5447 }
 0x2f6   : > { %v8335_v37 = vsel %vm7613_vm10, %v8334_v29, %v8330_v27  ;;  %v6671_v38 = vmul.f32 0.020408163, %v5451_v30  ;;  %v6670_v40 = vmul.f32 0.020408163, %v5448_v31  ;;  %v5680_v27 = vsel %vm4977_vm0, %v4699_v16, 0.0  ;;  %v4701_v31 = vld [vmem:[%s12259_s17 + $0x760] sm:$0xff] }
 0x2f7   : > { %v8340_v45 = vsel %vm14641_vm9, %v8339_v28, %v8335_v37  ;;  %v5686_v41 = vsel %vm4977_vm0, %v4701_v31, 0.0  ;;  %vm14642_vm9 = vcmask 654912  }
 0x2f8   : > { %v8349_v48 = vrot.slane %v6671_v38, %v12505_v58  ;;  %v8344_v49 = vrot.slane %v6670_v40, %v12511_v62  ;;  %5666 = vadd.xlane.f32.xlu1 %v5665_v33  ;;  %5663 = vadd.xlane.f32.xlu0 %v5662_v35 }
 0x2f9   : > { %v5457_v51 = vpop.xlane.xlu1 %5456  ;;  %v5454_v53 = vpop.xlane.xlu0 %5453 }
 0x2fa   : > { %v8345_v57 = vsel %vm7627_vm12, %v8344_v49, %v8340_v45  ;;  %v6673_v59 = vmul.f32 0.020408163, %v5457_v51  ;;  %v6672_v60 = vmul.f32 0.020408163, %v5454_v53  ;;  %v4704_v49 = vld [vmem:[%s12259_s17 + $0x778] sm:$0xff]  ;;  %v4703_v51 = vld [vmem:[%s12259_s17 + $0x770] sm:$0xff] }
 0x2fb   : > { %v8350_v0 = vsel %vm7634_vm13, %v8349_v48, %v8345_v57  ;;  %v5692_v61 = vsel %vm4977_vm0, %v4703_v51, 0.0 }
 0x2fc   : > { %v8359_v4 = vrot.slane %v6673_v59, %v12521_v12  ;;  %v8354_v5 = vrot.slane %v6672_v60, %v12526_v14  ;;  %5672 = vadd.xlane.f32.xlu1 %v5671_v54  ;;  %5669 = vadd.xlane.f32.xlu0 %v5668_v55  ;;  %v5695_v60 = vsel %vm4977_vm0, %v4704_v49, 0.0 }
 0x2fd   : > { %v5463_v6 = vpop.xlane.xlu1 %5462  ;;  %v5460_v7 = vpop.xlane.xlu0 %5459 }
 0x2fe   : > { %v8355_v10 = vsel %vm7641_vm14, %v8354_v5, %v8350_v0  ;;  %v6675_v11 = vmul.f32 0.020408163, %v5463_v6  ;;  %v6674_v18 = vmul.f32 0.020408163, %v5460_v7  ;;  %v4706_v5 = vld [vmem:[%s12259_s17 + $0x788] sm:$0xff]  ;;  %v4705_v6 = vld [vmem:[%s12259_s17 + $0x780] sm:$0xff] }
 0x2ff   : > { %v8360_v17 = vsel %vm7648_vm15, %v8359_v4, %v8355_v10  ;;  %v5698_v15 = vsel %vm4977_vm0, %v4705_v6, 0.0 }
 0x300   : > { %v13139_v13 = vsel %vm10101_vm11, %v8360_v17, %v12871_v46  ;;  %v8368_v20 = vrot.slane %v6675_v11, %v12424_v34  ;;  %v8364_v22 = vrot.slane %v6674_v18, %v12421_v32  ;;  %5678 = vadd.xlane.f32.xlu1 %v5677_v8  ;;  %5675 = vadd.xlane.f32.xlu0 %v5674_v9  ;;  %v4702_v46 = vld [vmem:[%s12259_s17 + $0x768] sm:$0xff]  ;;  %v5701_v18 = vsel %vm4977_vm0, %v4706_v5, 0.0 }
 0x301   : > { %v5469_v23 = vpop.xlane.xlu1 %5468  ;;  %v5466_v25 = vpop.xlane.xlu0 %5465  ;;  %v5689_v40 = vsel %vm4977_vm0, %v4702_v46, 0.0 }
 0x302   : > { %v8369_v28 = vsel %vm7550_vm1, %v8368_v20, %v8364_v22  ;;  %v6677_v29 = vmul.f32 0.020408163, %v5469_v23  ;;  %v6676_v30 = vmul.f32 0.020408163, %v5466_v25  ;;  %v4708_v22 = vld [vmem:[%s12259_s17 + $0x798] sm:$0xff]  ;;  %v4707_v23 = vld [vmem:[%s12259_s17 + $0x790] sm:$0xff] }
 0x303   : > { %v5704_v46 = vsel %vm4977_vm0, %v4707_v23, 0.0 }
 0x304   : > { %v8378_v33 = vrot.slane %v6677_v29, %v12433_v42  ;;  %v8373_v35 = vrot.slane %v6676_v30, %v12428_v36  ;;  %5684 = vadd.xlane.f32.xlu1 %v5683_v26  ;;  %5681 = vadd.xlane.f32.xlu0 %v5680_v27  ;;  %v5707_v30 = vsel %vm4977_vm0, %v4708_v22, 0.0 }
 0x305   : > { %v5475_v37 = vpop.xlane.xlu1 %5474  ;;  %v5472_v38 = vpop.xlane.xlu0 %5471 }
 0x306   : > { %v8374_v43 = vsel %vm7557_vm2, %v8373_v35, %v8369_v28  ;;  %v6679_v45 = vmul.f32 0.020408163, %v5475_v37  ;;  %v6678_v48 = vmul.f32 0.020408163, %v5472_v38  ;;  %v4710_v37 = vld [vmem:[%s12259_s17 + $0x7a8] sm:$0xff]  ;;  %v4709_v38 = vld [vmem:[%s12259_s17 + $0x7a0] sm:$0xff] }
 0x307   : > { %v8379_v53 = vsel %vm7564_vm3, %v8378_v33, %v8374_v43  ;;  %v5713_v49 = vsel %vm4977_vm0, %v4710_v37, 0.0  ;;  %v5710_v51 = vsel %vm4977_vm0, %v4709_v38, 0.0 }
 0x308   : > { %v8388_v54 = vrot.slane %v6679_v45, %v12438_v47  ;;  %v8383_v55 = vrot.slane %v6678_v48, %v12445_v52  ;;  %5690 = vadd.xlane.f32.xlu1 %v5689_v40  ;;  %5687 = vadd.xlane.f32.xlu0 %v5686_v41 }
 0x309   : > { %v5481_v57 = vpop.xlane.xlu1 %5480  ;;  %v5478_v59 = vpop.xlane.xlu0 %5477 }
 0x30a   : > { %v8384_v63 = vsel %vm7571_vm4, %v8383_v55, %v8379_v53  ;;  %v6681_v0 = vmul.f32 0.020408163, %v5481_v57  ;;  %v6680_v4 = vmul.f32 0.020408163, %v5478_v59  ;;  %v4712_v57 = vld [vmem:[%s12259_s17 + $0x7b8] sm:$0xff]  ;;  %v4711_v59 = vld [vmem:[%s12259_s17 + $0x7b0] sm:$0xff] }
 0x30b   : > { %v8389_v7 = vsel %vm7578_vm5, %v8388_v54, %v8384_v63  ;;  %v5719_v5 = vsel %vm4977_vm0, %v4712_v57, 0.0  ;;  %v5716_v6 = vsel %vm4977_vm0, %v4711_v59, 0.0 }
 0x30c   : > { %v8398_v8 = vrot.slane %v6681_v0, %v12456_v1  ;;  %v8393_v9 = vrot.slane %v6680_v4, %v12459_v2  ;;  %5696 = vadd.xlane.f32.xlu1 %v5695_v60  ;;  %5693 = vadd.xlane.f32.xlu0 %v5692_v61 }
 0x30d   : > { %v5487_v10 = vpop.xlane.xlu1 %5486  ;;  %v5484_v11 = vpop.xlane.xlu0 %5483 }
 0x30e   : > { %v8394_v16 = vsel %vm7585_vm6, %v8393_v9, %v8389_v7  ;;  %v6683_v17 = vmul.f32 0.020408163, %v5487_v10  ;;  %v6682_v20 = vmul.f32 0.020408163, %v5484_v11  ;;  %v4714_v10 = vld [vmem:[%s12259_s17 + $0x7c8] sm:$0xff]  ;;  %v4713_v11 = vld [vmem:[%s12259_s17 + $0x7c0] sm:$0xff] }
 0x30f   : > { %v8399_v25 = vsel %vm7592_vm7, %v8398_v8, %v8394_v16  ;;  %v5725_v22 = vsel %vm4977_vm0, %v4714_v10, 0.0  ;;  %v5722_v23 = vsel %vm4977_vm0, %v4713_v11, 0.0 }
 0x310   : > { %v8408_v26 = vrot.slane %v6683_v17, %v12473_v19  ;;  %v8403_v27 = vrot.slane %v6682_v20, %v12479_v24  ;;  %5702 = vadd.xlane.f32.xlu1 %v5701_v18  ;;  %5699 = vadd.xlane.f32.xlu0 %v5698_v15 }
 0x311   : > { %v5493_v28 = vpop.xlane.xlu1 %5492  ;;  %v5490_v29 = vpop.xlane.xlu0 %5489 }
 0x312   : > { %v8404_v31 = vsel %vm7599_vm8, %v8403_v27, %v8399_v25  ;;  %v6685_v33 = vmul.f32 0.020408163, %v5493_v28  ;;  %v6684_v35 = vmul.f32 0.020408163, %v5490_v29  ;;  %v4716_v28 = vld [vmem:[%s12259_s17 + $0x7d8] sm:$0xff]  ;;  %v4715_v29 = vld [vmem:[%s12259_s17 + $0x7d0] sm:$0xff] }
 0x313   : > { %v8409_v40 = vsel %vm14642_vm9, %v8408_v26, %v8404_v31  ;;  %vm14643_vm9 = vcmask 786112   ;;  %v5731_v38 = vsel %vm4977_vm0, %v4716_v28, 0.0 }
 0x314   : > { %v8418_v41 = vrot.slane %v6685_v33, %v12489_v39  ;;  %v8413_v43 = vrot.slane %v6684_v35, %v12495_v44  ;;  %5708 = vadd.xlane.f32.xlu1 %v5707_v30  ;;  %5705 = vadd.xlane.f32.xlu0 %v5704_v46 }
 0x315   : > { %v5499_v45 = vpop.xlane.xlu1 %5498  ;;  %v5496_v48 = vpop.xlane.xlu0 %5495 }
 0x316   : > { %v8414_v53 = vsel %vm7613_vm10, %v8413_v43, %v8409_v40  ;;  %v6687_v54 = vmul.f32 0.020408163, %v5499_v45  ;;  %v6686_v55 = vmul.f32 0.020408163, %v5496_v48  ;;  %v5728_v40 = vsel %vm4977_vm0, %v4715_v29, 0.0  ;;  %v4717_v48 = vld [vmem:[%s12259_s17 + $0x7e0] sm:$0xff] }
 0x317   : > { %v8419_v60 = vsel %vm14643_vm9, %v8418_v41, %v8414_v53  ;;  %v5734_v57 = vsel %vm4977_vm0, %v4717_v48, 0.0  ;;  %vm14644_vm9 = vcmask 654912  }
 0x318   : > { %v8428_v61 = vrot.slane %v6687_v54, %v12505_v58  ;;  %v8423_v63 = vrot.slane %v6686_v55, %v12511_v62  ;;  %5714 = vadd.xlane.f32.xlu1 %v5713_v49  ;;  %5711 = vadd.xlane.f32.xlu0 %v5710_v51 }
 0x319   : > { %v5505_v0 = vpop.xlane.xlu1 %5504  ;;  %v5502_v4 = vpop.xlane.xlu0 %5501 }
 0x31a   : > { %v8424_v7 = vsel %vm7627_vm12, %v8423_v63, %v8419_v60  ;;  %v6689_v8 = vmul.f32 0.020408163, %v5505_v0  ;;  %v6688_v9 = vmul.f32 0.020408163, %v5502_v4  ;;  %v4720_v63 = vld [vmem:[%s12259_s17 + $0x7f8] sm:$0xff]  ;;  %v4719_v0 = vld [vmem:[%s12259_s17 + $0x7f0] sm:$0xff] }
 0x31b   : > { %v8429_v18 = vsel %vm7634_vm13, %v8428_v61, %v8424_v7  ;;  %v5740_v10 = vsel %vm4977_vm0, %v4719_v0, 0.0 }
 0x31c   : > { %v8438_v15 = vrot.slane %v6689_v8, %v12521_v12  ;;  %v8433_v16 = vrot.slane %v6688_v9, %v12526_v14  ;;  %5720 = vadd.xlane.f32.xlu1 %v5719_v5  ;;  %5717 = vadd.xlane.f32.xlu0 %v5716_v6  ;;  %v5743_v9 = vsel %vm4977_vm0, %v4720_v63, 0.0 }
 0x31d   : > { %v5511_v17 = vpop.xlane.xlu1 %5510  ;;  %v5508_v20 = vpop.xlane.xlu0 %5507 }
 0x31e   : > { %v8434_v25 = vsel %vm7641_vm14, %v8433_v16, %v8429_v18  ;;  %v6691_v26 = vmul.f32 0.020408163, %v5511_v17  ;;  %v6690_v27 = vmul.f32 0.020408163, %v5508_v20  ;;  %v4722_v16 = vld [vmem:[%s12259_s17 + $0x808] sm:$0xff]  ;;  %v4721_v17 = vld [vmem:[%s12259_s17 + $0x800] sm:$0xff] }
 0x31f   : > { %v8439_v30 = vsel %vm7648_vm15, %v8438_v15, %v8434_v25  ;;  %v5746_v28 = vsel %vm4977_vm0, %v4721_v17, 0.0 }
 0x320   : > { %v13206_v46 = vsel %vm10101_vm11, %v8439_v30, %v12938_v50  ;;  %v8447_v31 = vrot.slane %v6691_v26, %v12424_v34  ;;  %v8443_v33 = vrot.slane %v6690_v27, %v12421_v32  ;;  %5726 = vadd.xlane.f32.xlu1 %v5725_v22  ;;  %5723 = vadd.xlane.f32.xlu0 %v5722_v23  ;;  %v4718_v50 = vld [vmem:[%s12259_s17 + $0x7e8] sm:$0xff]  ;;  %v5749_v27 = vsel %vm4977_vm0, %v4722_v16, 0.0 }
 0x321   : > { %v5517_v35 = vpop.xlane.xlu1 %5516  ;;  %v5514_v37 = vpop.xlane.xlu0 %5513  ;;  %v5737_v55 = vsel %vm4977_vm0, %v4718_v50, 0.0 }
 0x322   : > { %v8448_v41 = vsel %vm7550_vm1, %v8447_v31, %v8443_v33  ;;  %v6693_v43 = vmul.f32 0.020408163, %v5517_v35  ;;  %v6692_v45 = vmul.f32 0.020408163, %v5514_v37  ;;  %v4724_v33 = vld [vmem:[%s12259_s17 + $0x818] sm:$0xff]  ;;  %v4723_v35 = vld [vmem:[%s12259_s17 + $0x810] sm:$0xff] }
 0x323   : > { %v5752_v50 = vsel %vm4977_vm0, %v4723_v35, 0.0 }
 0x324   : > { %v8457_v49 = vrot.slane %v6693_v43, %v12433_v42  ;;  %v8452_v51 = vrot.slane %v6692_v45, %v12428_v36  ;;  %5732 = vadd.xlane.f32.xlu1 %v5731_v38  ;;  %5729 = vadd.xlane.f32.xlu0 %v5728_v40  ;;  %v5755_v45 = vsel %vm4977_vm0, %v4724_v33, 0.0 }
 0x325   : > { %v5523_v53 = vpop.xlane.xlu1 %5522  ;;  %v5520_v54 = vpop.xlane.xlu0 %5519 }
 0x326   : > { %v8453_v59 = vsel %vm7557_vm2, %v8452_v51, %v8448_v41  ;;  %v6695_v60 = vmul.f32 0.020408163, %v5523_v53  ;;  %v6694_v61 = vmul.f32 0.020408163, %v5520_v54  ;;  %v4726_v53 = vld [vmem:[%s12259_s17 + $0x828] sm:$0xff]  ;;  %v4725_v54 = vld [vmem:[%s12259_s17 + $0x820] sm:$0xff] }
 0x327   : > { %v8458_v4 = vsel %vm7564_vm3, %v8457_v49, %v8453_v59  ;;  %v5761_v63 = vsel %vm4977_vm0, %v4726_v53, 0.0  ;;  %v5758_v0 = vsel %vm4977_vm0, %v4725_v54, 0.0 }
 0x328   : > { %v8467_v5 = vrot.slane %v6695_v60, %v12438_v47  ;;  %v8462_v6 = vrot.slane %v6694_v61, %v12445_v52  ;;  %5738 = vadd.xlane.f32.xlu1 %v5737_v55  ;;  %5735 = vadd.xlane.f32.xlu0 %v5734_v57 }
 0x329   : > { %v5529_v7 = vpop.xlane.xlu1 %5528  ;;  %v5526_v8 = vpop.xlane.xlu0 %5525 }
 0x32a   : > { %v8463_v11 = vsel %vm7571_vm4, %v8462_v6, %v8458_v4  ;;  %v6697_v18 = vmul.f32 0.020408163, %v5529_v7  ;;  %v6696_v15 = vmul.f32 0.020408163, %v5526_v8  ;;  %v4728_v7 = vld [vmem:[%s12259_s17 + $0x838] sm:$0xff]  ;;  %v4727_v8 = vld [vmem:[%s12259_s17 + $0x830] sm:$0xff] }
 0x32b   : > { %v8468_v20 = vsel %vm7578_vm5, %v8467_v5, %v8463_v11  ;;  %v5767_v16 = vsel %vm4977_vm0, %v4728_v7, 0.0  ;;  %v5764_v17 = vsel %vm4977_vm0, %v4727_v8, 0.0 }
 0x32c   : > { %v8477_v22 = vrot.slane %v6697_v18, %v12456_v1  ;;  %v8472_v23 = vrot.slane %v6696_v15, %v12459_v2  ;;  %5744 = vadd.xlane.f32.xlu1 %v5743_v9  ;;  %5741 = vadd.xlane.f32.xlu0 %v5740_v10 }
 0x32d   : > { %v5535_v25 = vpop.xlane.xlu1 %5534  ;;  %v5532_v26 = vpop.xlane.xlu0 %5531 }
 0x32e   : > { %v8473_v29 = vsel %vm7585_vm6, %v8472_v23, %v8468_v20  ;;  %v6699_v30 = vmul.f32 0.020408163, %v5535_v25  ;;  %v6698_v31 = vmul.f32 0.020408163, %v5532_v26  ;;  %v4730_v25 = vld [vmem:[%s12259_s17 + $0x848] sm:$0xff]  ;;  %v4729_v26 = vld [vmem:[%s12259_s17 + $0x840] sm:$0xff] }
 0x32f   : > { %v8478_v37 = vsel %vm7592_vm7, %v8477_v22, %v8473_v29  ;;  %v5773_v33 = vsel %vm4977_vm0, %v4730_v25, 0.0  ;;  %v5770_v35 = vsel %vm4977_vm0, %v4729_v26, 0.0 }
 0x330   : > { %v8487_v38 = vrot.slane %v6699_v30, %v12473_v19  ;;  %v8482_v40 = vrot.slane %v6698_v31, %v12479_v24  ;;  %5750 = vadd.xlane.f32.xlu1 %v5749_v27  ;;  %5747 = vadd.xlane.f32.xlu0 %v5746_v28 }
 0x331   : > { %v5541_v41 = vpop.xlane.xlu1 %5540  ;;  %v5538_v43 = vpop.xlane.xlu0 %5537 }
 0x332   : > { %v8483_v48 = vsel %vm7599_vm8, %v8482_v40, %v8478_v37  ;;  %v6701_v49 = vmul.f32 0.020408163, %v5541_v41  ;;  %v6700_v51 = vmul.f32 0.020408163, %v5538_v43  ;;  %v4732_v41 = vld [vmem:[%s12259_s17 + $0x858] sm:$0xff]  ;;  %v4731_v43 = vld [vmem:[%s12259_s17 + $0x850] sm:$0xff] }
 0x333   : > { %v8488_v55 = vsel %vm14644_vm9, %v8487_v38, %v8483_v48  ;;  %vm14645_vm9 = vcmask 786112   ;;  %v5779_v54 = vsel %vm4977_vm0, %v4732_v41, 0.0 }
 0x334   : > { %v8497_v57 = vrot.slane %v6701_v49, %v12489_v39  ;;  %v8492_v59 = vrot.slane %v6700_v51, %v12495_v44  ;;  %5756 = vadd.xlane.f32.xlu1 %v5755_v45  ;;  %5753 = vadd.xlane.f32.xlu0 %v5752_v50 }
 0x335   : > { %v5547_v60 = vpop.xlane.xlu1 %5546  ;;  %v5544_v61 = vpop.xlane.xlu0 %5543 }
 0x336   : > { %v8493_v4 = vsel %vm7613_vm10, %v8492_v59, %v8488_v55  ;;  %v6703_v5 = vmul.f32 0.020408163, %v5547_v60  ;;  %v6702_v6 = vmul.f32 0.020408163, %v5544_v61  ;;  %v5776_v55 = vsel %vm4977_vm0, %v4731_v43, 0.0  ;;  %v4733_v61 = vld [vmem:[%s12259_s17 + $0x860] sm:$0xff] }
 0x337   : > { %v8498_v9 = vsel %vm14645_vm9, %v8497_v57, %v8493_v4  ;;  %v5782_v7 = vsel %vm4977_vm0, %v4733_v61, 0.0 }
 0x338   : > { %v8507_v10 = vrot.slane %v6703_v5, %v12505_v58  ;;  %v8502_v11 = vrot.slane %v6702_v6, %v12511_v62  ;;  %5762 = vadd.xlane.f32.xlu1 %v5761_v63  ;;  %5759 = vadd.xlane.f32.xlu0 %v5758_v0 }
 0x339   : > { %v5553_v18 = vpop.xlane.xlu1 %5552  ;;  %v5550_v15 = vpop.xlane.xlu0 %5549 }
 0x33a   : > { %v8503_v20 = vsel %vm7627_vm12, %v8502_v11, %v8498_v9  ;;  %v6705_v22 = vmul.f32 0.020408163, %v5553_v18  ;;  %v6704_v23 = vmul.f32 0.020408163, %v5550_v15  ;;  %v4736_v11 = vld [vmem:[%s12259_s17 + $0x878] sm:$0xff]  ;;  %v4735_v18 = vld [vmem:[%s12259_s17 + $0x870] sm:$0xff] }
 0x33b   : > { %v8508_v27 = vsel %vm7634_vm13, %v8507_v10, %v8503_v20  ;;  %v5788_v25 = vsel %vm4977_vm0, %v4735_v18, 0.0 }
 0x33c   : > { %v8517_v28 = vrot.slane %v6705_v22, %v12521_v12  ;;  %v8512_v29 = vrot.slane %v6704_v23, %v12526_v14  ;;  %5768 = vadd.xlane.f32.xlu1 %v5767_v16  ;;  %5765 = vadd.xlane.f32.xlu0 %v5764_v17  ;;  %v5791_v23 = vsel %vm4977_vm0, %v4736_v11, 0.0 }
 0x33d   : > { %v5559_v30 = vpop.xlane.xlu1 %5558  ;;  %v5556_v31 = vpop.xlane.xlu0 %5555 }
 0x33e   : > { %v8513_v37 = vsel %vm7641_vm14, %v8512_v29, %v8508_v27  ;;  %v6707_v38 = vmul.f32 0.020408163, %v5559_v30  ;;  %v6706_v40 = vmul.f32 0.020408163, %v5556_v31  ;;  %v4738_v29 = vld [vmem:[%s12259_s17 + $0x888] sm:$0xff]  ;;  %v4737_v30 = vld [vmem:[%s12259_s17 + $0x880] sm:$0xff] }
 0x33f   : > { %v8518_v45 = vsel %vm7648_vm15, %v8517_v28, %v8513_v37  ;;  %v5794_v41 = vsel %vm4977_vm0, %v4737_v30, 0.0 }
 0x340   : > { %v13273_v50 = vsel %vm10101_vm11, %v8518_v45, %v13005_v56  ;;  %v8526_v48 = vrot.slane %v6707_v38, %v12424_v34  ;;  %v8522_v49 = vrot.slane %v6706_v40, %v12421_v32  ;;  %5774 = vadd.xlane.f32.xlu1 %v5773_v33  ;;  %5771 = vadd.xlane.f32.xlu0 %v5770_v35  ;;  %v4734_v56 = vld [vmem:[%s12259_s17 + $0x868] sm:$0xff]  ;;  %v5797_v40 = vsel %vm4977_vm0, %v4738_v29, 0.0 }
 0x341   : > { %v5565_v51 = vpop.xlane.xlu1 %5564  ;;  %v5562_v53 = vpop.xlane.xlu0 %5561  ;;  %v5785_v6 = vsel %vm4977_vm0, %v4734_v56, 0.0  ;;  %vm14646_vm11 = vcmask 654912  }
 0x342   : > { %v8527_v57 = vsel %vm7550_vm1, %v8526_v48, %v8522_v49  ;;  %v6709_v59 = vmul.f32 0.020408163, %v5565_v51  ;;  %v6708_v60 = vmul.f32 0.020408163, %v5562_v53  ;;  %v4740_v49 = vld [vmem:[%s12259_s17 + $0x898] sm:$0xff]  ;;  %v4739_v51 = vld [vmem:[%s12259_s17 + $0x890] sm:$0xff] }
 0x343   : > { %v5800_v56 = vsel %vm4977_vm0, %v4739_v51, 0.0 }
 0x344   : > { %v8536_v63 = vrot.slane %v6709_v59, %v12433_v42  ;;  %v8531_v0 = vrot.slane %v6708_v60, %v12428_v36  ;;  %5780 = vadd.xlane.f32.xlu1 %v5779_v54  ;;  %5777 = vadd.xlane.f32.xlu0 %v5776_v55  ;;  %v5803_v60 = vsel %vm4977_vm0, %v4740_v49, 0.0 }
 0x345   : > { %v5571_v4 = vpop.xlane.xlu1 %5570  ;;  %v5568_v5 = vpop.xlane.xlu0 %5567 }
 0x346   : > { %v8532_v8 = vsel %vm7557_vm2, %v8531_v0, %v8527_v57  ;;  %v6711_v9 = vmul.f32 0.020408163, %v5571_v4  ;;  %v6710_v10 = vmul.f32 0.020408163, %v5568_v5  ;;  %v4742_v4 = vld [vmem:[%s12259_s17 + $0x8a8] sm:$0xff]  ;;  %v4741_v5 = vld [vmem:[%s12259_s17 + $0x8a0] sm:$0xff] }
 0x347   : > { %v8537_v15 = vsel %vm7564_vm3, %v8536_v63, %v8532_v8  ;;  %v5809_v11 = vsel %vm4977_vm0, %v4742_v4, 0.0  ;;  %v5806_v18 = vsel %vm4977_vm0, %v4741_v5, 0.0 }
 0x348   : > { %v8546_v16 = vrot.slane %v6711_v9, %v12438_v47  ;;  %v8541_v17 = vrot.slane %v6710_v10, %v12445_v52  ;;  %5786 = vadd.xlane.f32.xlu1 %v5785_v6  ;;  %5783 = vadd.xlane.f32.xlu0 %v5782_v7 }
 0x349   : > { %v5577_v20 = vpop.xlane.xlu1 %5576  ;;  %v5574_v22 = vpop.xlane.xlu0 %5573 }
 0x34a   : > { %v8542_v26 = vsel %vm7571_vm4, %v8541_v17, %v8537_v15  ;;  %v6713_v27 = vmul.f32 0.020408163, %v5577_v20  ;;  %v6712_v28 = vmul.f32 0.020408163, %v5574_v22  ;;  %v4744_v20 = vld [vmem:[%s12259_s17 + $0x8b8] sm:$0xff]  ;;  %v4743_v22 = vld [vmem:[%s12259_s17 + $0x8b0] sm:$0xff] }
 0x34b   : > { %v8547_v31 = vsel %vm7578_vm5, %v8546_v16, %v8542_v26  ;;  %v5815_v29 = vsel %vm4977_vm0, %v4744_v20, 0.0  ;;  %v5812_v30 = vsel %vm4977_vm0, %v4743_v22, 0.0 }
 0x34c   : > { %v8556_v33 = vrot.slane %v6713_v27, %v12456_v1  ;;  %v8551_v35 = vrot.slane %v6712_v28, %v12459_v2  ;;  %5792 = vadd.xlane.f32.xlu1 %v5791_v23  ;;  %5789 = vadd.xlane.f32.xlu0 %v5788_v25 }
 0x34d   : > { %v5583_v37 = vpop.xlane.xlu1 %5582  ;;  %v5580_v38 = vpop.xlane.xlu0 %5579 }
 0x34e   : > { %v8552_v43 = vsel %vm7585_vm6, %v8551_v35, %v8547_v31  ;;  %v6715_v45 = vmul.f32 0.020408163, %v5583_v37  ;;  %v6714_v48 = vmul.f32 0.020408163, %v5580_v38  ;;  %v4746_v37 = vld [vmem:[%s12259_s17 + $0x8c8] sm:$0xff]  ;;  %v4745_v38 = vld [vmem:[%s12259_s17 + $0x8c0] sm:$0xff] }
 0x34f   : > { %v8557_v53 = vsel %vm7592_vm7, %v8556_v33, %v8552_v43  ;;  %v5821_v49 = vsel %vm4977_vm0, %v4746_v37, 0.0  ;;  %v5818_v51 = vsel %vm4977_vm0, %v4745_v38, 0.0 }
 0x350   : > { %v8566_v54 = vrot.slane %v6715_v45, %v12473_v19  ;;  %v8561_v55 = vrot.slane %v6714_v48, %v12479_v24  ;;  %5798 = vadd.xlane.f32.xlu1 %v5797_v40  ;;  %5795 = vadd.xlane.f32.xlu0 %v5794_v41 }
 0x351   : > { %v5589_v57 = vpop.xlane.xlu1 %5588  ;;  %v5586_v59 = vpop.xlane.xlu0 %5585 }
 0x352   : > { %v8562_v61 = vsel %vm7599_vm8, %v8561_v55, %v8557_v53  ;;  %v6717_v63 = vmul.f32 0.020408163, %v5589_v57  ;;  %v6716_v0 = vmul.f32 0.020408163, %v5586_v59  ;;  %v4748_v57 = vld [vmem:[%s12259_s17 + $0x8d8] sm:$0xff]  ;;  %v4747_v59 = vld [vmem:[%s12259_s17 + $0x8d0] sm:$0xff] }
 0x353   : > { %v8567_v6 = vsel %vm14646_vm11, %v8566_v54, %v8562_v61  ;;  %vm10103_vm11 = vcmask 1043459   ;;  %v5827_v5 = vsel %vm4977_vm0, %v4748_v57, 0.0 }
 0x354   : > { %v8576_v7 = vrot.slane %v6717_v63, %v12489_v39  ;;  %v8571_v8 = vrot.slane %v6716_v0, %v12495_v44  ;;  %5804 = vadd.xlane.f32.xlu1 %v5803_v60  ;;  %5801 = vadd.xlane.f32.xlu0 %v5800_v56 }
 0x355   : > { %v5595_v9 = vpop.xlane.xlu1 %5594  ;;  %v5592_v10 = vpop.xlane.xlu0 %5591 }
 0x356   : > { %v8572_v15 = vsel %vm7613_vm10, %v8571_v8, %v8567_v6  ;;  %v6719_v16 = vmul.f32 0.020408163, %v5595_v9  ;;  %v6718_v17 = vmul.f32 0.020408163, %v5592_v10  ;;  %v5824_v6 = vsel %vm4977_vm0, %v4747_v59, 0.0  ;;  %v4749_v10 = vld [vmem:[%s12259_s17 + $0x8e0] sm:$0xff] }
 0x357   : > { %v8577_v23 = vsel %vm14645_vm9, %v8576_v7, %v8572_v15  ;;  %v5830_v20 = vsel %vm4977_vm0, %v4749_v10, 0.0  ;;  %vm14647_vm9 = vcmask 654912  }
 0x358   : > { %v8586_v25 = vrot.slane %v6719_v16, %v12505_v58  ;;  %v8581_v26 = vrot.slane %v6718_v17, %v12511_v62  ;;  %5810 = vadd.xlane.f32.xlu1 %v5809_v11  ;;  %5807 = vadd.xlane.f32.xlu0 %v5806_v18 }
 0x359   : > { %v5601_v27 = vpop.xlane.xlu1 %5600  ;;  %v5598_v28 = vpop.xlane.xlu0 %5597 }
 0x35a   : > { %v8582_v31 = vsel %vm7627_vm12, %v8581_v26, %v8577_v23  ;;  %v6721_v33 = vmul.f32 0.020408163, %v5601_v27  ;;  %v6720_v35 = vmul.f32 0.020408163, %v5598_v28  ;;  %v4752_v26 = vld [vmem:[%s12259_s17 + $0x8f8] sm:$0xff]  ;;  %v4751_v27 = vld [vmem:[%s12259_s17 + $0x8f0] sm:$0xff] }
 0x35b   : > { %v8587_v40 = vsel %vm7634_vm13, %v8586_v25, %v8582_v31  ;;  %v5836_v37 = vsel %vm4977_vm0, %v4751_v27, 0.0 }
 0x35c   : > { %v8596_v41 = vrot.slane %v6721_v33, %v12521_v12  ;;  %v8591_v43 = vrot.slane %v6720_v35, %v12526_v14  ;;  %5816 = vadd.xlane.f32.xlu1 %v5815_v29  ;;  %5813 = vadd.xlane.f32.xlu0 %v5812_v30  ;;  %v5839_v35 = vsel %vm4977_vm0, %v4752_v26, 0.0 }
 0x35d   : > { %v5607_v45 = vpop.xlane.xlu1 %5606  ;;  %v5604_v48 = vpop.xlane.xlu0 %5603 }
 0x35e   : > { %v8592_v53 = vsel %vm7641_vm14, %v8591_v43, %v8587_v40  ;;  %v6723_v54 = vmul.f32 0.020408163, %v5607_v45  ;;  %v6722_v55 = vmul.f32 0.020408163, %v5604_v48  ;;  %v4754_v43 = vld [vmem:[%s12259_s17 + $0x908] sm:$0xff]  ;;  %v4753_v45 = vld [vmem:[%s12259_s17 + $0x900] sm:$0xff] }
 0x35f   : > { %v8597_v60 = vsel %vm7648_vm15, %v8596_v41, %v8592_v53  ;;  %v5842_v57 = vsel %vm4977_vm0, %v4753_v45, 0.0 }
 0x360   : > { %v13340_v56 = vsel %vm10103_vm11, %v8597_v60, %v13072_v3  ;;  %v8605_v61 = vrot.slane %v6723_v54, %v12424_v34  ;;  %v8601_v63 = vrot.slane %v6722_v55, %v12421_v32  ;;  %5822 = vadd.xlane.f32.xlu1 %v5821_v49  ;;  %5819 = vadd.xlane.f32.xlu0 %v5818_v51  ;;  %v4750_v3 = vld [vmem:[%s12259_s17 + $0x8e8] sm:$0xff]  ;;  %v5845_v55 = vsel %vm4977_vm0, %v4754_v43, 0.0 }
 0x361   : > { %v5613_v0 = vpop.xlane.xlu1 %5612  ;;  %v5610_v4 = vpop.xlane.xlu0 %5609  ;;  %v5833_v17 = vsel %vm4977_vm0, %v4750_v3, 0.0 }
 0x362   : > { %v8606_v7 = vsel %vm7550_vm1, %v8605_v61, %v8601_v63  ;;  %v6725_v8 = vmul.f32 0.020408163, %v5613_v0  ;;  %v6724_v9 = vmul.f32 0.020408163, %v5610_v4  ;;  %v4756_v63 = vld [vmem:[%s12259_s17 + $0x918] sm:$0xff]  ;;  %v4755_v0 = vld [vmem:[%s12259_s17 + $0x910] sm:$0xff] }
 0x363   : > { %v5848_v3 = vsel %vm4977_vm0, %v4755_v0, 0.0 }
 0x364   : > { %v8615_v11 = vrot.slane %v6725_v8, %v12433_v42  ;;  %v8610_v18 = vrot.slane %v6724_v9, %v12428_v36  ;;  %5828 = vadd.xlane.f32.xlu1 %v5827_v5  ;;  %5825 = vadd.xlane.f32.xlu0 %v5824_v6  ;;  %v5851_v9 = vsel %vm4977_vm0, %v4756_v63, 0.0 }
 0x365   : > { %v5619_v15 = vpop.xlane.xlu1 %5618  ;;  %v5616_v16 = vpop.xlane.xlu0 %5615 }
 0x366   : > { %v8611_v22 = vsel %vm7557_vm2, %v8610_v18, %v8606_v7  ;;  %v6727_v23 = vmul.f32 0.020408163, %v5619_v15  ;;  %v6726_v25 = vmul.f32 0.020408163, %v5616_v16  ;;  %v4758_v15 = vld [vmem:[%s12259_s17 + $0x928] sm:$0xff]  ;;  %v4757_v16 = vld [vmem:[%s12259_s17 + $0x920] sm:$0xff] }
 0x367   : > { %v8616_v28 = vsel %vm7564_vm3, %v8615_v11, %v8611_v22  ;;  %v5857_v26 = vsel %vm4977_vm0, %v4758_v15, 0.0  ;;  %v5854_v27 = vsel %vm4977_vm0, %v4757_v16, 0.0 }
 0x368   : > { %v8625_v29 = vrot.slane %v6727_v23, %v12438_v47  ;;  %v8620_v30 = vrot.slane %v6726_v25, %v12445_v52  ;;  %5834 = vadd.xlane.f32.xlu1 %v5833_v17  ;;  %5831 = vadd.xlane.f32.xlu0 %v5830_v20 }
 0x369   : > { %v5625_v31 = vpop.xlane.xlu1 %5624  ;;  %v5622_v33 = vpop.xlane.xlu0 %5621 }
 0x36a   : > { %v8621_v38 = vsel %vm7571_vm4, %v8620_v30, %v8616_v28  ;;  %v6729_v40 = vmul.f32 0.020408163, %v5625_v31  ;;  %v6728_v41 = vmul.f32 0.020408163, %v5622_v33  ;;  %v4760_v31 = vld [vmem:[%s12259_s17 + $0x938] sm:$0xff]  ;;  %v4759_v33 = vld [vmem:[%s12259_s17 + $0x930] sm:$0xff] }
 0x36b   : > { %v8626_v48 = vsel %vm7578_vm5, %v8625_v29, %v8621_v38  ;;  %v5863_v43 = vsel %vm4977_vm0, %v4760_v31, 0.0  ;;  %v5860_v45 = vsel %vm4977_vm0, %v4759_v33, 0.0 }
 0x36c   : > { %v8635_v49 = vrot.slane %v6729_v40, %v12456_v1  ;;  %v8630_v51 = vrot.slane %v6728_v41, %v12459_v2  ;;  %5840 = vadd.xlane.f32.xlu1 %v5839_v35  ;;  %5837 = vadd.xlane.f32.xlu0 %v5836_v37 }
 0x36d   : > { %v5631_v53 = vpop.xlane.xlu1 %5630  ;;  %v5628_v54 = vpop.xlane.xlu0 %5627 }
 0x36e   : > { %v8631_v59 = vsel %vm7585_vm6, %v8630_v51, %v8626_v48  ;;  %v6731_v60 = vmul.f32 0.020408163, %v5631_v53  ;;  %v6730_v61 = vmul.f32 0.020408163, %v5628_v54  ;;  %v4762_v53 = vld [vmem:[%s12259_s17 + $0x948] sm:$0xff]  ;;  %v4761_v54 = vld [vmem:[%s12259_s17 + $0x940] sm:$0xff] }
 0x36f   : > { %v8636_v4 = vsel %vm7592_vm7, %v8635_v49, %v8631_v59  ;;  %v5869_v63 = vsel %vm4977_vm0, %v4762_v53, 0.0  ;;  %v5866_v0 = vsel %vm4977_vm0, %v4761_v54, 0.0 }
 0x370   : > { %v8645_v5 = vrot.slane %v6731_v60, %v12473_v19  ;;  %v8640_v6 = vrot.slane %v6730_v61, %v12479_v24  ;;  %5846 = vadd.xlane.f32.xlu1 %v5845_v55  ;;  %5843 = vadd.xlane.f32.xlu0 %v5842_v57 }
 0x371   : > { %v5637_v7 = vpop.xlane.xlu1 %5636  ;;  %v5634_v8 = vpop.xlane.xlu0 %5633 }
 0x372   : > { %v8641_v10 = vsel %vm7599_vm8, %v8640_v6, %v8636_v4  ;;  %v6733_v11 = vmul.f32 0.020408163, %v5637_v7  ;;  %v6732_v18 = vmul.f32 0.020408163, %v5634_v8  ;;  %v4764_v7 = vld [vmem:[%s12259_s17 + $0x958] sm:$0xff]  ;;  %v4763_v8 = vld [vmem:[%s12259_s17 + $0x950] sm:$0xff] }
 0x373   : > { %v8646_v17 = vsel %vm14647_vm9, %v8645_v5, %v8641_v10  ;;  %vm14648_vm9 = vcmask 786112   ;;  %v5875_v16 = vsel %vm4977_vm0, %v4764_v7, 0.0 }
 0x374   : > { %v8655_v20 = vrot.slane %v6733_v11, %v12489_v39  ;;  %v8650_v22 = vrot.slane %v6732_v18, %v12495_v44  ;;  %5852 = vadd.xlane.f32.xlu1 %v5851_v9  ;;  %5849 = vadd.xlane.f32.xlu0 %v5848_v3 }
 0x375   : > { %v5643_v23 = vpop.xlane.xlu1 %5642  ;;  %v5640_v25 = vpop.xlane.xlu0 %5639 }
 0x376   : > { %v8651_v28 = vsel %vm7613_vm10, %v8650_v22, %v8646_v17  ;;  %v6735_v29 = vmul.f32 0.020408163, %v5643_v23  ;;  %v6734_v30 = vmul.f32 0.020408163, %v5640_v25  ;;  %v5872_v17 = vsel %vm4977_vm0, %v4763_v8, 0.0  ;;  %v4765_v25 = vld [vmem:[%s12259_s17 + $0x960] sm:$0xff] }
 0x377   : > { %v8656_v35 = vsel %vm14648_vm9, %v8655_v20, %v8651_v28  ;;  %v5878_v31 = vsel %vm4977_vm0, %v4765_v25, 0.0  ;;  %vm14649_vm9 = vcmask 654912  }
 0x378   : > { %v8665_v37 = vrot.slane %v6735_v29, %v12505_v58  ;;  %v8660_v38 = vrot.slane %v6734_v30, %v12511_v62  ;;  %5858 = vadd.xlane.f32.xlu1 %v5857_v26  ;;  %5855 = vadd.xlane.f32.xlu0 %v5854_v27 }
 0x379   : > { %v5649_v40 = vpop.xlane.xlu1 %5648  ;;  %v5646_v41 = vpop.xlane.xlu0 %5645 }
 0x37a   : > { %v8661_v48 = vsel %vm7627_vm12, %v8660_v38, %v8656_v35  ;;  %v6737_v49 = vmul.f32 0.020408163, %v5649_v40  ;;  %v6736_v51 = vmul.f32 0.020408163, %v5646_v41  ;;  %v4768_v38 = vld [vmem:[%s12259_s17 + $0x978] sm:$0xff]  ;;  %v4767_v40 = vld [vmem:[%s12259_s17 + $0x970] sm:$0xff] }
 0x37b   : > { %v8666_v55 = vsel %vm7634_vm13, %v8665_v37, %v8661_v48  ;;  %v5884_v53 = vsel %vm4977_vm0, %v4767_v40, 0.0 }
 0x37c   : > { %v8675_v57 = vrot.slane %v6737_v49, %v12521_v12  ;;  %v8670_v59 = vrot.slane %v6736_v51, %v12526_v14  ;;  %5864 = vadd.xlane.f32.xlu1 %v5863_v43  ;;  %5861 = vadd.xlane.f32.xlu0 %v5860_v45  ;;  %v5887_v51 = vsel %vm4977_vm0, %v4768_v38, 0.0 }
 0x37d   : > { %v5655_v60 = vpop.xlane.xlu1 %5654  ;;  %v5652_v61 = vpop.xlane.xlu0 %5651 }
 0x37e   : > { %v8671_v4 = vsel %vm7641_vm14, %v8670_v59, %v8666_v55  ;;  %v6739_v5 = vmul.f32 0.020408163, %v5655_v60  ;;  %v6738_v6 = vmul.f32 0.020408163, %v5652_v61  ;;  %v4770_v59 = vld [vmem:[%s12259_s17 + $0x988] sm:$0xff]  ;;  %v4769_v60 = vld [vmem:[%s12259_s17 + $0x980] sm:$0xff] }
 0x37f   : > { %v8676_v9 = vsel %vm7648_vm15, %v8675_v57, %v8671_v4  ;;  %v5890_v7 = vsel %vm4977_vm0, %v4769_v60, 0.0 }
 0x380   : > { %v13407_v3 = vsel %vm10103_vm11, %v8676_v9, %v13139_v13  ;;  %v8684_v10 = vrot.slane %v6739_v5, %v12424_v34  ;;  %v8680_v11 = vrot.slane %v6738_v6, %v12421_v32  ;;  %5870 = vadd.xlane.f32.xlu1 %v5869_v63  ;;  %5867 = vadd.xlane.f32.xlu0 %v5866_v0  ;;  %v4766_v13 = vld [vmem:[%s12259_s17 + $0x968] sm:$0xff]  ;;  %v5893_v6 = vsel %vm4977_vm0, %v4770_v59, 0.0 }
 0x381   : > { %v5661_v18 = vpop.xlane.xlu1 %5660  ;;  %v5658_v15 = vpop.xlane.xlu0 %5657  ;;  %v5881_v30 = vsel %vm4977_vm0, %v4766_v13, 0.0 }
 0x382   : > { %v8685_v20 = vsel %vm7550_vm1, %v8684_v10, %v8680_v11  ;;  %v6741_v22 = vmul.f32 0.020408163, %v5661_v18  ;;  %v6740_v23 = vmul.f32 0.020408163, %v5658_v15  ;;  %v4772_v11 = vld [vmem:[%s12259_s17 + $0x998] sm:$0xff]  ;;  %v4771_v18 = vld [vmem:[%s12259_s17 + $0x990] sm:$0xff] }
 0x383   : > { %v5896_v13 = vsel %vm4977_vm0, %v4771_v18, 0.0 }
 0x384   : > { %v8694_v26 = vrot.slane %v6741_v22, %v12433_v42  ;;  %v8689_v27 = vrot.slane %v6740_v23, %v12428_v36  ;;  %5876 = vadd.xlane.f32.xlu1 %v5875_v16  ;;  %5873 = vadd.xlane.f32.xlu0 %v5872_v17  ;;  %v5899_v23 = vsel %vm4977_vm0, %v4772_v11, 0.0 }
 0x385   : > { %v5667_v28 = vpop.xlane.xlu1 %5666  ;;  %v5664_v29 = vpop.xlane.xlu0 %5663 }
 0x386   : > { %v8690_v33 = vsel %vm7557_vm2, %v8689_v27, %v8685_v20  ;;  %v6743_v35 = vmul.f32 0.020408163, %v5667_v28  ;;  %v6742_v37 = vmul.f32 0.020408163, %v5664_v29  ;;  %v4774_v28 = vld [vmem:[%s12259_s17 + $0x9a8] sm:$0xff]  ;;  %v4773_v29 = vld [vmem:[%s12259_s17 + $0x9a0] sm:$0xff] }
 0x387   : > { %v8695_v41 = vsel %vm7564_vm3, %v8694_v26, %v8690_v33  ;;  %v5905_v38 = vsel %vm4977_vm0, %v4774_v28, 0.0  ;;  %v5902_v40 = vsel %vm4977_vm0, %v4773_v29, 0.0 }
 0x388   : > { %v8704_v43 = vrot.slane %v6743_v35, %v12438_v47  ;;  %v8699_v45 = vrot.slane %v6742_v37, %v12445_v52  ;;  %5882 = vadd.xlane.f32.xlu1 %v5881_v30  ;;  %5879 = vadd.xlane.f32.xlu0 %v5878_v31 }
 0x389   : > { %v5673_v48 = vpop.xlane.xlu1 %5672  ;;  %v5670_v49 = vpop.xlane.xlu0 %5669 }
 0x38a   : > { %v8700_v54 = vsel %vm7571_vm4, %v8699_v45, %v8695_v41  ;;  %v6745_v55 = vmul.f32 0.020408163, %v5673_v48  ;;  %v6744_v57 = vmul.f32 0.020408163, %v5670_v49  ;;  %v4776_v48 = vld [vmem:[%s12259_s17 + $0x9b8] sm:$0xff]  ;;  %v4775_v49 = vld [vmem:[%s12259_s17 + $0x9b0] sm:$0xff] }
 0x38b   : > { %v8705_v61 = vsel %vm7578_vm5, %v8704_v43, %v8700_v54  ;;  %v5911_v59 = vsel %vm4977_vm0, %v4776_v48, 0.0  ;;  %v5908_v60 = vsel %vm4977_vm0, %v4775_v49, 0.0 }
 0x38c   : > { %v8714_v63 = vrot.slane %v6745_v55, %v12456_v1  ;;  %v8709_v0 = vrot.slane %v6744_v57, %v12459_v2  ;;  %5888 = vadd.xlane.f32.xlu1 %v5887_v51  ;;  %5885 = vadd.xlane.f32.xlu0 %v5884_v53 }
 0x38d   : > { %v5679_v4 = vpop.xlane.xlu1 %5678  ;;  %v5676_v5 = vpop.xlane.xlu0 %5675 }
 0x38e   : > { %v8710_v8 = vsel %vm7585_vm6, %v8709_v0, %v8705_v61  ;;  %v6747_v9 = vmul.f32 0.020408163, %v5679_v4  ;;  %v6746_v10 = vmul.f32 0.020408163, %v5676_v5  ;;  %v4778_v4 = vld [vmem:[%s12259_s17 + $0x9c8] sm:$0xff]  ;;  %v4777_v5 = vld [vmem:[%s12259_s17 + $0x9c0] sm:$0xff] }
 0x38f   : > { %v8715_v15 = vsel %vm7592_vm7, %v8714_v63, %v8710_v8  ;;  %v5917_v11 = vsel %vm4977_vm0, %v4778_v4, 0.0  ;;  %v5914_v18 = vsel %vm4977_vm0, %v4777_v5, 0.0 }
 0x390   : > { %v8724_v16 = vrot.slane %v6747_v9, %v12473_v19  ;;  %v8719_v17 = vrot.slane %v6746_v10, %v12479_v24  ;;  %5894 = vadd.xlane.f32.xlu1 %v5893_v6  ;;  %5891 = vadd.xlane.f32.xlu0 %v5890_v7 }
 0x391   : > { %v5685_v20 = vpop.xlane.xlu1 %5684  ;;  %v5682_v22 = vpop.xlane.xlu0 %5681 }
 0x392   : > { %v8720_v25 = vsel %vm7599_vm8, %v8719_v17, %v8715_v15  ;;  %v6749_v26 = vmul.f32 0.020408163, %v5685_v20  ;;  %v6748_v27 = vmul.f32 0.020408163, %v5682_v22  ;;  %v4780_v20 = vld [vmem:[%s12259_s17 + $0x9d8] sm:$0xff]  ;;  %v4779_v22 = vld [vmem:[%s12259_s17 + $0x9d0] sm:$0xff] }
 0x393   : > { %v8725_v30 = vsel %vm14649_vm9, %v8724_v16, %v8720_v25  ;;  %vm14650_vm9 = vcmask 786112   ;;  %v5923_v29 = vsel %vm4977_vm0, %v4780_v20, 0.0 }
 0x394   : > { %v8734_v31 = vrot.slane %v6749_v26, %v12489_v39  ;;  %v8729_v33 = vrot.slane %v6748_v27, %v12495_v44  ;;  %5900 = vadd.xlane.f32.xlu1 %v5899_v23  ;;  %5897 = vadd.xlane.f32.xlu0 %v5896_v13 }
 0x395   : > { %v5691_v35 = vpop.xlane.xlu1 %5690  ;;  %v5688_v37 = vpop.xlane.xlu0 %5687 }
 0x396   : > { %v8730_v41 = vsel %vm7613_vm10, %v8729_v33, %v8725_v30  ;;  %v6751_v43 = vmul.f32 0.020408163, %v5691_v35  ;;  %v6750_v45 = vmul.f32 0.020408163, %v5688_v37  ;;  %v5920_v30 = vsel %vm4977_vm0, %v4779_v22, 0.0  ;;  %v4781_v37 = vld [vmem:[%s12259_s17 + $0x9e0] sm:$0xff] }
 0x397   : > { %v8735_v51 = vsel %vm14650_vm9, %v8734_v31, %v8730_v41  ;;  %v5926_v48 = vsel %vm4977_vm0, %v4781_v37, 0.0  ;;  %vm14651_vm9 = vcmask 654912  }
 0x398   : > { %v8744_v53 = vrot.slane %v6751_v43, %v12505_v58  ;;  %v8739_v54 = vrot.slane %v6750_v45, %v12511_v62  ;;  %5906 = vadd.xlane.f32.xlu1 %v5905_v38  ;;  %5903 = vadd.xlane.f32.xlu0 %v5902_v40 }
 0x399   : > { %v5697_v55 = vpop.xlane.xlu1 %5696  ;;  %v5694_v57 = vpop.xlane.xlu0 %5693 }
 0x39a   : > { %v8740_v61 = vsel %vm7627_vm12, %v8739_v54, %v8735_v51  ;;  %v6753_v63 = vmul.f32 0.020408163, %v5697_v55  ;;  %v6752_v0 = vmul.f32 0.020408163, %v5694_v57  ;;  %v4784_v54 = vld [vmem:[%s12259_s17 + $0x9f8] sm:$0xff]  ;;  %v4783_v55 = vld [vmem:[%s12259_s17 + $0x9f0] sm:$0xff] }
 0x39b   : > { %v8745_v6 = vsel %vm7634_vm13, %v8744_v53, %v8740_v61  ;;  %v5932_v4 = vsel %vm4977_vm0, %v4783_v55, 0.0 }
 0x39c   : > { %v8754_v7 = vrot.slane %v6753_v63, %v12521_v12  ;;  %v8749_v8 = vrot.slane %v6752_v0, %v12526_v14  ;;  %5912 = vadd.xlane.f32.xlu1 %v5911_v59  ;;  %5909 = vadd.xlane.f32.xlu0 %v5908_v60  ;;  %v5935_v0 = vsel %vm4977_vm0, %v4784_v54, 0.0 }
 0x39d   : > { %v5703_v9 = vpop.xlane.xlu1 %5702  ;;  %v5700_v10 = vpop.xlane.xlu0 %5699 }
 0x39e   : > { %v8750_v15 = vsel %vm7641_vm14, %v8749_v8, %v8745_v6  ;;  %v6755_v16 = vmul.f32 0.020408163, %v5703_v9  ;;  %v6754_v17 = vmul.f32 0.020408163, %v5700_v10  ;;  %v4786_v8 = vld [vmem:[%s12259_s17 + $0xa08] sm:$0xff]  ;;  %v4785_v9 = vld [vmem:[%s12259_s17 + $0xa00] sm:$0xff] }
 0x39f   : > { %v8755_v23 = vsel %vm7648_vm15, %v8754_v7, %v8750_v15  ;;  %v5938_v20 = vsel %vm4977_vm0, %v4785_v9, 0.0 }
 0x3a0   : > { %v13474_v13 = vsel %vm10103_vm11, %v8755_v23, %v13206_v46  ;;  %v8763_v25 = vrot.slane %v6755_v16, %v12424_v34  ;;  %v8759_v26 = vrot.slane %v6754_v17, %v12421_v32  ;;  %5918 = vadd.xlane.f32.xlu1 %v5917_v11  ;;  %5915 = vadd.xlane.f32.xlu0 %v5914_v18  ;;  %v4782_v46 = vld [vmem:[%s12259_s17 + $0x9e8] sm:$0xff]  ;;  %v5941_v17 = vsel %vm4977_vm0, %v4786_v8, 0.0 }
 0x3a1   : > { %v5709_v27 = vpop.xlane.xlu1 %5708  ;;  %v5706_v28 = vpop.xlane.xlu0 %5705  ;;  %v5929_v45 = vsel %vm4977_vm0, %v4782_v46, 0.0 }
 0x3a2   : > { %v8764_v31 = vsel %vm7550_vm1, %v8763_v25, %v8759_v26  ;;  %v6757_v33 = vmul.f32 0.020408163, %v5709_v27  ;;  %v6756_v35 = vmul.f32 0.020408163, %v5706_v28  ;;  %v4788_v26 = vld [vmem:[%s12259_s17 + $0xa18] sm:$0xff]  ;;  %v4787_v27 = vld [vmem:[%s12259_s17 + $0xa10] sm:$0xff] }
 0x3a3   : > { %v5944_v46 = vsel %vm4977_vm0, %v4787_v27, 0.0 }
 0x3a4   : > { %v8773_v38 = vrot.slane %v6757_v33, %v12433_v42  ;;  %v8768_v40 = vrot.slane %v6756_v35, %v12428_v36  ;;  %5924 = vadd.xlane.f32.xlu1 %v5923_v29  ;;  %5921 = vadd.xlane.f32.xlu0 %v5920_v30  ;;  %v5947_v35 = vsel %vm4977_vm0, %v4788_v26, 0.0 }
 0x3a5   : > { %v5715_v41 = vpop.xlane.xlu1 %5714  ;;  %v5712_v43 = vpop.xlane.xlu0 %5711 }
 0x3a6   : > { %v8769_v49 = vsel %vm7557_vm2, %v8768_v40, %v8764_v31  ;;  %v6759_v51 = vmul.f32 0.020408163, %v5715_v41  ;;  %v6758_v53 = vmul.f32 0.020408163, %v5712_v43  ;;  %v4790_v41 = vld [vmem:[%s12259_s17 + $0xa28] sm:$0xff]  ;;  %v4789_v43 = vld [vmem:[%s12259_s17 + $0xa20] sm:$0xff] }
 0x3a7   : > { %v8774_v57 = vsel %vm7564_vm3, %v8773_v38, %v8769_v49  ;;  %v5953_v54 = vsel %vm4977_vm0, %v4790_v41, 0.0  ;;  %v5950_v55 = vsel %vm4977_vm0, %v4789_v43, 0.0 }
 0x3a8   : > { %v8783_v59 = vrot.slane %v6759_v51, %v12438_v47  ;;  %v8778_v60 = vrot.slane %v6758_v53, %v12445_v52  ;;  %5930 = vadd.xlane.f32.xlu1 %v5929_v45  ;;  %5927 = vadd.xlane.f32.xlu0 %v5926_v48 }
 0x3a9   : > { %v5721_v61 = vpop.xlane.xlu1 %5720  ;;  %v5718_v63 = vpop.xlane.xlu0 %5717 }
 0x3aa   : > { %v8779_v5 = vsel %vm7571_vm4, %v8778_v60, %v8774_v57  ;;  %v6761_v6 = vmul.f32 0.020408163, %v5721_v61  ;;  %v6760_v7 = vmul.f32 0.020408163, %v5718_v63  ;;  %v4792_v61 = vld [vmem:[%s12259_s17 + $0xa38] sm:$0xff]  ;;  %v4791_v63 = vld [vmem:[%s12259_s17 + $0xa30] sm:$0xff] }
 0x3ab   : > { %v8784_v10 = vsel %vm7578_vm5, %v8783_v59, %v8779_v5  ;;  %v5959_v8 = vsel %vm4977_vm0, %v4792_v61, 0.0  ;;  %v5956_v9 = vsel %vm4977_vm0, %v4791_v63, 0.0 }
 0x3ac   : > { %v8793_v11 = vrot.slane %v6761_v6, %v12456_v1  ;;  %v8788_v18 = vrot.slane %v6760_v7, %v12459_v2  ;;  %5936 = vadd.xlane.f32.xlu1 %v5935_v0  ;;  %5933 = vadd.xlane.f32.xlu0 %v5932_v4 }
 0x3ad   : > { %v5727_v15 = vpop.xlane.xlu1 %5726  ;;  %v5724_v16 = vpop.xlane.xlu0 %5723 }
 0x3ae   : > { %v8789_v22 = vsel %vm7585_vm6, %v8788_v18, %v8784_v10  ;;  %v6763_v23 = vmul.f32 0.020408163, %v5727_v15  ;;  %v6762_v25 = vmul.f32 0.020408163, %v5724_v16  ;;  %v4794_v15 = vld [vmem:[%s12259_s17 + $0xa48] sm:$0xff]  ;;  %v4793_v16 = vld [vmem:[%s12259_s17 + $0xa40] sm:$0xff] }
 0x3af   : > { %v8794_v28 = vsel %vm7592_vm7, %v8793_v11, %v8789_v22  ;;  %v5965_v26 = vsel %vm4977_vm0, %v4794_v15, 0.0  ;;  %v5962_v27 = vsel %vm4977_vm0, %v4793_v16, 0.0 }
 0x3b0   : > { %v8803_v29 = vrot.slane %v6763_v23, %v12473_v19  ;;  %v8798_v30 = vrot.slane %v6762_v25, %v12479_v24  ;;  %5942 = vadd.xlane.f32.xlu1 %v5941_v17  ;;  %5939 = vadd.xlane.f32.xlu0 %v5938_v20 }
 0x3b1   : > { %v5733_v31 = vpop.xlane.xlu1 %5732  ;;  %v5730_v33 = vpop.xlane.xlu0 %5729 }
 0x3b2   : > { %v8799_v37 = vsel %vm7599_vm8, %v8798_v30, %v8794_v28  ;;  %v6765_v38 = vmul.f32 0.020408163, %v5733_v31  ;;  %v6764_v40 = vmul.f32 0.020408163, %v5730_v33  ;;  %v4796_v31 = vld [vmem:[%s12259_s17 + $0xa58] sm:$0xff]  ;;  %v4795_v33 = vld [vmem:[%s12259_s17 + $0xa50] sm:$0xff] }
 0x3b3   : > { %v8804_v45 = vsel %vm14651_vm9, %v8803_v29, %v8799_v37  ;;  %vm14652_vm9 = vcmask 786112   ;;  %v5971_v43 = vsel %vm4977_vm0, %v4796_v31, 0.0 }
 0x3b4   : > { %v8813_v48 = vrot.slane %v6765_v38, %v12489_v39  ;;  %v8808_v49 = vrot.slane %v6764_v40, %v12495_v44  ;;  %5948 = vadd.xlane.f32.xlu1 %v5947_v35  ;;  %5945 = vadd.xlane.f32.xlu0 %v5944_v46 }
 0x3b5   : > { %v5739_v51 = vpop.xlane.xlu1 %5738  ;;  %v5736_v53 = vpop.xlane.xlu0 %5735 }
 0x3b6   : > { %v8809_v57 = vsel %vm7613_vm10, %v8808_v49, %v8804_v45  ;;  %v6767_v59 = vmul.f32 0.020408163, %v5739_v51  ;;  %v6766_v60 = vmul.f32 0.020408163, %v5736_v53  ;;  %v5968_v45 = vsel %vm4977_vm0, %v4795_v33, 0.0  ;;  %v4797_v53 = vld [vmem:[%s12259_s17 + $0xa60] sm:$0xff] }
 0x3b7   : > { %v8814_v0 = vsel %vm14652_vm9, %v8813_v48, %v8809_v57  ;;  %v5974_v61 = vsel %vm4977_vm0, %v4797_v53, 0.0 }
 0x3b8   : > { %v8823_v4 = vrot.slane %v6767_v59, %v12505_v58  ;;  %v8818_v5 = vrot.slane %v6766_v60, %v12511_v62  ;;  %5954 = vadd.xlane.f32.xlu1 %v5953_v54  ;;  %5951 = vadd.xlane.f32.xlu0 %v5950_v55 }
 0x3b9   : > { %v5745_v6 = vpop.xlane.xlu1 %5744  ;;  %v5742_v7 = vpop.xlane.xlu0 %5741 }
 0x3ba   : > { %v8819_v10 = vsel %vm7627_vm12, %v8818_v5, %v8814_v0  ;;  %v6769_v11 = vmul.f32 0.020408163, %v5745_v6  ;;  %v6768_v18 = vmul.f32 0.020408163, %v5742_v7  ;;  %v4800_v5 = vld [vmem:[%s12259_s17 + $0xa78] sm:$0xff]  ;;  %v4799_v6 = vld [vmem:[%s12259_s17 + $0xa70] sm:$0xff] }
 0x3bb   : > { %v8824_v17 = vsel %vm7634_vm13, %v8823_v4, %v8819_v10  ;;  %v5980_v15 = vsel %vm4977_vm0, %v4799_v6, 0.0 }
 0x3bc   : > { %v8833_v20 = vrot.slane %v6769_v11, %v12521_v12  ;;  %v8828_v22 = vrot.slane %v6768_v18, %v12526_v14  ;;  %5960 = vadd.xlane.f32.xlu1 %v5959_v8  ;;  %5957 = vadd.xlane.f32.xlu0 %v5956_v9  ;;  %v5983_v18 = vsel %vm4977_vm0, %v4800_v5, 0.0 }
 0x3bd   : > { %v5751_v23 = vpop.xlane.xlu1 %5750  ;;  %v5748_v25 = vpop.xlane.xlu0 %5747 }
 0x3be   : > { %v8829_v28 = vsel %vm7641_vm14, %v8828_v22, %v8824_v17  ;;  %v6771_v29 = vmul.f32 0.020408163, %v5751_v23  ;;  %v6770_v30 = vmul.f32 0.020408163, %v5748_v25  ;;  %v4802_v22 = vld [vmem:[%s12259_s17 + $0xa88] sm:$0xff]  ;;  %v4801_v23 = vld [vmem:[%s12259_s17 + $0xa80] sm:$0xff] }
 0x3bf   : > { %v8834_v35 = vsel %vm7648_vm15, %v8833_v20, %v8829_v28  ;;  %v5986_v31 = vsel %vm4977_vm0, %v4801_v23, 0.0 }
 0x3c0   : > { %v13541_v46 = vsel %vm10103_vm11, %v8834_v35, %v13273_v50  ;;  %v8842_v37 = vrot.slane %v6771_v29, %v12424_v34  ;;  %v8838_v38 = vrot.slane %v6770_v30, %v12421_v32  ;;  %5966 = vadd.xlane.f32.xlu1 %v5965_v26  ;;  %5963 = vadd.xlane.f32.xlu0 %v5962_v27  ;;  %v4798_v50 = vld [vmem:[%s12259_s17 + $0xa68] sm:$0xff]  ;;  %v5989_v30 = vsel %vm4977_vm0, %v4802_v22, 0.0 }
 0x3c1   : > { %v5757_v40 = vpop.xlane.xlu1 %5756  ;;  %v5754_v41 = vpop.xlane.xlu0 %5753  ;;  %v5977_v60 = vsel %vm4977_vm0, %v4798_v50, 0.0  ;;  %vm14653_vm11 = vcmask 654912  }
 0x3c2   : > { %v8843_v48 = vsel %vm7550_vm1, %v8842_v37, %v8838_v38  ;;  %v6773_v49 = vmul.f32 0.020408163, %v5757_v40  ;;  %v6772_v51 = vmul.f32 0.020408163, %v5754_v41  ;;  %v4804_v38 = vld [vmem:[%s12259_s17 + $0xa98] sm:$0xff]  ;;  %v4803_v40 = vld [vmem:[%s12259_s17 + $0xa90] sm:$0xff] }
 0x3c3   : > { %v5992_v50 = vsel %vm4977_vm0, %v4803_v40, 0.0 }
 0x3c4   : > { %v8852_v54 = vrot.slane %v6773_v49, %v12433_v42  ;;  %v8847_v55 = vrot.slane %v6772_v51, %v12428_v36  ;;  %5972 = vadd.xlane.f32.xlu1 %v5971_v43  ;;  %5969 = vadd.xlane.f32.xlu0 %v5968_v45  ;;  %v5995_v51 = vsel %vm4977_vm0, %v4804_v38, 0.0 }
 0x3c5   : > { %v5763_v57 = vpop.xlane.xlu1 %5762  ;;  %v5760_v59 = vpop.xlane.xlu0 %5759 }
 0x3c6   : > { %v8848_v63 = vsel %vm7557_vm2, %v8847_v55, %v8843_v48  ;;  %v6775_v0 = vmul.f32 0.020408163, %v5763_v57  ;;  %v6774_v4 = vmul.f32 0.020408163, %v5760_v59  ;;  %v4806_v57 = vld [vmem:[%s12259_s17 + $0xaa8] sm:$0xff]  ;;  %v4805_v59 = vld [vmem:[%s12259_s17 + $0xaa0] sm:$0xff] }
 0x3c7   : > { %v8853_v7 = vsel %vm7564_vm3, %v8852_v54, %v8848_v63  ;;  %v6001_v5 = vsel %vm4977_vm0, %v4806_v57, 0.0  ;;  %v5998_v6 = vsel %vm4977_vm0, %v4805_v59, 0.0 }
 0x3c8   : > { %v8862_v8 = vrot.slane %v6775_v0, %v12438_v47  ;;  %v8857_v9 = vrot.slane %v6774_v4, %v12445_v52  ;;  %5978 = vadd.xlane.f32.xlu1 %v5977_v60  ;;  %5975 = vadd.xlane.f32.xlu0 %v5974_v61 }
 0x3c9   : > { %v5769_v10 = vpop.xlane.xlu1 %5768  ;;  %v5766_v11 = vpop.xlane.xlu0 %5765 }
 0x3ca   : > { %v8858_v16 = vsel %vm7571_vm4, %v8857_v9, %v8853_v7  ;;  %v6777_v17 = vmul.f32 0.020408163, %v5769_v10  ;;  %v6776_v20 = vmul.f32 0.020408163, %v5766_v11  ;;  %v4808_v10 = vld [vmem:[%s12259_s17 + $0xab8] sm:$0xff]  ;;  %v4807_v11 = vld [vmem:[%s12259_s17 + $0xab0] sm:$0xff] }
 0x3cb   : > { %v8863_v25 = vsel %vm7578_vm5, %v8862_v8, %v8858_v16  ;;  %v6007_v22 = vsel %vm4977_vm0, %v4808_v10, 0.0  ;;  %v6004_v23 = vsel %vm4977_vm0, %v4807_v11, 0.0 }
 0x3cc   : > { %v8872_v26 = vrot.slane %v6777_v17, %v12456_v1  ;;  %v8867_v27 = vrot.slane %v6776_v20, %v12459_v2  ;;  %5984 = vadd.xlane.f32.xlu1 %v5983_v18  ;;  %5981 = vadd.xlane.f32.xlu0 %v5980_v15 }
 0x3cd   : > { %v5775_v28 = vpop.xlane.xlu1 %5774  ;;  %v5772_v29 = vpop.xlane.xlu0 %5771 }
 0x3ce   : > { %v8868_v33 = vsel %vm7585_vm6, %v8867_v27, %v8863_v25  ;;  %v6779_v35 = vmul.f32 0.020408163, %v5775_v28  ;;  %v6778_v37 = vmul.f32 0.020408163, %v5772_v29  ;;  %v4810_v28 = vld [vmem:[%s12259_s17 + $0xac8] sm:$0xff]  ;;  %v4809_v29 = vld [vmem:[%s12259_s17 + $0xac0] sm:$0xff] }
 0x3cf   : > { %v8873_v41 = vsel %vm7592_vm7, %v8872_v26, %v8868_v33  ;;  %v6013_v38 = vsel %vm4977_vm0, %v4810_v28, 0.0  ;;  %v6010_v40 = vsel %vm4977_vm0, %v4809_v29, 0.0 }
 0x3d0   : > { %v8882_v43 = vrot.slane %v6779_v35, %v12473_v19  ;;  %v8877_v45 = vrot.slane %v6778_v37, %v12479_v24  ;;  %5990 = vadd.xlane.f32.xlu1 %v5989_v30  ;;  %5987 = vadd.xlane.f32.xlu0 %v5986_v31 }
 0x3d1   : > { %v5781_v48 = vpop.xlane.xlu1 %5780  ;;  %v5778_v49 = vpop.xlane.xlu0 %5777 }
 0x3d2   : > { %v8878_v53 = vsel %vm7599_vm8, %v8877_v45, %v8873_v41  ;;  %v6781_v54 = vmul.f32 0.020408163, %v5781_v48  ;;  %v6780_v55 = vmul.f32 0.020408163, %v5778_v49  ;;  %v4812_v48 = vld [vmem:[%s12259_s17 + $0xad8] sm:$0xff]  ;;  %v4811_v49 = vld [vmem:[%s12259_s17 + $0xad0] sm:$0xff] }
 0x3d3   : > { %v8883_v60 = vsel %vm14653_vm11, %v8882_v43, %v8878_v53  ;;  %vm10105_vm11 = vcmask 1044484   ;;  %v6019_v59 = vsel %vm4977_vm0, %v4812_v48, 0.0 }
 0x3d4   : > { %v8892_v61 = vrot.slane %v6781_v54, %v12489_v39  ;;  %v8887_v63 = vrot.slane %v6780_v55, %v12495_v44  ;;  %5996 = vadd.xlane.f32.xlu1 %v5995_v51  ;;  %5993 = vadd.xlane.f32.xlu0 %v5992_v50 }
 0x3d5   : > { %v5787_v0 = vpop.xlane.xlu1 %5786  ;;  %v5784_v4 = vpop.xlane.xlu0 %5783 }
 0x3d6   : > { %v8888_v7 = vsel %vm7613_vm10, %v8887_v63, %v8883_v60  ;;  %v6783_v8 = vmul.f32 0.020408163, %v5787_v0  ;;  %v6782_v9 = vmul.f32 0.020408163, %v5784_v4  ;;  %v6016_v60 = vsel %vm4977_vm0, %v4811_v49, 0.0  ;;  %v4813_v4 = vld [vmem:[%s12259_s17 + $0xae0] sm:$0xff] }
 0x3d7   : > { %v8893_v18 = vsel %vm14652_vm9, %v8892_v61, %v8888_v7  ;;  %v6022_v10 = vsel %vm4977_vm0, %v4813_v4, 0.0  ;;  %vm14654_vm9 = vcmask 654912  }
 0x3d8   : > { %v8902_v15 = vrot.slane %v6783_v8, %v12505_v58  ;;  %v8897_v16 = vrot.slane %v6782_v9, %v12511_v62  ;;  %6002 = vadd.xlane.f32.xlu1 %v6001_v5  ;;  %5999 = vadd.xlane.f32.xlu0 %v5998_v6 }
 0x3d9   : > { %v5793_v17 = vpop.xlane.xlu1 %5792  ;;  %v5790_v20 = vpop.xlane.xlu0 %5789 }
 0x3da   : > { %v8898_v25 = vsel %vm7627_vm12, %v8897_v16, %v8893_v18  ;;  %v6785_v26 = vmul.f32 0.020408163, %v5793_v17  ;;  %v6784_v27 = vmul.f32 0.020408163, %v5790_v20  ;;  %v4816_v16 = vld [vmem:[%s12259_s17 + $0xaf8] sm:$0xff]  ;;  %v4815_v17 = vld [vmem:[%s12259_s17 + $0xaf0] sm:$0xff] }
 0x3db   : > { %v8903_v30 = vsel %vm7634_vm13, %v8902_v15, %v8898_v25  ;;  %v6028_v28 = vsel %vm4977_vm0, %v4815_v17, 0.0 }
 0x3dc   : > { %v8912_v31 = vrot.slane %v6785_v26, %v12521_v12  ;;  %v8907_v33 = vrot.slane %v6784_v27, %v12526_v14  ;;  %6008 = vadd.xlane.f32.xlu1 %v6007_v22  ;;  %6005 = vadd.xlane.f32.xlu0 %v6004_v23  ;;  %v6031_v27 = vsel %vm4977_vm0, %v4816_v16, 0.0 }
 0x3dd   : > { %v5799_v35 = vpop.xlane.xlu1 %5798  ;;  %v5796_v37 = vpop.xlane.xlu0 %5795 }
 0x3de   : > { %v8908_v41 = vsel %vm7641_vm14, %v8907_v33, %v8903_v30  ;;  %v6787_v43 = vmul.f32 0.020408163, %v5799_v35  ;;  %v6786_v45 = vmul.f32 0.020408163, %v5796_v37  ;;  %v4818_v33 = vld [vmem:[%s12259_s17 + $0xb08] sm:$0xff]  ;;  %v4817_v35 = vld [vmem:[%s12259_s17 + $0xb00] sm:$0xff] }
 0x3df   : > { %v8913_v51 = vsel %vm7648_vm15, %v8912_v31, %v8908_v41  ;;  %v6034_v48 = vsel %vm4977_vm0, %v4817_v35, 0.0 }
 0x3e0   : > { %v13608_v50 = vsel %vm10105_vm11, %v8913_v51, %v13340_v56  ;;  %v8921_v53 = vrot.slane %v6787_v43, %v12424_v34  ;;  %v8917_v54 = vrot.slane %v6786_v45, %v12421_v32  ;;  %6014 = vadd.xlane.f32.xlu1 %v6013_v38  ;;  %6011 = vadd.xlane.f32.xlu0 %v6010_v40  ;;  %v4814_v56 = vld [vmem:[%s12259_s17 + $0xae8] sm:$0xff]  ;;  %v6037_v45 = vsel %vm4977_vm0, %v4818_v33, 0.0 }
 0x3e1   : > { %v5805_v55 = vpop.xlane.xlu1 %5804  ;;  %v5802_v57 = vpop.xlane.xlu0 %5801  ;;  %v6025_v9 = vsel %vm4977_vm0, %v4814_v56, 0.0 }
 0x3e2   : > { %v8922_v61 = vsel %vm7550_vm1, %v8921_v53, %v8917_v54  ;;  %v6789_v63 = vmul.f32 0.020408163, %v5805_v55  ;;  %v6788_v0 = vmul.f32 0.020408163, %v5802_v57  ;;  %v4820_v54 = vld [vmem:[%s12259_s17 + $0xb18] sm:$0xff]  ;;  %v4819_v55 = vld [vmem:[%s12259_s17 + $0xb10] sm:$0xff] }
 0x3e3   : > { %v6040_v56 = vsel %vm4977_vm0, %v4819_v55, 0.0 }
 0x3e4   : > { %v8931_v5 = vrot.slane %v6789_v63, %v12433_v42  ;;  %v8926_v6 = vrot.slane %v6788_v0, %v12428_v36  ;;  %6020 = vadd.xlane.f32.xlu1 %v6019_v59  ;;  %6017 = vadd.xlane.f32.xlu0 %v6016_v60  ;;  %v6043_v0 = vsel %vm4977_vm0, %v4820_v54, 0.0 }
 0x3e5   : > { %v5811_v7 = vpop.xlane.xlu1 %5810  ;;  %v5808_v8 = vpop.xlane.xlu0 %5807 }
 0x3e6   : > { %v8927_v11 = vsel %vm7557_vm2, %v8926_v6, %v8922_v61  ;;  %v6791_v18 = vmul.f32 0.020408163, %v5811_v7  ;;  %v6790_v15 = vmul.f32 0.020408163, %v5808_v8  ;;  %v4822_v7 = vld [vmem:[%s12259_s17 + $0xb28] sm:$0xff]  ;;  %v4821_v8 = vld [vmem:[%s12259_s17 + $0xb20] sm:$0xff] }
 0x3e7   : > { %v8932_v20 = vsel %vm7564_vm3, %v8931_v5, %v8927_v11  ;;  %v6049_v16 = vsel %vm4977_vm0, %v4822_v7, 0.0  ;;  %v6046_v17 = vsel %vm4977_vm0, %v4821_v8, 0.0 }
 0x3e8   : > { %v8941_v22 = vrot.slane %v6791_v18, %v12438_v47  ;;  %v8936_v23 = vrot.slane %v6790_v15, %v12445_v52  ;;  %6026 = vadd.xlane.f32.xlu1 %v6025_v9  ;;  %6023 = vadd.xlane.f32.xlu0 %v6022_v10 }
 0x3e9   : > { %v5817_v25 = vpop.xlane.xlu1 %5816  ;;  %v5814_v26 = vpop.xlane.xlu0 %5813 }
 0x3ea   : > { %v8937_v29 = vsel %vm7571_vm4, %v8936_v23, %v8932_v20  ;;  %v6793_v30 = vmul.f32 0.020408163, %v5817_v25  ;;  %v6792_v31 = vmul.f32 0.020408163, %v5814_v26  ;;  %v4824_v25 = vld [vmem:[%s12259_s17 + $0xb38] sm:$0xff]  ;;  %v4823_v26 = vld [vmem:[%s12259_s17 + $0xb30] sm:$0xff] }
 0x3eb   : > { %v8942_v37 = vsel %vm7578_vm5, %v8941_v22, %v8937_v29  ;;  %v6055_v33 = vsel %vm4977_vm0, %v4824_v25, 0.0  ;;  %v6052_v35 = vsel %vm4977_vm0, %v4823_v26, 0.0 }
 0x3ec   : > { %v8951_v38 = vrot.slane %v6793_v30, %v12456_v1  ;;  %v8946_v40 = vrot.slane %v6792_v31, %v12459_v2  ;;  %6032 = vadd.xlane.f32.xlu1 %v6031_v27  ;;  %6029 = vadd.xlane.f32.xlu0 %v6028_v28 }
 0x3ed   : > { %v5823_v41 = vpop.xlane.xlu1 %5822  ;;  %v5820_v43 = vpop.xlane.xlu0 %5819 }
 0x3ee   : > { %v8947_v49 = vsel %vm7585_vm6, %v8946_v40, %v8942_v37  ;;  %v6795_v51 = vmul.f32 0.020408163, %v5823_v41  ;;  %v6794_v53 = vmul.f32 0.020408163, %v5820_v43  ;;  %v4826_v41 = vld [vmem:[%s12259_s17 + $0xb48] sm:$0xff]  ;;  %v4825_v43 = vld [vmem:[%s12259_s17 + $0xb40] sm:$0xff] }
 0x3ef   : > { %v8952_v57 = vsel %vm7592_vm7, %v8951_v38, %v8947_v49  ;;  %v6061_v54 = vsel %vm4977_vm0, %v4826_v41, 0.0  ;;  %v6058_v55 = vsel %vm4977_vm0, %v4825_v43, 0.0 }
 0x3f0   : > { %v8961_v59 = vrot.slane %v6795_v51, %v12473_v19  ;;  %v8956_v60 = vrot.slane %v6794_v53, %v12479_v24  ;;  %6038 = vadd.xlane.f32.xlu1 %v6037_v45  ;;  %6035 = vadd.xlane.f32.xlu0 %v6034_v48 }
 0x3f1   : > { %v5829_v61 = vpop.xlane.xlu1 %5828  ;;  %v5826_v63 = vpop.xlane.xlu0 %5825 }
 0x3f2   : > { %v8957_v4 = vsel %vm7599_vm8, %v8956_v60, %v8952_v57  ;;  %v6797_v5 = vmul.f32 0.020408163, %v5829_v61  ;;  %v6796_v6 = vmul.f32 0.020408163, %v5826_v63  ;;  %v4828_v61 = vld [vmem:[%s12259_s17 + $0xb58] sm:$0xff]  ;;  %v4827_v63 = vld [vmem:[%s12259_s17 + $0xb50] sm:$0xff] }
 0x3f3   : > { %v8962_v9 = vsel %vm14654_vm9, %v8961_v59, %v8957_v4  ;;  %vm14655_vm9 = vcmask 786112   ;;  %v6067_v8 = vsel %vm4977_vm0, %v4828_v61, 0.0 }
 0x3f4   : > { %v8971_v10 = vrot.slane %v6797_v5, %v12489_v39  ;;  %v8966_v11 = vrot.slane %v6796_v6, %v12495_v44  ;;  %6044 = vadd.xlane.f32.xlu1 %v6043_v0  ;;  %6041 = vadd.xlane.f32.xlu0 %v6040_v56 }
 0x3f5   : > { %v5835_v18 = vpop.xlane.xlu1 %5834  ;;  %v5832_v15 = vpop.xlane.xlu0 %5831 }
 0x3f6   : > { %v8967_v20 = vsel %vm7613_vm10, %v8966_v11, %v8962_v9  ;;  %v6799_v22 = vmul.f32 0.020408163, %v5835_v18  ;;  %v6798_v23 = vmul.f32 0.020408163, %v5832_v15  ;;  %v6064_v9 = vsel %vm4977_vm0, %v4827_v63, 0.0  ;;  %v4829_v15 = vld [vmem:[%s12259_s17 + $0xb60] sm:$0xff] }
 0x3f7   : > { %v8972_v27 = vsel %vm14655_vm9, %v8971_v10, %v8967_v20  ;;  %v6070_v25 = vsel %vm4977_vm0, %v4829_v15, 0.0  ;;  %vm14656_vm9 = vcmask 654912  }
 0x3f8   : > { %v8981_v28 = vrot.slane %v6799_v22, %v12505_v58  ;;  %v8976_v29 = vrot.slane %v6798_v23, %v12511_v62  ;;  %6050 = vadd.xlane.f32.xlu1 %v6049_v16  ;;  %6047 = vadd.xlane.f32.xlu0 %v6046_v17 }
 0x3f9   : > { %v5841_v30 = vpop.xlane.xlu1 %5840  ;;  %v5838_v31 = vpop.xlane.xlu0 %5837 }
 0x3fa   : > { %v8977_v37 = vsel %vm7627_vm12, %v8976_v29, %v8972_v27  ;;  %v6801_v38 = vmul.f32 0.020408163, %v5841_v30  ;;  %v6800_v40 = vmul.f32 0.020408163, %v5838_v31  ;;  %v4832_v29 = vld [vmem:[%s12259_s17 + $0xb78] sm:$0xff]  ;;  %v4831_v30 = vld [vmem:[%s12259_s17 + $0xb70] sm:$0xff] }
 0x3fb   : > { %v8982_v45 = vsel %vm7634_vm13, %v8981_v28, %v8977_v37  ;;  %v6076_v41 = vsel %vm4977_vm0, %v4831_v30, 0.0 }
 0x3fc   : > { %v8991_v48 = vrot.slane %v6801_v38, %v12521_v12  ;;  %v8986_v49 = vrot.slane %v6800_v40, %v12526_v14  ;;  %6056 = vadd.xlane.f32.xlu1 %v6055_v33  ;;  %6053 = vadd.xlane.f32.xlu0 %v6052_v35  ;;  %v6079_v40 = vsel %vm4977_vm0, %v4832_v29, 0.0 }
 0x3fd   : > { %v5847_v51 = vpop.xlane.xlu1 %5846  ;;  %v5844_v53 = vpop.xlane.xlu0 %5843 }
 0x3fe   : > { %v8987_v57 = vsel %vm7641_vm14, %v8986_v49, %v8982_v45  ;;  %v6803_v59 = vmul.f32 0.020408163, %v5847_v51  ;;  %v6802_v60 = vmul.f32 0.020408163, %v5844_v53  ;;  %v4834_v49 = vld [vmem:[%s12259_s17 + $0xb88] sm:$0xff]  ;;  %v4833_v51 = vld [vmem:[%s12259_s17 + $0xb80] sm:$0xff] }
 0x3ff   : > { %v8992_v0 = vsel %vm7648_vm15, %v8991_v48, %v8987_v57  ;;  %v6082_v61 = vsel %vm4977_vm0, %v4833_v51, 0.0 }
 0x400   : > { %v13675_v56 = vsel %vm10105_vm11, %v8992_v0, %v13407_v3  ;;  %v9000_v4 = vrot.slane %v6803_v59, %v12424_v34  ;;  %v8996_v5 = vrot.slane %v6802_v60, %v12421_v32  ;;  %6062 = vadd.xlane.f32.xlu1 %v6061_v54  ;;  %6059 = vadd.xlane.f32.xlu0 %v6058_v55  ;;  %v4830_v3 = vld [vmem:[%s12259_s17 + $0xb68] sm:$0xff]  ;;  %v6085_v60 = vsel %vm4977_vm0, %v4834_v49, 0.0 }
 0x401   : > { %v5853_v6 = vpop.xlane.xlu1 %5852  ;;  %v5850_v7 = vpop.xlane.xlu0 %5849  ;;  %v6073_v23 = vsel %vm4977_vm0, %v4830_v3, 0.0 }
 0x402   : > { %v9001_v10 = vsel %vm7550_vm1, %v9000_v4, %v8996_v5  ;;  %v6805_v11 = vmul.f32 0.020408163, %v5853_v6  ;;  %v6804_v18 = vmul.f32 0.020408163, %v5850_v7  ;;  %v4836_v5 = vld [vmem:[%s12259_s17 + $0xb98] sm:$0xff]  ;;  %v4835_v6 = vld [vmem:[%s12259_s17 + $0xb90] sm:$0xff] }
 0x403   : > { %v6088_v3 = vsel %vm4977_vm0, %v4835_v6, 0.0 }
 0x404   : > { %v9010_v16 = vrot.slane %v6805_v11, %v12433_v42  ;;  %v9005_v17 = vrot.slane %v6804_v18, %v12428_v36  ;;  %6068 = vadd.xlane.f32.xlu1 %v6067_v8  ;;  %6065 = vadd.xlane.f32.xlu0 %v6064_v9  ;;  %v6091_v18 = vsel %vm4977_vm0, %v4836_v5, 0.0 }
 0x405   : > { %v5859_v20 = vpop.xlane.xlu1 %5858  ;;  %v5856_v22 = vpop.xlane.xlu0 %5855 }
 0x406   : > { %v9006_v26 = vsel %vm7557_vm2, %v9005_v17, %v9001_v10  ;;  %v6807_v27 = vmul.f32 0.020408163, %v5859_v20  ;;  %v6806_v28 = vmul.f32 0.020408163, %v5856_v22  ;;  %v4838_v20 = vld [vmem:[%s12259_s17 + $0xba8] sm:$0xff]  ;;  %v4837_v22 = vld [vmem:[%s12259_s17 + $0xba0] sm:$0xff] }
 0x407   : > { %v9011_v31 = vsel %vm7564_vm3, %v9010_v16, %v9006_v26  ;;  %v6097_v29 = vsel %vm4977_vm0, %v4838_v20, 0.0  ;;  %v6094_v30 = vsel %vm4977_vm0, %v4837_v22, 0.0 }
 0x408   : > { %v9020_v33 = vrot.slane %v6807_v27, %v12438_v47  ;;  %v9015_v35 = vrot.slane %v6806_v28, %v12445_v52  ;;  %6074 = vadd.xlane.f32.xlu1 %v6073_v23  ;;  %6071 = vadd.xlane.f32.xlu0 %v6070_v25 }
 0x409   : > { %v5865_v37 = vpop.xlane.xlu1 %5864  ;;  %v5862_v38 = vpop.xlane.xlu0 %5861 }
 0x40a   : > { %v9016_v43 = vsel %vm7571_vm4, %v9015_v35, %v9011_v31  ;;  %v6809_v45 = vmul.f32 0.020408163, %v5865_v37  ;;  %v6808_v48 = vmul.f32 0.020408163, %v5862_v38  ;;  %v4840_v37 = vld [vmem:[%s12259_s17 + $0xbb8] sm:$0xff]  ;;  %v4839_v38 = vld [vmem:[%s12259_s17 + $0xbb0] sm:$0xff] }
 0x40b   : > { %v9021_v53 = vsel %vm7578_vm5, %v9020_v33, %v9016_v43  ;;  %v6103_v49 = vsel %vm4977_vm0, %v4840_v37, 0.0  ;;  %v6100_v51 = vsel %vm4977_vm0, %v4839_v38, 0.0 }
 0x40c   : > { %v9030_v54 = vrot.slane %v6809_v45, %v12456_v1  ;;  %v9025_v55 = vrot.slane %v6808_v48, %v12459_v2  ;;  %6080 = vadd.xlane.f32.xlu1 %v6079_v40  ;;  %6077 = vadd.xlane.f32.xlu0 %v6076_v41 }
 0x40d   : > { %v5871_v57 = vpop.xlane.xlu1 %5870  ;;  %v5868_v59 = vpop.xlane.xlu0 %5867 }
 0x40e   : > { %v9026_v63 = vsel %vm7585_vm6, %v9025_v55, %v9021_v53  ;;  %v6811_v0 = vmul.f32 0.020408163, %v5871_v57  ;;  %v6810_v4 = vmul.f32 0.020408163, %v5868_v59  ;;  %v4842_v57 = vld [vmem:[%s12259_s17 + $0xbc8] sm:$0xff]  ;;  %v4841_v59 = vld [vmem:[%s12259_s17 + $0xbc0] sm:$0xff] }
 0x40f   : > { %v9031_v7 = vsel %vm7592_vm7, %v9030_v54, %v9026_v63  ;;  %v6109_v5 = vsel %vm4977_vm0, %v4842_v57, 0.0  ;;  %v6106_v6 = vsel %vm4977_vm0, %v4841_v59, 0.0 }
 0x410   : > { %v9040_v8 = vrot.slane %v6811_v0, %v12473_v19  ;;  %v9035_v9 = vrot.slane %v6810_v4, %v12479_v24  ;;  %6086 = vadd.xlane.f32.xlu1 %v6085_v60  ;;  %6083 = vadd.xlane.f32.xlu0 %v6082_v61 }
 0x411   : > { %v5877_v10 = vpop.xlane.xlu1 %5876  ;;  %v5874_v11 = vpop.xlane.xlu0 %5873 }
 0x412   : > { %v9036_v15 = vsel %vm7599_vm8, %v9035_v9, %v9031_v7  ;;  %v6813_v16 = vmul.f32 0.020408163, %v5877_v10  ;;  %v6812_v17 = vmul.f32 0.020408163, %v5874_v11  ;;  %v4844_v10 = vld [vmem:[%s12259_s17 + $0xbd8] sm:$0xff]  ;;  %v4843_v11 = vld [vmem:[%s12259_s17 + $0xbd0] sm:$0xff] }
 0x413   : > { %v9041_v23 = vsel %vm14656_vm9, %v9040_v8, %v9036_v15  ;;  %vm14657_vm9 = vcmask 786112   ;;  %v6115_v22 = vsel %vm4977_vm0, %v4844_v10, 0.0 }
 0x414   : > { %v9050_v25 = vrot.slane %v6813_v16, %v12489_v39  ;;  %v9045_v26 = vrot.slane %v6812_v17, %v12495_v44  ;;  %6092 = vadd.xlane.f32.xlu1 %v6091_v18  ;;  %6089 = vadd.xlane.f32.xlu0 %v6088_v3 }
 0x415   : > { %v5883_v27 = vpop.xlane.xlu1 %5882  ;;  %v5880_v28 = vpop.xlane.xlu0 %5879 }
 0x416   : > { %v9046_v31 = vsel %vm7613_vm10, %v9045_v26, %v9041_v23  ;;  %v6815_v33 = vmul.f32 0.020408163, %v5883_v27  ;;  %v6814_v35 = vmul.f32 0.020408163, %v5880_v28  ;;  %v6112_v23 = vsel %vm4977_vm0, %v4843_v11, 0.0  ;;  %v4845_v28 = vld [vmem:[%s12259_s17 + $0xbe0] sm:$0xff] }
 0x417   : > { %v9051_v40 = vsel %vm14657_vm9, %v9050_v25, %v9046_v31  ;;  %v6118_v37 = vsel %vm4977_vm0, %v4845_v28, 0.0  ;;  %vm14658_vm9 = vcmask 654912  }
 0x418   : > { %v9060_v41 = vrot.slane %v6815_v33, %v12505_v58  ;;  %v9055_v43 = vrot.slane %v6814_v35, %v12511_v62  ;;  %6098 = vadd.xlane.f32.xlu1 %v6097_v29  ;;  %6095 = vadd.xlane.f32.xlu0 %v6094_v30 }
 0x419   : > { %v5889_v45 = vpop.xlane.xlu1 %5888  ;;  %v5886_v48 = vpop.xlane.xlu0 %5885 }
 0x41a   : > { %v9056_v53 = vsel %vm7627_vm12, %v9055_v43, %v9051_v40  ;;  %v6817_v54 = vmul.f32 0.020408163, %v5889_v45  ;;  %v6816_v55 = vmul.f32 0.020408163, %v5886_v48  ;;  %v4848_v43 = vld [vmem:[%s12259_s17 + $0xbf8] sm:$0xff]  ;;  %v4847_v45 = vld [vmem:[%s12259_s17 + $0xbf0] sm:$0xff] }
 0x41b   : > { %v9061_v60 = vsel %vm7634_vm13, %v9060_v41, %v9056_v53  ;;  %v6124_v57 = vsel %vm4977_vm0, %v4847_v45, 0.0 }
 0x41c   : > { %v9070_v61 = vrot.slane %v6817_v54, %v12521_v12  ;;  %v9065_v63 = vrot.slane %v6816_v55, %v12526_v14  ;;  %6104 = vadd.xlane.f32.xlu1 %v6103_v49  ;;  %6101 = vadd.xlane.f32.xlu0 %v6100_v51  ;;  %v6127_v55 = vsel %vm4977_vm0, %v4848_v43, 0.0 }
 0x41d   : > { %v5895_v0 = vpop.xlane.xlu1 %5894  ;;  %v5892_v4 = vpop.xlane.xlu0 %5891 }
 0x41e   : > { %v9066_v7 = vsel %vm7641_vm14, %v9065_v63, %v9061_v60  ;;  %v6819_v8 = vmul.f32 0.020408163, %v5895_v0  ;;  %v6818_v9 = vmul.f32 0.020408163, %v5892_v4  ;;  %v4850_v63 = vld [vmem:[%s12259_s17 + $0xc08] sm:$0xff]  ;;  %v4849_v0 = vld [vmem:[%s12259_s17 + $0xc00] sm:$0xff] }
 0x41f   : > { %v9071_v18 = vsel %vm7648_vm15, %v9070_v61, %v9066_v7  ;;  %v6130_v10 = vsel %vm4977_vm0, %v4849_v0, 0.0 }
 0x420   : > { %v13742_v3 = vsel %vm10105_vm11, %v9071_v18, %v13474_v13  ;;  %v9079_v15 = vrot.slane %v6819_v8, %v12424_v34  ;;  %v9075_v16 = vrot.slane %v6818_v9, %v12421_v32  ;;  %6110 = vadd.xlane.f32.xlu1 %v6109_v5  ;;  %6107 = vadd.xlane.f32.xlu0 %v6106_v6  ;;  %v4846_v13 = vld [vmem:[%s12259_s17 + $0xbe8] sm:$0xff]  ;;  %v6133_v9 = vsel %vm4977_vm0, %v4850_v63, 0.0 }
 0x421   : > { %v5901_v17 = vpop.xlane.xlu1 %5900  ;;  %v5898_v20 = vpop.xlane.xlu0 %5897  ;;  %v6121_v35 = vsel %vm4977_vm0, %v4846_v13, 0.0 }
 0x422   : > { %v9080_v25 = vsel %vm7550_vm1, %v9079_v15, %v9075_v16  ;;  %v6821_v26 = vmul.f32 0.020408163, %v5901_v17  ;;  %v6820_v27 = vmul.f32 0.020408163, %v5898_v20  ;;  %v4852_v16 = vld [vmem:[%s12259_s17 + $0xc18] sm:$0xff]  ;;  %v4851_v17 = vld [vmem:[%s12259_s17 + $0xc10] sm:$0xff] }
 0x423   : > { %v6136_v13 = vsel %vm4977_vm0, %v4851_v17, 0.0 }
 0x424   : > { %v9089_v29 = vrot.slane %v6821_v26, %v12433_v42  ;;  %v9084_v30 = vrot.slane %v6820_v27, %v12428_v36  ;;  %6116 = vadd.xlane.f32.xlu1 %v6115_v22  ;;  %6113 = vadd.xlane.f32.xlu0 %v6112_v23  ;;  %v6139_v27 = vsel %vm4977_vm0, %v4852_v16, 0.0 }
 0x425   : > { %v5907_v31 = vpop.xlane.xlu1 %5906  ;;  %v5904_v33 = vpop.xlane.xlu0 %5903 }
 0x426   : > { %v9085_v38 = vsel %vm7557_vm2, %v9084_v30, %v9080_v25  ;;  %v6823_v40 = vmul.f32 0.020408163, %v5907_v31  ;;  %v6822_v41 = vmul.f32 0.020408163, %v5904_v33  ;;  %v4854_v31 = vld [vmem:[%s12259_s17 + $0xc28] sm:$0xff]  ;;  %v4853_v33 = vld [vmem:[%s12259_s17 + $0xc20] sm:$0xff] }
 0x427   : > { %v9090_v48 = vsel %vm7564_vm3, %v9089_v29, %v9085_v38  ;;  %v6145_v43 = vsel %vm4977_vm0, %v4854_v31, 0.0  ;;  %v6142_v45 = vsel %vm4977_vm0, %v4853_v33, 0.0 }
 0x428   : > { %v9099_v49 = vrot.slane %v6823_v40, %v12438_v47  ;;  %v9094_v51 = vrot.slane %v6822_v41, %v12445_v52  ;;  %6122 = vadd.xlane.f32.xlu1 %v6121_v35  ;;  %6119 = vadd.xlane.f32.xlu0 %v6118_v37 }
 0x429   : > { %v5913_v53 = vpop.xlane.xlu1 %5912  ;;  %v5910_v54 = vpop.xlane.xlu0 %5909 }
 0x42a   : > { %v9095_v59 = vsel %vm7571_vm4, %v9094_v51, %v9090_v48  ;;  %v6825_v60 = vmul.f32 0.020408163, %v5913_v53  ;;  %v6824_v61 = vmul.f32 0.020408163, %v5910_v54  ;;  %v4856_v53 = vld [vmem:[%s12259_s17 + $0xc38] sm:$0xff]  ;;  %v4855_v54 = vld [vmem:[%s12259_s17 + $0xc30] sm:$0xff] }
 0x42b   : > { %v9100_v4 = vsel %vm7578_vm5, %v9099_v49, %v9095_v59  ;;  %v6151_v63 = vsel %vm4977_vm0, %v4856_v53, 0.0  ;;  %v6148_v0 = vsel %vm4977_vm0, %v4855_v54, 0.0 }
 0x42c   : > { %v9109_v5 = vrot.slane %v6825_v60, %v12456_v1  ;;  %v9104_v6 = vrot.slane %v6824_v61, %v12459_v2  ;;  %6128 = vadd.xlane.f32.xlu1 %v6127_v55  ;;  %6125 = vadd.xlane.f32.xlu0 %v6124_v57 }
 0x42d   : > { %v5919_v7 = vpop.xlane.xlu1 %5918  ;;  %v5916_v8 = vpop.xlane.xlu0 %5915 }
 0x42e   : > { %v9105_v11 = vsel %vm7585_vm6, %v9104_v6, %v9100_v4  ;;  %v6827_v18 = vmul.f32 0.020408163, %v5919_v7  ;;  %v6826_v15 = vmul.f32 0.020408163, %v5916_v8  ;;  %v4858_v7 = vld [vmem:[%s12259_s17 + $0xc48] sm:$0xff]  ;;  %v4857_v8 = vld [vmem:[%s12259_s17 + $0xc40] sm:$0xff] }
 0x42f   : > { %v9110_v20 = vsel %vm7592_vm7, %v9109_v5, %v9105_v11  ;;  %v6157_v16 = vsel %vm4977_vm0, %v4858_v7, 0.0  ;;  %v6154_v17 = vsel %vm4977_vm0, %v4857_v8, 0.0 }
 0x430   : > { %v9119_v22 = vrot.slane %v6827_v18, %v12473_v19  ;;  %v9114_v23 = vrot.slane %v6826_v15, %v12479_v24  ;;  %6134 = vadd.xlane.f32.xlu1 %v6133_v9  ;;  %6131 = vadd.xlane.f32.xlu0 %v6130_v10 }
 0x431   : > { %v5925_v25 = vpop.xlane.xlu1 %5924  ;;  %v5922_v26 = vpop.xlane.xlu0 %5921 }
 0x432   : > { %v9115_v28 = vsel %vm7599_vm8, %v9114_v23, %v9110_v20  ;;  %v6829_v29 = vmul.f32 0.020408163, %v5925_v25  ;;  %v6828_v30 = vmul.f32 0.020408163, %v5922_v26  ;;  %v4860_v25 = vld [vmem:[%s12259_s17 + $0xc58] sm:$0xff]  ;;  %v4859_v26 = vld [vmem:[%s12259_s17 + $0xc50] sm:$0xff] }
 0x433   : > { %v9120_v35 = vsel %vm14658_vm9, %v9119_v22, %v9115_v28  ;;  %vm14659_vm9 = vcmask 786112   ;;  %v6163_v33 = vsel %vm4977_vm0, %v4860_v25, 0.0 }
 0x434   : > { %v9129_v37 = vrot.slane %v6829_v29, %v12489_v39  ;;  %v9124_v38 = vrot.slane %v6828_v30, %v12495_v44  ;;  %6140 = vadd.xlane.f32.xlu1 %v6139_v27  ;;  %6137 = vadd.xlane.f32.xlu0 %v6136_v13 }
 0x435   : > { %v5931_v40 = vpop.xlane.xlu1 %5930  ;;  %v5928_v41 = vpop.xlane.xlu0 %5927 }
 0x436   : > { %v9125_v48 = vsel %vm7613_vm10, %v9124_v38, %v9120_v35  ;;  %v6831_v49 = vmul.f32 0.020408163, %v5931_v40  ;;  %v6830_v51 = vmul.f32 0.020408163, %v5928_v41  ;;  %v6160_v35 = vsel %vm4977_vm0, %v4859_v26, 0.0  ;;  %v4861_v41 = vld [vmem:[%s12259_s17 + $0xc60] sm:$0xff] }
 0x437   : > { %v9130_v55 = vsel %vm14659_vm9, %v9129_v37, %v9125_v48  ;;  %v6166_v53 = vsel %vm4977_vm0, %v4861_v41, 0.0 }
 0x438   : > { %v9139_v57 = vrot.slane %v6831_v49, %v12505_v58  ;;  %v9134_v59 = vrot.slane %v6830_v51, %v12511_v62  ;;  %6146 = vadd.xlane.f32.xlu1 %v6145_v43  ;;  %6143 = vadd.xlane.f32.xlu0 %v6142_v45 }
 0x439   : > { %v5937_v60 = vpop.xlane.xlu1 %5936  ;;  %v5934_v61 = vpop.xlane.xlu0 %5933 }
 0x43a   : > { %v9135_v4 = vsel %vm7627_vm12, %v9134_v59, %v9130_v55  ;;  %v6833_v5 = vmul.f32 0.020408163, %v5937_v60  ;;  %v6832_v6 = vmul.f32 0.020408163, %v5934_v61  ;;  %v4864_v59 = vld [vmem:[%s12259_s17 + $0xc78] sm:$0xff]  ;;  %v4863_v60 = vld [vmem:[%s12259_s17 + $0xc70] sm:$0xff] }
 0x43b   : > { %v9140_v9 = vsel %vm7634_vm13, %v9139_v57, %v9135_v4  ;;  %v6172_v7 = vsel %vm4977_vm0, %v4863_v60, 0.0 }
 0x43c   : > { %v9149_v10 = vrot.slane %v6833_v5, %v12521_v12  ;;  %v9144_v11 = vrot.slane %v6832_v6, %v12526_v14  ;;  %6152 = vadd.xlane.f32.xlu1 %v6151_v63  ;;  %6149 = vadd.xlane.f32.xlu0 %v6148_v0  ;;  %v6175_v6 = vsel %vm4977_vm0, %v4864_v59, 0.0 }
 0x43d   : > { %v5943_v18 = vpop.xlane.xlu1 %5942  ;;  %v5940_v15 = vpop.xlane.xlu0 %5939 }
 0x43e   : > { %v9145_v20 = vsel %vm7641_vm14, %v9144_v11, %v9140_v9  ;;  %v6835_v22 = vmul.f32 0.020408163, %v5943_v18  ;;  %v6834_v23 = vmul.f32 0.020408163, %v5940_v15  ;;  %v4866_v11 = vld [vmem:[%s12259_s17 + $0xc88] sm:$0xff]  ;;  %v4865_v18 = vld [vmem:[%s12259_s17 + $0xc80] sm:$0xff] }
 0x43f   : > { %v9150_v27 = vsel %vm7648_vm15, %v9149_v10, %v9145_v20  ;;  %v6178_v25 = vsel %vm4977_vm0, %v4865_v18, 0.0 }
 0x440   : > { %v13809_v13 = vsel %vm10105_vm11, %v9150_v27, %v13541_v46  ;;  %v9158_v28 = vrot.slane %v6835_v22, %v12424_v34  ;;  %v9154_v29 = vrot.slane %v6834_v23, %v12421_v32  ;;  %6158 = vadd.xlane.f32.xlu1 %v6157_v16  ;;  %6155 = vadd.xlane.f32.xlu0 %v6154_v17  ;;  %v4862_v46 = vld [vmem:[%s12259_s17 + $0xc68] sm:$0xff]  ;;  %v6181_v23 = vsel %vm4977_vm0, %v4866_v11, 0.0 }
 0x441   : > { %v5949_v30 = vpop.xlane.xlu1 %5948  ;;  %v5946_v31 = vpop.xlane.xlu0 %5945  ;;  %v6169_v51 = vsel %vm4977_vm0, %v4862_v46, 0.0  ;;  %vm14660_vm11 = vcmask 654912  }
 0x442   : > { %v9159_v37 = vsel %vm7550_vm1, %v9158_v28, %v9154_v29  ;;  %v6837_v38 = vmul.f32 0.020408163, %v5949_v30  ;;  %v6836_v40 = vmul.f32 0.020408163, %v5946_v31  ;;  %v4868_v29 = vld [vmem:[%s12259_s17 + $0xc98] sm:$0xff]  ;;  %v4867_v30 = vld [vmem:[%s12259_s17 + $0xc90] sm:$0xff] }
 0x443   : > { %v6184_v46 = vsel %vm4977_vm0, %v4867_v30, 0.0 }
 0x444   : > { %v9168_v43 = vrot.slane %v6837_v38, %v12433_v42  ;;  %v9163_v45 = vrot.slane %v6836_v40, %v12428_v36  ;;  %6164 = vadd.xlane.f32.xlu1 %v6163_v33  ;;  %6161 = vadd.xlane.f32.xlu0 %v6160_v35  ;;  %v6187_v40 = vsel %vm4977_vm0, %v4868_v29, 0.0 }
 0x445   : > { %v5955_v48 = vpop.xlane.xlu1 %5954  ;;  %v5952_v49 = vpop.xlane.xlu0 %5951 }
 0x446   : > { %v9164_v54 = vsel %vm7557_vm2, %v9163_v45, %v9159_v37  ;;  %v6839_v55 = vmul.f32 0.020408163, %v5955_v48  ;;  %v6838_v57 = vmul.f32 0.020408163, %v5952_v49  ;;  %v4870_v48 = vld [vmem:[%s12259_s17 + $0xca8] sm:$0xff]  ;;  %v4869_v49 = vld [vmem:[%s12259_s17 + $0xca0] sm:$0xff] }
 0x447   : > { %v9169_v61 = vsel %vm7564_vm3, %v9168_v43, %v9164_v54  ;;  %v6193_v59 = vsel %vm4977_vm0, %v4870_v48, 0.0  ;;  %v6190_v60 = vsel %vm4977_vm0, %v4869_v49, 0.0 }
 0x448   : > { %v9178_v63 = vrot.slane %v6839_v55, %v12438_v47  ;;  %v9173_v0 = vrot.slane %v6838_v57, %v12445_v52  ;;  %6170 = vadd.xlane.f32.xlu1 %v6169_v51  ;;  %6167 = vadd.xlane.f32.xlu0 %v6166_v53 }
 0x449   : > { %v5961_v4 = vpop.xlane.xlu1 %5960  ;;  %v5958_v5 = vpop.xlane.xlu0 %5957 }
 0x44a   : > { %v9174_v8 = vsel %vm7571_vm4, %v9173_v0, %v9169_v61  ;;  %v6841_v9 = vmul.f32 0.020408163, %v5961_v4  ;;  %v6840_v10 = vmul.f32 0.020408163, %v5958_v5  ;;  %v4872_v4 = vld [vmem:[%s12259_s17 + $0xcb8] sm:$0xff]  ;;  %v4871_v5 = vld [vmem:[%s12259_s17 + $0xcb0] sm:$0xff] }
 0x44b   : > { %v9179_v15 = vsel %vm7578_vm5, %v9178_v63, %v9174_v8  ;;  %v6199_v11 = vsel %vm4977_vm0, %v4872_v4, 0.0  ;;  %v6196_v18 = vsel %vm4977_vm0, %v4871_v5, 0.0 }
 0x44c   : > { %v9188_v16 = vrot.slane %v6841_v9, %v12456_v1  ;;  %v9183_v17 = vrot.slane %v6840_v10, %v12459_v2  ;;  %6176 = vadd.xlane.f32.xlu1 %v6175_v6  ;;  %6173 = vadd.xlane.f32.xlu0 %v6172_v7 }
 0x44d   : > { %v5967_v20 = vpop.xlane.xlu1 %5966  ;;  %v5964_v22 = vpop.xlane.xlu0 %5963 }
 0x44e   : > { %v9184_v26 = vsel %vm7585_vm6, %v9183_v17, %v9179_v15  ;;  %v6843_v27 = vmul.f32 0.020408163, %v5967_v20  ;;  %v6842_v28 = vmul.f32 0.020408163, %v5964_v22  ;;  %v4874_v20 = vld [vmem:[%s12259_s17 + $0xcc8] sm:$0xff]  ;;  %v4873_v22 = vld [vmem:[%s12259_s17 + $0xcc0] sm:$0xff] }
 0x44f   : > { %v9189_v31 = vsel %vm7592_vm7, %v9188_v16, %v9184_v26  ;;  %v6205_v29 = vsel %vm4977_vm0, %v4874_v20, 0.0  ;;  %v6202_v30 = vsel %vm4977_vm0, %v4873_v22, 0.0 }
 0x450   : > { %v9198_v33 = vrot.slane %v6843_v27, %v12473_v19  ;;  %v9193_v35 = vrot.slane %v6842_v28, %v12479_v24  ;;  %6182 = vadd.xlane.f32.xlu1 %v6181_v23  ;;  %6179 = vadd.xlane.f32.xlu0 %v6178_v25 }
 0x451   : > { %v5973_v37 = vpop.xlane.xlu1 %5972  ;;  %v5970_v38 = vpop.xlane.xlu0 %5969 }
 0x452   : > { %v9194_v41 = vsel %vm7599_vm8, %v9193_v35, %v9189_v31  ;;  %v6845_v43 = vmul.f32 0.020408163, %v5973_v37  ;;  %v6844_v45 = vmul.f32 0.020408163, %v5970_v38  ;;  %v4876_v37 = vld [vmem:[%s12259_s17 + $0xcd8] sm:$0xff]  ;;  %v4875_v38 = vld [vmem:[%s12259_s17 + $0xcd0] sm:$0xff] }
 0x453   : > { %v9199_v51 = vsel %vm14660_vm11, %v9198_v33, %v9194_v41  ;;  %vm10107_vm11 = vcmask 1045509   ;;  %v6211_v49 = vsel %vm4977_vm0, %v4876_v37, 0.0 }
 0x454   : > { %v9208_v53 = vrot.slane %v6845_v43, %v12489_v39  ;;  %v9203_v54 = vrot.slane %v6844_v45, %v12495_v44  ;;  %6188 = vadd.xlane.f32.xlu1 %v6187_v40  ;;  %6185 = vadd.xlane.f32.xlu0 %v6184_v46 }
 0x455   : > { %v5979_v55 = vpop.xlane.xlu1 %5978  ;;  %v5976_v57 = vpop.xlane.xlu0 %5975 }
 0x456   : > { %v9204_v61 = vsel %vm7613_vm10, %v9203_v54, %v9199_v51  ;;  %v6847_v63 = vmul.f32 0.020408163, %v5979_v55  ;;  %v6846_v0 = vmul.f32 0.020408163, %v5976_v57  ;;  %v6208_v51 = vsel %vm4977_vm0, %v4875_v38, 0.0  ;;  %v4877_v57 = vld [vmem:[%s12259_s17 + $0xce0] sm:$0xff] }
 0x457   : > { %v9209_v6 = vsel %vm14659_vm9, %v9208_v53, %v9204_v61  ;;  %v6214_v4 = vsel %vm4977_vm0, %v4877_v57, 0.0  ;;  %vm14661_vm9 = vcmask 654912  }
 0x458   : > { %v9218_v7 = vrot.slane %v6847_v63, %v12505_v58  ;;  %v9213_v8 = vrot.slane %v6846_v0, %v12511_v62  ;;  %6194 = vadd.xlane.f32.xlu1 %v6193_v59  ;;  %6191 = vadd.xlane.f32.xlu0 %v6190_v60 }
 0x459   : > { %v5985_v9 = vpop.xlane.xlu1 %5984  ;;  %v5982_v10 = vpop.xlane.xlu0 %5981 }
 0x45a   : > { %v9214_v15 = vsel %vm7627_vm12, %v9213_v8, %v9209_v6  ;;  %v6849_v16 = vmul.f32 0.020408163, %v5985_v9  ;;  %v6848_v17 = vmul.f32 0.020408163, %v5982_v10  ;;  %v4880_v8 = vld [vmem:[%s12259_s17 + $0xcf8] sm:$0xff]  ;;  %v4879_v9 = vld [vmem:[%s12259_s17 + $0xcf0] sm:$0xff] }
 0x45b   : > { %v9219_v23 = vsel %vm7634_vm13, %v9218_v7, %v9214_v15  ;;  %v6220_v20 = vsel %vm4977_vm0, %v4879_v9, 0.0 }
 0x45c   : > { %v9228_v25 = vrot.slane %v6849_v16, %v12521_v12  ;;  %v9223_v26 = vrot.slane %v6848_v17, %v12526_v14  ;;  %6200 = vadd.xlane.f32.xlu1 %v6199_v11  ;;  %6197 = vadd.xlane.f32.xlu0 %v6196_v18  ;;  %v6223_v17 = vsel %vm4977_vm0, %v4880_v8, 0.0 }
 0x45d   : > { %v5991_v27 = vpop.xlane.xlu1 %5990  ;;  %v5988_v28 = vpop.xlane.xlu0 %5987 }
 0x45e   : > { %v9224_v31 = vsel %vm7641_vm14, %v9223_v26, %v9219_v23  ;;  %v6851_v33 = vmul.f32 0.020408163, %v5991_v27  ;;  %v6850_v35 = vmul.f32 0.020408163, %v5988_v28  ;;  %v4882_v26 = vld [vmem:[%s12259_s17 + $0xd08] sm:$0xff]  ;;  %v4881_v27 = vld [vmem:[%s12259_s17 + $0xd00] sm:$0xff] }
 0x45f   : > { %v9229_v40 = vsel %vm7648_vm15, %v9228_v25, %v9224_v31  ;;  %v6226_v37 = vsel %vm4977_vm0, %v4881_v27, 0.0 }
 0x460   : > { %v13876_v46 = vsel %vm10107_vm11, %v9229_v40, %v13608_v50  ;;  %v9237_v41 = vrot.slane %v6851_v33, %v12424_v34  ;;  %v9233_v43 = vrot.slane %v6850_v35, %v12421_v32  ;;  %6206 = vadd.xlane.f32.xlu1 %v6205_v29  ;;  %6203 = vadd.xlane.f32.xlu0 %v6202_v30  ;;  %v4878_v50 = vld [vmem:[%s12259_s17 + $0xce8] sm:$0xff]  ;;  %v6229_v35 = vsel %vm4977_vm0, %v4882_v26, 0.0 }
 0x461   : > { %v5997_v45 = vpop.xlane.xlu1 %5996  ;;  %v5994_v48 = vpop.xlane.xlu0 %5993  ;;  %v6217_v0 = vsel %vm4977_vm0, %v4878_v50, 0.0 }
 0x462   : > { %v9238_v53 = vsel %vm7550_vm1, %v9237_v41, %v9233_v43  ;;  %v6853_v54 = vmul.f32 0.020408163, %v5997_v45  ;;  %v6852_v55 = vmul.f32 0.020408163, %v5994_v48  ;;  %v4884_v43 = vld [vmem:[%s12259_s17 + $0xd18] sm:$0xff]  ;;  %v4883_v45 = vld [vmem:[%s12259_s17 + $0xd10] sm:$0xff] }
 0x463   : > { %v6232_v50 = vsel %vm4977_vm0, %v4883_v45, 0.0 }
 0x464   : > { %v9247_v59 = vrot.slane %v6853_v54, %v12433_v42  ;;  %v9242_v60 = vrot.slane %v6852_v55, %v12428_v36  ;;  %6212 = vadd.xlane.f32.xlu1 %v6211_v49  ;;  %6209 = vadd.xlane.f32.xlu0 %v6208_v51  ;;  %v6235_v55 = vsel %vm4977_vm0, %v4884_v43, 0.0 }
 0x465   : > { %v6003_v61 = vpop.xlane.xlu1 %6002  ;;  %v6000_v63 = vpop.xlane.xlu0 %5999 }
 0x466   : > { %v9243_v5 = vsel %vm7557_vm2, %v9242_v60, %v9238_v53  ;;  %v6855_v6 = vmul.f32 0.020408163, %v6003_v61  ;;  %v6854_v7 = vmul.f32 0.020408163, %v6000_v63  ;;  %v4886_v61 = vld [vmem:[%s12259_s17 + $0xd28] sm:$0xff]  ;;  %v4885_v63 = vld [vmem:[%s12259_s17 + $0xd20] sm:$0xff] }
 0x467   : > { %v9248_v10 = vsel %vm7564_vm3, %v9247_v59, %v9243_v5  ;;  %v6241_v8 = vsel %vm4977_vm0, %v4886_v61, 0.0  ;;  %v6238_v9 = vsel %vm4977_vm0, %v4885_v63, 0.0 }
 0x468   : > { %v9257_v11 = vrot.slane %v6855_v6, %v12438_v47  ;;  %v9252_v18 = vrot.slane %v6854_v7, %v12445_v52  ;;  %6218 = vadd.xlane.f32.xlu1 %v6217_v0  ;;  %6215 = vadd.xlane.f32.xlu0 %v6214_v4 }
 0x469   : > { %v6009_v15 = vpop.xlane.xlu1 %6008  ;;  %v6006_v16 = vpop.xlane.xlu0 %6005 }
 0x46a   : > { %v9253_v22 = vsel %vm7571_vm4, %v9252_v18, %v9248_v10  ;;  %v6857_v23 = vmul.f32 0.020408163, %v6009_v15  ;;  %v6856_v25 = vmul.f32 0.020408163, %v6006_v16  ;;  %v4888_v15 = vld [vmem:[%s12259_s17 + $0xd38] sm:$0xff]  ;;  %v4887_v16 = vld [vmem:[%s12259_s17 + $0xd30] sm:$0xff] }
 0x46b   : > { %v9258_v28 = vsel %vm7578_vm5, %v9257_v11, %v9253_v22  ;;  %v6247_v26 = vsel %vm4977_vm0, %v4888_v15, 0.0  ;;  %v6244_v27 = vsel %vm4977_vm0, %v4887_v16, 0.0 }
 0x46c   : > { %v9267_v29 = vrot.slane %v6857_v23, %v12456_v1  ;;  %v9262_v30 = vrot.slane %v6856_v25, %v12459_v2  ;;  %6224 = vadd.xlane.f32.xlu1 %v6223_v17  ;;  %6221 = vadd.xlane.f32.xlu0 %v6220_v20 }
 0x46d   : > { %v6015_v31 = vpop.xlane.xlu1 %6014  ;;  %v6012_v33 = vpop.xlane.xlu0 %6011 }
 0x46e   : > { %v9263_v38 = vsel %vm7585_vm6, %v9262_v30, %v9258_v28  ;;  %v6859_v40 = vmul.f32 0.020408163, %v6015_v31  ;;  %v6858_v41 = vmul.f32 0.020408163, %v6012_v33  ;;  %v4890_v31 = vld [vmem:[%s12259_s17 + $0xd48] sm:$0xff]  ;;  %v4889_v33 = vld [vmem:[%s12259_s17 + $0xd40] sm:$0xff] }
 0x46f   : > { %v9268_v48 = vsel %vm7592_vm7, %v9267_v29, %v9263_v38  ;;  %v6253_v43 = vsel %vm4977_vm0, %v4890_v31, 0.0  ;;  %v6250_v45 = vsel %vm4977_vm0, %v4889_v33, 0.0 }
 0x470   : > { %v9277_v49 = vrot.slane %v6859_v40, %v12473_v19  ;;  %v9272_v51 = vrot.slane %v6858_v41, %v12479_v24  ;;  %6230 = vadd.xlane.f32.xlu1 %v6229_v35  ;;  %6227 = vadd.xlane.f32.xlu0 %v6226_v37 }
 0x471   : > { %v6021_v53 = vpop.xlane.xlu1 %6020  ;;  %v6018_v54 = vpop.xlane.xlu0 %6017 }
 0x472   : > { %v9273_v57 = vsel %vm7599_vm8, %v9272_v51, %v9268_v48  ;;  %v6861_v59 = vmul.f32 0.020408163, %v6021_v53  ;;  %v6860_v60 = vmul.f32 0.020408163, %v6018_v54  ;;  %v4892_v53 = vld [vmem:[%s12259_s17 + $0xd58] sm:$0xff]  ;;  %v4891_v54 = vld [vmem:[%s12259_s17 + $0xd50] sm:$0xff] }
 0x473   : > { %v9278_v0 = vsel %vm14661_vm9, %v9277_v49, %v9273_v57  ;;  %vm14662_vm9 = vcmask 786112   ;;  %v6259_v63 = vsel %vm4977_vm0, %v4892_v53, 0.0 }
 0x474   : > { %v9287_v4 = vrot.slane %v6861_v59, %v12489_v39  ;;  %v9282_v5 = vrot.slane %v6860_v60, %v12495_v44  ;;  %6236 = vadd.xlane.f32.xlu1 %v6235_v55  ;;  %6233 = vadd.xlane.f32.xlu0 %v6232_v50 }
 0x475   : > { %v6027_v6 = vpop.xlane.xlu1 %6026  ;;  %v6024_v7 = vpop.xlane.xlu0 %6023 }
 0x476   : > { %v9283_v10 = vsel %vm7613_vm10, %v9282_v5, %v9278_v0  ;;  %v6863_v11 = vmul.f32 0.020408163, %v6027_v6  ;;  %v6862_v18 = vmul.f32 0.020408163, %v6024_v7  ;;  %v6256_v0 = vsel %vm4977_vm0, %v4891_v54, 0.0  ;;  %v4893_v7 = vld [vmem:[%s12259_s17 + $0xd60] sm:$0xff] }
 0x477   : > { %v9288_v17 = vsel %vm14662_vm9, %v9287_v4, %v9283_v10  ;;  %v6262_v15 = vsel %vm4977_vm0, %v4893_v7, 0.0  ;;  %vm14663_vm9 = vcmask 654912  }
 0x478   : > { %v9297_v20 = vrot.slane %v6863_v11, %v12505_v58  ;;  %v9292_v22 = vrot.slane %v6862_v18, %v12511_v62  ;;  %6242 = vadd.xlane.f32.xlu1 %v6241_v8  ;;  %6239 = vadd.xlane.f32.xlu0 %v6238_v9 }
 0x479   : > { %v6033_v23 = vpop.xlane.xlu1 %6032  ;;  %v6030_v25 = vpop.xlane.xlu0 %6029 }
 0x47a   : > { %v9293_v28 = vsel %vm7627_vm12, %v9292_v22, %v9288_v17  ;;  %v6865_v29 = vmul.f32 0.020408163, %v6033_v23  ;;  %v6864_v30 = vmul.f32 0.020408163, %v6030_v25  ;;  %v4896_v22 = vld [vmem:[%s12259_s17 + $0xd78] sm:$0xff]  ;;  %v4895_v23 = vld [vmem:[%s12259_s17 + $0xd70] sm:$0xff] }
 0x47b   : > { %v9298_v35 = vsel %vm7634_vm13, %v9297_v20, %v9293_v28  ;;  %v6268_v31 = vsel %vm4977_vm0, %v4895_v23, 0.0 }
 0x47c   : > { %v9307_v37 = vrot.slane %v6865_v29, %v12521_v12  ;;  %v9302_v38 = vrot.slane %v6864_v30, %v12526_v14  ;;  %6248 = vadd.xlane.f32.xlu1 %v6247_v26  ;;  %6245 = vadd.xlane.f32.xlu0 %v6244_v27  ;;  %v6271_v30 = vsel %vm4977_vm0, %v4896_v22, 0.0 }
 0x47d   : > { %v6039_v40 = vpop.xlane.xlu1 %6038  ;;  %v6036_v41 = vpop.xlane.xlu0 %6035 }
 0x47e   : > { %v9303_v48 = vsel %vm7641_vm14, %v9302_v38, %v9298_v35  ;;  %v6867_v49 = vmul.f32 0.020408163, %v6039_v40  ;;  %v6866_v51 = vmul.f32 0.020408163, %v6036_v41  ;;  %v4898_v38 = vld [vmem:[%s12259_s17 + $0xd88] sm:$0xff]  ;;  %v4897_v40 = vld [vmem:[%s12259_s17 + $0xd80] sm:$0xff] }
 0x47f   : > { %v9308_v55 = vsel %vm7648_vm15, %v9307_v37, %v9303_v48  ;;  %v6274_v53 = vsel %vm4977_vm0, %v4897_v40, 0.0 }
 0x480   : > { %v13943_v50 = vsel %vm10107_vm11, %v9308_v55, %v13675_v56  ;;  %v9316_v57 = vrot.slane %v6867_v49, %v12424_v34  ;;  %v9312_v59 = vrot.slane %v6866_v51, %v12421_v32  ;;  %6254 = vadd.xlane.f32.xlu1 %v6253_v43  ;;  %6251 = vadd.xlane.f32.xlu0 %v6250_v45  ;;  %v4894_v56 = vld [vmem:[%s12259_s17 + $0xd68] sm:$0xff]  ;;  %v6277_v51 = vsel %vm4977_vm0, %v4898_v38, 0.0 }
 0x481   : > { %v6045_v60 = vpop.xlane.xlu1 %6044  ;;  %v6042_v61 = vpop.xlane.xlu0 %6041  ;;  %v6265_v18 = vsel %vm4977_vm0, %v4894_v56, 0.0 }
 0x482   : > { %v9317_v4 = vsel %vm7550_vm1, %v9316_v57, %v9312_v59  ;;  %v6869_v5 = vmul.f32 0.020408163, %v6045_v60  ;;  %v6868_v6 = vmul.f32 0.020408163, %v6042_v61  ;;  %v4900_v59 = vld [vmem:[%s12259_s17 + $0xd98] sm:$0xff]  ;;  %v4899_v60 = vld [vmem:[%s12259_s17 + $0xd90] sm:$0xff] }
 0x483   : > { %v6280_v56 = vsel %vm4977_vm0, %v4899_v60, 0.0 }
 0x484   : > { %v9326_v8 = vrot.slane %v6869_v5, %v12433_v42  ;;  %v9321_v9 = vrot.slane %v6868_v6, %v12428_v36  ;;  %6260 = vadd.xlane.f32.xlu1 %v6259_v63  ;;  %6257 = vadd.xlane.f32.xlu0 %v6256_v0  ;;  %v6283_v6 = vsel %vm4977_vm0, %v4900_v59, 0.0 }
 0x485   : > { %v6051_v10 = vpop.xlane.xlu1 %6050  ;;  %v6048_v11 = vpop.xlane.xlu0 %6047 }
 0x486   : > { %v9322_v16 = vsel %vm7557_vm2, %v9321_v9, %v9317_v4  ;;  %v6871_v17 = vmul.f32 0.020408163, %v6051_v10  ;;  %v6870_v20 = vmul.f32 0.020408163, %v6048_v11  ;;  %v4902_v10 = vld [vmem:[%s12259_s17 + $0xda8] sm:$0xff]  ;;  %v4901_v11 = vld [vmem:[%s12259_s17 + $0xda0] sm:$0xff] }
 0x487   : > { %v9327_v25 = vsel %vm7564_vm3, %v9326_v8, %v9322_v16  ;;  %v6289_v22 = vsel %vm4977_vm0, %v4902_v10, 0.0  ;;  %v6286_v23 = vsel %vm4977_vm0, %v4901_v11, 0.0 }
 0x488   : > { %v9336_v26 = vrot.slane %v6871_v17, %v12438_v47  ;;  %v9331_v27 = vrot.slane %v6870_v20, %v12445_v52  ;;  %6266 = vadd.xlane.f32.xlu1 %v6265_v18  ;;  %6263 = vadd.xlane.f32.xlu0 %v6262_v15 }
 0x489   : > { %v6057_v28 = vpop.xlane.xlu1 %6056  ;;  %v6054_v29 = vpop.xlane.xlu0 %6053 }
 0x48a   : > { %v9332_v33 = vsel %vm7571_vm4, %v9331_v27, %v9327_v25  ;;  %v6873_v35 = vmul.f32 0.020408163, %v6057_v28  ;;  %v6872_v37 = vmul.f32 0.020408163, %v6054_v29  ;;  %v4904_v28 = vld [vmem:[%s12259_s17 + $0xdb8] sm:$0xff]  ;;  %v4903_v29 = vld [vmem:[%s12259_s17 + $0xdb0] sm:$0xff] }
 0x48b   : > { %v9337_v41 = vsel %vm7578_vm5, %v9336_v26, %v9332_v33  ;;  %v6295_v38 = vsel %vm4977_vm0, %v4904_v28, 0.0  ;;  %v6292_v40 = vsel %vm4977_vm0, %v4903_v29, 0.0 }
 0x48c   : > { %v9346_v43 = vrot.slane %v6873_v35, %v12456_v1  ;;  %v9341_v45 = vrot.slane %v6872_v37, %v12459_v2  ;;  %6272 = vadd.xlane.f32.xlu1 %v6271_v30  ;;  %6269 = vadd.xlane.f32.xlu0 %v6268_v31 }
 0x48d   : > { %v6063_v48 = vpop.xlane.xlu1 %6062  ;;  %v6060_v49 = vpop.xlane.xlu0 %6059 }
 0x48e   : > { %v9342_v54 = vsel %vm7585_vm6, %v9341_v45, %v9337_v41  ;;  %v6875_v55 = vmul.f32 0.020408163, %v6063_v48  ;;  %v6874_v57 = vmul.f32 0.020408163, %v6060_v49  ;;  %v4906_v48 = vld [vmem:[%s12259_s17 + $0xdc8] sm:$0xff]  ;;  %v4905_v49 = vld [vmem:[%s12259_s17 + $0xdc0] sm:$0xff] }
 0x48f   : > { %v9347_v61 = vsel %vm7592_vm7, %v9346_v43, %v9342_v54  ;;  %v6301_v59 = vsel %vm4977_vm0, %v4906_v48, 0.0  ;;  %v6298_v60 = vsel %vm4977_vm0, %v4905_v49, 0.0 }
 0x490   : > { %v9356_v63 = vrot.slane %v6875_v55, %v12473_v19  ;;  %v9351_v0 = vrot.slane %v6874_v57, %v12479_v24  ;;  %6278 = vadd.xlane.f32.xlu1 %v6277_v51  ;;  %6275 = vadd.xlane.f32.xlu0 %v6274_v53 }
 0x491   : > { %v6069_v4 = vpop.xlane.xlu1 %6068  ;;  %v6066_v5 = vpop.xlane.xlu0 %6065 }
 0x492   : > { %v9352_v7 = vsel %vm7599_vm8, %v9351_v0, %v9347_v61  ;;  %v6877_v8 = vmul.f32 0.020408163, %v6069_v4  ;;  %v6876_v9 = vmul.f32 0.020408163, %v6066_v5  ;;  %v4908_v4 = vld [vmem:[%s12259_s17 + $0xdd8] sm:$0xff]  ;;  %v4907_v5 = vld [vmem:[%s12259_s17 + $0xdd0] sm:$0xff] }
 0x493   : > { %v9357_v18 = vsel %vm14663_vm9, %v9356_v63, %v9352_v7  ;;  %vm14664_vm9 = vcmask 786112   ;;  %v6307_v11 = vsel %vm4977_vm0, %v4908_v4, 0.0 }
 0x494   : > { %v9366_v15 = vrot.slane %v6877_v8, %v12489_v39  ;;  %v9361_v16 = vrot.slane %v6876_v9, %v12495_v44  ;;  %6284 = vadd.xlane.f32.xlu1 %v6283_v6  ;;  %6281 = vadd.xlane.f32.xlu0 %v6280_v56 }
 0x495   : > { %v6075_v17 = vpop.xlane.xlu1 %6074  ;;  %v6072_v20 = vpop.xlane.xlu0 %6071 }
 0x496   : > { %v9362_v25 = vsel %vm7613_vm10, %v9361_v16, %v9357_v18  ;;  %v6879_v26 = vmul.f32 0.020408163, %v6075_v17  ;;  %v6878_v27 = vmul.f32 0.020408163, %v6072_v20  ;;  %v6304_v18 = vsel %vm4977_vm0, %v4907_v5, 0.0  ;;  %v4909_v20 = vld [vmem:[%s12259_s17 + $0xde0] sm:$0xff] }
 0x497   : > { %v9367_v30 = vsel %vm14664_vm9, %v9366_v15, %v9362_v25  ;;  %v6310_v28 = vsel %vm4977_vm0, %v4909_v20, 0.0  ;;  %vm14665_vm9 = vcmask 654912  }
 0x498   : > { %v9376_v31 = vrot.slane %v6879_v26, %v12505_v58  ;;  %v9371_v33 = vrot.slane %v6878_v27, %v12511_v62  ;;  %6290 = vadd.xlane.f32.xlu1 %v6289_v22  ;;  %6287 = vadd.xlane.f32.xlu0 %v6286_v23 }
 0x499   : > { %v6081_v35 = vpop.xlane.xlu1 %6080  ;;  %v6078_v37 = vpop.xlane.xlu0 %6077 }
 0x49a   : > { %v9372_v41 = vsel %vm7627_vm12, %v9371_v33, %v9367_v30  ;;  %v6881_v43 = vmul.f32 0.020408163, %v6081_v35  ;;  %v6880_v45 = vmul.f32 0.020408163, %v6078_v37  ;;  %v4912_v33 = vld [vmem:[%s12259_s17 + $0xdf8] sm:$0xff]  ;;  %v4911_v35 = vld [vmem:[%s12259_s17 + $0xdf0] sm:$0xff] }
 0x49b   : > { %v9377_v51 = vsel %vm7634_vm13, %v9376_v31, %v9372_v41  ;;  %v6316_v48 = vsel %vm4977_vm0, %v4911_v35, 0.0 }
 0x49c   : > { %v9386_v53 = vrot.slane %v6881_v43, %v12521_v12  ;;  %v9381_v54 = vrot.slane %v6880_v45, %v12526_v14  ;;  %6296 = vadd.xlane.f32.xlu1 %v6295_v38  ;;  %6293 = vadd.xlane.f32.xlu0 %v6292_v40  ;;  %v6319_v45 = vsel %vm4977_vm0, %v4912_v33, 0.0 }
 0x49d   : > { %v6087_v55 = vpop.xlane.xlu1 %6086  ;;  %v6084_v57 = vpop.xlane.xlu0 %6083 }
 0x49e   : > { %v9382_v61 = vsel %vm7641_vm14, %v9381_v54, %v9377_v51  ;;  %v6883_v63 = vmul.f32 0.020408163, %v6087_v55  ;;  %v6882_v0 = vmul.f32 0.020408163, %v6084_v57  ;;  %v4914_v54 = vld [vmem:[%s12259_s17 + $0xe08] sm:$0xff]  ;;  %v4913_v55 = vld [vmem:[%s12259_s17 + $0xe00] sm:$0xff] }
 0x49f   : > { %v9387_v6 = vsel %vm7648_vm15, %v9386_v53, %v9382_v61  ;;  %v6322_v4 = vsel %vm4977_vm0, %v4913_v55, 0.0 }
 0x4a0   : > { %v14010_v56 = vsel %vm10107_vm11, %v9387_v6, %v13742_v3  ;;  %v9395_v7 = vrot.slane %v6883_v63, %v12424_v34  ;;  %v9391_v8 = vrot.slane %v6882_v0, %v12421_v32  ;;  %6302 = vadd.xlane.f32.xlu1 %v6301_v59  ;;  %6299 = vadd.xlane.f32.xlu0 %v6298_v60  ;;  %v4910_v3 = vld [vmem:[%s12259_s17 + $0xde8] sm:$0xff]  ;;  %v6325_v0 = vsel %vm4977_vm0, %v4914_v54, 0.0 }
 0x4a1   : > { %v6093_v9 = vpop.xlane.xlu1 %6092  ;;  %v6090_v10 = vpop.xlane.xlu0 %6089  ;;  %v6313_v27 = vsel %vm4977_vm0, %v4910_v3, 0.0 }
 0x4a2   : > { %v9396_v15 = vsel %vm7550_vm1, %v9395_v7, %v9391_v8  ;;  %v6885_v16 = vmul.f32 0.020408163, %v6093_v9  ;;  %v6884_v17 = vmul.f32 0.020408163, %v6090_v10  ;;  %v4916_v8 = vld [vmem:[%s12259_s17 + $0xe18] sm:$0xff]  ;;  %v4915_v9 = vld [vmem:[%s12259_s17 + $0xe10] sm:$0xff] }
 0x4a3   : > { %v6328_v3 = vsel %vm4977_vm0, %v4915_v9, 0.0 }
 0x4a4   : > { %v9405_v22 = vrot.slane %v6885_v16, %v12433_v42  ;;  %v9400_v23 = vrot.slane %v6884_v17, %v12428_v36  ;;  %6308 = vadd.xlane.f32.xlu1 %v6307_v11  ;;  %6305 = vadd.xlane.f32.xlu0 %v6304_v18  ;;  %v6331_v17 = vsel %vm4977_vm0, %v4916_v8, 0.0 }
 0x4a5   : > { %v6099_v25 = vpop.xlane.xlu1 %6098  ;;  %v6096_v26 = vpop.xlane.xlu0 %6095 }
 0x4a6   : > { %v9401_v29 = vsel %vm7557_vm2, %v9400_v23, %v9396_v15  ;;  %v6887_v30 = vmul.f32 0.020408163, %v6099_v25  ;;  %v6886_v31 = vmul.f32 0.020408163, %v6096_v26  ;;  %v4918_v25 = vld [vmem:[%s12259_s17 + $0xe28] sm:$0xff]  ;;  %v4917_v26 = vld [vmem:[%s12259_s17 + $0xe20] sm:$0xff] }
 0x4a7   : > { %v9406_v37 = vsel %vm7564_vm3, %v9405_v22, %v9401_v29  ;;  %v6337_v33 = vsel %vm4977_vm0, %v4918_v25, 0.0  ;;  %v6334_v35 = vsel %vm4977_vm0, %v4917_v26, 0.0 }
 0x4a8   : > { %v9415_v38 = vrot.slane %v6887_v30, %v12438_v47  ;;  %v9410_v40 = vrot.slane %v6886_v31, %v12445_v52  ;;  %6314 = vadd.xlane.f32.xlu1 %v6313_v27  ;;  %6311 = vadd.xlane.f32.xlu0 %v6310_v28 }
 0x4a9   : > { %v6105_v41 = vpop.xlane.xlu1 %6104  ;;  %v6102_v43 = vpop.xlane.xlu0 %6101 }
 0x4aa   : > { %v9411_v49 = vsel %vm7571_vm4, %v9410_v40, %v9406_v37  ;;  %v6889_v51 = vmul.f32 0.020408163, %v6105_v41  ;;  %v6888_v53 = vmul.f32 0.020408163, %v6102_v43  ;;  %v4920_v41 = vld [vmem:[%s12259_s17 + $0xe38] sm:$0xff]  ;;  %v4919_v43 = vld [vmem:[%s12259_s17 + $0xe30] sm:$0xff] }
 0x4ab   : > { %v9416_v57 = vsel %vm7578_vm5, %v9415_v38, %v9411_v49  ;;  %v6343_v54 = vsel %vm4977_vm0, %v4920_v41, 0.0  ;;  %v6340_v55 = vsel %vm4977_vm0, %v4919_v43, 0.0 }
 0x4ac   : > { %v9425_v59 = vrot.slane %v6889_v51, %v12456_v1  ;;  %v9420_v60 = vrot.slane %v6888_v53, %v12459_v2  ;;  %6320 = vadd.xlane.f32.xlu1 %v6319_v45  ;;  %6317 = vadd.xlane.f32.xlu0 %v6316_v48 }
 0x4ad   : > { %v6111_v61 = vpop.xlane.xlu1 %6110  ;;  %v6108_v63 = vpop.xlane.xlu0 %6107 }
 0x4ae   : > { %v9421_v5 = vsel %vm7585_vm6, %v9420_v60, %v9416_v57  ;;  %v6891_v6 = vmul.f32 0.020408163, %v6111_v61  ;;  %v6890_v7 = vmul.f32 0.020408163, %v6108_v63  ;;  %v4922_v61 = vld [vmem:[%s12259_s17 + $0xe48] sm:$0xff]  ;;  %v4921_v63 = vld [vmem:[%s12259_s17 + $0xe40] sm:$0xff] }
 0x4af   : > { %v9426_v10 = vsel %vm7592_vm7, %v9425_v59, %v9421_v5  ;;  %v6349_v8 = vsel %vm4977_vm0, %v4922_v61, 0.0  ;;  %v6346_v9 = vsel %vm4977_vm0, %v4921_v63, 0.0 }
 0x4b0   : > { %v9435_v11 = vrot.slane %v6891_v6, %v12473_v19  ;;  %v9430_v18 = vrot.slane %v6890_v7, %v12479_v24  ;;  %6326 = vadd.xlane.f32.xlu1 %v6325_v0  ;;  %6323 = vadd.xlane.f32.xlu0 %v6322_v4 }
 0x4b1   : > { %v6117_v15 = vpop.xlane.xlu1 %6116  ;;  %v6114_v16 = vpop.xlane.xlu0 %6113 }
 0x4b2   : > { %v9431_v20 = vsel %vm7599_vm8, %v9430_v18, %v9426_v10  ;;  %v6893_v22 = vmul.f32 0.020408163, %v6117_v15  ;;  %v6892_v23 = vmul.f32 0.020408163, %v6114_v16  ;;  %v4924_v15 = vld [vmem:[%s12259_s17 + $0xe58] sm:$0xff]  ;;  %v4923_v16 = vld [vmem:[%s12259_s17 + $0xe50] sm:$0xff] }
 0x4b3   : > { %v9436_v27 = vsel %vm14665_vm9, %v9435_v11, %v9431_v20  ;;  %vm14666_vm9 = vcmask 786112   ;;  %v6355_v26 = vsel %vm4977_vm0, %v4924_v15, 0.0 }
 0x4b4   : > { %v9445_v28 = vrot.slane %v6893_v22, %v12489_v39  ;;  %v9440_v29 = vrot.slane %v6892_v23, %v12495_v44  ;;  %6332 = vadd.xlane.f32.xlu1 %v6331_v17  ;;  %6329 = vadd.xlane.f32.xlu0 %v6328_v3 }
 0x4b5   : > { %v6123_v30 = vpop.xlane.xlu1 %6122  ;;  %v6120_v31 = vpop.xlane.xlu0 %6119 }
 0x4b6   : > { %v9441_v37 = vsel %vm7613_vm10, %v9440_v29, %v9436_v27  ;;  %v6895_v38 = vmul.f32 0.020408163, %v6123_v30  ;;  %v6894_v40 = vmul.f32 0.020408163, %v6120_v31  ;;  %v6352_v27 = vsel %vm4977_vm0, %v4923_v16, 0.0  ;;  %v4925_v31 = vld [vmem:[%s12259_s17 + $0xe60] sm:$0xff] }
 0x4b7   : > { %v9446_v45 = vsel %vm14666_vm9, %v9445_v28, %v9441_v37  ;;  %v6358_v41 = vsel %vm4977_vm0, %v4925_v31, 0.0 }
 0x4b8   : > { %v9455_v48 = vrot.slane %v6895_v38, %v12505_v58  ;;  %v9450_v49 = vrot.slane %v6894_v40, %v12511_v62  ;;  %6338 = vadd.xlane.f32.xlu1 %v6337_v33  ;;  %6335 = vadd.xlane.f32.xlu0 %v6334_v35 }
 0x4b9   : > { %v6129_v51 = vpop.xlane.xlu1 %6128  ;;  %v6126_v53 = vpop.xlane.xlu0 %6125 }
 0x4ba   : > { %v9451_v57 = vsel %vm7627_vm12, %v9450_v49, %v9446_v45  ;;  %v6897_v59 = vmul.f32 0.020408163, %v6129_v51  ;;  %v6896_v60 = vmul.f32 0.020408163, %v6126_v53  ;;  %v4928_v49 = vld [vmem:[%s12259_s17 + $0xe78] sm:$0xff]  ;;  %v4927_v51 = vld [vmem:[%s12259_s17 + $0xe70] sm:$0xff] }
 0x4bb   : > { %v9456_v0 = vsel %vm7634_vm13, %v9455_v48, %v9451_v57  ;;  %v6364_v61 = vsel %vm4977_vm0, %v4927_v51, 0.0 }
 0x4bc   : > { %v9465_v4 = vrot.slane %v6897_v59, %v12521_v12  ;;  %v9460_v5 = vrot.slane %v6896_v60, %v12526_v14  ;;  %6344 = vadd.xlane.f32.xlu1 %v6343_v54  ;;  %6341 = vadd.xlane.f32.xlu0 %v6340_v55  ;;  %v6367_v60 = vsel %vm4977_vm0, %v4928_v49, 0.0 }
 0x4bd   : > { %v6135_v6 = vpop.xlane.xlu1 %6134  ;;  %v6132_v7 = vpop.xlane.xlu0 %6131 }
 0x4be   : > { %v9461_v10 = vsel %vm7641_vm14, %v9460_v5, %v9456_v0  ;;  %v6899_v11 = vmul.f32 0.020408163, %v6135_v6  ;;  %v6898_v18 = vmul.f32 0.020408163, %v6132_v7  ;;  %v4930_v5 = vld [vmem:[%s12259_s17 + $0xe88] sm:$0xff]  ;;  %v4929_v6 = vld [vmem:[%s12259_s17 + $0xe80] sm:$0xff] }
 0x4bf   : > { %v9466_v17 = vsel %vm7648_vm15, %v9465_v4, %v9461_v10  ;;  %v6370_v15 = vsel %vm4977_vm0, %v4929_v6, 0.0 }
 0x4c0   : > { %v14077_v3 = vsel %vm10107_vm11, %v9466_v17, %v13809_v13  ;;  %v9474_v20 = vrot.slane %v6899_v11, %v12424_v34  ;;  %v9470_v22 = vrot.slane %v6898_v18, %v12421_v32  ;;  %6350 = vadd.xlane.f32.xlu1 %v6349_v8  ;;  %6347 = vadd.xlane.f32.xlu0 %v6346_v9  ;;  %v4926_v13 = vld [vmem:[%s12259_s17 + $0xe68] sm:$0xff]  ;;  %v6373_v18 = vsel %vm4977_vm0, %v4930_v5, 0.0 }
 0x4c1   : > { %v6141_v23 = vpop.xlane.xlu1 %6140  ;;  %v6138_v25 = vpop.xlane.xlu0 %6137  ;;  %v6361_v40 = vsel %vm4977_vm0, %v4926_v13, 0.0  ;;  %vm14667_vm11 = vcmask 654912  }
 0x4c2   : > { %v9475_v28 = vsel %vm7550_vm1, %v9474_v20, %v9470_v22  ;;  %v6901_v29 = vmul.f32 0.020408163, %v6141_v23  ;;  %v6900_v30 = vmul.f32 0.020408163, %v6138_v25  ;;  %v4946_v22 = vld [vmem:[%s12259_s17 + $0xf08] sm:$0xff]  ;;  %v4945_v23 = vld [vmem:[%s12259_s17 + $0xf00] sm:$0xff] }
 0x4c3   : > { %v6418_v13 = vsel %vm4977_vm0, %v4945_v23, 0.0 }
 0x4c4   : > { %v9484_v33 = vrot.slane %v6901_v29, %v12433_v42  ;;  %v9479_v35 = vrot.slane %v6900_v30, %v12428_v36  ;;  %6356 = vadd.xlane.f32.xlu1 %v6355_v26  ;;  %6353 = vadd.xlane.f32.xlu0 %v6352_v27  ;;  %v6421_v30 = vsel %vm4977_vm0, %v4946_v22, 0.0 }
 0x4c5   : > { %v6147_v37 = vpop.xlane.xlu1 %6146  ;;  %v6144_v38 = vpop.xlane.xlu0 %6143 }
 0x4c6   : > { %v9480_v43 = vsel %vm7557_vm2, %v9479_v35, %v9475_v28  ;;  %v6903_v45 = vmul.f32 0.020408163, %v6147_v37  ;;  %v6902_v48 = vmul.f32 0.020408163, %v6144_v38  ;;  %v4962_v37 = vld [vmem:[%s12259_s17 + $0xf88] sm:$0xff]  ;;  %v4961_v38 = vld [vmem:[%s12259_s17 + $0xf80] sm:$0xff] }
 0x4c7   : > { %v9485_v53 = vsel %vm7564_vm3, %v9484_v33, %v9480_v43  ;;  %v6469_v49 = vsel %vm4977_vm0, %v4962_v37, 0.0  ;;  %v6466_v51 = vsel %vm4977_vm0, %v4961_v38, 0.0 }
 0x4c8   : > { %v9494_v54 = vrot.slane %v6903_v45, %v12438_v47  ;;  %v9489_v55 = vrot.slane %v6902_v48, %v12445_v52  ;;  %6362 = vadd.xlane.f32.xlu1 %v6361_v40  ;;  %6359 = vadd.xlane.f32.xlu0 %v6358_v41 }
 0x4c9   : > { %v6153_v57 = vpop.xlane.xlu1 %6152  ;;  %v6150_v59 = vpop.xlane.xlu0 %6149 }
 0x4ca   : > { %v9490_v63 = vsel %vm7571_vm4, %v9489_v55, %v9485_v53  ;;  %v6905_v0 = vmul.f32 0.020408163, %v6153_v57  ;;  %v6904_v4 = vmul.f32 0.020408163, %v6150_v59  ;;  %v4947_v57 = vld [vmem:[%s12259_s17 + $0xf10] sm:$0xff] }
 0x4cb   : > { %v9495_v7 = vsel %vm7578_vm5, %v9494_v54, %v9490_v63  ;;  %v4931_v59 = vld [vmem:[%s12259_s17 + $0xe90] sm:$0xff]  ;;  %v6424_v5 = vsel %vm4977_vm0, %v4947_v57, 0.0 }
 0x4cc   : > { %v9504_v8 = vrot.slane %v6905_v0, %v12456_v1  ;;  %v9499_v9 = vrot.slane %v6904_v4, %v12459_v2  ;;  %6368 = vadd.xlane.f32.xlu1 %v6367_v60  ;;  %6365 = vadd.xlane.f32.xlu0 %v6364_v61  ;;  %v6376_v6 = vsel %vm4977_vm0, %v4931_v59, 0.0 }
 0x4cd   : > { %v6159_v10 = vpop.xlane.xlu1 %6158  ;;  %v6156_v11 = vpop.xlane.xlu0 %6155 }
 0x4ce   : > { %v9500_v16 = vsel %vm7585_vm6, %v9499_v9, %v9495_v7  ;;  %v6907_v17 = vmul.f32 0.020408163, %v6159_v10  ;;  %v6906_v20 = vmul.f32 0.020408163, %v6156_v11  ;;  %v4932_v10 = vld [vmem:[%s12259_s17 + $0xe98] sm:$0xff]  ;;  %v4963_v11 = vld [vmem:[%s12259_s17 + $0xf90] sm:$0xff] }
 0x4cf   : > { %v9505_v25 = vsel %vm7592_vm7, %v9504_v8, %v9500_v16  ;;  %v6379_v22 = vsel %vm4977_vm0, %v4932_v10, 0.0  ;;  %v6472_v23 = vsel %vm4977_vm0, %v4963_v11, 0.0 }
 0x4d0   : > { %v9514_v26 = vrot.slane %v6907_v17, %v12473_v19  ;;  %v9509_v27 = vrot.slane %v6906_v20, %v12479_v24  ;;  %6374 = vadd.xlane.f32.xlu1 %v6373_v18  ;;  %6371 = vadd.xlane.f32.xlu0 %v6370_v15 }
 0x4d1   : > { %v6165_v28 = vpop.xlane.xlu1 %6164  ;;  %v6162_v29 = vpop.xlane.xlu0 %6161 }
 0x4d2   : > { %v9510_v31 = vsel %vm7599_vm8, %v9509_v27, %v9505_v25  ;;  %v6909_v33 = vmul.f32 0.020408163, %v6165_v28  ;;  %v6908_v35 = vmul.f32 0.020408163, %v6162_v29  ;;  %v4964_v28 = vld [vmem:[%s12259_s17 + $0xf98] sm:$0xff] }
 0x4d3   : > { %v9515_v40 = vsel %vm14667_vm11, %v9514_v26, %v9510_v31  ;;  %vm10109_vm11 = vcmask 1046534   ;;  %v4948_v29 = vld [vmem:[%s12259_s17 + $0xf18] sm:$0xff]  ;;  %v6475_v38 = vsel %vm4977_vm0, %v4964_v28, 0.0 }
 0x4d4   : > { %v9524_v41 = vrot.slane %v6909_v33, %v12489_v39  ;;  %v9519_v43 = vrot.slane %v6908_v35, %v12495_v44  ;;  %6422 = vadd.xlane.f32.xlu1 %v6421_v30  ;;  %6419 = vadd.xlane.f32.xlu0 %v6418_v13 }
 0x4d5   : > { %v6171_v45 = vpop.xlane.xlu1 %6170  ;;  %v6168_v48 = vpop.xlane.xlu0 %6167 }
 0x4d6   : > { %v9520_v53 = vsel %vm7613_vm10, %v9519_v43, %v9515_v40  ;;  %v6911_v54 = vmul.f32 0.020408163, %v6171_v45  ;;  %v6910_v55 = vmul.f32 0.020408163, %v6168_v48  ;;  %v6427_v40 = vsel %vm4977_vm0, %v4948_v29, 0.0  ;;  %v4933_v48 = vld [vmem:[%s12259_s17 + $0xea0] sm:$0xff] }
 0x4d7   : > { %v9525_v60 = vsel %vm14666_vm9, %v9524_v41, %v9520_v53  ;;  %v6382_v57 = vsel %vm4977_vm0, %v4933_v48, 0.0  ;;  %vm14668_vm9 = vcmask 654912  }
 0x4d8   : > { %v9534_v61 = vrot.slane %v6911_v54, %v12505_v58  ;;  %v9529_v63 = vrot.slane %v6910_v55, %v12511_v62  ;;  %6470 = vadd.xlane.f32.xlu1 %v6469_v49  ;;  %6467 = vadd.xlane.f32.xlu0 %v6466_v51 }
 0x4d9   : > { %v6177_v0 = vpop.xlane.xlu1 %6176  ;;  %v6174_v4 = vpop.xlane.xlu0 %6173 }
 0x4da   : > { %v9530_v7 = vsel %vm7627_vm12, %v9529_v63, %v9525_v60  ;;  %v6913_v8 = vmul.f32 0.020408163, %v6177_v0  ;;  %v6912_v9 = vmul.f32 0.020408163, %v6174_v4  ;;  %v4934_v63 = vld [vmem:[%s12259_s17 + $0xea8] sm:$0xff]  ;;  %v4965_v0 = vld [vmem:[%s12259_s17 + $0xfa0] sm:$0xff] }
 0x4db   : > { %v9535_v18 = vsel %vm7634_vm13, %v9534_v61, %v9530_v7  ;;  %v6478_v10 = vsel %vm4977_vm0, %v4965_v0, 0.0 }
 0x4dc   : > { %v9544_v15 = vrot.slane %v6913_v8, %v12521_v12  ;;  %v9539_v16 = vrot.slane %v6912_v9, %v12526_v14  ;;  %6425 = vadd.xlane.f32.xlu1 %v6424_v5  ;;  %6377 = vadd.xlane.f32.xlu0 %v6376_v6  ;;  %v6385_v9 = vsel %vm4977_vm0, %v4934_v63, 0.0 }
 0x4dd   : > { %v6183_v17 = vpop.xlane.xlu1 %6182  ;;  %v6180_v20 = vpop.xlane.xlu0 %6179 }
 0x4de   : > { %v9540_v25 = vsel %vm7641_vm14, %v9539_v16, %v9535_v18  ;;  %v6915_v26 = vmul.f32 0.020408163, %v6183_v17  ;;  %v6914_v27 = vmul.f32 0.020408163, %v6180_v20  ;;  %v4966_v16 = vld [vmem:[%s12259_s17 + $0xfa8] sm:$0xff] }
 0x4df   : > { %v9545_v30 = vsel %vm7648_vm15, %v9544_v15, %v9540_v25  ;;  %v4950_v17 = vld [vmem:[%s12259_s17 + $0xf28] sm:$0xff] }
 0x4e0   : > { %v14144_v13 = vsel %vm10109_vm11, %v9545_v30, %v13876_v46  ;;  %v9553_v31 = vrot.slane %v6915_v26, %v12424_v34  ;;  %v9549_v33 = vrot.slane %v6914_v27, %v12421_v32  ;;  %6380 = vadd.xlane.f32.xlu1 %v6379_v22  ;;  %6473 = vadd.xlane.f32.xlu0 %v6472_v23  ;;  %v4949_v46 = vld [vmem:[%s12259_s17 + $0xf20] sm:$0xff]  ;;  %v6481_v27 = vsel %vm4977_vm0, %v4966_v16, 0.0 }
 0x4e1   : > { %v6189_v35 = vpop.xlane.xlu1 %6188  ;;  %v6186_v37 = vpop.xlane.xlu0 %6185  ;;  %v6430_v55 = vsel %vm4977_vm0, %v4949_v46, 0.0  ;;  %v6433_v28 = vsel %vm4977_vm0, %v4950_v17, 0.0 }
 0x4e2   : > { %v9554_v41 = vsel %vm7550_vm1, %v9553_v31, %v9549_v33  ;;  %v6917_v43 = vmul.f32 0.020408163, %v6189_v35  ;;  %v6916_v45 = vmul.f32 0.020408163, %v6186_v37  ;;  %v4951_v33 = vld [vmem:[%s12259_s17 + $0xf30] sm:$0xff] }
 0x4e3   : > { %v4935_v35 = vld [vmem:[%s12259_s17 + $0xeb0] sm:$0xff] }
 0x4e4   : > { %v9563_v49 = vrot.slane %v6917_v43, %v12433_v42  ;;  %v9558_v51 = vrot.slane %v6916_v45, %v12428_v36  ;;  %6476 = vadd.xlane.f32.xlu1 %v6475_v38  ;;  %6428 = vadd.xlane.f32.xlu0 %v6427_v40  ;;  %v6436_v45 = vsel %vm4977_vm0, %v4951_v33, 0.0  ;;  %v6388_v46 = vsel %vm4977_vm0, %v4935_v35, 0.0 }
 0x4e5   : > { %v6195_v53 = vpop.xlane.xlu1 %6194  ;;  %v6192_v54 = vpop.xlane.xlu0 %6191 }
 0x4e6   : > { %v9559_v59 = vsel %vm7557_vm2, %v9558_v51, %v9554_v41  ;;  %v6919_v60 = vmul.f32 0.020408163, %v6195_v53  ;;  %v6918_v61 = vmul.f32 0.020408163, %v6192_v54  ;;  %v4936_v53 = vld [vmem:[%s12259_s17 + $0xeb8] sm:$0xff]  ;;  %v4967_v54 = vld [vmem:[%s12259_s17 + $0xfb0] sm:$0xff] }
 0x4e7   : > { %v9564_v4 = vsel %vm7564_vm3, %v9563_v49, %v9559_v59  ;;  %v6391_v63 = vsel %vm4977_vm0, %v4936_v53, 0.0  ;;  %v6484_v0 = vsel %vm4977_vm0, %v4967_v54, 0.0 }
 0x4e8   : > { %v9573_v5 = vrot.slane %v6919_v60, %v12438_v47  ;;  %v9568_v6 = vrot.slane %v6918_v61, %v12445_v52  ;;  %6431 = vadd.xlane.f32.xlu1 %v6430_v55  ;;  %6383 = vadd.xlane.f32.xlu0 %v6382_v57 }
 0x4e9   : > { %v6201_v7 = vpop.xlane.xlu1 %6200  ;;  %v6198_v8 = vpop.xlane.xlu0 %6197 }
 0x4ea   : > { %v9569_v11 = vsel %vm7571_vm4, %v9568_v6, %v9564_v4  ;;  %v6921_v18 = vmul.f32 0.020408163, %v6201_v7  ;;  %v6920_v15 = vmul.f32 0.020408163, %v6198_v8  ;;  %v4968_v7 = vld [vmem:[%s12259_s17 + $0xfb8] sm:$0xff] }
 0x4eb   : > { %v9574_v20 = vsel %vm7578_vm5, %v9573_v5, %v9569_v11  ;;  %v4952_v8 = vld [vmem:[%s12259_s17 + $0xf38] sm:$0xff]  ;;  %v6487_v16 = vsel %vm4977_vm0, %v4968_v7, 0.0 }
 0x4ec   : > { %v9583_v22 = vrot.slane %v6921_v18, %v12456_v1  ;;  %v9578_v23 = vrot.slane %v6920_v15, %v12459_v2  ;;  %6386 = vadd.xlane.f32.xlu1 %v6385_v9  ;;  %6479 = vadd.xlane.f32.xlu0 %v6478_v10  ;;  %v6439_v17 = vsel %vm4977_vm0, %v4952_v8, 0.0 }
 0x4ed   : > { %v6207_v25 = vpop.xlane.xlu1 %6206  ;;  %v6204_v26 = vpop.xlane.xlu0 %6203 }
 0x4ee   : > { %v9579_v29 = vsel %vm7585_vm6, %v9578_v23, %v9574_v20  ;;  %v6923_v30 = vmul.f32 0.020408163, %v6207_v25  ;;  %v6922_v31 = vmul.f32 0.020408163, %v6204_v26  ;;  %v4953_v25 = vld [vmem:[%s12259_s17 + $0xf40] sm:$0xff] }
 0x4ef   : > { %v9584_v37 = vsel %vm7592_vm7, %v9583_v22, %v9579_v29  ;;  %v4937_v26 = vld [vmem:[%s12259_s17 + $0xec0] sm:$0xff]  ;;  %v6442_v33 = vsel %vm4977_vm0, %v4953_v25, 0.0 }
 0x4f0   : > { %v9593_v38 = vrot.slane %v6923_v30, %v12473_v19  ;;  %v9588_v40 = vrot.slane %v6922_v31, %v12479_v24  ;;  %6482 = vadd.xlane.f32.xlu1 %v6481_v27  ;;  %6434 = vadd.xlane.f32.xlu0 %v6433_v28  ;;  %v6394_v35 = vsel %vm4977_vm0, %v4937_v26, 0.0 }
 0x4f1   : > { %v6213_v41 = vpop.xlane.xlu1 %6212  ;;  %v6210_v43 = vpop.xlane.xlu0 %6209 }
 0x4f2   : > { %v9589_v48 = vsel %vm7599_vm8, %v9588_v40, %v9584_v37  ;;  %v6925_v49 = vmul.f32 0.020408163, %v6213_v41  ;;  %v6924_v51 = vmul.f32 0.020408163, %v6210_v43  ;;  %v4938_v41 = vld [vmem:[%s12259_s17 + $0xec8] sm:$0xff]  ;;  %v4969_v43 = vld [vmem:[%s12259_s17 + $0xfc0] sm:$0xff] }
 0x4f3   : > { %v9594_v55 = vsel %vm14668_vm9, %v9593_v38, %v9589_v48  ;;  %vm14669_vm9 = vcmask 786112   ;;  %v6397_v54 = vsel %vm4977_vm0, %v4938_v41, 0.0 }
 0x4f4   : > { %v9603_v57 = vrot.slane %v6925_v49, %v12489_v39  ;;  %v9598_v59 = vrot.slane %v6924_v51, %v12495_v44  ;;  %6437 = vadd.xlane.f32.xlu1 %v6436_v45  ;;  %6389 = vadd.xlane.f32.xlu0 %v6388_v46 }
 0x4f5   : > { %v6219_v60 = vpop.xlane.xlu1 %6218  ;;  %v6216_v61 = vpop.xlane.xlu0 %6215 }
 0x4f6   : > { %v9599_v4 = vsel %vm7613_vm10, %v9598_v59, %v9594_v55  ;;  %v6927_v5 = vmul.f32 0.020408163, %v6219_v60  ;;  %v6926_v6 = vmul.f32 0.020408163, %v6216_v61  ;;  %v6490_v55 = vsel %vm4977_vm0, %v4969_v43, 0.0  ;;  %v4970_v61 = vld [vmem:[%s12259_s17 + $0xfc8] sm:$0xff] }
 0x4f7   : > { %v9604_v9 = vsel %vm14669_vm9, %v9603_v57, %v9599_v4  ;;  %vm14670_vm9 = vcmask 654912  }
 0x4f8   : > { %v9613_v10 = vrot.slane %v6927_v5, %v12505_v58  ;;  %v9608_v11 = vrot.slane %v6926_v6, %v12511_v62  ;;  %6392 = vadd.xlane.f32.xlu1 %v6391_v63  ;;  %6485 = vadd.xlane.f32.xlu0 %v6484_v0  ;;  %v4954_v63 = vld [vmem:[%s12259_s17 + $0xf48] sm:$0xff]  ;;  %v6493_v6 = vsel %vm4977_vm0, %v4970_v61, 0.0 }
 0x4f9   : > { %v6225_v18 = vpop.xlane.xlu1 %6224  ;;  %v6222_v15 = vpop.xlane.xlu0 %6221  ;;  %v6445_v7 = vsel %vm4977_vm0, %v4954_v63, 0.0 }
 0x4fa   : > { %v9609_v20 = vsel %vm7627_vm12, %v9608_v11, %v9604_v9  ;;  %v6929_v22 = vmul.f32 0.020408163, %v6225_v18  ;;  %v6928_v23 = vmul.f32 0.020408163, %v6222_v15  ;;  %v4955_v11 = vld [vmem:[%s12259_s17 + $0xf50] sm:$0xff] }
 0x4fb   : > { %v9614_v27 = vsel %vm7634_vm13, %v9613_v10, %v9609_v20  ;;  %v4939_v18 = vld [vmem:[%s12259_s17 + $0xed0] sm:$0xff] }
 0x4fc   : > { %v9623_v28 = vrot.slane %v6929_v22, %v12521_v12  ;;  %v9618_v29 = vrot.slane %v6928_v23, %v12526_v14  ;;  %6488 = vadd.xlane.f32.xlu1 %v6487_v16  ;;  %6440 = vadd.xlane.f32.xlu0 %v6439_v17  ;;  %v6448_v23 = vsel %vm4977_vm0, %v4955_v11, 0.0  ;;  %v6400_v25 = vsel %vm4977_vm0, %v4939_v18, 0.0 }
 0x4fd   : > { %v6231_v30 = vpop.xlane.xlu1 %6230  ;;  %v6228_v31 = vpop.xlane.xlu0 %6227 }
 0x4fe   : > { %v9619_v37 = vsel %vm7641_vm14, %v9618_v29, %v9614_v27  ;;  %v6931_v38 = vmul.f32 0.020408163, %v6231_v30  ;;  %v6930_v40 = vmul.f32 0.020408163, %v6228_v31  ;;  %v4940_v29 = vld [vmem:[%s12259_s17 + $0xed8] sm:$0xff]  ;;  %v4971_v30 = vld [vmem:[%s12259_s17 + $0xfd0] sm:$0xff] }
 0x4ff   : > { %v9624_v45 = vsel %vm7648_vm15, %v9623_v28, %v9619_v37  ;;  %v6496_v41 = vsel %vm4977_vm0, %v4971_v30, 0.0 }
 0x500   : > { %v9632_v46 = vrot.slane %v6931_v38, %v12424_v34  ;;  %v9628_v48 = vrot.slane %v6930_v40, %v12421_v32  ;;  %6443 = vadd.xlane.f32.xlu1 %v6442_v33  ;;  %6395 = vadd.xlane.f32.xlu0 %v6394_v35  ;;  %v14213_v49 = vsel %vm10109_vm11, %v9624_v45, %v13943_v50  ;;  %v6403_v40 = vsel %vm4977_vm0, %v4940_v29, 0.0 }
 0x501   : > { %v6237_v51 = vpop.xlane.xlu1 %6236  ;;  %v6234_v53 = vpop.xlane.xlu0 %6233 }
 0x502   : > { %v9633_v57 = vsel %vm7550_vm1, %v9632_v46, %v9628_v48  ;;  %v6933_v59 = vmul.f32 0.020408163, %v6237_v51  ;;  %v6932_v60 = vmul.f32 0.020408163, %v6234_v53  ;;  %v4972_v48 = vld [vmem:[%s12259_s17 + $0xfd8] sm:$0xff] }
 0x503   : > { %v4956_v51 = vld [vmem:[%s12259_s17 + $0xf58] sm:$0xff] }
 0x504   : > { %v9642_v0 = vrot.slane %v6933_v59, %v12433_v42  ;;  %v9637_v4 = vrot.slane %v6932_v60, %v12428_v36  ;;  %6398 = vadd.xlane.f32.xlu1 %v6397_v54  ;;  %6491 = vadd.xlane.f32.xlu0 %v6490_v55  ;;  %v6499_v60 = vsel %vm4977_vm0, %v4972_v48, 0.0  ;;  %v6451_v61 = vsel %vm4977_vm0, %v4956_v51, 0.0 }
 0x505   : > { %v6243_v50 = vpop.xlane.xlu1 %6242  ;;  %v6240_v5 = vpop.xlane.xlu0 %6239 }
 0x506   : > { %v9638_v8 = vsel %vm7557_vm2, %v9637_v4, %v9633_v57  ;;  %v6935_v9 = vmul.f32 0.020408163, %v6243_v50  ;;  %v6934_v10 = vmul.f32 0.020408163, %v6240_v5  ;;  %v4957_v50 = vld [vmem:[%s12259_s17 + $0xf60] sm:$0xff] }
 0x507   : > { %v9643_v15 = vsel %vm7564_vm3, %v9642_v0, %v9638_v8  ;;  %v4941_v5 = vld [vmem:[%s12259_s17 + $0xee0] sm:$0xff]  ;;  %v6454_v11 = vsel %vm4977_vm0, %v4957_v50, 0.0 }
 0x508   : > { %v9652_v16 = vrot.slane %v6935_v9, %v12438_v47  ;;  %v9647_v17 = vrot.slane %v6934_v10, %v12445_v52  ;;  %6494 = vadd.xlane.f32.xlu1 %v6493_v6  ;;  %6446 = vadd.xlane.f32.xlu0 %v6445_v7  ;;  %v6406_v18 = vsel %vm4977_vm0, %v4941_v5, 0.0 }
 0x509   : > { %v6249_v20 = vpop.xlane.xlu1 %6248  ;;  %v6246_v22 = vpop.xlane.xlu0 %6245 }
 0x50a   : > { %v9648_v26 = vsel %vm7571_vm4, %v9647_v17, %v9643_v15  ;;  %v6937_v27 = vmul.f32 0.020408163, %v6249_v20  ;;  %v6936_v28 = vmul.f32 0.020408163, %v6246_v22  ;;  %v4942_v20 = vld [vmem:[%s12259_s17 + $0xee8] sm:$0xff]  ;;  %v4973_v22 = vld [vmem:[%s12259_s17 + $0xfe0] sm:$0xff] }
 0x50b   : > { %v9653_v31 = vsel %vm7578_vm5, %v9652_v16, %v9648_v26  ;;  %v6409_v29 = vsel %vm4977_vm0, %v4942_v20, 0.0  ;;  %v6502_v30 = vsel %vm4977_vm0, %v4973_v22, 0.0 }
 0x50c   : > { %v9662_v33 = vrot.slane %v6937_v27, %v12456_v1  ;;  %v9657_v35 = vrot.slane %v6936_v28, %v12459_v2  ;;  %6449 = vadd.xlane.f32.xlu1 %v6448_v23  ;;  %6401 = vadd.xlane.f32.xlu0 %v6400_v25 }
 0x50d   : > { %v6255_v37 = vpop.xlane.xlu1 %6254  ;;  %v6252_v38 = vpop.xlane.xlu0 %6251 }
 0x50e   : > { %v9658_v43 = vsel %vm7585_vm6, %v9657_v35, %v9653_v31  ;;  %v6939_v45 = vmul.f32 0.020408163, %v6255_v37  ;;  %v6938_v46 = vmul.f32 0.020408163, %v6252_v38  ;;  %v4974_v37 = vld [vmem:[%s12259_s17 + $0xfe8] sm:$0xff] }
 0x50f   : > { %v9663_v53 = vsel %vm7592_vm7, %v9662_v33, %v9658_v43  ;;  %v4958_v38 = vld [vmem:[%s12259_s17 + $0xf68] sm:$0xff]  ;;  %v6505_v48 = vsel %vm4977_vm0, %v4974_v37, 0.0 }
 0x510   : > { %v9672_v54 = vrot.slane %v6939_v45, %v12473_v19  ;;  %v9667_v55 = vrot.slane %v6938_v46, %v12479_v24  ;;  %6404 = vadd.xlane.f32.xlu1 %v6403_v40  ;;  %6497 = vadd.xlane.f32.xlu0 %v6496_v41  ;;  %v6457_v51 = vsel %vm4977_vm0, %v4958_v38, 0.0 }
 0x511   : > { %v6261_v57 = vpop.xlane.xlu1 %6260  ;;  %v6258_v59 = vpop.xlane.xlu0 %6257 }
 0x512   : > { %v9668_v63 = vsel %vm7599_vm8, %v9667_v55, %v9663_v53  ;;  %v6941_v0 = vmul.f32 0.020408163, %v6261_v57  ;;  %v6940_v4 = vmul.f32 0.020408163, %v6258_v59  ;;  %v4959_v57 = vld [vmem:[%s12259_s17 + $0xf70] sm:$0xff] }
 0x513   : > { %v9673_v6 = vsel %vm14670_vm9, %v9672_v54, %v9668_v63  ;;  %vm14671_vm9 = vcmask 786112   ;;  %v4943_v59 = vld [vmem:[%s12259_s17 + $0xef0] sm:$0xff]  ;;  %v6460_v5 = vsel %vm4977_vm0, %v4959_v57, 0.0 }
 0x514   : > { %v9682_v7 = vrot.slane %v6941_v0, %v12489_v39  ;;  %v9677_v8 = vrot.slane %v6940_v4, %v12495_v44  ;;  %6500 = vadd.xlane.f32.xlu1 %v6499_v60  ;;  %6452 = vadd.xlane.f32.xlu0 %v6451_v61 }
 0x515   : > { %v6267_v9 = vpop.xlane.xlu1 %6266  ;;  %v6264_v10 = vpop.xlane.xlu0 %6263 }
 0x516   : > { %v9678_v15 = vsel %vm7613_vm10, %v9677_v8, %v9673_v6  ;;  %v6943_v16 = vmul.f32 0.020408163, %v6267_v9  ;;  %v6942_v17 = vmul.f32 0.020408163, %v6264_v10  ;;  %v6412_v6 = vsel %vm4977_vm0, %v4943_v59, 0.0  ;;  %v4944_v10 = vld [vmem:[%s12259_s17 + $0xef8] sm:$0xff] }
 0x517   : > { %v9683_v23 = vsel %vm14671_vm9, %v9682_v7, %v9678_v15 }
 0x518   : > { %v9692_v25 = vrot.slane %v6943_v16, %v12505_v58  ;;  %v9687_v26 = vrot.slane %v6942_v17, %v12511_v62  ;;  %6455 = vadd.xlane.f32.xlu1 %v6454_v11  ;;  %6407 = vadd.xlane.f32.xlu0 %v6406_v18  ;;  %v4975_v11 = vld [vmem:[%s12259_s17 + $0xff0] sm:$0xff]  ;;  %v6415_v17 = vsel %vm4977_vm0, %v4944_v10, 0.0 }
 0x519   : > { %v6273_v27 = vpop.xlane.xlu1 %6272  ;;  %v6270_v28 = vpop.xlane.xlu0 %6269  ;;  %v6508_v20 = vsel %vm4977_vm0, %v4975_v11, 0.0 }
 0x51a   : > { %v9688_v31 = vsel %vm7627_vm12, %v9687_v26, %v9683_v23  ;;  %v6945_v33 = vmul.f32 0.020408163, %v6273_v27  ;;  %v6944_v35 = vmul.f32 0.020408163, %v6270_v28  ;;  %v4976_v26 = vld [vmem:[%s12259_s17 + $0xff8] sm:$0xff] }
 0x51b   : > { %v9693_v40 = vsel %vm7634_vm13, %v9692_v25, %v9688_v31  ;;  %v4960_v27 = vld [vmem:[%s12259_s17 + $0xf78] sm:$0xff] }
 0x51c   : > { %v9702_v41 = vrot.slane %v6945_v33, %v12521_v12  ;;  %v9697_v43 = vrot.slane %v6944_v35, %v12526_v14  ;;  %6410 = vadd.xlane.f32.xlu1 %v6409_v29  ;;  %6503 = vadd.xlane.f32.xlu0 %v6502_v30  ;;  %v6511_v35 = vsel %vm4977_vm0, %v4976_v26, 0.0  ;;  %v6463_v37 = vsel %vm4977_vm0, %v4960_v27, 0.0 }
 0x51d   : > { %v6279_v45 = vpop.xlane.xlu1 %6278  ;;  %v6276_v46 = vpop.xlane.xlu0 %6275  ;;  %vm14672_vm0 = vcmask 654912  }
 0x51e   : > { %v9698_v53 = vsel %vm7641_vm14, %v9697_v43, %v9693_v40  ;;  %v6947_v54 = vmul.f32 0.020408163, %v6279_v45  ;;  %v6946_v55 = vmul.f32 0.020408163, %v6276_v46 }
 0x51f   : > { %v9703_v60 = vsel %vm7648_vm15, %v9702_v41, %v9698_v53 }
 0x520   : > { %v9711_v61 = vrot.slane %v6947_v54, %v12424_v34  ;;  %v9707_v63 = vrot.slane %v6946_v55, %v12421_v32  ;;  %6506 = vadd.xlane.f32.xlu1 %v6505_v48  ;;  %6458 = vadd.xlane.f32.xlu0 %v6457_v51  ;;  %v14280_v0 = vsel %vm10109_vm11, %v9703_v60, %v14010_v56 }
 0x521   : > { %v6285_v4 = vpop.xlane.xlu1 %6284  ;;  %v6282_v50 = vpop.xlane.xlu0 %6281 }
 0x522   : > { %v9712_v7 = vsel %vm7550_vm1, %v9711_v61, %v9707_v63  ;;  %v6949_v8 = vmul.f32 0.020408163, %v6285_v4  ;;  %v6948_v9 = vmul.f32 0.020408163, %v6282_v50 }
 0x524   : > { %v9721_v18 = vrot.slane %v6949_v8, %v12433_v42  ;;  %v9716_v15 = vrot.slane %v6948_v9, %v12428_v36  ;;  %6461 = vadd.xlane.f32.xlu1 %v6460_v5  ;;  %6413 = vadd.xlane.f32.xlu0 %v6412_v6 }
 0x525   : > { %v6291_v56 = vpop.xlane.xlu1 %6290  ;;  %v6288_v16 = vpop.xlane.xlu0 %6287 }
 0x526   : > { %v9717_v22 = vsel %vm7557_vm2, %v9716_v15, %v9712_v7  ;;  %v6951_v23 = vmul.f32 0.020408163, %v6291_v56  ;;  %v6950_v25 = vmul.f32 0.020408163, %v6288_v16 }
 0x527   : > { %v9722_v28 = vsel %vm7564_vm3, %v9721_v18, %v9717_v22 }
 0x528   : > { %v9731_v29 = vrot.slane %v6951_v23, %v12438_v47  ;;  %v9726_v30 = vrot.slane %v6950_v25, %v12445_v52  ;;  %6416 = vadd.xlane.f32.xlu1 %v6415_v17  ;;  %6509 = vadd.xlane.f32.xlu0 %v6508_v20 }
 0x529   : > { %v6297_v31 = vpop.xlane.xlu1 %6296  ;;  %v6294_v33 = vpop.xlane.xlu0 %6293 }
 0x52a   : > { %v9727_v38 = vsel %vm7571_vm4, %v9726_v30, %v9722_v28  ;;  %v6953_v40 = vmul.f32 0.020408163, %v6297_v31  ;;  %v6952_v41 = vmul.f32 0.020408163, %v6294_v33 }
 0x52b   : > { %v9732_v43 = vsel %vm7578_vm5, %v9731_v29, %v9727_v38 }
 0x52c   : > { %v9741_v45 = vrot.slane %v6953_v40, %v12456_v1  ;;  %v9736_v46 = vrot.slane %v6952_v41, %v12459_v2  ;;  %6512 = vadd.xlane.f32.xlu1 %v6511_v35  ;;  %6464 = vadd.xlane.f32.xlu0 %v6463_v37 }
 0x52d   : > { %v6303_v48 = vpop.xlane.xlu1 %6302  ;;  %v6300_v51 = vpop.xlane.xlu0 %6299 }
 0x52e   : > { %v9737_v53 = vsel %vm7585_vm6, %v9736_v46, %v9732_v43  ;;  %v6955_v54 = vmul.f32 0.020408163, %v6303_v48  ;;  %v6954_v55 = vmul.f32 0.020408163, %v6300_v51 }
 0x52f   : > { %v9742_v57 = vsel %vm7592_vm7, %v9741_v45, %v9737_v53 }
 0x530   : > { %v9751_v59 = vrot.slane %v6955_v54, %v12473_v19  ;;  %v9746_v60 = vrot.slane %v6954_v55, %v12479_v24 }
 0x531   : > { %v6309_v61 = vpop.xlane.xlu1 %6308  ;;  %v6306_v63 = vpop.xlane.xlu0 %6305 }
 0x532   : > { %v9747_v4 = vsel %vm7599_vm8, %v9746_v60, %v9742_v57  ;;  %v6957_v50 = vmul.f32 0.020408163, %v6309_v61  ;;  %v6956_v5 = vmul.f32 0.020408163, %v6306_v63 }
 0x533   : > { %v9752_v6 = vsel %vm14672_vm0, %v9751_v59, %v9747_v4 }
 0x534   : > { %v9761_v7 = vrot.slane %v6957_v50, %v12489_v39  ;;  %v9756_v8 = vrot.slane %v6956_v5, %v12495_v44 }
 0x535   : > { %v6315_v9 = vpop.xlane.xlu1 %6314  ;;  %v6312_v10 = vpop.xlane.xlu0 %6311 }
 0x536   : > { %v9757_v11 = vsel %vm7613_vm10, %v9756_v8, %v9752_v6  ;;  %v6959_v18 = vmul.f32 0.020408163, %v6315_v9  ;;  %v6958_v15 = vmul.f32 0.020408163, %v6312_v10 }
 0x537   : > { %v9762_v56 = vsel %vm14671_vm9, %v9761_v7, %v9757_v11 }
 0x538   : > { %v9771_v16 = vrot.slane %v6959_v18, %v12505_v58  ;;  %v9766_v17 = vrot.slane %v6958_v15, %v12511_v62 }
 0x539   : > { %v6321_v20 = vpop.xlane.xlu1 %6320  ;;  %v6318_v22 = vpop.xlane.xlu0 %6317 }
 0x53a   : > { %v9767_v23 = vsel %vm7627_vm12, %v9766_v17, %v9762_v56  ;;  %v6961_v25 = vmul.f32 0.020408163, %v6321_v20  ;;  %v6960_v26 = vmul.f32 0.020408163, %v6318_v22 }
 0x53b   : > { %v9772_v27 = vsel %vm7634_vm13, %v9771_v16, %v9767_v23 }
 0x53c   : > { %v9781_v28 = vrot.slane %v6961_v25, %v12521_v12  ;;  %v9776_v29 = vrot.slane %v6960_v26, %v12526_v14 }
 0x53d   : > { %v6327_v30 = vpop.xlane.xlu1 %6326  ;;  %v6324_v31 = vpop.xlane.xlu0 %6323 }
 0x53e   : > { %v9777_v33 = vsel %vm7641_vm14, %v9776_v29, %v9772_v27  ;;  %v6963_v35 = vmul.f32 0.020408163, %v6327_v30  ;;  %v6962_v37 = vmul.f32 0.020408163, %v6324_v31 }
 0x53f   : > { %v9782_v38 = vsel %vm7648_vm15, %v9781_v28, %v9777_v33 }
 0x540   : > { %v14323_v40 = vsel %vm10109_vm11, %v9782_v38, %v14077_v3  ;;  %v9790_v41 = vrot.slane %v6963_v35, %v12424_v34  ;;  %v9786_v43 = vrot.slane %v6962_v37, %v12421_v32  ;;  %vm14673_vm11 = vmmov %vm14672_vm0 }
 0x541   : > { %v6333_v45 = vpop.xlane.xlu1 %6332  ;;  %v6330_v46 = vpop.xlane.xlu0 %6329  ;;  %vm14674_vm0 = vmmov %vm14671_vm9  ;;  %vm10111_vm9 = vcmask 1047559  }
 0x542   : > { %v6965_v48 = vmul.f32 0.020408163, %v6333_v45  ;;  %v6964_v51 = vmul.f32 0.020408163, %v6330_v46  ;;  %v9791_v54 = vsel %vm7550_vm1, %v9790_v41, %v9786_v43 }
 0x544   : > { %v9795_v53 = vrot.slane %v6964_v51, %v12428_v36  ;;  %v9800_v55 = vrot.slane %v6965_v48, %v12433_v42 }
 0x545   : > { %v6339_v57 = vpop.xlane.xlu1 %6338  ;;  %v6336_v59 = vpop.xlane.xlu0 %6335 }
 0x546   : > { %v9796_v3 = vsel %vm7557_vm2, %v9795_v53, %v9791_v54  ;;  %v6967_v60 = vmul.f32 0.020408163, %v6339_v57  ;;  %v6966_v61 = vmul.f32 0.020408163, %v6336_v59 }
 0x547   : > { %v9801_v50 = vsel %vm7564_vm3, %v9800_v55, %v9796_v3 }
 0x548   : > { %v9805_v63 = vrot.slane %v6966_v61, %v12445_v52  ;;  %v9810_v4 = vrot.slane %v6967_v60, %v12438_v47 }
 0x549   : > { %v6345_v5 = vpop.xlane.xlu1 %6344  ;;  %v6342_v6 = vpop.xlane.xlu0 %6341 }
 0x54a   : > { %v9806_v7 = vsel %vm7571_vm4, %v9805_v63, %v9801_v50  ;;  %v6969_v8 = vmul.f32 0.020408163, %v6345_v5  ;;  %v6968_v9 = vmul.f32 0.020408163, %v6342_v6 }
 0x54b   : > { %v9811_v18 = vsel %vm7578_vm5, %v9810_v4, %v9806_v7 }
 0x54c   : > { %v9815_v10 = vrot.slane %v6968_v9, %v12459_v2  ;;  %v9820_v11 = vrot.slane %v6969_v8, %v12456_v1 }
 0x54d   : > { %v6351_v15 = vpop.xlane.xlu1 %6350  ;;  %v6348_v56 = vpop.xlane.xlu0 %6347 }
 0x54e   : > { %v9816_v16 = vsel %vm7585_vm6, %v9815_v10, %v9811_v18  ;;  %v6971_v17 = vmul.f32 0.020408163, %v6351_v15  ;;  %v6970_v20 = vmul.f32 0.020408163, %v6348_v56 }
 0x54f   : > { %v9821_v25 = vsel %vm7592_vm7, %v9820_v11, %v9816_v16 }
 0x550   : > { %v9825_v22 = vrot.slane %v6970_v20, %v12479_v24  ;;  %v9830_v23 = vrot.slane %v6971_v17, %v12473_v19 }
 0x551   : > { %v6357_v26 = vpop.xlane.xlu1 %6356  ;;  %v6354_v27 = vpop.xlane.xlu0 %6353 }
 0x552   : > { %v9826_v28 = vsel %vm7599_vm8, %v9825_v22, %v9821_v25  ;;  %v6973_v29 = vmul.f32 0.020408163, %v6357_v26  ;;  %v6972_v30 = vmul.f32 0.020408163, %v6354_v27 }
 0x553   : > { %v9831_v35 = vsel %vm14673_vm11, %v9830_v23, %v9826_v28 }
 0x554   : > { %v9835_v31 = vrot.slane %v6972_v30, %v12495_v44  ;;  %v9840_v33 = vrot.slane %v6973_v29, %v12489_v39 }
 0x555   : > { %v6363_v37 = vpop.xlane.xlu1 %6362  ;;  %v6360_v38 = vpop.xlane.xlu0 %6359 }
 0x556   : > { %v9836_v41 = vsel %vm7613_vm10, %v9835_v31, %v9831_v35  ;;  %v6975_v43 = vmul.f32 0.020408163, %v6363_v37  ;;  %v6974_v45 = vmul.f32 0.020408163, %v6360_v38 }
 0x557   : > { %v9841_v51 = vsel %vm14674_vm0, %v9840_v33, %v9836_v41 }
 0x558   : > { %v9845_v46 = vrot.slane %v6974_v45, %v12511_v62  ;;  %v9850_v48 = vrot.slane %v6975_v43, %v12505_v58 }
 0x559   : > { %v6369_v53 = vpop.xlane.xlu1 %6368  ;;  %v6366_v54 = vpop.xlane.xlu0 %6365 }
 0x55a   : > { %v9846_v55 = vsel %vm7627_vm12, %v9845_v46, %v9841_v51  ;;  %v6977_v57 = vmul.f32 0.020408163, %v6369_v53  ;;  %v6976_v59 = vmul.f32 0.020408163, %v6366_v54 }
 0x55b   : > { %v9851_v61 = vsel %vm7634_vm13, %v9850_v48, %v9846_v55 }
 0x55c   : > { %v9860_v3 = vrot.slane %v6977_v57, %v12521_v12  ;;  %v9855_v60 = vrot.slane %v6976_v59, %v12526_v14 }
 0x55d   : > { %v6375_v63 = vpop.xlane.xlu1 %6374  ;;  %v6372_v4 = vpop.xlane.xlu0 %6371 }
 0x55e   : > { %v9856_v50 = vsel %vm7641_vm14, %v9855_v60, %v9851_v61  ;;  %v6979_v5 = vmul.f32 0.020408163, %v6375_v63  ;;  %v6978_v6 = vmul.f32 0.020408163, %v6372_v4 }
 0x55f   : > { %v9861_v7 = vsel %vm7648_vm15, %v9860_v3, %v9856_v50 }
 0x560   : > { %v10112_v8 = vsel %vm10111_vm9, %v9861_v7, %v14144_v13  ;;  %v9869_v9 = vrot.slane %v6979_v5, %v12424_v34  ;;  %v9865_v10 = vrot.slane %v6978_v6, %v12421_v32 }
 0x561   : > { %10143 = vst [vmem:[%s14362_s8] sm:$0xff] %v10112_v8  ;;  %v6423_v11 = vpop.xlane.xlu1 %6422  ;;  %v6420_v18 = vpop.xlane.xlu0 %6419 }
 0x562   : > { %v9870_v15 = vsel %vm7550_vm1, %v9869_v9, %v9865_v10  ;;  %v6995_v56 = vmul.f32 0.020408163, %v6423_v11  ;;  %v6994_v16 = vmul.f32 0.020408163, %v6420_v18 }
 0x564   : > { %v9948_v17 = vrot.slane %v6995_v56, %v12424_v34  ;;  %v9944_v20 = vrot.slane %v6994_v16, %v12421_v32 }
 0x565   : > { %v6471_v22 = vpop.xlane.xlu1 %6470  ;;  %v6468_v13 = vpop.xlane.xlu0 %6467 }
 0x566   : > { %v9949_v23 = vsel %vm7550_vm1, %v9948_v17, %v9944_v20  ;;  %v7011_v25 = vmul.f32 0.020408163, %v6471_v22  ;;  %v7010_v26 = vmul.f32 0.020408163, %v6468_v13 }
 0x568   : > { %v10027_v27 = vrot.slane %v7011_v25, %v12424_v34  ;;  %v10023_v28 = vrot.slane %v7010_v26, %v12421_v32 }
 0x569   : > { %v6426_v29 = vpop.xlane.xlu1 %6425  ;;  %v6378_v30 = vpop.xlane.xlu0 %6377 }
 0x56a   : > { %v10028_v31 = vsel %vm7550_vm1, %v10027_v27, %v10023_v28  ;;  %v6996_v33 = vmul.f32 0.020408163, %v6426_v29  ;;  %v6980_v9 = vmul.f32 0.020408163, %v6378_v30  ;;  %vm14675_vm1 = vmmov %vm14673_vm11 }
 0x56c   : > { %v9953_v35 = vrot.slane %v6996_v33, %v12428_v36  ;;  %v9874_v22 = vrot.slane %v6980_v9, %v12428_v36 }
 0x56d   : > { %v6381_v37 = vpop.xlane.xlu1 %6380  ;;  %v6474_v38 = vpop.xlane.xlu0 %6473 }
 0x56e   : > { %v9954_v41 = vsel %vm7557_vm2, %v9953_v35, %v9949_v23  ;;  %v6981_v10 = vmul.f32 0.020408163, %v6381_v37  ;;  %v7012_v11 = vmul.f32 0.020408163, %v6474_v38  ;;  %v9875_v37 = vsel %vm7557_vm2, %v9874_v22, %v9870_v15 }
 0x570   : > { %v9879_v23 = vrot.slane %v6981_v10, %v12433_v42  ;;  %v10032_v25 = vrot.slane %v7012_v11, %v12428_v36 }
 0x571   : > { %v6477_v43 = vpop.xlane.xlu1 %6476  ;;  %v6429_v45 = vpop.xlane.xlu0 %6428 }
 0x572   : > { %v6997_v18 = vmul.f32 0.020408163, %v6429_v45  ;;  %v7013_v56 = vmul.f32 0.020408163, %v6477_v43  ;;  %v9880_v45 = vsel %vm7564_vm3, %v9879_v23, %v9875_v37 }
 0x574   : > { %v9958_v26 = vrot.slane %v6997_v18, %v12433_v42  ;;  %v10037_v28 = vrot.slane %v7013_v56, %v12433_v42 }
 0x575   : > { %v6432_v46 = vpop.xlane.xlu1 %6431  ;;  %v6384_v48 = vpop.xlane.xlu0 %6383 }
 0x576   : > { %v6998_v16 = vmul.f32 0.020408163, %v6432_v46  ;;  %v6982_v13 = vmul.f32 0.020408163, %v6384_v48  ;;  %v10033_v48 = vsel %vm7557_vm2, %v10032_v25, %v10028_v31  ;;  %v9959_v42 = vsel %vm7564_vm3, %v9958_v26, %v9954_v41  ;;  %vm14676_vm2 = vmmov %vm14675_vm1 }
 0x577   : > { %v10038_v9 = vsel %vm7564_vm3, %v10037_v28, %v10033_v48  ;;  %vm14677_vm3 = vmmov %vm14675_vm1 }
 0x578   : > { %v9963_v29 = vrot.slane %v6998_v16, %v12445_v52  ;;  %v9884_v38 = vrot.slane %v6982_v13, %v12445_v52 }
 0x579   : > { %v6387_v51 = vpop.xlane.xlu1 %6386  ;;  %v6480_v53 = vpop.xlane.xlu0 %6479 }
 0x57a   : > { %v6983_v27 = vmul.f32 0.020408163, %v6387_v51  ;;  %v7014_v30 = vmul.f32 0.020408163, %v6480_v53  ;;  %v9964_v10 = vsel %vm7571_vm4, %v9963_v29, %v9959_v42  ;;  %v9885_v56 = vsel %vm7571_vm4, %v9884_v38, %v9880_v45 }
 0x57c   : > { %v9889_v51 = vrot.slane %v6983_v27, %v12438_v47  ;;  %v10042_v15 = vrot.slane %v7014_v30, %v12445_v52 }
 0x57d   : > { %v6483_v34 = vpop.xlane.xlu1 %6482  ;;  %v6435_v54 = vpop.xlane.xlu0 %6434 }
 0x57e   : > { %v6999_v43 = vmul.f32 0.020408163, %v6435_v54  ;;  %v7015_v36 = vmul.f32 0.020408163, %v6483_v34  ;;  %v9890_v13 = vsel %vm7578_vm5, %v9889_v51, %v9885_v56  ;;  %v10043_v25 = vsel %vm7571_vm4, %v10042_v15, %v10038_v9  ;;  %vm14678_vm4 = vmmov %vm14674_vm0 }
 0x580   : > { %v9968_v34 = vrot.slane %v6999_v43, %v12438_v47  ;;  %v10047_v41 = vrot.slane %v7015_v36, %v12438_v47 }
 0x581   : > { %v6438_v32 = vpop.xlane.xlu1 %6437  ;;  %v6390_v55 = vpop.xlane.xlu0 %6389 }
 0x582   : > { %v7000_v46 = vmul.f32 0.020408163, %v6438_v32  ;;  %v6984_v53 = vmul.f32 0.020408163, %v6390_v55  ;;  %v9969_v47 = vsel %vm7578_vm5, %v9968_v34, %v9964_v10  ;;  %v10048_v30 = vsel %vm7578_vm5, %v10047_v41, %v10043_v25  ;;  %vm14679_vm5 = vmmov %vm14674_vm0 }
 0x584   : > { %v9973_v16 = vrot.slane %v7000_v46, %v12459_v2  ;;  %v9894_v23 = vrot.slane %v6984_v53, %v12459_v2 }
 0x585   : > { %v6393_v57 = vpop.xlane.xlu1 %6392  ;;  %v6486_v59 = vpop.xlane.xlu0 %6485 }
 0x586   : > { %v6985_v11 = vmul.f32 0.020408163, %v6393_v57  ;;  %v7016_v32 = vmul.f32 0.020408163, %v6486_v59 }
 0x588   : > { %v9899_v26 = vrot.slane %v6985_v11, %v12456_v1  ;;  %v10052_v29 = vrot.slane %v7016_v32, %v12459_v2 }
 0x589   : > { %v6489_v3 = vpop.xlane.xlu1 %6488  ;;  %v6441_v60 = vpop.xlane.xlu0 %6440 }
 0x58a   : > { %v7001_v31 = vmul.f32 0.020408163, %v6441_v60  ;;  %v7017_v55 = vmul.f32 0.020408163, %v6489_v3  ;;  %v10053_v48 = vsel %vm7585_vm6, %v10052_v29, %v10048_v30 }
 0x58c   : > { %v9978_v3 = vrot.slane %v7001_v31, %v12456_v1 }
 0x58d   : > { %v6444_v61 = vpop.xlane.xlu1 %6443  ;;  %v6396_v63 = vpop.xlane.xlu0 %6395 }
 0x58e   : > { %v7002_v22 = vmul.f32 0.020408163, %v6444_v61  ;;  %v6986_v52 = vmul.f32 0.020408163, %v6396_v63  ;;  %v9974_v63 = vsel %vm7585_vm6, %v9973_v16, %v9969_v47 }
 0x58f   : > { %v9979_v42 = vsel %vm7592_vm7, %v9978_v3, %v9974_v63 }
 0x590   : > { %v9983_v37 = vrot.slane %v7002_v22, %v12479_v24 }
 0x591   : > { %v6399_v4 = vpop.xlane.xlu1 %6398  ;;  %v6492_v50 = vpop.xlane.xlu0 %6491 }
 0x592   : > { %v7018_v57 = vmul.f32 0.020408163, %v6492_v50  ;;  %v6987_v27 = vmul.f32 0.020408163, %v6399_v4  ;;  %v10057_v50 = vrot.slane %v7017_v55, %v12456_v1  ;;  %v9895_v4 = vsel %vm7585_vm6, %v9894_v23, %v9890_v13  ;;  %vm14680_vm6 = vmmov %vm14674_vm0 }
 0x593   : > { %v9900_v2 = vsel %vm7592_vm7, %v9899_v26, %v9895_v4  ;;  %v9984_v53 = vsel %vm7599_vm8, %v9983_v37, %v9979_v42 }
 0x594   : > { %v10062_v38 = vrot.slane %v7018_v57, %v12479_v24 }
 0x595   : > { %v6495_v5 = vpop.xlane.xlu1 %6494  ;;  %v6447_v6 = vpop.xlane.xlu0 %6446 }
 0x596   : > { %v7019_v28 = vmul.f32 0.020408163, %v6495_v5  ;;  %v7003_v61 = vmul.f32 0.020408163, %v6447_v6  ;;  %v9904_v5 = vrot.slane %v6986_v52, %v12479_v24  ;;  %v9909_v6 = vrot.slane %v6987_v27, %v12473_v19 }
 0x598   : > { %v10067_v45 = vrot.slane %v7019_v28, %v12473_v19  ;;  %v9988_v51 = vrot.slane %v7003_v61, %v12473_v19  ;;  %v9905_v15 = vsel %vm7599_vm8, %v9904_v5, %v9900_v2 }
 0x599   : > { %v14374_v7 = vpop.xlane.xlu1 %6449  ;;  %v14376_v8 = vpop.xlane.xlu0 %6401  ;;  %v9910_v34 = vsel %vm14675_vm1, %v9909_v6, %v9905_v15 }
 0x59a   : > { %v7004_v43 = vmul.f32 0.020408163, %v14374_v7  ;;  %v6988_v36 = vmul.f32 0.020408163, %v14376_v8  ;;  %v10058_v7 = vsel %vm7592_vm7, %v10057_v50, %v10053_v48 }
 0x59b   : > { %v10063_v8 = vsel %vm7599_vm8, %v10062_v38, %v10058_v7 }
 0x59c   : > { %v9993_v11 = vrot.slane %v7004_v43, %v12495_v44  ;;  %v10068_v19 = vsel %vm14676_vm2, %v10067_v45, %v10063_v8 }
 0x59d   : > { %v14378_v17 = vpop.xlane.xlu1 %6404  ;;  %v14380_v20 = vpop.xlane.xlu0 %6497 }
 0x59e   : > { %v6989_v24 = vmul.f32 0.020408163, %v14378_v17  ;;  %v7020_v9 = vmul.f32 0.020408163, %v14380_v20  ;;  %v9914_v17 = vrot.slane %v6988_v36, %v12495_v44  ;;  %v9989_v20 = vsel %vm14677_vm3, %v9988_v51, %v9984_v53 }
 0x59f   : > { %v9994_v57 = vsel %vm7613_vm10, %v9993_v11, %v9989_v20  ;;  %v10993_v20 = vld [vmem:[%s12257_s16 + $0x10] sm:$0xff] (!%p10832_p2)  }
 0x5a0   : > { %v10072_v22 = vrot.slane %v7020_v9, %v12495_v44  ;;  %v9915_v27 = vsel %vm7613_vm10, %v9914_v17, %v9910_v34  ;;  %v10987_v34 = vld [vmem:[%s12257_s16 + $0x48] sm:$0xff] (!%p10832_p2)  }
 0x5a1   : > { %v14388_v33 = vpop.xlane.xlu1 %6500  ;;  %v14390_v35 = vpop.xlane.xlu0 %6452  ;;  %v10989_v17 = vld [vmem:[%s12257_s16 + $0x8] sm:$0xff] (!%p10832_p2)  }
 0x5a2   : > { %v7021_v32 = vmul.f32 0.020408163, %v14388_v33  ;;  %v7005_v16 = vmul.f32 0.020408163, %v14390_v35  ;;  %v10073_v61 = vsel %vm7613_vm10, %v10072_v22, %v10068_v19  ;;  %v10988_v19 = vld [vmem:[%s12257_s16 + $0xc8] sm:$0xff] (!%p10832_p2)   ;;  %v10997_v22 = vld [vmem:[%s12257_s16 + $0x18] sm:$0xff] (!%p10832_p2)  }
 0x5a4   : > { %v10077_v28 = vrot.slane %v7021_v32, %v12489_v39  ;;  %v10990_v32 = vld [vmem:[%s12257_s16 + $0x88] sm:$0xff] (!%p10832_p2)  }
 0x5a5   : > { %v6456_v18 = vpop.xlane.xlu1 %6455  ;;  %v6408_v54 = vpop.xlane.xlu0 %6407 }
 0x5a6   : > { %v6990_v10 = vmul.f32 0.020408163, %v6408_v54  ;;  %v9919_v54 = vrot.slane %v6989_v24, %v12489_v39  ;;  %v7006_v13 = vmul.f32 0.020408163, %v6456_v18  ;;  %v9998_v18 = vrot.slane %v7005_v16, %v12489_v39  ;;  %v10995_v16 = vld [vmem:[%s12257_s16 + $0x58] sm:$0xff] (!%p10832_p2)  }
 0x5a7   : > { %v10078_v39 = vsel %vm14679_vm5, %v10077_v28, %v10073_v61  ;;  %v11006_v28 = vld [vmem:[%s12257_s16 + $0xa8] sm:$0xff] (!%p10832_p2)  }
 0x5a8   : > { %v9924_v23 = vrot.slane %v6990_v10, %v12511_v62  ;;  %v9920_v44 = vsel %vm14678_vm4, %v9919_v54, %v9915_v27  ;;  %v10003_v30 = vrot.slane %v7006_v13, %v12511_v62  ;;  %v10994_v54 = vld [vmem:[%s12257_s16 + $0x90] sm:$0xff] (!%p10832_p2)   ;;  %v10998_v13 = vld [vmem:[%s12257_s16 + $0x98] sm:$0xff] (!%p10832_p2)   ;;  %v11005_v27 = vld [vmem:[%s12257_s16 + $0x28] sm:$0xff] (!%p10832_p2)  }
 0x5a9   : > { %v6411_v59 = vpop.xlane.xlu1 %6410  ;;  %v6504_v60 = vpop.xlane.xlu0 %6503 }
 0x5aa   : > { %v6991_v56 = vmul.f32 0.020408163, %v6411_v59  ;;  %v7022_v52 = vmul.f32 0.020408163, %v6504_v60  ;;  %v9925_v63 = vsel %vm7627_vm12, %v9924_v23, %v9920_v44  ;;  %v10999_v23 = vld [vmem:[%s12257_s16 + $0x60] sm:$0xff] (!%p10832_p2)   ;;  %v11011_v44 = vld [vmem:[%s12257_s16 + $0x78] sm:$0xff] (!%p10832_p2)  }
 0x5ac   : > { %v9929_v25 = vrot.slane %v6991_v56, %v12505_v58  ;;  %v10082_v50 = vrot.slane %v7022_v52, %v12511_v62  ;;  %v9999_v62 = vsel %vm14680_vm6, %v9998_v18, %v9994_v57  ;;  %v10984_v56 = vld [vmem:[%s12257_s16 + $0xc0] sm:$0xff] (!%p10832_p2)   ;;  %v11012_v18 = vld [vmem:[%s12257_s16 + $0xf8] sm:$0xff] (!%p10832_p2)  }
 0x5ad   : > { %v6507_v46 = vpop.xlane.xlu1 %6506  ;;  %v6459_v1 = vpop.xlane.xlu0 %6458  ;;  %v10004_v48 = vsel %vm7627_vm12, %v10003_v30, %v9999_v62  ;;  %10894 = vmatprep.subr.bf16.mxu1 (!%p10832_p2), %v10984_v56  ;;  %v11000_v52 = vld [vmem:[%s12257_s16 + $0xe0] sm:$0xff] (!%p10832_p2)  }
 0x5ae   : > { %v7023_v33 = vmul.f32 0.020408163, %v6507_v46  ;;  %v7007_v26 = vmul.f32 0.020408163, %v6459_v1  ;;  %v9930_v37 = vsel %vm7634_vm13, %v9929_v25, %v9925_v63  ;;  %v10083_v42 = vsel %vm7627_vm12, %v10082_v50, %v10078_v39  ;;  %v11001_v57 = vld [vmem:[%s12257_s16 + $0x20] sm:$0xff] (!%p10832_p2)  }
 0x5af   : > { %v11002_v25 = vld [vmem:[%s12257_s16 + $0xa0] sm:$0xff] (!%p10832_p2)  }
 0x5b0   : > { %v10087_v4 = vrot.slane %v7023_v33, %v12505_v58  ;;  %v10008_v5 = vrot.slane %v7007_v26, %v12505_v58  ;;  %v11003_v33 = vld [vmem:[%s12257_s16 + $0x68] sm:$0xff] (!%p10832_p2)  }
 0x5b1   : > { %v6462_v31 = vpop.xlane.xlu1 %6461  ;;  %v6414_v41 = vpop.xlane.xlu0 %6413  ;;  %v11004_v26 = vld [vmem:[%s12257_s16 + $0xe8] sm:$0xff] (!%p10832_p2)  }
 0x5b2   : > { %v6992_v55 = vmul.f32 0.020408163, %v6414_v41  ;;  %v7008_v59 = vmul.f32 0.020408163, %v6462_v31  ;;  %v10088_v24 = vsel %vm7634_vm13, %v10087_v4, %v10083_v42  ;;  %v10991_v31 = vld [vmem:[%s12257_s16 + $0x50] sm:$0xff] (!%p10832_p2)  }
 0x5b3   : > { %v10992_v41 = vld [vmem:[%s12257_s16 + $0xd0] sm:$0xff] (!%p10832_p2)  }
 0x5b4   : > { %v9934_v35 = vrot.slane %v6992_v55, %v12526_v14  ;;  %v10013_v43 = vrot.slane %v7008_v59, %v12526_v14  ;;  %v10996_v55 = vld [vmem:[%s12257_s16 + $0xd8] sm:$0xff] (!%p10832_p2)   ;;  %v11007_v59 = vld [vmem:[%s12257_s16 + $0x70] sm:$0xff] (!%p10832_p2)  }
 0x5b5   : > { %v6417_v47 = vpop.xlane.xlu1 %6416  ;;  %v6510_v29 = vpop.xlane.xlu0 %6509 }
 0x5b6   : > { %v6993_v60 = vmul.f32 0.020408163, %v6417_v47  ;;  %v7024_v3 = vmul.f32 0.020408163, %v6510_v29  ;;  %v9935_v2 = vsel %vm7641_vm14, %v9934_v35, %v9930_v37  ;;  %v11008_v35 = vld [vmem:[%s12257_s16 + $0xf0] sm:$0xff] (!%p10832_p2)  }
 0x5b7   : > { %v11009_v47 = vld [vmem:[%s12257_s16 + $0x30] sm:$0xff] (!%p10832_p2)  }
 0x5b8   : > { %v9939_v38 = vrot.slane %v6993_v60, %v12521_v12  ;;  %v10092_v6 = vrot.slane %v7024_v3, %v12526_v14  ;;  %v10009_v14 = vsel %vm7634_vm13, %v10008_v5, %v10004_v48  ;;  %v11010_v29 = vld [vmem:[%s12257_s16 + $0xb0] sm:$0xff] (!%p10832_p2)   ;;  %v11013_v60 = vld [vmem:[%s12257_s16 + $0x38] sm:$0xff] (!%p10832_p2)  }
 0x5b9   : > { %v6513_v45 = vpop.xlane.xlu1 %6512  ;;  %v6465_v36 = vpop.xlane.xlu0 %6464  ;;  %v10014_v9 = vsel %vm7641_vm14, %v10013_v43, %v10009_v14  ;;  %v11014_v3 = vld [vmem:[%s12257_s16 + $0xb8] sm:$0xff] (!%p10832_p2)  }
 0x5ba   : > { %v9940_v46 = vsel %vm7648_vm15, %v9939_v38, %v9935_v2  ;;  %v7025_v1 = vmul.f32 0.020408163, %v6513_v45  ;;  %v7009_v58 = vmul.f32 0.020408163, %v6465_v36  ;;  %v10093_v10 = vsel %vm7641_vm14, %v10092_v6, %v10088_v24  ;;  %10150 = sbr.rel (%p10832_p2) target bundleno = 1774 (0x6ee), region = 100 }
 0x5bb   : > { %v10119_v51 = vsel %vm10111_vm9, %v9940_v46, %v14213_v49 }
 0x5bc   : > { %10144 = vst [vmem:[%s14362_s8 + $0x8] sm:$0xff] %v10119_v51  ;;  %v10097_v7 = vrot.slane %v7025_v1, %v12521_v12  ;;  %v10018_v53 = vrot.slane %v7009_v58, %v12521_v12  ;;  %v10983_v12 = vld [vmem:[%s12257_s16 + $0x40] sm:$0xff] (!%p10832_p2)  }
 0x5bd   : > { %10872 = vmatprep.subr.bf16.mxu0 (!%p10832_p2), %v10983_v12 }
 0x5be   : > { %v10098_v15 = vsel %vm7648_vm15, %v10097_v7, %v10093_v10  ;;  %v10019_v8 = vsel %vm7648_vm15, %v10018_v53, %v10014_v9 }
 0x5bf   : > { %v10133_v49 = vsel %vm10111_vm9, %v10098_v15, %v14323_v40  ;;  %v10126_v11 = vsel %vm10111_vm9, %v10019_v8, %v14280_v0  ;;  %v10985_v40 = vld [vmem:[%s12257_s16] sm:$0xff] (!%p10832_p2)  }
 0x5c0   : > { %10146 = vst [vmem:[%s14362_s8 + $0x18] sm:$0xff] %v10133_v49  ;;  %10145 = vst [vmem:[%s14362_s8 + $0x10] sm:$0xff] %v10126_v11  ;;  %v10986_v0 = vld [vmem:[%s12257_s16 + $0x80] sm:$0xff] (!%p10832_p2)   ;;  %10873 = vmatpush3.bf16.msra.mxu0 (!%p10832_p2), %v10985_v40 }
 0x5c1   : > { %10895 = vmatpush3.bf16.msra.mxu1 %v10986_v0  ;;  %10874 = vmatprep.subr.bf16.mxu0 %v10987_v34 }
 0x5c2   : > { %10896 = vmatprep.subr.bf16.mxu1 %v10988_v19 }
 0x5c4   : > { %10875 = vmatpush3.bf16.msra.mxu0 %v10989_v17 }
 0x5c5   : > { %10897 = vmatpush3.bf16.msra.mxu1 %v10990_v32  ;;  %10876 = vmatprep.subr.bf16.mxu0 %v10991_v31 }
 0x5c6   : > { %10898 = vmatprep.subr.bf16.mxu1 %v10992_v41 }
 0x5c7   : > { %v10151_v61 = vld [vmem:[#allocation2] sm:$0xff]  ;;  %v10152_v30 = vld [vmem:[#allocation2 + $0x8] sm:$0xff]  ;;  %v10153_v63 = vld [vmem:[#allocation2 + $0x10] sm:$0xff] }
 0x5c8   : > { %10877 = vmatpush3.bf16.msra.mxu0 %v10993_v20  ;;  %v10154_v50 = vld [vmem:[#allocation2 + $0x18] sm:$0xff]  ;;  %v10155_v37 = vld [vmem:[#allocation2 + $0x20] sm:$0xff]  ;;  %v10156_v4 = vld [vmem:[#allocation2 + $0x28] sm:$0xff] }
 0x5c9   : > { %10899 = vmatpush3.bf16.msra.mxu1 %v10994_v54  ;;  %10878 = vmatprep.subr.bf16.mxu0 %v10995_v16  ;;  %v10157_v5 = vld [vmem:[#allocation2 + $0x30] sm:$0xff]  ;;  %v10158_v38 = vld [vmem:[#allocation2 + $0x38] sm:$0xff]  ;;  %v10159_v39 = vadd.f32 %v10155_v37, %v10151_v61  ;;  %v10166_v43 = vadd.f32 %v10156_v4, %v10152_v30 }
 0x5ca   : > { %10900 = vmatprep.subr.bf16.mxu1 %v10996_v55  ;;  %v10173_v2 = vadd.f32 %v10157_v5, %v10153_v63  ;;  %v10180_v6 = vadd.f32 %v10158_v38, %v10154_v50 }
 0x5cb   : > { %v10160_v45 = vrot.slane %v10159_v39, 4  ;;  %v10167_v36 = vrot.slane %v10166_v43, 4 }
 0x5cc   : > { %10879 = vmatpush3.bf16.msra.mxu0 %v10997_v22  ;;  %v10174_v62 = vrot.slane %v10173_v2, 4  ;;  %v10181_v46 = vrot.slane %v10180_v6, 4 }
 0x5cd   : > { %10901 = vmatpush3.bf16.msra.mxu1 %v10998_v13  ;;  %10880 = vmatprep.subr.bf16.mxu0 %v10999_v23  ;;  %v10161_v1 = vadd.f32 %v10160_v45, %v10159_v39  ;;  %v10168_v58 = vadd.f32 %v10167_v36, %v10166_v43 }
 0x5ce   : > { %10902 = vmatprep.subr.bf16.mxu1 %v11000_v52  ;;  %v10175_v48 = vadd.f32 %v10174_v62, %v10173_v2  ;;  %v10182_v42 = vadd.f32 %v10181_v46, %v10180_v6 }
 0x5cf   : > { %v10162_v51 = vrot.slane %v10161_v1, 2  ;;  %v10169_v24 = vrot.slane %v10168_v58, 2 }
 0x5d0   : > { %10881 = vmatpush3.bf16.msra.mxu0 %v11001_v57  ;;  %v10176_v14 = vrot.slane %v10175_v48, 2  ;;  %v10183_v7 = vrot.slane %v10182_v42, 2 }
 0x5d1   : > { %10903 = vmatpush3.bf16.msra.mxu1 %v11002_v25  ;;  %10882 = vmatprep.subr.bf16.mxu0 %v11003_v33  ;;  %v10163_v53 = vadd.f32 %v10162_v51, %v10161_v1  ;;  %v10170_v9 = vadd.f32 %v10169_v24, %v10168_v58 }
 0x5d2   : > { %10904 = vmatprep.subr.bf16.mxu1 %v11004_v26  ;;  %v10177_v10 = vadd.f32 %v10176_v14, %v10175_v48  ;;  %v10184_v15 = vadd.f32 %v10183_v7, %v10182_v42 }
 0x5d3   : > { %v10164_v8 = vrot.slane %v10163_v53, 1  ;;  %v10171_v49 = vrot.slane %v10170_v9, 1 }
 0x5d4   : > { %10883 = vmatpush3.bf16.msra.mxu0 %v11005_v27  ;;  %v10178_v11 = vrot.slane %v10177_v10, 1  ;;  %v10185_v12 = vrot.slane %v10184_v15, 1 }
 0x5d5   : > { %10905 = vmatpush3.bf16.msra.mxu1 %v11006_v28  ;;  %10884 = vmatprep.subr.bf16.mxu0 %v11007_v59  ;;  %v10165_v56 = vadd.f32 %v10164_v8, %v10163_v53  ;;  %v10172_v40 = vadd.f32 %v10171_v49, %v10170_v9  ;;  %v11114_v49 = vmov 1966171168  }
 0x5d6   : > { %10906 = vmatprep.subr.bf16.mxu1 %v11008_v35  ;;  %v10179_v0 = vadd.f32 %v10178_v11, %v10177_v10  ;;  %v10186_v34 = vadd.f32 %v10185_v12, %v10184_v15  ;;  %v10255_v11 = vunpack.c.l.s4 %v11114_v49 }
 0x5d7   : > { %v10187_v19 = vmul.f32 0.0625, %v10165_v56  ;;  %v10188_v17 = vmul.f32 0.0625, %v10172_v40 }
 0x5d8   : > { %10885 = vmatpush3.bf16.msra.mxu0 %v11009_v47  ;;  %v10189_v32 = vmul.f32 0.0625, %v10179_v0  ;;  %v10190_v31 = vmul.f32 0.0625, %v10186_v34  ;;  %v10256_v12 = vunpack.c.0.s8 %v10255_v11 }
 0x5d9   : > { %10907 = vmatpush3.bf16.msra.mxu1 %v11010_v29  ;;  %10886 = vmatprep.subr.bf16.mxu0 %v11011_v44  ;;  %v14516_v41 = vsub.f32 %v10151_v61, %v10187_v19  ;;  %v14518_v20 = vsub.f32 %v10152_v30, %v10188_v17  ;;  %v14520_v54 = vsub.f32 %v10155_v37, %v10187_v19 }
 0x5da   : > { %10908 = vmatprep.subr.bf16.mxu1 %v11012_v18  ;;  %v14522_v16 = vsub.f32 %v10156_v4, %v10188_v17  ;;  %v14524_v55 = vsub.f32 %v10153_v63, %v10189_v32  ;;  %v14526_v22 = vsub.f32 %v10154_v50, %v10190_v31  ;;  %v14528_v13 = vsub.f32 %v10157_v5, %v10189_v32 }
 0x5db   : > { %v14530_v23 = vsub.f32 %v10158_v38, %v10190_v31  ;;  %v10199_v52 = vmul.f32 %v14516_v41, %v14516_v41  ;;  %v10200_v57 = vmul.f32 %v14518_v20, %v14518_v20  ;;  %v10203_v25 = vmul.f32 %v14520_v54, %v14520_v54 }
 0x5dc   : > { %10887 = vmatpush3.bf16.msra.mxu0 %v11013_v60  ;;  %v10204_v33 = vmul.f32 %v14522_v16, %v14522_v16  ;;  %v10201_v26 = vmul.f32 %v14524_v55, %v14524_v55  ;;  %v10202_v27 = vmul.f32 %v14526_v22, %v14526_v22  ;;  %v10205_v28 = vmul.f32 %v14528_v13, %v14528_v13 }
 0x5dd   : > { %10909 = vmatpush3.bf16.msra.mxu1 %v11014_v3  ;;  %v10206_v59 = vmul.f32 %v14530_v23, %v14530_v23  ;;  %v10207_v35 = vadd.f32 %v10203_v25, %v10199_v52  ;;  %v10259_v40 = vsub.s32 %v10256_v12, %v12409_v21  ;;  %v10239_v25 = vld [vmem:[%s4443_s10] sm:$0xf] }
 0x5de   : > { %v10214_v47 = vadd.f32 %v10204_v33, %v10200_v57  ;;  %v10221_v29 = vadd.f32 %v10205_v28, %v10201_v26  ;;  %v10285_v33 = vsub.s32 1, %v12409_v21  ;;  %v10293_v28 = vsub.s32 3, %v12409_v21 }
 0x5df   : > { %v10228_v44 = vadd.f32 %v10206_v59, %v10202_v27  ;;  %v10208_v18 = vrot.slane %v10207_v35, 4  ;;  %v10307_v27 = vld [vmem:[%s4448_s13] sm:$0xf]  ;;  %v10281_v59 = vsub.s32 0, %v12409_v21 }
 0x5e0   : > { %v10215_v60 = vrot.slane %v10214_v47, 4  ;;  %v10222_v3 = vrot.slane %v10221_v29, 4 }
 0x5e1   : > { %v10229_v61 = vrot.slane %v10228_v44, 4  ;;  %v10209_v30 = vadd.f32 %v10208_v18, %v10207_v35  ;;  %v10289_v35 = vsub.s32 2, %v12409_v21 }
 0x5e2   : > { %v10216_v63 = vadd.f32 %v10215_v60, %v10214_v47  ;;  %v10223_v50 = vadd.f32 %v10222_v3, %v10221_v29  ;;  %v10316_v29 = vrot.slane %v10307_v27, %v10285_v33 }
 0x5e3   : > { %v10230_v37 = vadd.f32 %v10229_v61, %v10228_v44  ;;  %v10210_v4 = vrot.slane %v10209_v30, 2  ;;  %v10324_v44 = vrot.slane %v10307_v27, %v10293_v28 }
 0x5e4   : > { %v10217_v5 = vrot.slane %v10216_v63, 2  ;;  %v10224_v38 = vrot.slane %v10223_v50, 2 }
 0x5e5   : > { %v10231_v39 = vrot.slane %v10230_v37, 2  ;;  %v10211_v43 = vadd.f32 %v10210_v4, %v10209_v30  ;;  %v10312_v30 = vrot.slane %v10307_v27, %v10281_v59 }
 0x5e6   : > { %v10218_v2 = vadd.f32 %v10217_v5, %v10216_v63  ;;  %v10225_v6 = vadd.f32 %v10224_v38, %v10223_v50  ;;  %v10320_v63 = vrot.slane %v10307_v27, %v10289_v35 }
 0x5e7   : > { %v10232_v45 = vadd.f32 %v10231_v39, %v10230_v37  ;;  %v10212_v36 = vrot.slane %v10211_v43, 1 }
 0x5e8   : > { %v10219_v62 = vrot.slane %v10218_v2, 1  ;;  %v10226_v46 = vrot.slane %v10225_v6, 1 }
 0x5e9   : > { %v10233_v1 = vrot.slane %v10232_v45, 1  ;;  %v10213_v58 = vadd.f32 %v10212_v36, %v10211_v43 }
 0x5ea   : > { %v10220_v48 = vadd.f32 %v10219_v62, %v10218_v2  ;;  %v10227_v42 = vadd.f32 %v10226_v46, %v10225_v6 }
 0x5eb   : > { %v10234_v51 = vadd.f32 %v10233_v1, %v10232_v45  ;;  %v10235_v24 = vmul.f32 0.0625, %v10213_v58 }
 0x5ec   : > { %v10236_v14 = vmul.f32 0.0625, %v10220_v48  ;;  %v10237_v7 = vmul.f32 0.0625, %v10227_v42 }
 0x5ed   : > { %v10238_v53 = vmul.f32 0.0625, %v10234_v51  ;;  %v10240_v9 = vadd.f32 1e-05, %v10235_v24 }
 0x5ee   : > { %v10241_v10 = vadd.f32 1e-05, %v10236_v14  ;;  %v10242_v15 = vadd.f32 1e-05, %v10237_v7  ;;  %v10337_v14 = vld [vmem:[#allocation3] sm:$0xff] }
 0x5ef   : > { %v10243_v8 = vadd.f32 1e-05, %v10238_v53  ;;  %11015 = vrsqrt.f32 %v10240_v9 }
 0x5f0   : > { %11017 = vrsqrt.f32 %v10241_v10 }
 0x5f1   : > { %11019 = vrsqrt.f32 %v10242_v15 }
 0x5f2   : > { %11021 = vrsqrt.f32 %v10243_v8  ;;  %v10338_v8 = vld [vmem:[#allocation3 + $0x8] sm:$0xff] }
 0x5f9   : > { %v11016_v56 = vpop.eup %11015 }
 0x5fa   : > { %v11018_v0 = vpop.eup %11017 }
 0x5fb   : > { %v11020_v34 = vpop.eup %11019  ;;  %v10252_v19 = vcombine.low %v11016_v56, %v11018_v0 }
 0x5fc   : > { %v11022_v17 = vpop.eup %11021 }
 0x5fd   : > { %v10253_v32 = vcombine.low %v11020_v34, %v11022_v17  ;;  %v10260_v31 = vrot.slane %v10252_v19, %v10259_v40 }
 0x5ff   : > { %v10267_v52 = vrot.slane %v10253_v32, %v10259_v40 }
 0x601   : > { %v10268_v57 = vcombine.low %v10260_v31, %v10267_v52 }
 0x603   : > { %v10275_v26 = vrot.slane %v10268_v57, %v10259_v40 }
 0x605   : > { %v10277_v47 = vmul.f32 %v10275_v26, %v10239_v25 }
 0x607   : > { %v10286_v18 = vrot.slane %v10277_v47, %v10285_v33  ;;  %v10294_v60 = vrot.slane %v10277_v47, %v10293_v28  ;;  %v10282_v3 = vrot.slane %v10277_v47, %v10281_v59  ;;  %v10290_v61 = vrot.slane %v10277_v47, %v10289_v35 }
 0x609   : > { %v10300_v50 = vmul.f32 %v10286_v18, %v14518_v20  ;;  %v10304_v37 = vmul.f32 %v10286_v18, %v14522_v16  ;;  %v10302_v4 = vmul.f32 %v10294_v60, %v14526_v22  ;;  %v10306_v5 = vmul.f32 %v10294_v60, %v14530_v23 }
 0x60a   : > { %v10299_v38 = vmul.f32 %v10282_v3, %v14516_v41  ;;  %v10303_v21 = vmul.f32 %v10282_v3, %v14520_v54  ;;  %v10301_v39 = vmul.f32 %v10290_v61, %v14524_v55  ;;  %v10305_v43 = vmul.f32 %v10290_v61, %v14528_v13 }
 0x60b   : > { %v10330_v2 = vadd.f32 %v10316_v29, %v10300_v50  ;;  %v10334_v6 = vadd.f32 %v10316_v29, %v10304_v37  ;;  %v10332_v45 = vadd.f32 %v10324_v44, %v10302_v4  ;;  %v10336_v36 = vadd.f32 %v10324_v44, %v10306_v5 }
 0x60c   : > { %v10329_v62 = vadd.f32 %v10312_v30, %v10299_v38  ;;  %v10333_v20 = vadd.f32 %v10312_v30, %v10303_v21  ;;  %v10331_v46 = vadd.f32 %v10320_v63, %v10301_v39  ;;  %v10335_v16 = vadd.f32 %v10320_v63, %v10305_v43 }
 0x60d   : > { %v10340_v1 = vpack.c.bf16 %v10334_v6, %v10330_v2  ;;  %v10342_v22 = vpack.c.bf16 %v10336_v36, %v10332_v45 }
 0x60e   : > { %v10339_v58 = vpack.c.bf16 %v10333_v20, %v10329_v62  ;;  %v10341_v23 = vpack.c.bf16 %v10335_v16, %v10331_v46 }
 0x60f   : > { %10631 = vmatprep.mubr.bf16.mxu0 %v10340_v1  ;;  %10672 = vmatprep.mubr.bf16.mxu1 %v10342_v22 }
 0x610   : > { %10632 = vmatmul.mubr.bf16.vlgmr.msra.gmra.mrb[0].mxu0 %v10339_v58  ;;  %10673 = vmatmul.mubr.bf16.vlgmr.msra.gmra.mrb[0].mxu1 %v10341_v23 }
 0x6e3   : > { %v10888_v41 = vpop.f32.mrb[0].mxu0  ;;  %v10910_v54 = vpop.f32.mrb[0].mxu1 }
 0x6e4   : > { %v10889_v55 = vpop.f32.mrb[1].mxu0  ;;  %v10911_v13 = vpop.f32.mrb[1].mxu1 }
 0x6e5   : > { %v10890_v48 = vadd.f32 %v10889_v55, %v10888_v41  ;;  %v10912_v42 = vadd.f32 %v10911_v13, %v10910_v54  ;;  %v10891_v51 = vpop.f32.mrb[2].mxu0  ;;  %v10913_v24 = vpop.f32.mrb[2].mxu1 }
 0x6e6   : > { %v10892_v7 = vpop.f32.mrb[3].mxu0  ;;  %v10914_v53 = vpop.f32.mrb[3].mxu1 }
 0x6e7   : > { %v10675_v9 = vadd.f32 %v10912_v42, %v10890_v48  ;;  %v10893_v10 = vadd.f32 %v10892_v7, %v10891_v51  ;;  %v10915_v15 = vadd.f32 %v10914_v53, %v10913_v24 }
 0x6e9   : > { %v10681_v49 = vadd.f32 %v10675_v9, %v10337_v14  ;;  %v10678_v11 = vadd.f32 %v10915_v15, %v10893_v10 }
 0x6eb   : > { %10683 = vst [vmem:[#allocation3] sm:$0xff] %v10681_v49  ;;  %v10682_v12 = vadd.f32 %v10678_v11, %v10338_v8 }
 0x6ed   : > { %10684 = vst [vmem:[#allocation3 + $0x8] sm:$0xff] %v10682_v12 }
 0x6ee PF: > { %p10685_p3 = scmp.eq.s32.totalorder %s11099_s21, 3 }
 0x6f0   : > { %p10686_p4 = pnand %p10685_p3, %p10147_p1 }
 0x6f1   : > { %v10865_v40 = vld [vmem:[%s14630_s4] ss:$0 sm:$0xff] (!%p10686_p4) }
 0x6f2   : > { %10689 = sbr.rel (%p10686_p4) target bundleno = 1795 (0x703), region = 104  ;;  %v10690_v56 = vld [vmem:[#allocation3] sm:$0xff] (!%p10686_p4) }
 0x6f3   : > { %v10699_v34 = vadd.f32 (!%p10686_p4), %v10865_v40, %v10690_v56 }
 0x6f4   : > { %v10691_v0 = vld [vmem:[#allocation3 + $0x8] sm:$0xff] (!%p10686_p4) }
 0x6f5   : > { %v10700_v19 = vadd.f32 (!%p10686_p4), %v10865_v40, %v10691_v0  ;;  %11023 = vtanh.f32 (!%p10686_p4), %v10699_v34 }
 0x6f7   : > { %11025 = vtanh.f32 (!%p10686_p4), %v10700_v19 }
 0x6ff   : > { %v11024_v17 = vpop.eup %11023 }
 0x700   : > { %10703 = vst [vmem:[#allocation5] sm:$0xff] %v11024_v17 }
 0x701   : > { %v11026_v32 = vpop.eup %11025 }
 0x702   : > { %10704 = vst [vmem:[#allocation5 + $0x8] sm:$0xff] %v11026_v32 }
 0x703 PF: > { %p14579_p5 = scmp.eq.s32.totalorder %s10815_s25, 7  ;;  %s11115_s21 = smov [#allocation5]  }
 0x704   : > { %s10711_s13 = sshll.u32 %s11115_s21, 4  ;;  %s10712_s13 = int_to_ptr.vmem [resolvable:$true] %s10711_s13 }
 0x705   : > { %s11027_s14 = scalar_lea.vmem %s10712_s13, 256  ;;  %p11034_p9 = scmp.lt.s32.totalorder %s10712_s13, %s10712_s13 }
 0x706   : > { %p11028_p6 = scmp.ne.s32.totalorder %s10712_s13, %s11027_s14  ;;  %p11035_p10 = scmp.lt.s32.totalorder %s11027_s14, %s11027_s14 }
 0x708   : > { %p11029_p7 = pnand %p11028_p6, %p14579_p5  ;;  %p11036_p11 = por %p11035_p10, %p11034_p9 }
 0x70a   : > { %p11030_p8 = pneg %p11029_p7 }
 0x70c   : > { %p11037_p12 = pnand %p11036_p11, %p11030_p8 }
 0x70e   : > { %11040 = shalt.err (!%p11037_p12)
}
 0x70f   : > { %s11041_s25 = scalar_lea.hbm %s14631_s5, 256 }
 0x710   : > { %p11042_p13 = scmp.ne.s32.totalorder %s14631_s5, %s11041_s25  ;;  %p11047_p2 = scmp.lt.u32.totalorder %s11041_s25, %s14631_s5 }
 0x712   : > { %p11043_p0 = pnand %p11042_p13, %p14579_p5 }
 0x714   : > { %p11044_p1 = pneg %p11043_p0 }
 0x716   : > { %p11049_p3 = pnand %p11047_p2, %p11044_p1 }
 0x718   : > { %11052 = shalt.err (!%p11049_p3)
}
 0x719   : > { %s11116_s8 = smov 128   ;;  %s11117_s9 = smov 8  }
 0x71a   : > { %10917 = dma.vmem_to_hbm [thread:$0]  (%p14579_p5), %s10712_s13, 256, %s14631_s5, [#allocation6], %s11116_s8, %s11116_s8, %s11117_s9  }
 0x71b   : > { %11082 = dma.done.wait (%p14579_p5), [#allocation6], 256  }
 0x71c   : > { %11084 = vsyncadd (%p14579_p5), [#allocation6], 4294967040 }
 0x71d PF: > { %s16_s24 = sadd.s32 1, %s11111_s24   ;;  %s14682_s18 = smov %s11091_s19 }
 0x71e   : > { %p13_p4 = scmp.ge.s32.totalorder %s16_s24, 10   ;;  %s14683_s19 = smov %s11200_s7 }
 0x71f   : > { %s14684_s20 = smov %s11103_s22  ;;  %s14685_s21 = smov %s11107_s23 }
 0x720   : > { %s14686_s22 = smov %s14689_s26  ;;  %s14687_s23 = smov %s14693_s27 }
 0x721   :  { %15 = sbr.rel (!%p13_p4) target bundleno = 4 (0x4), region = 152 }
 0x728   :  { %10727 = vsyncpa [#allocation6], 1 }
 0x729   :  { %10729 = vsyncpa [#allocation6 + $0x1], 1 }

</bundles_post_ra>
